<compile_context>
chip_gen: v6e
topology: v6e:2x2x1
jax: 0.10.0
libtpu: 0.0.40
codegen_flags: <defaults>
</compile_context>

<pallas_src>
import functools

import numpy as np
import jax
import jax.numpy as jnp
from jax import lax
from jax.experimental import pallas as pl
from jax.experimental.pallas import tpu as pltpu


# ----------------------------------------------------------------------------
# Plain-JAX symmetric-matrix helpers (glue; eigh-based)
# TODO(synk): eigh and cholesky have no Pallas TPU equivalent; kept in XLA.
# ----------------------------------------------------------------------------
def ensure_sym(x):
    return 0.5 * (x + jnp.swapaxes(x, -1, -2))


def _sym_fun(x, fn):
    w, v = jnp.linalg.eigh(x)
    return jnp.einsum('...ij,...j,...kj->...ik', v, fn(w), v)


sym_expm     = functools.partial(_sym_fun, fn=jnp.exp)
sym_logm     = functools.partial(_sym_fun, fn=jnp.log)
sym_sqrtm    = functools.partial(_sym_fun, fn=jnp.sqrt)
sym_invsqrtm = functools.partial(_sym_fun, fn=lambda w: 1.0 / jnp.sqrt(w))


def spd_barycenter(x, steps=1, dim=1):
    """Karcher-flow barycenter (matches manifolds.SymmetricPositiveDefinite)."""
    rm = jnp.mean(x, axis=dim, keepdims=True)
    for _ in range(steps):
        sq = sym_sqrtm(rm)
        isq = sym_invsqrtm(rm)
        xt = sym_logm(isq @ x @ isq)
        gt = jnp.mean(xt, axis=dim, keepdims=True)
        rm = sq @ sym_expm(gt) @ sq
    return rm


def lower_triangle_projection(c):
    """(C*C, D) matrix T s.t. flat_rowmajor(sym) @ T == lower_triangle(sym)
    (torch tril_indices order: row-major over (i, j<=i); off-diag * sqrt(2))."""
    d = c * (c + 1) // 2
    t = np.zeros((c * c, d), dtype=np.float32)
    p = 0
    for i in range(c):
        for j in range(i + 1):
            t[i * c + j, p] = np.float32(np.sqrt(2.0)) if i > j else np.float32(1.0)
            p += 1
    return jnp.asarray(t)


def _round_up(v, m):
    return ((v + m - 1) // m) * m


def _choose_num_blocks(n, s, cc, dp, vmem_budget_bytes=8 << 20):
    """Pick the grid length for kernel A.

    At least 2 steps when n >= 2 (the "parallel" axis then shards across the
    two v7x TensorCores), more only if VMEM pressure forces it; the result
    always divides n so every block is full."""
    per_batch = 8 * (s * cc + cc * dp + dp * dp)       # f32, double-buffered
    blocks = max(2 if n >= 2 else 1,
                 -(-(n * per_batch) // vmem_budget_bytes))
    blocks = min(blocks, n)
    while n % blocks:
        blocks += 1
    return blocks


# ----------------------------------------------------------------------------
# Pallas kernel A: (folded) lower-triangle projection + covariance + normalize
#   per batch b in the block:
#     V   = flat(M_b) @ P_comb_b          (S, DP)   [DP = round_up(D,128)]
#     cov = V^T V                          (DP, DP)
#     out = cov / trace(cov) + eps * I
#   The /(S-1) factors are dropped: they cancel exactly in cov/trace.
# ----------------------------------------------------------------------------
def _cov_kernel(xc_ref, p_ref, o_ref, *, eps):
    xc = xc_ref[...]                                        # (NB, S, C*C)
    pj = p_ref[...]                                         # (NB, C*C, DP)
    v = jnp.einsum('bsc,bcd->bsd', xc, pj,
                   preferred_element_type=jnp.float32)      # (NB, S, DP)
    cov = jnp.einsum('bsd,bse->bde', v, v,
                     preferred_element_type=jnp.float32)    # (NB, DP, DP)
    # trace(cov[b]) == sum(v[b]*v[b]); padded columns of pj are zero, so the
    # padded lanes contribute nothing (avoids a cross-lane diagonal gather).
    tr = jnp.sum(jnp.sum(v * v, axis=2, keepdims=True), axis=1, keepdims=True)
    inv_tr = pl.reciprocal(tr, approx=False)                # EUP, not VALU divide
    dp = cov.shape[-1]
    row = lax.broadcasted_iota(jnp.int32, (dp, dp), 0)
    col = lax.broadcasted_iota(jnp.int32, (dp, dp), 1)
    eye_eps = jnp.where(row == col, jnp.float32(eps), jnp.float32(0.0))
    o_ref[...] = cov * inv_tr + eye_eps[None]


def lower_tri_cov(m_flat, p_comb, *, eps=1e-5):
    n, s, cc = m_flat.shape
    _, _, dp = p_comb.shape
    num_blocks = _choose_num_blocks(n, s, cc, dp)
    nb = n // num_blocks
    return pl.pallas_call(
        functools.partial(_cov_kernel, eps=eps),
        out_shape=jax.ShapeDtypeStruct((n, dp, dp), jnp.float32),
        grid=(num_blocks,),
        in_specs=[pl.BlockSpec((nb, s, cc), lambda i: (i, 0, 0)),
                  pl.BlockSpec((nb, cc, dp), lambda i: (i, 0, 0))],
        out_specs=pl.BlockSpec((nb, dp, dp), lambda i: (i, 0, 0)),
        compiler_params=pltpu.CompilerParams(dimension_semantics=("parallel",)),
    )(m_flat, p_comb)


# ----------------------------------------------------------------------------
# Pallas kernel B: single lane-padded matmul  (N*dim, KP) @ (KP, KP)
# (replaces a per-batch matmul grid; the right operand is shared across the
#  batch, so the whole batch collapses into one MXU pass with lane-dense vst)
# ----------------------------------------------------------------------------
def _mm_kernel(a_ref, b_ref, o_ref):
    o_ref[...] = jnp.dot(a_ref[...], b_ref[...],
                         preferred_element_type=jnp.float32)


def matmul_lane_dense(a, b):
    m, kk = a.shape
    kk2, r = b.shape
    assert kk == kk2
    return pl.pallas_call(
        _mm_kernel,
        out_shape=jax.ShapeDtypeStruct((m, r), jnp.float32),
        grid=(1,),
        in_specs=[pl.BlockSpec((m, kk), lambda i: (0, 0)),
                  pl.BlockSpec((kk, r), lambda i: (0, 0))],
        out_specs=pl.BlockSpec((m, r), lambda i: (0, 0)),
        compiler_params=pltpu.CompilerParams(dimension_semantics=("arbitrary",)),
    )(a, b)


# ----------------------------------------------------------------------------
# Embedding_SPD.forward
# ----------------------------------------------------------------------------
def embedding_spd_forward(x, W, W_lw, k):
    n, t, v_, m, c, _ = x.shape
    s = t * v_ * m
    x = x.reshape(n, s, c, c).astype(jnp.float32)

    # --- XLA glue (eigh-based). TODO(synk): barycenter / pre-logm sandwiches
    # stay in XLA because they feed eigh, which has no Pallas equivalent. ----
    x_mean = spd_barycenter(x, steps=1, dim=1)                  # (N,1,C,C)
    w_pt = sym_expm(ensure_sym(W))                              # (C,C)

    sq = sym_sqrtm(x_mean)[:, 0]                                # (N,C,C)
    isq = sym_invsqrtm(x_mean)[:, 0]                            # (N,C,C)
    w_sq = sym_sqrtm(w_pt)                                      # (C,C)

    inner = isq[:, None] @ x @ isq[:, None]                     # (N,S,C,C)
    m_tan = sym_logm(inner)                                     # (N,S,C,C) eigh

    # x_center = A_n @ m_tan @ A_n^T,  A_n = w_sq @ isq_n @ sq_n
    # (logmap sandwich + transport-via-identity). Folded with the
    # lower-triangle projection:
    #   flat(x_center) @ proj == flat(m_tan) @ p_comb[n]
    d = c * (c + 1) // 2
    dp = _round_up(d, 128)                                      # lane-dense width
    proj = lower_triangle_projection(c)                         # (C*C, D)
    proj_pad = jnp.pad(proj, ((0, 0), (0, dp - d)))             # (C*C, DP)
    a_map = jnp.einsum('ij,njk,nkl->nil', w_sq, isq, sq)        # (N,C,C)
    proj4 = proj_pad.reshape(c, c, dp)
    p_comb = jnp.einsum('nij,nlk,ilp->njkp', a_map, a_map,
                        proj4).reshape(n, c * c, dp)            # (N,C*C,DP)

    # --- Pallas kernel A ----------------------------------------------------
    m_flat = m_tan.reshape(n, s, c * c)
    x_cov = lower_tri_cov(m_flat, p_comb)[:, :d, :d]            # (N,D,D)

    # TODO(synk): Cholesky has no Pallas equivalent; done in plain JAX.
    L = jnp.linalg.cholesky(x_cov)                              # (N,D,D)
    R = jnp.linalg.cholesky(sym_expm(ensure_sym(W_lw)))         # (dim,dim)

    dim = d + k
    if k == 0:
        blk = L
    else:
        mean_lt = sym_logm(x_mean).reshape(n, 1, c * c) @ proj  # (N,1,D)
        blk = jnp.zeros((n, dim, dim), jnp.float32)
        blk = blk.at[:, :d, :d].set(L)
        blk = blk.at[:, d:, :d].set(jnp.broadcast_to(mean_lt, (n, k, d)))
        blk = blk.at[:, d:, d:].set(
            jnp.broadcast_to(jnp.eye(k, dtype=jnp.float32), (n, k, k)))

    # --- Pallas kernel B: single lane-padded matmul  blk @ R ----------------
    kp = _round_up(dim, 128)
    a2d = jnp.pad(blk.reshape(n * dim, dim), ((0, 0), (0, kp - dim)))
    r2d = jnp.pad(R.astype(jnp.float32), ((0, kp - dim), (0, kp - dim)))
    out = matmul_lane_dense(a2d, r2d)[:, :dim]
    return out.reshape(n, dim, dim)


# ----------------------------------------------------------------------------
if __name__ == "__main__":
    key = jax.random.PRNGKey(0)

    # small shapes consistent with the module: x is (N, T, V, M, C, C) SPD
    N, T, V, M, C = 2, 8, 4, 2, 8          # S = T*V*M = 64
    k = 3
    D = C * (C + 1) // 2                   # 36
    dim = k + D                            # 39

    a = jax.random.normal(key, (N, T, V, M, C, C), dtype=jnp.float32)
    x = a @ jnp.swapaxes(a, -1, -2) + 0.5 * jnp.eye(C, dtype=jnp.float32)

    # deterministic parameter init per Embedding_SPD.__init__
    W = jnp.eye(C, dtype=jnp.float32)
    W_lw = jnp.eye(dim, dtype=jnp.float32)

    fwd = jax.jit(embedding_spd_forward, static_argnums=3)
    out = jax.block_until_ready(fwd(x, W, W_lw, k))

    assert out.shape == (N, dim, dim), out.shape
    assert bool(jnp.all(jnp.isfinite(out)))
    print("KERNEL_OK")
</pallas_src>

<mosaic_0001>
module attributes {stable_mosaic.version = 11 : i64} {
  func.func @_cov_kernel(%arg0: i32, %arg1: memref<1x64x64xf32, #tpu.memory_space<vmem>>, %arg2: memref<1x64x128xf32, #tpu.memory_space<vmem>>, %arg3: memref<1x128x128xf32, #tpu.memory_space<vmem>>) attributes {dimension_semantics = [#tpu.dimension_semantics<parallel>], iteration_bounds = array<i64: 2>, scalar_prefetch = 0 : i64, scratch_operands = 0 : i64, tpu.core_type = #tpu.core_type<tc>, window_params = [{transform_indices = @transform_0, window_bounds = array<i64: 1, 64, 64>}, {transform_indices = @transform_1, window_bounds = array<i64: 1, 64, 128>}, {transform_indices = @transform_2, window_bounds = array<i64: 1, 128, 128>}]} {
    %c0 = arith.constant 0 : index
    %c0_0 = arith.constant 0 : index
    %c0_1 = arith.constant 0 : index
    %0 = vector.load %arg1[%c0, %c0_0, %c0_1] : memref<1x64x64xf32, #tpu.memory_space<vmem>>, vector<1x64x64xf32>
    %c0_2 = arith.constant 0 : index
    %c0_3 = arith.constant 0 : index
    %c0_4 = arith.constant 0 : index
    %1 = vector.load %arg2[%c0_2, %c0_3, %c0_4] : memref<1x64x128xf32, #tpu.memory_space<vmem>>, vector<1x64x128xf32>
    "tpu.trace_start"() <{level = 10 : i32, message = "bsc,bcd->bsd"}> : () -> ()
    %cst = arith.constant dense<0.000000e+00> : vector<1x64x128xf32>
    %2 = tpu.matmul %0, %1, %cst {dimension_numbers = #tpu.dot_dimension_numbers<[2], [1], [1], [2], [0, 0, 0, 1, 1, 2], [0], [0]>} : vector<1x64x64xf32>, vector<1x64x128xf32>, vector<1x64x128xf32> -> vector<1x64x128xf32>
    "tpu.trace_stop"() : () -> ()
    "tpu.trace_start"() <{level = 10 : i32, message = "bsd,bse->bde"}> : () -> ()
    %cst_5 = arith.constant dense<0.000000e+00> : vector<1x128x128xf32>
    %3 = tpu.matmul %2, %2, %cst_5 {dimension_numbers = #tpu.dot_dimension_numbers<[1], [1], [2], [2], [0, 0, 0, 2, 1, 2], [0], [0]>} : vector<1x64x128xf32>, vector<1x64x128xf32>, vector<1x128x128xf32> -> vector<1x128x128xf32>
    "tpu.trace_stop"() : () -> ()
    %4 = arith.mulf %2, %2 : vector<1x64x128xf32>
    %cst_6 = arith.constant dense<0.000000e+00> : vector<1x64xf32>
    %5 = vector.multi_reduction <add>, %4, %cst_6 [2] : vector<1x64x128xf32> to vector<1x64xf32>
    %6 = vector.shape_cast %5 : vector<1x64xf32> to vector<1x64x1xf32>
    %cst_7 = arith.constant dense<0.000000e+00> : vector<1x1xf32>
    %7 = vector.multi_reduction <add>, %6, %cst_7 [1] : vector<1x64x1xf32> to vector<1x1xf32>
    %8 = vector.shape_cast %7 : vector<1x1xf32> to vector<1x1x1xf32>
    %9 = tpu.reciprocal %8 : vector<1x1x1xf32> -> vector<1x1x1xf32>
    %10 = tpu.iota {dimensions = array<i32: 0>} : vector<128x128xi32>
    %11 = tpu.iota {dimensions = array<i32: 1>} : vector<128x128xi32>
    %12 = arith.cmpi eq, %10, %11 : vector<128x128xi32>
    %cst_8 = arith.constant 9.99999974E-6 : f32
    %cst_9 = arith.constant 0.000000e+00 : f32
    %13 = vector.broadcast %cst_8 : f32 to vector<128x128xf32>
    %14 = vector.broadcast %cst_9 : f32 to vector<128x128xf32>
    %15 = arith.select %12, %13, %14 : vector<128x128xi1>, vector<128x128xf32>
    %16 = vector.broadcast %9 : vector<1x1x1xf32> to vector<1x128x128xf32>
    %17 = arith.mulf %3, %16 : vector<1x128x128xf32>
    %18 = vector.shape_cast %15 : vector<128x128xf32> to vector<1x128x128xf32>
    %19 = arith.addf %17, %18 : vector<1x128x128xf32>
    %c0_10 = arith.constant 0 : index
    %c0_11 = arith.constant 0 : index
    %c0_12 = arith.constant 0 : index
    %20 = vector.load %arg3[%c0_10, %c0_11, %c0_12] : memref<1x128x128xf32, #tpu.memory_space<vmem>>, vector<1x128x128xf32>
    tpu.vector_store %arg3[%c0_10, %c0_11, %c0_12], %19 {strides = array<i32>} : memref<1x128x128xf32, #tpu.memory_space<vmem>>, vector<1x128x128xf32>,
    return
  }
  func.func @transform_0(%arg0: i32) -> (i32, i32, i32) {
    %c0_i32 = arith.constant 0 : i32
    %c0_i32_0 = arith.constant 0 : i32
    %c0_i32_1 = arith.constant 0 : i32
    return %arg0, %c0_i32, %c0_i32_0 : i32, i32, i32
  }
  func.func @transform_1(%arg0: i32) -> (i32, i32, i32) {
    %c0_i32 = arith.constant 0 : i32
    %c0_i32_0 = arith.constant 0 : i32
    %c0_i32_1 = arith.constant 0 : i32
    return %arg0, %c0_i32, %c0_i32_0 : i32, i32, i32
  }
  func.func @transform_2(%arg0: i32) -> (i32, i32, i32) {
    %c0_i32 = arith.constant 0 : i32
    %c0_i32_0 = arith.constant 0 : i32
    %c0_i32_1 = arith.constant 0 : i32
    return %arg0, %c0_i32, %c0_i32_0 : i32, i32, i32
  }
}

module attributes {stable_mosaic.version = 11 : i64} {
  func.func @_mm_kernel(%arg0: i32, %arg1: memref<78x128xf32, #tpu.memory_space<vmem>>, %arg2: memref<128x128xf32, #tpu.memory_space<vmem>>, %arg3: memref<78x128xf32, #tpu.memory_space<vmem>>) attributes {dimension_semantics = [#tpu.dimension_semantics<arbitrary>], iteration_bounds = array<i64: 1>, scalar_prefetch = 0 : i64, scratch_operands = 0 : i64, tpu.core_type = #tpu.core_type<tc>, window_params = [{pipeline_mode = #tpu.pipeline_mode<synchronous>, transform_indices = @transform_0, window_bounds = array<i64: 78, 128>}, {pipeline_mode = #tpu.pipeline_mode<synchronous>, transform_indices = @transform_1, window_bounds = array<i64: 128, 128>}, {pipeline_mode = #tpu.pipeline_mode<synchronous>, transform_indices = @transform_2, window_bounds = array<i64: 78, 128>}]} {
    %c0 = arith.constant 0 : index
    %c0_0 = arith.constant 0 : index
    %0 = vector.load %arg1[%c0, %c0_0] : memref<78x128xf32, #tpu.memory_space<vmem>>, vector<78x128xf32>
    %c0_1 = arith.constant 0 : index
    %c0_2 = arith.constant 0 : index
    %1 = vector.load %arg2[%c0_1, %c0_2] : memref<128x128xf32, #tpu.memory_space<vmem>>, vector<128x128xf32>
    %cst = arith.constant dense<0.000000e+00> : vector<78x128xf32>
    %2 = tpu.matmul %0, %1, %cst {dimension_numbers = #tpu.dot_dimension_numbers<[1], [0], [0], [1], [0, 0, 1, 1], [], []>} : vector<78x128xf32>, vector<128x128xf32>, vector<78x128xf32> -> vector<78x128xf32>
    %c0_3 = arith.constant 0 : index
    %c0_4 = arith.constant 0 : index
    %3 = vector.load %arg3[%c0_3, %c0_4] : memref<78x128xf32, #tpu.memory_space<vmem>>, vector<78x128xf32>
    tpu.vector_store %arg3[%c0_3, %c0_4], %2 {strides = array<i32>} : memref<78x128xf32, #tpu.memory_space<vmem>>, vector<78x128xf32>,
    return
  }
  func.func @transform_0(%arg0: i32) -> (i32, i32) {
    %c0_i32 = arith.constant 0 : i32
    %c0_i32_0 = arith.constant 0 : i32
    %c0_i32_1 = arith.constant 0 : i32
    return %c0_i32, %c0_i32_0 : i32, i32
  }
  func.func @transform_1(%arg0: i32) -> (i32, i32) {
    %c0_i32 = arith.constant 0 : i32
    %c0_i32_0 = arith.constant 0 : i32
    %c0_i32_1 = arith.constant 0 : i32
    return %c0_i32, %c0_i32_0 : i32, i32
  }
  func.func @transform_2(%arg0: i32) -> (i32, i32) {
    %c0_i32 = arith.constant 0 : i32
    %c0_i32_0 = arith.constant 0 : i32
    %c0_i32_1 = arith.constant 0 : i32
    return %c0_i32, %c0_i32_0 : i32, i32
  }
}

</mosaic_0001>

<bundles_post_ra>
// kernel: custom-call.19
= control target key start
LH: loop header
LB: loop body
LE: loop exit
PB: predicated region body
PF: predicated region fallthrough
CT: control target
= control target key end

     0   :  { %s2136_s0 = inlined_call_operand.vmem [shape: f32[2,1,4,4], index: 0, kind: input, shape index: {}]   ;;  %s2137_s1 = inlined_call_operand.vmem [shape: f32[2,1,4,4], index: 1, kind: input, shape index: {}]   ;;  %s2138_s2 = inlined_call_operand.vmem [shape: f32[2,1,4,4], index: 2, kind: input, shape index: {}]   ;;  %s2139_s3 = inlined_call_operand.vmem [shape: f32[2,1,4,4], index: 3, kind: input, shape index: {}]   ;;  %s2140_s4 = inlined_call_operand.vmem [shape: f32[2,1,4], index: 4, kind: output, shape index: {0}]   ;;  %s2141_s5 = inlined_call_operand.vmem [shape: f32[2,1,4], index: 5, kind: output, shape index: {1}]   ;;  %s2142_s6 = inlined_call_operand.vmem [shape: f32[2,1,4,4], index: 6, kind: output, shape index: {2}]   ;;  %s2143_s7 = inlined_call_operand.vmem [shape: f32[2,1,4,4], index: 7, kind: output, shape index: {3}]   ;;  %s2144_s8 = inlined_call_operand.vmem [shape: f32[2,1,4,4], index: 8, kind: output, shape index: {4}]   ;;  %s2145_s9 = inlined_call_operand.vmem [shape: f32[2,1,4,4], index: 9, kind: output, shape index: {5}]  }
   0x1   :  { %2149 = sst [smem:[#allocation35_spill]] %s2136_s0 }
   0x2   :  { %2150 = sst [smem:[#allocation36_spill]] %s2137_s1 }
   0x3   :  { %s1795_s30 = smov 0   ;;  %s1797_s10 = smov 0  }
   0x4   :  { %s1799_s11 = smov 0   ;;  %s1801_s12 = smov 0  }
   0x5   :  { %s1803_s13 = smov 0  }
   0x6 LB: > { %2151 = sst [smem:[#allocation33_spill]] %s1728_s12  ;;  %s2146_s14 = sadd.s32 4294967295, %s1732_s13   ;;  %s1732_s13 = sphi %s1803_s13, %s16_s13   ;;  %s1728_s12 = sphi %s1801_s12, %s2167_s12   ;;  %s1724_s11 = sphi %s1799_s11, %s2166_s11   ;;  %s1720_s10 = sphi %s1797_s10, %s2169_s10   ;;  %s1716_s30 = sphi %s1795_s30, %s2168_s30  }
   0x7   : > { %s28_s15 = sadd.s32 1, %s1728_s12  ;;  %p49_p1 = scmp.ne.s32.totalorder %s1720_s10, %s1716_s30 }
   0x8   : > { %p30_p0 = scmp.ge.s32.totalorder %s28_s15, 2  ;;  %p50_p2 = scmp.eq.s32.totalorder %s2146_s14, 1 }
   0x9   : > { %s39_s18 = sadd.s32 1, %s1720_s10  ;;  %p1567_p5 = scmp.ge.s32.totalorder %s1732_s13, 2 }
   0xa   : > { %s2171_s15 = smov (%p30_p0, %s28_s15), 0  ;;  %p1828_p3 = por %p50_p2, %p49_p1 }
   0xb   : > { %2152 = sst [smem:[#allocation34_spill]] %s2171_s15  ;;  %s34_s17 = ssub.s32 %s1728_s12, %s2171_s15 }
   0xc   : > { %p37_p4 = scmp.eq.s32.totalorder %s34_s17, 0  ;;  %102 = sbr.rel (%p1567_p5) target bundleno = 25 (0x19), region = 16 }
   0xd   : > { %s104_s20 = sand.u32 (!%p1567_p5), 1, %s1732_s13   ;;  %s1569_s21 = sshll.u32 (!%p1567_p5), %s1728_s12, 2 }
   0xe   : > { %s1836_s19 = scalar_select %p37_p4, %s1720_s10, %s39_s18  }
   0xf   : > { %s1568_s22 = sshll.u32 (!%p1567_p5), %s104_s20, 2  ;;  %s2154_s0 = sld [smem:[#allocation35_spill]] (!%p1567_p5) }
  0x10   : > { %s106_s26 = scalar_lea.vmem (!%p1567_p5), [#allocation1], %s1568_s22  ;;  %s2155_s1 = sld [smem:[#allocation36_spill]] (!%p1567_p5) }
  0x11   : > { %s189_s14 = scalar_lea.vmem %s2138_s2, %s1569_s21  ;;  %s146_s15 = scalar_lea.vmem [#allocation3], %s1568_s22 }
  0x12   : > { %v206_v2 = vld [vmem:[%s189_s14] sm:$0xf]  ;;  %s229_s23 = scalar_lea.vmem %s2139_s3, %s1569_s21  ;;  %s186_s24 = scalar_lea.vmem [#allocation5], %s1568_s22 }
  0x13   : > { %207 = vst [vmem:[%s186_s24] sm:$0xf] %v206_v2  ;;  %v246_v3 = vld [vmem:[%s229_s23] sm:$0xf] }
  0x15   : > { %s109_s25 = scalar_lea.vmem %s2154_s0, %s1569_s21 }
  0x16   : > { %v126_v0 = vld [vmem:[%s109_s25] sm:$0xf]  ;;  %s149_s29 = scalar_lea.vmem %s2155_s1, %s1569_s21  ;;  %s226_s25 = scalar_lea.vmem [#allocation7], %s1568_s22 }
  0x17   : > { %127 = vst [vmem:[%s106_s26] sm:$0xf] %v126_v0  ;;  %v166_v1 = vld [vmem:[%s149_s29] sm:$0xf]  ;;  %247 = vst [vmem:[%s226_s25] sm:$0xf] %v246_v3 }
  0x18   : > { %167 = vst [vmem:[%s146_s15] sm:$0xf] %v166_v1 }
  0x19 PF: > { %p1576_p6 = scmp.ge.s32.totalorder %s1732_s13, 1  ;;  %p264_p7 = scmp.lt.s32.totalorder %s1732_s13, 3 }
  0x1b   : > { %p265_p8 = pnand %p1576_p6, %p264_p7 }
  0x1d   : > { %268 = sbr.rel (%p265_p8) target bundleno = 1002 (0x3ea), region = 140 }
  0x22   : > { %s2156_s26 = sadd.s32 4294967295, %s1732_s13   ;;  %s305_s15 = sand.u32 1, %s1716_s30   ;;  %v367_v4 = vlaneseq  ;;  %v1742_v5 = vmov 0.0  }
  0x23   : > { %s287_s14 = sand.u32 1, %s2156_s26   ;;  %362 = vst [vmem:[#allocation12] sm:$0xff] %v1742_v5  ;;  %363 = vst [vmem:[#allocation14] sm:$0xff] %v1742_v5  ;;  %s350_s29 = smov [#allocation20] }
  0x24   : > { %s1858_s12 = sshll.u32 %s287_s14, 2  ;;  %364 = vst [vmem:[#allocation16] sm:$0xff] %v1742_v5  ;;  %365 = vst [vmem:[#allocation18] sm:$0xff] %v1742_v5  ;;  %v1860_v6 = vand.u32 127, %v367_v4  ;;  %v1862_v7 = vshrl.u32 %v367_v4, 7  ;;  %s366_s17 = smov [#allocation12] }
  0x25   : > { %s289_s21 = scalar_lea.vmem [#allocation1], %s1858_s12  ;;  %s293_s22 = scalar_lea.vmem [#allocation3], %s1858_s12 }
  0x26   : > { %v331_v8 = vld [vmem:[%s289_s21] sm:$0xf]  ;;  %v336_v9 = vld [vmem:[%s293_s22] sm:$0xf]  ;;  %s297_s27 = scalar_lea.vmem [#allocation5], %s1858_s12  ;;  %s301_s28 = scalar_lea.vmem [#allocation7], %s1858_s12  ;;  %v369_v6 = vmov %v1860_v6  ;;  %v372_v7 = vmov %v1862_v7 }
  0x27   : > { %332 = vst [vmem:[#allocation0] sm:$0xf] %v331_v8  ;;  %337 = vst [vmem:[#allocation2] sm:$0xf] %v336_v9  ;;  %v341_v10 = vld [vmem:[%s297_s27] sm:$0xf]  ;;  %v382_v6 = vmov %v1860_v6  ;;  %v385_v7 = vmov %v1862_v7  ;;  %vm376_vm0 = vcmp.eq.s32.totalorder %v372_v7, %v369_v6 }
  0x28   : > { %v346_v11 = vld [vmem:[%s301_s28] sm:$0xf]  ;;  %342 = vst [vmem:[#allocation4] sm:$0xf] %v341_v10  ;;  %vm389_vm1 = vcmp.eq.s32.totalorder %v385_v7, %v382_v6  ;;  %s353_s18 = smov [#allocation21]  ;;  %s379_s20 = smov [#allocation18]  ;;  %v1442_v7 = vmov %v1862_v7 }
  0x29   : > { %347 = vst [vmem:[#allocation6] sm:$0xf] %v346_v11  ;;  %s356_s23 = smov [#allocation22]  ;;  %s359_s24 = smov [#allocation23]  ;;  %vm1447_vm2 = vcmp.lt.s32.totalorder %v1860_v6, 4  ;;  %v1439_v6 = vmov %v1860_v6 }
  0x2a   : > { %v373_v12 = vld [vmem:[%s366_s17] sm:$0xf]  ;;  %s1874_s25 = scalar_lea.vmem [#allocation9], %s305_s15  ;;  %s1878_s26 = scalar_lea.vmem [#allocation11], %s305_s15  ;;  %vm1452_vm3 = vcmp.eq.s32.totalorder %v1442_v7, %v1439_v6  ;;  %v1490_v6 = vmov %v1860_v6  ;;  %v1459_v7 = vmov %v1862_v7 }
  0x2b   : > { %v377_v13 = vsel %vm376_vm0, 1.0, %v373_v12  ;;  %v386_v14 = vld [vmem:[%s379_s20] sm:$0xf]  ;;  %s1443_s28 = smov [#allocation20]  ;;  %v1456_v6 = vmov %v1860_v6  ;;  %v1493_v7 = vmov %v1862_v7 }
  0x2c   : > { %378 = vst [vmem:[%s366_s17] sm:$0xf] %v377_v13  ;;  %v390_v17 = vsel %vm389_vm1, 1.0, %v386_v14  ;;  %s1477_s17 = smov [#allocation22]  ;;  %v1473_v6 = vmov %v1860_v6  ;;  %v1476_v7 = vmov %v1862_v7  ;;  %vm1503_vm4 = vcmp.eq.s32.totalorder %v1493_v7, %v1490_v6 }
  0x2d   : > { %391 = vst [vmem:[%s379_s20] sm:$0xf] %v390_v17 }
  0x2e   : > { %v351_v15 = vld [vmem:[#allocation0] sm:$0xff]  ;;  %v354_v16 = vld [vmem:[#allocation2] sm:$0xff] }
  0x2f   : > { %352 = vst [vmem:[%s350_s29] sm:$0xff] %v351_v15  ;;  %355 = vst [vmem:[%s353_s18] sm:$0xff] %v354_v16  ;;  %v357_v18 = vld [vmem:[#allocation4] sm:$0xff]  ;;  %s1460_s29 = smov [#allocation21]  ;;  %s1494_s18 = smov [#allocation23] }
  0x30   : > { %v360_v19 = vld [vmem:[#allocation6] sm:$0xff]  ;;  %358 = vst [vmem:[%s356_s23] sm:$0xff] %v357_v18 }
  0x31   : > { %361 = vst [vmem:[%s359_s24] sm:$0xff] %v360_v19 }
  0x36   : > { %v1449_v20 = vld [vmem:[%s1443_s28] sm:$0xf] }
  0x37   : > { %v1466_v21 = vld [vmem:[%s1460_s29] sm:$0xf]  ;;  %v1450_v22 = vsel %vm1447_vm2, %v1449_v20, 0.0 }
  0x38   : > { %v1467_v23 = vsel %vm1447_vm2, %v1466_v21, 0.0  ;;  %v1483_v24 = vld [vmem:[%s1477_s17] sm:$0xf]  ;;  %v1451_v26 = vmul.f32 %v1450_v22, %v1450_v22 }
  0x39   : > { %v1500_v25 = vld [vmem:[%s1494_s18] sm:$0xf]  ;;  %v1468_v27 = vmul.f32 %v1467_v23, %v1467_v23  ;;  %v1484_v28 = vsel %vm1447_vm2, %v1483_v24, 0.0 }
  0x3a   : > { %v1501_v29 = vsel %vm1447_vm2, %v1500_v25, 0.0  ;;  %v1485_v30 = vmul.f32 %v1484_v28, %v1484_v28  ;;  %v1453_v33 = vsel %vm1452_vm3, 0.0, %v1451_v26 }
  0x3b   : > { %v1470_v31 = vadd.f32 %v1468_v27, %v1451_v26  ;;  %v1502_v32 = vmul.f32 %v1501_v29, %v1501_v29  ;;  %v1469_v34 = vadd.f32 %v1468_v27, %v1453_v33 }
  0x3d   : > { %v1487_v35 = vadd.f32 %v1485_v30, %v1470_v31  ;;  %v1486_v36 = vadd.f32 %v1485_v30, %v1469_v34  ;;  %v1504_v37 = vsel %vm1503_vm4, 0.0, %v1502_v32 }
  0x3f   : > { %v1506_v38 = vadd.f32 %v1502_v32, %v1487_v35  ;;  %v1505_v39 = vadd.f32 %v1504_v37, %v1486_v36 }
  0x41   : > { %1507 = vadd.xlane.f32.xlu0 %v1506_v38 }
  0x45   : > { %1515 = vadd.xlane.f32.xlu0 %v1505_v39 }
  0xca   : > { %v1508_v40 = vpop.xlane.xlu0 %1507 }
  0xcb   : > { %v1509_v41 = vrot.slane %v1508_v40, 4 }
  0xcd   : > { %v1510_v42 = vadd.f32 %v1509_v41, %v1508_v40 }
  0xce   : > { %v1516_v43 = vpop.xlane.xlu0 %1515 }
  0xcf   : > { %v1511_v44 = vrot.slane %v1510_v42, 2  ;;  %v1517_v45 = vrot.slane %v1516_v43, 4 }
  0xd1   : > { %v1518_v46 = vadd.f32 %v1517_v45, %v1516_v43  ;;  %v1512_v47 = vadd.f32 %v1511_v44, %v1510_v42 }
  0xd3   : > { %v1519_v48 = vrot.slane %v1518_v46, 2  ;;  %v1513_v50 = vrot.slane %v1512_v47, 1 }
  0xd5   : > { %v1520_v49 = vadd.f32 %v1519_v48, %v1518_v46  ;;  %v1514_v53 = vadd.f32 %v1513_v50, %v1512_v47 }
  0xd7   : > { %v1521_v51 = vrot.slane %v1520_v49, 1 }
  0xd9   : > { %v1522_v52 = vadd.f32 %v1521_v51, %v1520_v49 }
  0xdb   : > { %1611 = vpush %v1522_v52 }
  0xdc   : > { %1613 = vpush %v1514_v53 }
 0x10c   : > { %s1612_s30 = spop %1611 }
 0x10d   : > { %s1614_s15 = spop %1613 }
 0x10e   : > { %s1525_s20 = smul.f32 1e-10, %s1614_s15 }
 0x110   : > { %p1526_p9 = scmp.le.f32.partialorder %s1612_s30, %s1525_s20 }
 0x111   : > { %s1902_s23 = smov (!%p1526_p9), 0  }
 0x112   : > { %1529 = sbr.rel (%p1526_p9) target bundleno = 956 (0x3bc), region = 467 }
 0x117 LB: >> { %s1907_s24 = smov 0   ;;  %s1736_s23 = sphi %s1902_s23, %s2157_s23  }
 0x118 LB: >>> { %s496_s28 = smov [#allocation20]  ;;  %v500_v6 = vmov %v1860_v6  ;;  %v503_v7 = vmov %v1862_v7  ;;  %s516_s29 = smov [#allocation21]  ;;  %vm819_vm14 = vcmp.eq.s32.totalorder %v1862_v7, 0  ;;  %vm831_vm15 = vcmp.eq.s32.totalorder %v1862_v7, 3  ;;  %s1740_s24 = sphi %s1907_s24, %s495_s24  }
 0x119   : >>> { %v520_v6 = vmov %v1860_v6  ;;  %v523_v7 = vmov %v1862_v7  ;;  %v504_v54 = vld [vmem:[%s496_s28] sm:$0xf]  ;;  %vm507_vm5 = vcmp.eq.s32.totalorder %v503_v7, %v500_v6  ;;  %s536_s17 = smov [#allocation23]  ;;  %s497_s18 = smov [#allocation24] }
 0x11a   : >>> { %vm527_vm6 = vcmp.eq.s32.totalorder %v523_v7, %v520_v6  ;;  %v540_v6 = vmov %v1860_v6  ;;  %v543_v7 = vmov %v1862_v7  ;;  %v508_v55 = vsel %vm507_vm5, %v504_v54, 0.0  ;;  %v524_v56 = vld [vmem:[%s516_s29] sm:$0xf]  ;;  %s517_s30 = smov [#allocation25]  ;;  %s537_s15 = smov [#allocation26] }
 0x11b   : >>> { %vm547_vm7 = vcmp.eq.s32.totalorder %v543_v7, %v540_v6  ;;  %v509_v57 = vrot.slane %v508_v55, 4  ;;  %v528_v58 = vsel %vm527_vm6, %v524_v56, 0.0  ;;  %v544_v59 = vld [vmem:[%s536_s17] sm:$0xf]  ;;  %s560_s20 = smov [#allocation25]  ;;  %s558_s28 = smov [#allocation24]  ;;  %v609_v6 = vmov %v1860_v6 }
 0x11c   : >>> { %v529_v60 = vrot.slane %v528_v58, 4  ;;  %v548_v61 = vsel %vm547_vm7, %v544_v59, 0.0  ;;  %s562_s29 = smov [#allocation26]  ;;  %s597_s17 = smov [#allocation27]  ;;  %v612_v7 = vmov %v1862_v7  ;;  %v624_v6 = vmov %v1860_v6 }
 0x11d   : >>> { %v510_v62 = vadd.f32 %v509_v57, %v508_v55  ;;  %v549_v63 = vrot.slane %v548_v61, 4  ;;  %v627_v7 = vmov %v1862_v7  ;;  %vm614_vm12 = vcmp.eq.s32.totalorder %v612_v7, %v609_v6  ;;  %s1926_s27 = smov [#allocation22]  ;;  %s1932_s22 = smov [#allocation14] }
 0x11e   : >>> { %v530_v0 = vadd.f32 %v529_v60, %v528_v58  ;;  %vm629_vm13 = vcmp.eq.s32.totalorder %v627_v7, %v624_v6  ;;  %s859_s21 = smov [#allocation31]  ;;  %s1938_s14 = smov [#allocation18]  ;;  %v645_v55 = vld [vmem:[%s1926_s27] sm:$0xf]  ;;  %v722_v6 = vmov %v1860_v6  ;;  %v725_v7 = vmov %v1862_v7 }
 0x11f   : >>> { %v511_v1 = vrot.slane %v510_v62, 2  ;;  %v550_v2 = vadd.f32 %v549_v63, %v548_v61  ;;  %v868_v58 = vld [vmem:[%s1932_s22] sm:$0xf]  ;;  %s637_s0 = smov [#allocation32]  ;;  %s861_s1 = smov [#allocation32]  ;;  %v736_v6 = vmov %v1860_v6  ;;  %v739_v7 = vmov %v1862_v7 }
 0x120   : >>> { %v531_v3 = vrot.slane %v530_v0, 2  ;;  %v870_v61 = vld [vmem:[%s1938_s14] sm:$0xf]  ;;  %vm729_vm0 = vcmp.eq.s32.totalorder %v725_v7, %v722_v6  ;;  %v695_v6 = vmov %v1860_v6  ;;  %v698_v7 = vmov %v1862_v7  ;;  %s495_s24 = sadd.s32 1, %s1740_s24  }
 0x121   : >>> { %v512_v4 = vadd.f32 %v511_v1, %v510_v62  ;;  %v551_v5 = vrot.slane %v550_v2, 2  ;;  %v709_v6 = vmov %v1860_v6  ;;  %v712_v7 = vmov %v1862_v7  ;;  %p492_p10 = scmp.ge.s32.totalorder %s495_s24, 7  }
 0x122   : >>> { %v532_v8 = vadd.f32 %v531_v3, %v530_v0  ;;  %vm744_vm1 = vcmp.eq.s32.totalorder %v739_v7, %v736_v6  ;;  %vm703_vm3 = vcmp.eq.s32.totalorder %v698_v7, %v695_v6  ;;  %vm716_vm4 = vcmp.eq.s32.totalorder %v712_v7, %v709_v6 }
 0x123   : >>> { %v513_v9 = vrot.slane %v512_v4, 1  ;;  %v552_v10 = vadd.f32 %v551_v5, %v550_v2  ;;  %vm758_vm5 = vcmp.eq.s32.totalorder %v1860_v6, 0  ;;  %vm762_vm6 = vcmp.eq.s32.totalorder %v1860_v6, 1 }
 0x124   : >>> { %v533_v11 = vrot.slane %v532_v8, 1  ;;  %vm775_vm7 = vcmp.eq.s32.totalorder %v1860_v6, 3  ;;  %v396_v6 = vmov (%p492_p10), %v1860_v6  ;;  %v399_v7 = vmov (%p492_p10), %v1862_v7 }
 0x125   : >>> { %v514_v12 = vadd.f32 %v513_v9, %v512_v4  ;;  %v553_v13 = vrot.slane %v552_v10, 1  ;;  %v449_v6 = vmov (%p492_p10), %v1860_v6 }
 0x126   : >>> { %v534_v14 = vadd.f32 %v533_v11, %v532_v8 }
 0x127   : >>> { %515 = vst [vmem:[%s497_s18] sm:$0x1] %v514_v12  ;;  %v554_v15 = vadd.f32 %v553_v13, %v552_v10  ;;  %s599_s18 = smov [#allocation28] }
 0x128   : >>> { %535 = vst [vmem:[%s517_s30] sm:$0x1] %v534_v14  ;;  %s556_s30 = smov [#allocation29] }
 0x129   : >>> { %555 = vst [vmem:[%s537_s15] sm:$0x1] %v554_v15  ;;  %s557_s15 = smov [#allocation30]  ;;  %s601_s30 = smov %s556_s30 }
 0x12a   : >>> { %s603_s15 = smov %s557_s15 }
 0x12e   : >>> { %v559_v18 = vld [vmem:[%s558_s28] sm:$0xff]  ;;  %s620_s28 = smov [#allocation30] }
 0x12f   : >>> { %v561_v16 = vld [vmem:[%s560_s20] sm:$0xff]  ;;  %v582_v33 = vand.u32 2147483647, %v559_v18  ;;  %s605_s20 = smov [#allocation29] }
 0x130   : >>> { %v565_v17 = vmul.f32 2.0, %v561_v16  ;;  %v563_v19 = vld [vmem:[%s562_s29] sm:$0xff]  ;;  %v583_v36 = vand.u32 2147483647, %v561_v16  ;;  %s618_s29 = smov [#allocation31] }
 0x131   : >>> { %v564_v20 = vsub.f32 %v563_v19, %v559_v18  ;;  %v584_v34 = vand.u32 2147483647, %v563_v19 }
 0x132   : >>> { %1678 = vrcp.f32 %v565_v17 }
 0x133   : >>> { %v585_v35 = vmin.f32 %v582_v33, %v584_v34 }
 0x135   : >>> { %v586_v37 = vmul.f32 1.1920929e-08, %v585_v35 }
 0x137   : >>> { %vm587_vm11 = vcmp.le.f32.partialorder %v583_v36, %v586_v37 }
 0x13f   : >>> { %v1679_v21 = vpop.eup %1678 }
 0x140   : >>> { %v567_v22 = vmul.f32 %v1679_v21, %v564_v20 }
 0x142   : >>> { %v569_v23 = vmul.f32 %v567_v22, %v567_v22  ;;  %vm568_vm10 = vcmp.ge.f32.partialorder %v567_v22, 0.0 }
 0x144   : >>> { %v570_v24 = vadd.f32 1.0, %v569_v23 }
 0x146   : >>> { %1680 = vrsqrt.f32 %v570_v24  ;;  %vm573_vm8 = vcmp.eq.f32.partialorder %v570_v24, inf  ;;  %v576_v26 = vand.u32 2147483648, %v570_v24  ;;  %vm575_vm9 = vcmp.eq.f32.partialorder %v570_v24, 0.0 }
 0x153   : >>> { %v1681_v25 = vpop.eup %1680 }
 0x154   : >>> { %v572_v27 = vmul.f32 %v1681_v25, %v570_v24 }
 0x156   : >>> { %v574_v28 = vsel %vm573_vm8, %v570_v24, %v572_v27  ;;  %vm411_vm8 = vcmp.eq.s32.totalorder (%p492_p10), %v399_v7, %v396_v6  ;;  %v452_v7 = vmov (%p492_p10), %v1862_v7  ;;  %v415_v6 = vmov (%p492_p10), %v1860_v6 }
 0x157   : >>> { %v577_v29 = vsel %vm575_vm9, %v576_v26, %v574_v28  ;;  %v418_v7 = vmov (%p492_p10), %v1862_v7  ;;  %v432_v6 = vmov (%p492_p10), %v1860_v6  ;;  %vm464_vm9 = vcmp.eq.s32.totalorder (%p492_p10), %v452_v7, %v449_v6 }
 0x158   : >>> { %v578_v30 = vxor.u32 2147483648, %v577_v29  ;;  %v435_v7 = vmov (%p492_p10), %v1862_v7 }
 0x15a   : >>> { %v579_v31 = vsel %vm568_vm10, %v577_v29, %v578_v30 }
 0x15b   : >>> { %v580_v32 = vadd.f32 %v579_v31, %v567_v22 }
 0x15d   : >>> { %1682 = vrcp.f32 %v580_v32 }
 0x16a   : >>> { %v1683_v38 = vpop.eup %1682 }
 0x16b   : >>> { %v588_v39 = vsel %vm587_vm11, 0.0, %v1683_v38 }
 0x16c   : >>> { %v589_v40 = vmul.f32 %v588_v39, %v588_v39  ;;  %v593_v41 = vmul.f32 %v588_v39, %v561_v16 }
 0x16e   : >>> { %v590_v42 = vadd.f32 1.0, %v589_v40  ;;  %v594_v43 = vsub.f32 %v559_v18, %v593_v41  ;;  %v596_v44 = vadd.f32 %v593_v41, %v563_v19 }
 0x170   : >>> { %1684 = vrsqrt.f32 %v590_v42  ;;  %598 = vst [vmem:[%s597_s17] sm:$0xff] %v594_v43  ;;  %600 = vst [vmem:[%s599_s18] sm:$0xff] %v596_v44  ;;  %s635_s17 = smov [#allocation31]  ;;  %s1922_s18 = smov [#allocation20] }
 0x171   : >>> { %v643_v53 = vld [vmem:[%s1922_s18] sm:$0xf] }
 0x17d   : >>> { %v1685_v45 = vpop.eup %1684 }
 0x17e   : >>> { %602 = vst [vmem:[%s601_s30] sm:$0xff] %v1685_v45  ;;  %v592_v46 = vmul.f32 %v1685_v45, %v588_v39  ;;  %s633_s30 = smov [#allocation32] }
 0x180   : >>> { %604 = vst [vmem:[%s603_s15] sm:$0xff] %v592_v46  ;;  %s1924_s15 = smov [#allocation21] }
 0x181   : >>> { %v644_v54 = vld [vmem:[%s1924_s15] sm:$0xf] }
 0x185   : >>> { %v606_v47 = vld [vmem:[%s605_s20] ss:$0 sm:$0xff]  ;;  %s1928_s20 = smov [#allocation23] }
 0x186   : >>> { %v615_v48 = vsel %vm614_vm12, %v606_v47, 0.0  ;;  %v646_v56 = vld [vmem:[%s1928_s20] sm:$0xf] }
 0x187   : >>> { %616 = vadd.xlane.f32.xlu0 %v615_v48  ;;  %v621_v49 = vld [vmem:[%s620_s28] ss:$0 sm:$0xff]  ;;  %s1930_s28 = smov [#allocation12] }
 0x188   : >>> { %v630_v50 = vsel %vm629_vm13, %v621_v49, 0.0  ;;  %v867_v57 = vld [vmem:[%s1930_s28] sm:$0xf] }
 0x18b   : >>> { %631 = vadd.xlane.f32.xlu0 %v630_v50 }
 0x210   : >>> { %v617_v51 = vpop.xlane.xlu0 %616 }
 0x211   : >>> { %619 = vst [vmem:[%s618_s29] sm:$0xff] %v617_v51  ;;  %s1934_s29 = smov [#allocation16] }
 0x212   : >>> { %v869_v59 = vld [vmem:[%s1934_s29] sm:$0xf] }
 0x214   : >>> { %v632_v52 = vpop.xlane.xlu0 %631 }
 0x215   : >>> { %634 = vst [vmem:[%s633_s30] sm:$0xff] %v632_v52  ;;  %s1958_s30 = smov [#allocation23] }
 0x218   : >>> { %v636_v60 = vld [vmem:[%s635_s17] sm:$0xff]  ;;  %s1956_s17 = smov [#allocation22] }
 0x219   : >>> { %v860_v62 = vld [vmem:[%s859_s21] sm:$0xff]  ;;  %v647_v63 = vmul.f32 %v643_v53, %v636_v60  ;;  %v650_v0 = vmul.f32 %v644_v54, %v636_v60  ;;  %v654_v1 = vmul.f32 %v645_v55, %v636_v60  ;;  %v657_v2 = vmul.f32 %v646_v56, %v636_v60  ;;  %s1954_s21 = smov [#allocation12] }
 0x21a   : >>> { %v871_v3 = vmul.f32 %v867_v57, %v860_v62  ;;  %v874_v4 = vmul.f32 %v868_v58, %v860_v62  ;;  %v878_v5 = vmul.f32 %v869_v59, %v860_v62  ;;  %v881_v8 = vmul.f32 %v870_v61, %v860_v62 }
 0x21c   : >>> { %v638_v9 = vld [vmem:[%s637_s0] sm:$0xff]  ;;  %s663_s0 = smov [#allocation29] }
 0x21d   : >>> { %v862_v10 = vld [vmem:[%s861_s1] sm:$0xff]  ;;  %v648_v11 = vmul.f32 %v645_v55, %v638_v9  ;;  %v651_v12 = vmul.f32 %v646_v56, %v638_v9  ;;  %v653_v13 = vmul.f32 %v643_v53, %v638_v9  ;;  %v656_v14 = vmul.f32 %v644_v54, %v638_v9  ;;  %s665_s1 = smov [#allocation30] }
 0x21e   : >>> { %v872_v15 = vmul.f32 %v869_v59, %v862_v10  ;;  %v875_v16 = vmul.f32 %v870_v61, %v862_v10  ;;  %v877_v17 = vmul.f32 %v867_v57, %v862_v10  ;;  %v880_v18 = vmul.f32 %v868_v58, %v862_v10  ;;  %v664_v27 = vld [vmem:[%s663_s0] ss:$0 sm:$0xff]  ;;  %s692_s0 = smov [#allocation27] }
 0x21f   : >>> { %v649_v19 = vsub.f32 %v647_v63, %v648_v11  ;;  %v652_v20 = vsub.f32 %v650_v0, %v651_v12  ;;  %v655_v21 = vadd.f32 %v654_v1, %v653_v13  ;;  %v658_v22 = vadd.f32 %v657_v2, %v656_v14  ;;  %v666_v28 = vld [vmem:[%s665_s1] ss:$0 sm:$0xff]  ;;  %s691_s1 = smov [#allocation20] }
 0x220   : >>> { %v873_v23 = vsub.f32 %v871_v3, %v872_v15  ;;  %v876_v24 = vsub.f32 %v874_v4, %v875_v16  ;;  %v879_v25 = vadd.f32 %v878_v5, %v877_v17  ;;  %v882_v26 = vadd.f32 %v881_v8, %v880_v18  ;;  %v699_v63 = vld [vmem:[%s692_s0] ss:$0 sm:$0xff]  ;;  %s935_s0 = sadd.s32 (%p492_p10), 1, %s1736_s23  }
 0x221   : >>> { %660 = vst [vmem:[%s1924_s15] sm:$0xf] %v652_v20  ;;  %662 = vst [vmem:[%s1928_s20] sm:$0xf] %v658_v22  ;;  %s1960_s15 = smov [#allocation20]  ;;  %s733_s20 = smov [#allocation28] }
 0x222   : >>> { %659 = vst [vmem:[%s1922_s18] sm:$0xf] %v649_v19  ;;  %661 = vst [vmem:[%s1926_s27] sm:$0xf] %v655_v21  ;;  %s1962_s27 = smov [#allocation16]  ;;  %s1970_s18 = smov [#allocation21]  ;;  %v740_v59 = vld [vmem:[%s733_s20] ss:$0 sm:$0xff] }
 0x223   : >>> { %883 = vst [vmem:[%s1930_s28] sm:$0xf] %v873_v23  ;;  %884 = vst [vmem:[%s1932_s22] sm:$0xf] %v876_v24  ;;  %s1964_s22 = smov [#allocation14]  ;;  %s719_s28 = smov [#allocation22] }
 0x224   : >>> { %885 = vst [vmem:[%s1934_s29] sm:$0xf] %v879_v25  ;;  %886 = vst [vmem:[%s1938_s14] sm:$0xf] %v882_v26  ;;  %s1968_s14 = smov [#allocation18]  ;;  %s732_s29 = smov [#allocation23] }
 0x225   : >>> { %s835_s20 = smov [#allocation21]  ;;  %p488_p11 = scmp.ge.s32.totalorder (%p492_p10), %s935_s0, 15 }
 0x226   : >> { %s2157_s23 = smov (%p492_p10), %s935_s0 }
 0x228   : >>> { %v674_v30 = vld [vmem:[%s1958_s30] sm:$0xf] }
 0x229   : >>> { %v673_v29 = vld [vmem:[%s1956_s17] sm:$0xf]  ;;  %v682_v36 = vmul.f32 %v674_v30, %v666_v28  ;;  %v685_v42 = vmul.f32 %v674_v30, %v664_v27 }
 0x22a   : >>> { %v671_v31 = vld [vmem:[%s1960_s15] sm:$0xf]  ;;  %v681_v35 = vmul.f32 %v673_v29, %v664_v27  ;;  %v684_v37 = vmul.f32 %v673_v29, %v666_v28 }
 0x22b   : >>> { %v889_v32 = vld [vmem:[%s1954_s21] ss:$0 sm:$0xff]  ;;  %v1594_v34 = vld [vmem:[%s1954_s21 + $0x3] ss:$0 sm:$0xff]  ;;  %v675_v48 = vmul.f32 %v671_v31, %v664_v27  ;;  %v678_v49 = vmul.f32 %v671_v31, %v666_v28 }
 0x22c   : >>> { %v1593_v33 = vld [vmem:[%s1954_s21 - $0x1] sm:$0xe]  ;;  %v1598_v45 = vld [vmem:[%s1964_s22 + $0x3] ss:$0 sm:$0xff]  ;;  %v683_v47 = vsub.f32 %v681_v35, %v682_v36  ;;  %v686_v53 = vadd.f32 %v685_v42, %v684_v37 }
 0x22d   : >>> { %v896_v38 = vsel %vm819_vm14, %v889_v32, %v1593_v33  ;;  %v900_v39 = vld [vmem:[%s1962_s27] ss:$0 sm:$0xff]  ;;  %v1596_v40 = vld [vmem:[%s1962_s27 + $0x1] sm:$0x7] }
 0x22e   : >>> { %v913_v41 = vld [vmem:[%s1964_s22] ss:$0 sm:$0xff]  ;;  %899 = vst [vmem:[%s1954_s21] sm:$0xf] %v896_v38  ;;  %v908_v43 = vsel %vm831_vm15, %v1594_v34, %v1596_v40  ;;  %v1600_v51 = vld [vmem:[%s1968_s14 + $0x1] sm:$0x7]  ;;  %689 = vst [vmem:[%s1956_s17] sm:$0xf] %v683_v47 }
 0x22f   : >>> { %v1597_v44 = vld [vmem:[%s1964_s22 - $0x1] sm:$0xe]  ;;  %1595 = vst [vmem:[%s1954_s21 + $0x1] sm:$0x1] %v900_v39  ;;  %910 = vst [vmem:[%s1962_s27] sm:$0xf] %v908_v43  ;;  %v932_v54 = vsel %vm831_vm15, %v1598_v45, %v1600_v51  ;;  %s706_s21 = smov [#allocation21] }
 0x230   : >>> { %v924_v46 = vld [vmem:[%s1968_s14] ss:$0 sm:$0xff]  ;;  %v920_v50 = vsel %vm819_vm14, %v913_v41, %v1597_v44  ;;  %690 = vst [vmem:[%s1958_s30] sm:$0xf] %v686_v53  ;;  %s2012_s17 = smov [#allocation22]  ;;  %s1743_s30 = smov 1  }
 0x231   : >>> { %v672_v52 = vld [vmem:[%s1970_s18] sm:$0xf]  ;;  %923 = vst [vmem:[%s1964_s22] sm:$0xf] %v920_v50  ;;  %934 = vst [vmem:[%s1968_s14] sm:$0xf] %v932_v54  ;;  %s748_s27 = smov [#allocation21]  ;;  %s2015_s14 = smov [#allocation23] }
 0x232   : >>> { %v676_v55 = vmul.f32 %v672_v52, %v666_v28  ;;  %v679_v56 = vmul.f32 %v672_v52, %v664_v27  ;;  %1599 = vst [vmem:[%s1964_s22 + $0x1] sm:$0x1] %v924_v46  ;;  %s1744_s22 = smov 127  }
 0x234   : >>> { %v677_v57 = vsub.f32 %v675_v48, %v676_v55  ;;  %v680_v58 = vadd.f32 %v679_v56, %v678_v49 }
 0x235   : >>> { %v726_v60 = vld [vmem:[%s719_s28] sm:$0xf] }
 0x236   : >>> { %687 = vst [vmem:[%s1960_s15] sm:$0xf] %v677_v57  ;;  %688 = vst [vmem:[%s1970_s18] sm:$0xf] %v680_v58  ;;  %v730_v61 = vsel %vm729_vm0, 0.0, %v726_v60  ;;  %s747_s15 = smov [#allocation20]  ;;  %s811_s18 = smov [#allocation20] }
 0x237   : >>> { %v741_v62 = vld [vmem:[%s732_s29] sm:$0xf]  ;;  %731 = vst [vmem:[%s719_s28] sm:$0xf] %v730_v61  ;;  %s812_s28 = smov [#allocation22] }
 0x238   : >>> { %v745_v0 = vsel %vm744_vm1, %v740_v59, %v741_v62 }
 0x239   : >>> { %746 = vst [vmem:[%s732_s29] sm:$0xf] %v745_v0  ;;  %s836_s29 = smov [#allocation23] }
 0x23d   : >>> { %v700_v1 = vld [vmem:[%s691_s1] sm:$0xf] }
 0x23e   : >>> { %v713_v2 = vld [vmem:[%s706_s21] sm:$0xf]  ;;  %v704_v3 = vsel %vm703_vm3, %v699_v63, %v700_v1 }
 0x23f   : >>> { %v717_v4 = vsel %vm716_vm4, 0.0, %v713_v2  ;;  %705 = vst [vmem:[%s691_s1] sm:$0xf] %v704_v3  ;;  %v785_v5 = vld [vmem:[%s2012_s17] sm:$0xf]  ;;  %s400_s1 = smov (%p492_p10), [#allocation20] }
 0x240   : >>> { %718 = vst [vmem:[%s706_s21] sm:$0xf] %v717_v4  ;;  %786 = vrot.lane.b32.xlu0 %v785_v5, %s1743_s30  ;;  %v781_v11 = vld [vmem:[%s2015_s14] sm:$0xf]  ;;  %s419_s21 = smov (%p492_p10), [#allocation21] }
 0x241   : >>> { %v802_v12 = vld [vmem:[%s2015_s14] sm:$0xf] }
 0x242   : >>> { %v784_v30 = vld [vmem:[%s2012_s17] sm:$0xf] }
 0x246   : >>> { %v753_v8 = vld [vmem:[%s747_s15] sm:$0xf] }
 0x247   : >>> { %754 = vrot.lane.b32.xlu1 %v753_v8, %s1743_s30  ;;  %v749_v9 = vld [vmem:[%s748_s27] sm:$0xf] }
 0x248   : >>> { %v770_v10 = vld [vmem:[%s748_s27] sm:$0xf] }
 0x249   : >>> { %v752_v18 = vld [vmem:[%s747_s15] sm:$0xf] }
 0x24b   : >>> { %750 = vrot.lane.b32.xlu1 %v749_v9, %s1743_s30 }
 0x24f   : >>> { %771 = vrot.lane.b32.xlu1 %v770_v10, %s1744_s22 }
 0x253   : >>> { %782 = vrot.lane.b32.xlu1 %v781_v11, %s1743_s30  ;;  %s453_s30 = smov (%p492_p10), [#allocation23] }
 0x257   : >>> { %803 = vrot.lane.b32.xlu1 %v802_v12, %s1744_s22 }
 0x2b2   : >>> { %v787_v20 = vpop.permute.xlu0 %786 }
 0x2b3   : >>> { %v791_v22 = vsel %vm758_vm5, %v785_v5, %v787_v20 }
 0x2b9   : >>> { %v755_v13 = vpop.permute.xlu1 %754 }
 0x2ba   : >>> { %v759_v14 = vsel %vm758_vm5, %v753_v8, %v755_v13 }
 0x2bd   : >>> { %v751_v15 = vpop.permute.xlu1 %750 }
 0x2be   : >>> { %v763_v16 = vsel %vm762_vm6, %v751_v15, %v759_v14 }
 0x2bf   : >>> { %v769_v17 = vsel %vm1447_vm2, %v763_v16, 0.0 }
 0x2c0   : >>> { %777 = vst [vmem:[%s747_s15] sm:$0xf] %v769_v17 }
 0x2c1   : >>> { %v772_v19 = vpop.permute.xlu1 %771 }
 0x2c2   : >>> { %v776_v21 = vsel %vm775_vm7, %v752_v18, %v772_v19 }
 0x2c3   : >>> { %778 = vst [vmem:[%s748_s27] sm:$0xf] %v776_v21 }
 0x2c5   : >>> { %v783_v23 = vpop.permute.xlu1 %782 }
 0x2c6   : >>> { %v795_v24 = vsel %vm762_vm6, %v783_v23, %v791_v22 }
 0x2c7   : >>> { %v813_v25 = vld [vmem:[%s811_s18] ss:$0 sm:$0xff]  ;;  %v1586_v27 = vld [vmem:[%s811_s18 + $0x3] ss:$0 sm:$0xff]  ;;  %v801_v29 = vsel %vm1447_vm2, %v795_v24, 0.0 }
 0x2c8   : >>> { %v1585_v26 = vld [vmem:[%s811_s18 - $0x1] sm:$0xe]  ;;  %809 = vst [vmem:[%s2012_s17] sm:$0xf] %v801_v29  ;;  %s436_s17 = smov (%p492_p10), [#allocation22] }
 0x2c9   : >>> { %v820_v28 = vsel %vm819_vm14, %v813_v25, %v1585_v26  ;;  %v804_v31 = vpop.permute.xlu1 %803 }
 0x2ca   : >>> { %823 = vst [vmem:[%s811_s18] sm:$0xf] %v820_v28  ;;  %v837_v32 = vld [vmem:[%s835_s20] ss:$0 sm:$0xff]  ;;  %v1590_v34 = vld [vmem:[%s835_s20 + $0x3] ss:$0 sm:$0xff]  ;;  %v808_v35 = vsel %vm775_vm7, %v784_v30, %v804_v31 }
 0x2cb   : >>> { %v1589_v33 = vld [vmem:[%s835_s20 - $0x1] sm:$0xe]  ;;  %810 = vst [vmem:[%s2015_s14] sm:$0xf] %v808_v35 }
 0x2cc   : >>> { %v844_v36 = vsel %vm819_vm14, %v837_v32, %v1589_v33 }
 0x2cd   : >>> { %847 = vst [vmem:[%s835_s20] sm:$0xf] %v844_v36 }
 0x2cf   : >>> { %v824_v37 = vld [vmem:[%s812_s28] ss:$0 sm:$0xff]  ;;  %v1588_v38 = vld [vmem:[%s812_s28 + $0x1] sm:$0x7] }
 0x2d0   : >>> { %1587 = vst [vmem:[%s811_s18 + $0x1] sm:$0x1] %v824_v37  ;;  %v832_v39 = vsel %vm831_vm15, %v1586_v27, %v1588_v38 }
 0x2d1   : >>> { %834 = vst [vmem:[%s812_s28] sm:$0xf] %v832_v39 }
 0x2d2   : >>> { %v848_v40 = vld [vmem:[%s836_s29] ss:$0 sm:$0xff]  ;;  %v1592_v41 = vld [vmem:[%s836_s29 + $0x1] sm:$0x7] }
 0x2d3   : >>> { %1591 = vst [vmem:[%s835_s20 + $0x1] sm:$0x1] %v848_v40  ;;  %v856_v42 = vsel %vm831_vm15, %v1590_v34, %v1592_v41 }
 0x2d4   : >>> { %858 = vst [vmem:[%s836_s29] sm:$0xf] %v856_v42  ;;  %494 = sbr.rel (!%p492_p10) target bundleno = 280 (0x118), region = 462 }
 0x2d7   : >> { %v406_v43 = vld [vmem:[%s400_s1] sm:$0xf] (%p492_p10) }
 0x2d8   : >> { %v407_v45 = vsel (%p492_p10), %vm1447_vm2, %v406_v43, 0.0  ;;  %v442_v47 = vld [vmem:[%s436_s17] sm:$0xf] (%p492_p10) }
 0x2d9   : >> { %v408_v49 = vmul.f32 %v407_v45, %v407_v45  ;;  %v443_v51 = vsel %vm1447_vm2, %v442_v47, 0.0 }
 0x2da   : >> { %v425_v44 = vld [vmem:[%s419_s21] sm:$0xf]  ;;  %v444_v53 = vmul.f32 %v443_v51, %v443_v51 }
 0x2db   : >> { %v426_v46 = vsel %vm1447_vm2, %v425_v44, 0.0  ;;  %v459_v48 = vld [vmem:[%s453_s30] sm:$0xf]  ;;  %v412_v56 = vsel %vm411_vm8, 0.0, %v408_v49 }
 0x2dc   : >> { %v427_v50 = vmul.f32 %v426_v46, %v426_v46  ;;  %v460_v52 = vsel %vm1447_vm2, %v459_v48, 0.0 }
 0x2dd   : >> { %v461_v55 = vmul.f32 %v460_v52, %v460_v52 }
 0x2de   : >> { %v429_v54 = vadd.f32 %v427_v50, %v408_v49  ;;  %v428_v57 = vadd.f32 %v427_v50, %v412_v56 }
 0x2df   : >> { %v465_v60 = vsel %vm464_vm9, 0.0, %v461_v55 }
 0x2e0   : >> { %v446_v58 = vadd.f32 %v444_v53, %v429_v54  ;;  %v445_v59 = vadd.f32 %v444_v53, %v428_v57 }
 0x2e2   : >> { %v467_v61 = vadd.f32 %v461_v55, %v446_v58  ;;  %v466_v62 = vadd.f32 %v465_v60, %v445_v59 }
 0x2e4   : >> { %468 = vadd.xlane.f32.xlu0 %v467_v61 }
 0x2e8   : >> { %476 = vadd.xlane.f32.xlu0 %v466_v62 }
 0x36d   : >> { %v469_v63 = vpop.xlane.xlu0 %468 }
 0x36e   : >> { %v470_v0 = vrot.slane %v469_v63, 4 }
 0x370   : >> { %v471_v1 = vadd.f32 %v470_v0, %v469_v63 }
 0x371   : >> { %v477_v2 = vpop.xlane.xlu0 %476 }
 0x372   : >> { %v472_v3 = vrot.slane %v471_v1, 2  ;;  %v478_v4 = vrot.slane %v477_v2, 4 }
 0x374   : >> { %v479_v5 = vadd.f32 %v478_v4, %v477_v2  ;;  %v473_v8 = vadd.f32 %v472_v3, %v471_v1 }
 0x376   : >> { %v480_v9 = vrot.slane %v479_v5, 2  ;;  %v474_v11 = vrot.slane %v473_v8, 1 }
 0x378   : >> { %v481_v10 = vadd.f32 %v480_v9, %v479_v5  ;;  %v475_v14 = vadd.f32 %v474_v11, %v473_v8 }
 0x37a   : >> { %v482_v12 = vrot.slane %v481_v10, 1 }
 0x37c   : >> { %v483_v13 = vadd.f32 %v482_v12, %v481_v10 }
 0x37e   : >> { %1615 = vpush %v483_v13 }
 0x37f   : >> { %1617 = vpush %v475_v14 }
 0x3af   : >> { %s1616_s24 = spop %1615 }
 0x3b0   : >> { %s1618_s15 = spop %1617 }
 0x3b1   : >> { %s486_s27 = smul.f32 1e-10, %s1618_s15 }
 0x3b3   : >> { %p487_p12 = scmp.le.f32.partialorder %s1616_s24, %s486_s27 }
 0x3b5   : >> { %p489_p13 = por %p488_p11, %p487_p12 }
 0x3b7   : > { %937 = sbr.rel (!%p489_p13) target bundleno = 279 (0x117), region = 473 }
 0x3bc PF: > { %s942_s22 = smov [#allocation20]  ;;  %v946_v6 = vmov %v1860_v6  ;;  %v949_v7 = vmov %v1862_v7  ;;  %v1002_v15 = vld [vmem:[#allocation12] sm:$0xf]  ;;  %v1010_v16 = vld [vmem:[#allocation14] sm:$0xf]  ;;  %s962_s23 = smov [#allocation23] }
 0x3bd   : > { %v966_v6 = vmov %v1860_v6  ;;  %v969_v7 = vmov %v1862_v7  ;;  %v950_v17 = vld [vmem:[%s942_s22] sm:$0xf]  ;;  %vm953_vm10 = vcmp.eq.s32.totalorder %v949_v7, %v946_v6  ;;  %s2158_s14 = scalar_lea.vmem [#allocation13], %s1858_s12  ;;  %s2159_s18 = scalar_lea.vmem [#allocation15], %s1858_s12  ;;  %v1018_v18 = vld [vmem:[#allocation16] sm:$0xf] }
 0x3be   : > { %vm973_vm11 = vcmp.eq.s32.totalorder %v969_v7, %v966_v6  ;;  %1005 = vst [vmem:[%s2158_s14] sm:$0xf] %v1002_v15  ;;  %1013 = vst [vmem:[%s2159_s18] sm:$0xf] %v1010_v16  ;;  %v954_v19 = vsel %vm953_vm10, %v950_v17, 0.0  ;;  %v970_v20 = vld [vmem:[%s962_s23] sm:$0xf]  ;;  %s2160_s20 = scalar_lea.vmem [#allocation17], %s1858_s12  ;;  %s1057_s17 = scalar_lea.vmem (%p1828_p3), %s2140_s4, %s1724_s11 }
 0x3bf   : > { %1021 = vst [vmem:[%s2160_s20] sm:$0xf] %v1018_v18  ;;  %v1026_v21 = vld [vmem:[#allocation18] sm:$0xf]  ;;  %v955_v22 = vrot.slane %v954_v19, 4  ;;  %v974_v23 = vsel %vm973_vm11, %v970_v20, 0.0  ;;  %s2161_s28 = scalar_lea.vmem [#allocation19], %s1858_s12 }
 0x3c0   : > { %1029 = vst [vmem:[%s2161_s28] sm:$0xf] %v1026_v21  ;;  %v975_v24 = vrot.slane %v974_v23, 4  ;;  %s943_s29 = smov [#allocation8]  ;;  %s963_s0 = smov [#allocation10] }
 0x3c1   : > { %v956_v25 = vadd.f32 %v955_v22, %v954_v19 }
 0x3c2   : > { %v976_v26 = vadd.f32 %v975_v24, %v974_v23 }
 0x3c3   : > { %v957_v6 = vrot.slane %v956_v25, 2 }
 0x3c4   : > { %v977_v7 = vrot.slane %v976_v26, 2 }
 0x3c5   : > { %v958_v27 = vadd.f32 %v957_v6, %v956_v25 }
 0x3c6   : > { %v978_v28 = vadd.f32 %v977_v7, %v976_v26 }
 0x3c7   : > { %v959_v29 = vrot.slane %v958_v27, 1 }
 0x3c8   : > { %v979_v30 = vrot.slane %v978_v28, 1 }
 0x3c9   : > { %v960_v31 = vadd.f32 %v959_v29, %v958_v27 }
 0x3ca   : > { %v980_v32 = vadd.f32 %v979_v30, %v978_v28 }
 0x3cb   : > { %961 = vst [vmem:[%s943_s29] sm:$0x1] %v960_v31 }
 0x3cc   : > { %981 = vst [vmem:[%s963_s0] sm:$0x1] %v980_v32 }
 0x3d0   : > { %1054 = sbr.rel (!%p1828_p3) target bundleno = 988 (0x3dc), region = 158 }
 0x3d2   : > { %v986_v33 = vld [vmem:[#allocation8] sm:$0x1] }
 0x3d3   : > { %989 = vst [vmem:[%s1874_s25] sm:$0x1] %v986_v33  ;;  %v994_v34 = vld [vmem:[#allocation10] sm:$0x1] }
 0x3d4   : > { %997 = vst [vmem:[%s1878_s26] sm:$0x1] %v994_v34 }
 0x3da   : > { %v1074_v35 = vld [vmem:[%s1874_s25] sm:$0x1] }
 0x3db   : > { %1075 = vst [vmem:[%s1057_s17] sm:$0x1] %v1074_v35 }
 0x3dc PF: > { %1093 = sbr.rel (!%p1828_p3) target bundleno = 996 (0x3e4), region = 192  ;;  %s1096_s15 = scalar_lea.vmem (%p1828_p3), %s2141_s5, %s1724_s11 }
 0x3e2   : > { %v1113_v36 = vld [vmem:[%s1878_s26] sm:$0x1] }
 0x3e3   : > { %1114 = vst [vmem:[%s1096_s15] sm:$0x1] %v1113_v36 }
 0x3e4 PF: > { %s1605_s25 = sshll.u32 %s1724_s11, 2  ;;  %s2162_s27 = scalar_lea.vmem [#allocation13], %s1858_s12 }
 0x3e5   : > { %v1149_v37 = vld [vmem:[%s2162_s27] sm:$0xf]  ;;  %s2163_s22 = scalar_lea.vmem [#allocation15], %s1858_s12  ;;  %s1132_s14 = scalar_lea.vmem %s2142_s6, %s1605_s25 }
 0x3e6   : > { %v1185_v38 = vld [vmem:[%s2163_s22] sm:$0xf]  ;;  %s1168_s26 = scalar_lea.vmem %s2143_s7, %s1605_s25  ;;  %s2164_s28 = scalar_lea.vmem [#allocation17], %s1858_s12  ;;  %1150 = vst [vmem:[%s1132_s14] sm:$0xf] %v1149_v37 }
 0x3e7   : > { %v1221_v39 = vld [vmem:[%s2164_s28] sm:$0xf]  ;;  %s2165_s29 = scalar_lea.vmem [#allocation19], %s1858_s12  ;;  %1186 = vst [vmem:[%s1168_s26] sm:$0xf] %v1185_v38  ;;  %s1204_s1 = scalar_lea.vmem %s2144_s8, %s1605_s25 }
 0x3e8   : > { %v1257_v40 = vld [vmem:[%s2165_s29] sm:$0xf]  ;;  %s1240_s30 = scalar_lea.vmem %s2145_s9, %s1605_s25  ;;  %1222 = vst [vmem:[%s1204_s1] sm:$0xf] %v1221_v39 }
 0x3e9   : > { %1258 = vst [vmem:[%s1240_s30] sm:$0xf] %v1257_v40 }
 0x3ea PF: > { %s16_s13 = sadd.s32 1, %s1732_s13   ;;  %s2166_s11 = sld [smem:[#allocation33_spill]] }
 0x3eb   : > { %p13_p0 = scmp.ge.s32.totalorder %s16_s13, 4   ;;  %s2167_s12 = sld [smem:[#allocation34_spill]] }
 0x3ec   : > { %s2168_s30 = smov %s1720_s10  ;;  %s2169_s10 = smov %s1836_s19 }
 0x3ed   :  { %15 = sbr.rel (!%p13_p0) target bundleno = 6 (0x6), region = 484 }

// kernel: custom-call.20
= control target key start
LH: loop header
LB: loop body
LE: loop exit
PB: predicated region body
PF: predicated region fallthrough
CT: control target
= control target key end

     0   :  { %s2234_s0 = inlined_call_operand.vmem [shape: f32[2,64,4,4], index: 0, kind: input, shape index: {}]   ;;  %s2235_s1 = inlined_call_operand.vmem [shape: f32[2,64,4,4], index: 1, kind: input, shape index: {}]   ;;  %s2236_s2 = inlined_call_operand.vmem [shape: f32[2,64,4,4], index: 2, kind: input, shape index: {}]   ;;  %s2237_s3 = inlined_call_operand.vmem [shape: f32[2,64,4,4], index: 3, kind: input, shape index: {}]   ;;  %s2238_s4 = inlined_call_operand.vmem [shape: f32[2,64,4], index: 4, kind: output, shape index: {0}]   ;;  %s2239_s5 = inlined_call_operand.vmem [shape: f32[2,64,4], index: 5, kind: output, shape index: {1}]   ;;  %s2240_s6 = inlined_call_operand.vmem [shape: f32[2,64,4,4], index: 6, kind: output, shape index: {2}]   ;;  %s2241_s7 = inlined_call_operand.vmem [shape: f32[2,64,4,4], index: 7, kind: output, shape index: {3}]   ;;  %s2242_s8 = inlined_call_operand.vmem [shape: f32[2,64,4,4], index: 8, kind: output, shape index: {4}]   ;;  %s2243_s9 = inlined_call_operand.vmem [shape: f32[2,64,4,4], index: 9, kind: output, shape index: {5}]  }
   0x1   :  { %2249 = sst [smem:[#allocation36_spill]] %s2243_s9 }
   0x2   :  { %s1866_s30 = smov 0   ;;  %s1868_s10 = smov 0  }
   0x3   :  { %s1870_s11 = smov 0   ;;  %s1872_s12 = smov 0  }
   0x4   :  { %s1874_s13 = smov 0   ;;  %s1876_s14 = smov 0  }
   0x5   :  { %s1878_s15 = smov 0  }
   0x6 LB: > { %2250 = sst [smem:[#allocation31_spill]] %s1783_s10  ;;  %s25_s16 = sadd.s32 1, %s1795_s13  ;;  %s1803_s15 = sphi %s1878_s15, %s16_s15   ;;  %s1799_s14 = sphi %s1876_s14, %s2275_s14   ;;  %s1795_s13 = sphi %s1874_s13, %s2277_s13   ;;  %s1791_s12 = sphi %s1872_s12, %s2273_s12   ;;  %s1787_s11 = sphi %s1870_s11, %s2276_s11   ;;  %s1783_s10 = sphi %s1868_s10, %s2272_s10   ;;  %s1779_s30 = sphi %s1866_s30, %s2271_s30  }
   0x7   : > { %2251 = sst [smem:[#allocation32_spill]] %s1799_s14  ;;  %p26_p0 = scmp.ge.s32.totalorder %s25_s16, 64 }
   0x8   : > { %s28_s17 = sadd.s32 1, %s1799_s14  ;;  %s2244_s18 = sadd.s32 4294967295, %s1803_s15  }
   0x9   : > { %s32_s19 = sshrl.u32 %s1795_s13, 3  ;;  %s2279_s16 = smov (%p26_p0, %s25_s16), 0 }
   0xa   : > { %2252 = sst [smem:[#allocation33_spill]] %s2279_s16  ;;  %s2281_s17 = smov (!%p26_p0, %s28_s17), %s1799_s14 }
   0xb   : > { %s33_s20 = sshrl.u32 %s2279_s16, 3  ;;  %p49_p1 = scmp.ne.s32.totalorder %s1783_s10, %s1779_s30 }
   0xc   : > { %p30_p2 = scmp.ge.s32.totalorder %s2281_s17, 2  ;;  %s35_s21 = ssub.s32 %s32_s19, %s33_s20 }
   0xd   : > { %p50_p3 = scmp.eq.s32.totalorder %s2244_s18, 127  ;;  %s39_s25 = sadd.s32 1, %s1783_s10 }
   0xe   : > { %s2283_s17 = smov (%p30_p2, %s2281_s17), 0  ;;  %p1590_p6 = scmp.ge.s32.totalorder %s1803_s15, 128 }
   0xf   : > { %2253 = sst [smem:[#allocation34_spill]] %s2283_s17  ;;  %p1915_p4 = por %p50_p3, %p49_p1 }
  0x10   : > { %s34_s23 = ssub.s32 %s1799_s14, %s2283_s17  ;;  %s104_s27 = sand.u32 (!%p1590_p6), 1, %s1803_s15  }
  0x11   : > { %s36_s24 = sor.u32 %s35_s21, %s34_s23  ;;  %s1592_s28 = sshll.u32 (!%p1590_p6), %s1799_s14, 6 }
  0x12   : > { %p37_p5 = scmp.eq.s32.totalorder %s36_s24, 0  ;;  %102 = sbr.rel (%p1590_p6) target bundleno = 28 (0x1c), region = 16 }
  0x13   : > { %s1591_s29 = sshll.u32 (!%p1590_p6), %s104_s27, 2  ;;  %s108_s19 = sadd.s32 (!%p1590_p6), %s1795_s13, %s1592_s28 }
  0x14   : > { %s1923_s26 = scalar_select %p37_p5, %s1783_s10, %s39_s25  }
  0x15   : > { %s1593_s20 = sshll.u32 (!%p1590_p6), %s108_s19, 2  ;;  %s106_s25 = scalar_lea.vmem (!%p1590_p6), [#allocation1], %s1591_s29 }
  0x16   : > { %2255 = sst [smem:[#allocation35_spill]] %s1923_s26  ;;  %s110_s17 = scalar_lea.vmem (!%p1590_p6), %s2234_s0, %s1593_s20 }
  0x17   : > { %v127_v0 = vld [vmem:[%s110_s17] sm:$0xf]  ;;  %s151_s24 = scalar_lea.vmem %s2235_s1, %s1593_s20  ;;  %s192_s9 = scalar_lea.vmem %s2236_s2, %s1593_s20 }
  0x18   : > { %128 = vst [vmem:[%s106_s25] sm:$0xf] %v127_v0  ;;  %v168_v1 = vld [vmem:[%s151_s24] sm:$0xf]  ;;  %s147_s14 = scalar_lea.vmem [#allocation3], %s1591_s29  ;;  %s233_s16 = scalar_lea.vmem %s2237_s3, %s1593_s20 }
  0x19   : > { %169 = vst [vmem:[%s147_s14] sm:$0xf] %v168_v1  ;;  %v209_v2 = vld [vmem:[%s192_s9] sm:$0xf]  ;;  %s188_s18 = scalar_lea.vmem [#allocation5], %s1591_s29  ;;  %s229_s17 = scalar_lea.vmem [#allocation7], %s1591_s29 }
  0x1a   : > { %210 = vst [vmem:[%s188_s18] sm:$0xf] %v209_v2  ;;  %v250_v3 = vld [vmem:[%s233_s16] sm:$0xf] }
  0x1b   : > { %251 = vst [vmem:[%s229_s17] sm:$0xf] %v250_v3 }
  0x1c PF: > { %p1603_p7 = scmp.ge.s32.totalorder %s1803_s15, 1  ;;  %p268_p8 = scmp.lt.s32.totalorder %s1803_s15, 129 }
  0x1e   : > { %p269_p9 = pnand %p1603_p7, %p268_p8 }
  0x20   : > { %272 = sbr.rel (%p269_p9) target bundleno = 1004 (0x3ec), region = 140 }
  0x25   : > { %s2256_s10 = sadd.s32 4294967295, %s1803_s15   ;;  %s309_s14 = sand.u32 1, %s1779_s30   ;;  %v373_v4 = vlaneseq  ;;  %v1813_v5 = vmov 0.0  }
  0x26   : > { %s291_s9 = sand.u32 1, %s2256_s10   ;;  %s1948_s29 = sshll.u32 %s309_s14, 3  ;;  %368 = vst [vmem:[#allocation10] sm:$0xff] %v1813_v5  ;;  %369 = vst [vmem:[#allocation12] sm:$0xff] %v1813_v5 }
  0x27   : > { %s1946_s26 = sshll.u32 %s291_s9, 2  ;;  %370 = vst [vmem:[#allocation14] sm:$0xff] %v1813_v5  ;;  %371 = vst [vmem:[#allocation16] sm:$0xff] %v1813_v5  ;;  %v1950_v6 = vand.u32 127, %v373_v4  ;;  %v1952_v7 = vshrl.u32 %v373_v4, 7  ;;  %s356_s23 = smov [#allocation18] }
  0x28   : > { %s293_s19 = scalar_lea.vmem [#allocation1], %s1946_s26  ;;  %s297_s30 = scalar_lea.vmem [#allocation3], %s1946_s26 }
  0x29   : > { %v337_v8 = vld [vmem:[%s293_s19] sm:$0xf]  ;;  %v342_v9 = vld [vmem:[%s297_s30] sm:$0xf]  ;;  %s301_s20 = scalar_lea.vmem [#allocation5], %s1946_s26  ;;  %s305_s21 = scalar_lea.vmem [#allocation7], %s1946_s26  ;;  %v375_v6 = vmov %v1950_v6  ;;  %v378_v7 = vmov %v1952_v7 }
  0x2a   : > { %338 = vst [vmem:[#allocation0] sm:$0xf] %v337_v8  ;;  %343 = vst [vmem:[#allocation2] sm:$0xf] %v342_v9  ;;  %v347_v10 = vld [vmem:[%s301_s20] sm:$0xf]  ;;  %v388_v6 = vmov %v1950_v6  ;;  %v391_v7 = vmov %v1952_v7  ;;  %vm382_vm0 = vcmp.eq.s32.totalorder %v378_v7, %v375_v6 }
  0x2b   : > { %v352_v11 = vld [vmem:[%s305_s21] sm:$0xf]  ;;  %348 = vst [vmem:[#allocation4] sm:$0xf] %v347_v10  ;;  %s359_s24 = smov [#allocation19]  ;;  %vm395_vm1 = vcmp.eq.s32.totalorder %v391_v7, %v388_v6  ;;  %s372_s25 = smov [#allocation10]  ;;  %v1462_v7 = vmov %v1952_v7 }
  0x2c   : > { %353 = vst [vmem:[#allocation6] sm:$0xf] %v352_v11  ;;  %s385_s27 = smov [#allocation16]  ;;  %s362_s28 = smov [#allocation20]  ;;  %vm1467_vm2 = vcmp.lt.s32.totalorder %v1950_v6, 4  ;;  %v1459_v6 = vmov %v1950_v6 }
  0x2d   : > { %s365_s16 = smov [#allocation21]  ;;  %v379_v12 = vld [vmem:[%s372_s25] sm:$0xf]  ;;  %s1463_s30 = smov [#allocation18]  ;;  %vm1472_vm3 = vcmp.eq.s32.totalorder %v1462_v7, %v1459_v6  ;;  %v1510_v6 = vmov %v1950_v6  ;;  %v1479_v7 = vmov %v1952_v7 }
  0x2e   : > { %v392_v13 = vld [vmem:[%s385_s27] sm:$0xf]  ;;  %v383_v16 = vsel %vm382_vm0, 1.0, %v379_v12  ;;  %s1480_s20 = smov [#allocation19]  ;;  %s1497_s21 = smov [#allocation20]  ;;  %v1476_v6 = vmov %v1950_v6  ;;  %v1513_v7 = vmov %v1952_v7 }
  0x2f   : > { %v396_v17 = vsel %vm395_vm1, 1.0, %v392_v13  ;;  %384 = vst [vmem:[%s372_s25] sm:$0xf] %v383_v16  ;;  %v1493_v6 = vmov %v1950_v6  ;;  %v1496_v7 = vmov %v1952_v7  ;;  %vm1523_vm4 = vcmp.eq.s32.totalorder %v1513_v7, %v1510_v6 }
  0x30   : > { %397 = vst [vmem:[%s385_s27] sm:$0xf] %v396_v17 }
  0x31   : > { %v357_v14 = vld [vmem:[#allocation0] sm:$0xff]  ;;  %v360_v15 = vld [vmem:[#allocation2] sm:$0xff] }
  0x32   : > { %358 = vst [vmem:[%s356_s23] sm:$0xff] %v357_v14  ;;  %361 = vst [vmem:[%s359_s24] sm:$0xff] %v360_v15  ;;  %v363_v18 = vld [vmem:[#allocation4] sm:$0xff]  ;;  %s1514_s23 = smov [#allocation21] }
  0x33   : > { %v366_v19 = vld [vmem:[#allocation6] sm:$0xff]  ;;  %364 = vst [vmem:[%s362_s28] sm:$0xff] %v363_v18 }
  0x34   : > { %367 = vst [vmem:[%s365_s16] sm:$0xff] %v366_v19 }
  0x39   : > { %v1469_v20 = vld [vmem:[%s1463_s30] sm:$0xf] }
  0x3a   : > { %v1486_v21 = vld [vmem:[%s1480_s20] sm:$0xf]  ;;  %v1470_v22 = vsel %vm1467_vm2, %v1469_v20, 0.0 }
  0x3b   : > { %v1487_v23 = vsel %vm1467_vm2, %v1486_v21, 0.0  ;;  %v1503_v24 = vld [vmem:[%s1497_s21] sm:$0xf]  ;;  %v1471_v26 = vmul.f32 %v1470_v22, %v1470_v22 }
  0x3c   : > { %v1520_v25 = vld [vmem:[%s1514_s23] sm:$0xf]  ;;  %v1488_v27 = vmul.f32 %v1487_v23, %v1487_v23  ;;  %v1504_v28 = vsel %vm1467_vm2, %v1503_v24, 0.0 }
  0x3d   : > { %v1521_v29 = vsel %vm1467_vm2, %v1520_v25, 0.0  ;;  %v1505_v30 = vmul.f32 %v1504_v28, %v1504_v28  ;;  %v1473_v33 = vsel %vm1472_vm3, 0.0, %v1471_v26 }
  0x3e   : > { %v1490_v31 = vadd.f32 %v1488_v27, %v1471_v26  ;;  %v1522_v32 = vmul.f32 %v1521_v29, %v1521_v29  ;;  %v1489_v34 = vadd.f32 %v1488_v27, %v1473_v33 }
  0x40   : > { %v1507_v35 = vadd.f32 %v1505_v30, %v1490_v31  ;;  %v1506_v36 = vadd.f32 %v1505_v30, %v1489_v34  ;;  %v1524_v37 = vsel %vm1523_vm4, 0.0, %v1522_v32 }
  0x42   : > { %v1526_v38 = vadd.f32 %v1522_v32, %v1507_v35  ;;  %v1525_v39 = vadd.f32 %v1524_v37, %v1506_v36 }
  0x44   : > { %1527 = vadd.xlane.f32.xlu0 %v1526_v38 }
  0x48   : > { %1535 = vadd.xlane.f32.xlu0 %v1525_v39 }
  0xcd   : > { %v1528_v40 = vpop.xlane.xlu0 %1527 }
  0xce   : > { %v1529_v41 = vrot.slane %v1528_v40, 4 }
  0xd0   : > { %v1530_v42 = vadd.f32 %v1529_v41, %v1528_v40 }
  0xd1   : > { %v1536_v43 = vpop.xlane.xlu0 %1535 }
  0xd2   : > { %v1531_v44 = vrot.slane %v1530_v42, 2  ;;  %v1537_v45 = vrot.slane %v1536_v43, 4 }
  0xd4   : > { %v1538_v46 = vadd.f32 %v1537_v45, %v1536_v43  ;;  %v1532_v47 = vadd.f32 %v1531_v44, %v1530_v42 }
  0xd6   : > { %v1539_v48 = vrot.slane %v1538_v46, 2  ;;  %v1533_v50 = vrot.slane %v1532_v47, 1 }
  0xd8   : > { %v1540_v49 = vadd.f32 %v1539_v48, %v1538_v46  ;;  %v1534_v53 = vadd.f32 %v1533_v50, %v1532_v47 }
  0xda   : > { %v1541_v51 = vrot.slane %v1540_v49, 1 }
  0xdc   : > { %v1542_v52 = vadd.f32 %v1541_v51, %v1540_v49 }
  0xde   : > { %1650 = vpush %v1542_v52 }
  0xdf   : > { %1652 = vpush %v1534_v53 }
 0x10f   : > { %s1651_s24 = spop %1650 }
 0x110   : > { %s1653_s25 = spop %1652 }
 0x111   : > { %s1545_s27 = smul.f32 1e-10, %s1653_s25 }
 0x113   : > { %p1546_p10 = scmp.le.f32.partialorder %s1651_s24, %s1545_s27 }
 0x114   : > { %s1986_s28 = smov (!%p1546_p10), 0  }
 0x115   : > { %1549 = sbr.rel (%p1546_p10) target bundleno = 959 (0x3bf), region = 475 }
 0x11a LB: >> { %s1991_s16 = smov 0   ;;  %s1807_s28 = sphi %s1986_s28, %s2257_s28  }
 0x11b LB: >>> { %s502_s30 = smov [#allocation18]  ;;  %v506_v6 = vmov %v1950_v6  ;;  %v509_v7 = vmov %v1952_v7  ;;  %s522_s20 = smov [#allocation19]  ;;  %vm825_vm14 = vcmp.eq.s32.totalorder %v1952_v7, 0  ;;  %vm837_vm15 = vcmp.eq.s32.totalorder %v1952_v7, 3  ;;  %s1811_s16 = sphi %s1991_s16, %s501_s16  }
 0x11c   : >>> { %v526_v6 = vmov %v1950_v6  ;;  %v529_v7 = vmov %v1952_v7  ;;  %v510_v54 = vld [vmem:[%s502_s30] sm:$0xf]  ;;  %vm513_vm5 = vcmp.eq.s32.totalorder %v509_v7, %v506_v6  ;;  %s542_s21 = smov [#allocation21]  ;;  %s503_s23 = smov [#allocation22] }
 0x11d   : >>> { %vm533_vm6 = vcmp.eq.s32.totalorder %v529_v7, %v526_v6  ;;  %v546_v6 = vmov %v1950_v6  ;;  %v549_v7 = vmov %v1952_v7  ;;  %v514_v55 = vsel %vm513_vm5, %v510_v54, 0.0  ;;  %v530_v56 = vld [vmem:[%s522_s20] sm:$0xf]  ;;  %s523_s24 = smov [#allocation23]  ;;  %s543_s25 = smov [#allocation24] }
 0x11e   : >>> { %vm553_vm7 = vcmp.eq.s32.totalorder %v549_v7, %v546_v6  ;;  %v515_v57 = vrot.slane %v514_v55, 4  ;;  %v534_v58 = vsel %vm533_vm6, %v530_v56, 0.0  ;;  %v550_v59 = vld [vmem:[%s542_s21] sm:$0xf]  ;;  %s566_s27 = smov [#allocation23]  ;;  %s564_s30 = smov [#allocation22]  ;;  %v615_v6 = vmov %v1950_v6 }
 0x11f   : >>> { %v535_v60 = vrot.slane %v534_v58, 4  ;;  %v554_v61 = vsel %vm553_vm7, %v550_v59, 0.0  ;;  %s568_s20 = smov [#allocation24]  ;;  %s603_s21 = smov [#allocation25]  ;;  %v618_v7 = vmov %v1952_v7  ;;  %v630_v6 = vmov %v1950_v6 }
 0x120   : >>> { %v516_v62 = vadd.f32 %v515_v57, %v514_v55  ;;  %v555_v63 = vrot.slane %v554_v61, 4  ;;  %v633_v7 = vmov %v1952_v7  ;;  %vm620_vm12 = vcmp.eq.s32.totalorder %v618_v7, %v615_v6  ;;  %s2010_s17 = smov [#allocation20]  ;;  %s2016_s18 = smov [#allocation12] }
 0x121   : >>> { %v536_v0 = vadd.f32 %v535_v60, %v534_v58  ;;  %vm635_vm13 = vcmp.eq.s32.totalorder %v633_v7, %v630_v6  ;;  %s865_s19 = smov [#allocation29]  ;;  %s2022_s14 = smov [#allocation16]  ;;  %v651_v55 = vld [vmem:[%s2010_s17] sm:$0xf]  ;;  %v728_v6 = vmov %v1950_v6  ;;  %v731_v7 = vmov %v1952_v7 }
 0x122   : >>> { %v517_v1 = vrot.slane %v516_v62, 2  ;;  %v556_v2 = vadd.f32 %v555_v63, %v554_v61  ;;  %v874_v58 = vld [vmem:[%s2016_s18] sm:$0xf]  ;;  %s643_s9 = smov [#allocation30]  ;;  %s867_s10 = smov [#allocation30]  ;;  %v742_v6 = vmov %v1950_v6  ;;  %v745_v7 = vmov %v1952_v7 }
 0x123   : >>> { %v537_v3 = vrot.slane %v536_v0, 2  ;;  %v876_v61 = vld [vmem:[%s2022_s14] sm:$0xf]  ;;  %vm735_vm0 = vcmp.eq.s32.totalorder %v731_v7, %v728_v6  ;;  %v701_v6 = vmov %v1950_v6  ;;  %v704_v7 = vmov %v1952_v7  ;;  %s501_s16 = sadd.s32 1, %s1811_s16  }
 0x124   : >>> { %v518_v4 = vadd.f32 %v517_v1, %v516_v62  ;;  %v557_v5 = vrot.slane %v556_v2, 2  ;;  %v715_v6 = vmov %v1950_v6  ;;  %v718_v7 = vmov %v1952_v7  ;;  %p498_p11 = scmp.ge.s32.totalorder %s501_s16, 7  }
 0x125   : >>> { %v538_v8 = vadd.f32 %v537_v3, %v536_v0  ;;  %vm750_vm1 = vcmp.eq.s32.totalorder %v745_v7, %v742_v6  ;;  %vm709_vm3 = vcmp.eq.s32.totalorder %v704_v7, %v701_v6  ;;  %vm722_vm4 = vcmp.eq.s32.totalorder %v718_v7, %v715_v6 }
 0x126   : >>> { %v519_v9 = vrot.slane %v518_v4, 1  ;;  %v558_v10 = vadd.f32 %v557_v5, %v556_v2  ;;  %vm764_vm5 = vcmp.eq.s32.totalorder %v1950_v6, 0  ;;  %vm768_vm6 = vcmp.eq.s32.totalorder %v1950_v6, 1 }
 0x127   : >>> { %v539_v11 = vrot.slane %v538_v8, 1  ;;  %vm781_vm7 = vcmp.eq.s32.totalorder %v1950_v6, 3  ;;  %v402_v6 = vmov (%p498_p11), %v1950_v6  ;;  %v405_v7 = vmov (%p498_p11), %v1952_v7 }
 0x128   : >>> { %v520_v12 = vadd.f32 %v519_v9, %v518_v4  ;;  %v559_v13 = vrot.slane %v558_v10, 1  ;;  %v455_v6 = vmov (%p498_p11), %v1950_v6 }
 0x129   : >>> { %v540_v14 = vadd.f32 %v539_v11, %v538_v8 }
 0x12a   : >>> { %521 = vst [vmem:[%s503_s23] sm:$0x1] %v520_v12  ;;  %v560_v15 = vadd.f32 %v559_v13, %v558_v10  ;;  %s605_s23 = smov [#allocation26] }
 0x12b   : >>> { %541 = vst [vmem:[%s523_s24] sm:$0x1] %v540_v14  ;;  %s562_s24 = smov [#allocation27] }
 0x12c   : >>> { %561 = vst [vmem:[%s543_s25] sm:$0x1] %v560_v15  ;;  %s563_s25 = smov [#allocation28]  ;;  %s607_s24 = smov %s562_s24 }
 0x12d   : >>> { %s609_s25 = smov %s563_s25 }
 0x131   : >>> { %v565_v18 = vld [vmem:[%s564_s30] sm:$0xff]  ;;  %s626_s30 = smov [#allocation28] }
 0x132   : >>> { %v567_v16 = vld [vmem:[%s566_s27] sm:$0xff]  ;;  %v588_v33 = vand.u32 2147483647, %v565_v18  ;;  %s611_s27 = smov [#allocation27] }
 0x133   : >>> { %v571_v17 = vmul.f32 2.0, %v567_v16  ;;  %v569_v19 = vld [vmem:[%s568_s20] sm:$0xff]  ;;  %v589_v36 = vand.u32 2147483647, %v567_v16  ;;  %s624_s20 = smov [#allocation29] }
 0x134   : >>> { %v570_v20 = vsub.f32 %v569_v19, %v565_v18  ;;  %v590_v34 = vand.u32 2147483647, %v569_v19 }
 0x135   : >>> { %1733 = vrcp.f32 %v571_v17 }
 0x136   : >>> { %v591_v35 = vmin.f32 %v588_v33, %v590_v34 }
 0x138   : >>> { %v592_v37 = vmul.f32 1.1920929e-08, %v591_v35 }
 0x13a   : >>> { %vm593_vm11 = vcmp.le.f32.partialorder %v589_v36, %v592_v37 }
 0x142   : >>> { %v1734_v21 = vpop.eup %1733 }
 0x143   : >>> { %v573_v22 = vmul.f32 %v1734_v21, %v570_v20 }
 0x145   : >>> { %v575_v23 = vmul.f32 %v573_v22, %v573_v22  ;;  %vm574_vm10 = vcmp.ge.f32.partialorder %v573_v22, 0.0 }
 0x147   : >>> { %v576_v24 = vadd.f32 1.0, %v575_v23 }
 0x149   : >>> { %1735 = vrsqrt.f32 %v576_v24  ;;  %vm579_vm8 = vcmp.eq.f32.partialorder %v576_v24, inf  ;;  %v582_v26 = vand.u32 2147483648, %v576_v24  ;;  %vm581_vm9 = vcmp.eq.f32.partialorder %v576_v24, 0.0 }
 0x156   : >>> { %v1736_v25 = vpop.eup %1735 }
 0x157   : >>> { %v578_v27 = vmul.f32 %v1736_v25, %v576_v24 }
 0x159   : >>> { %v580_v28 = vsel %vm579_vm8, %v576_v24, %v578_v27  ;;  %vm417_vm8 = vcmp.eq.s32.totalorder (%p498_p11), %v405_v7, %v402_v6  ;;  %v458_v7 = vmov (%p498_p11), %v1952_v7  ;;  %v421_v6 = vmov (%p498_p11), %v1950_v6 }
 0x15a   : >>> { %v583_v29 = vsel %vm581_vm9, %v582_v26, %v580_v28  ;;  %v424_v7 = vmov (%p498_p11), %v1952_v7  ;;  %v438_v6 = vmov (%p498_p11), %v1950_v6  ;;  %vm470_vm9 = vcmp.eq.s32.totalorder (%p498_p11), %v458_v7, %v455_v6 }
 0x15b   : >>> { %v584_v30 = vxor.u32 2147483648, %v583_v29  ;;  %v441_v7 = vmov (%p498_p11), %v1952_v7 }
 0x15d   : >>> { %v585_v31 = vsel %vm574_vm10, %v583_v29, %v584_v30 }
 0x15e   : >>> { %v586_v32 = vadd.f32 %v585_v31, %v573_v22 }
 0x160   : >>> { %1737 = vrcp.f32 %v586_v32 }
 0x16d   : >>> { %v1738_v38 = vpop.eup %1737 }
 0x16e   : >>> { %v594_v39 = vsel %vm593_vm11, 0.0, %v1738_v38 }
 0x16f   : >>> { %v595_v40 = vmul.f32 %v594_v39, %v594_v39  ;;  %v599_v41 = vmul.f32 %v594_v39, %v567_v16 }
 0x171   : >>> { %v596_v42 = vadd.f32 1.0, %v595_v40  ;;  %v600_v43 = vsub.f32 %v565_v18, %v599_v41  ;;  %v602_v44 = vadd.f32 %v599_v41, %v569_v19 }
 0x173   : >>> { %1739 = vrsqrt.f32 %v596_v42  ;;  %604 = vst [vmem:[%s603_s21] sm:$0xff] %v600_v43  ;;  %606 = vst [vmem:[%s605_s23] sm:$0xff] %v602_v44  ;;  %s641_s21 = smov [#allocation29]  ;;  %s2006_s23 = smov [#allocation18] }
 0x174   : >>> { %v649_v53 = vld [vmem:[%s2006_s23] sm:$0xf] }
 0x180   : >>> { %v1740_v45 = vpop.eup %1739 }
 0x181   : >>> { %608 = vst [vmem:[%s607_s24] sm:$0xff] %v1740_v45  ;;  %v598_v46 = vmul.f32 %v1740_v45, %v594_v39  ;;  %s639_s24 = smov [#allocation30] }
 0x183   : >>> { %610 = vst [vmem:[%s609_s25] sm:$0xff] %v598_v46  ;;  %s2008_s25 = smov [#allocation19] }
 0x184   : >>> { %v650_v54 = vld [vmem:[%s2008_s25] sm:$0xf] }
 0x188   : >>> { %v612_v47 = vld [vmem:[%s611_s27] ss:$0 sm:$0xff]  ;;  %s2012_s27 = smov [#allocation21] }
 0x189   : >>> { %v621_v48 = vsel %vm620_vm12, %v612_v47, 0.0  ;;  %v652_v56 = vld [vmem:[%s2012_s27] sm:$0xf] }
 0x18a   : >>> { %622 = vadd.xlane.f32.xlu0 %v621_v48  ;;  %v627_v49 = vld [vmem:[%s626_s30] ss:$0 sm:$0xff]  ;;  %s2014_s30 = smov [#allocation10] }
 0x18b   : >>> { %v636_v50 = vsel %vm635_vm13, %v627_v49, 0.0  ;;  %v873_v57 = vld [vmem:[%s2014_s30] sm:$0xf] }
 0x18e   : >>> { %637 = vadd.xlane.f32.xlu0 %v636_v50 }
 0x213   : >>> { %v623_v51 = vpop.xlane.xlu0 %622 }
 0x214   : >>> { %625 = vst [vmem:[%s624_s20] sm:$0xff] %v623_v51  ;;  %s2018_s20 = smov [#allocation14] }
 0x215   : >>> { %v875_v59 = vld [vmem:[%s2018_s20] sm:$0xf] }
 0x217   : >>> { %v638_v52 = vpop.xlane.xlu0 %637 }
 0x218   : >>> { %640 = vst [vmem:[%s639_s24] sm:$0xff] %v638_v52  ;;  %s2042_s24 = smov [#allocation21] }
 0x21b   : >>> { %v642_v60 = vld [vmem:[%s641_s21] sm:$0xff]  ;;  %s2040_s21 = smov [#allocation20] }
 0x21c   : >>> { %v866_v62 = vld [vmem:[%s865_s19] sm:$0xff]  ;;  %v653_v63 = vmul.f32 %v649_v53, %v642_v60  ;;  %v656_v0 = vmul.f32 %v650_v54, %v642_v60  ;;  %v660_v1 = vmul.f32 %v651_v55, %v642_v60  ;;  %v663_v2 = vmul.f32 %v652_v56, %v642_v60  ;;  %s2038_s19 = smov [#allocation10] }
 0x21d   : >>> { %v877_v3 = vmul.f32 %v873_v57, %v866_v62  ;;  %v880_v4 = vmul.f32 %v874_v58, %v866_v62  ;;  %v884_v5 = vmul.f32 %v875_v59, %v866_v62  ;;  %v887_v8 = vmul.f32 %v876_v61, %v866_v62 }
 0x21f   : >>> { %v644_v9 = vld [vmem:[%s643_s9] sm:$0xff]  ;;  %s671_s9 = smov [#allocation28] }
 0x220   : >>> { %v868_v10 = vld [vmem:[%s867_s10] sm:$0xff]  ;;  %v654_v11 = vmul.f32 %v651_v55, %v644_v9  ;;  %v657_v12 = vmul.f32 %v652_v56, %v644_v9  ;;  %v659_v13 = vmul.f32 %v649_v53, %v644_v9  ;;  %v662_v14 = vmul.f32 %v650_v54, %v644_v9  ;;  %s669_s10 = smov [#allocation27] }
 0x221   : >>> { %v878_v15 = vmul.f32 %v875_v59, %v868_v10  ;;  %v881_v16 = vmul.f32 %v876_v61, %v868_v10  ;;  %v883_v17 = vmul.f32 %v873_v57, %v868_v10  ;;  %v886_v18 = vmul.f32 %v874_v58, %v868_v10  ;;  %v670_v27 = vld [vmem:[%s669_s10] ss:$0 sm:$0xff]  ;;  %s698_s10 = smov [#allocation25] }
 0x222   : >>> { %v655_v19 = vsub.f32 %v653_v63, %v654_v11  ;;  %v658_v20 = vsub.f32 %v656_v0, %v657_v12  ;;  %v661_v21 = vadd.f32 %v660_v1, %v659_v13  ;;  %v664_v22 = vadd.f32 %v663_v2, %v662_v14  ;;  %v672_v28 = vld [vmem:[%s671_s9] ss:$0 sm:$0xff]  ;;  %s697_s9 = smov [#allocation18] }
 0x223   : >>> { %v879_v23 = vsub.f32 %v877_v3, %v878_v15  ;;  %v882_v24 = vsub.f32 %v880_v4, %v881_v16  ;;  %v885_v25 = vadd.f32 %v884_v5, %v883_v17  ;;  %v888_v26 = vadd.f32 %v887_v8, %v886_v18  ;;  %v705_v63 = vld [vmem:[%s698_s10] ss:$0 sm:$0xff]  ;;  %s941_s10 = sadd.s32 (%p498_p11), 1, %s1807_s28  }
 0x224   : >>> { %666 = vst [vmem:[%s2008_s25] sm:$0xf] %v658_v20  ;;  %668 = vst [vmem:[%s2012_s27] sm:$0xf] %v664_v22  ;;  %s2044_s25 = smov [#allocation18]  ;;  %s739_s27 = smov [#allocation26] }
 0x225   : >>> { %665 = vst [vmem:[%s2006_s23] sm:$0xf] %v655_v19  ;;  %667 = vst [vmem:[%s2010_s17] sm:$0xf] %v661_v21  ;;  %s2046_s17 = smov [#allocation14]  ;;  %s2054_s23 = smov [#allocation19]  ;;  %v746_v59 = vld [vmem:[%s739_s27] ss:$0 sm:$0xff] }
 0x226   : >>> { %889 = vst [vmem:[%s2014_s30] sm:$0xf] %v879_v23  ;;  %890 = vst [vmem:[%s2016_s18] sm:$0xf] %v882_v24  ;;  %s2048_s18 = smov [#allocation12]  ;;  %s725_s30 = smov [#allocation20] }
 0x227   : >>> { %891 = vst [vmem:[%s2018_s20] sm:$0xf] %v885_v25  ;;  %892 = vst [vmem:[%s2022_s14] sm:$0xf] %v888_v26  ;;  %s2052_s14 = smov [#allocation16]  ;;  %s738_s20 = smov [#allocation21] }
 0x228   : >>> { %s841_s27 = smov [#allocation19]  ;;  %p494_p12 = scmp.ge.s32.totalorder (%p498_p11), %s941_s10, 15 }
 0x229   : >> { %s2257_s28 = smov (%p498_p11), %s941_s10 }
 0x22b   : >>> { %v680_v30 = vld [vmem:[%s2042_s24] sm:$0xf] }
 0x22c   : >>> { %v679_v29 = vld [vmem:[%s2040_s21] sm:$0xf]  ;;  %v688_v36 = vmul.f32 %v680_v30, %v672_v28  ;;  %v691_v42 = vmul.f32 %v680_v30, %v670_v27 }
 0x22d   : >>> { %v677_v31 = vld [vmem:[%s2044_s25] sm:$0xf]  ;;  %v687_v35 = vmul.f32 %v679_v29, %v670_v27  ;;  %v690_v37 = vmul.f32 %v679_v29, %v672_v28 }
 0x22e   : >>> { %v895_v32 = vld [vmem:[%s2038_s19] ss:$0 sm:$0xff]  ;;  %v1623_v34 = vld [vmem:[%s2038_s19 + $0x3] ss:$0 sm:$0xff]  ;;  %v681_v48 = vmul.f32 %v677_v31, %v670_v27  ;;  %v684_v49 = vmul.f32 %v677_v31, %v672_v28 }
 0x22f   : >>> { %v1622_v33 = vld [vmem:[%s2038_s19 - $0x1] sm:$0xe]  ;;  %v1627_v45 = vld [vmem:[%s2048_s18 + $0x3] ss:$0 sm:$0xff]  ;;  %v689_v47 = vsub.f32 %v687_v35, %v688_v36  ;;  %v692_v53 = vadd.f32 %v691_v42, %v690_v37 }
 0x230   : >>> { %v902_v38 = vsel %vm825_vm14, %v895_v32, %v1622_v33  ;;  %v906_v39 = vld [vmem:[%s2046_s17] ss:$0 sm:$0xff]  ;;  %v1625_v40 = vld [vmem:[%s2046_s17 + $0x1] sm:$0x7] }
 0x231   : >>> { %v919_v41 = vld [vmem:[%s2048_s18] ss:$0 sm:$0xff]  ;;  %905 = vst [vmem:[%s2038_s19] sm:$0xf] %v902_v38  ;;  %v914_v43 = vsel %vm837_vm15, %v1623_v34, %v1625_v40  ;;  %v1629_v51 = vld [vmem:[%s2052_s14 + $0x1] sm:$0x7]  ;;  %695 = vst [vmem:[%s2040_s21] sm:$0xf] %v689_v47 }
 0x232   : >>> { %v1626_v44 = vld [vmem:[%s2048_s18 - $0x1] sm:$0xe]  ;;  %1624 = vst [vmem:[%s2038_s19 + $0x1] sm:$0x1] %v906_v39  ;;  %916 = vst [vmem:[%s2046_s17] sm:$0xf] %v914_v43  ;;  %v938_v54 = vsel %vm837_vm15, %v1627_v45, %v1629_v51  ;;  %s712_s19 = smov [#allocation19] }
 0x233   : >>> { %v930_v46 = vld [vmem:[%s2052_s14] ss:$0 sm:$0xff]  ;;  %v926_v50 = vsel %vm825_vm14, %v919_v41, %v1626_v44  ;;  %696 = vst [vmem:[%s2042_s24] sm:$0xf] %v692_v53  ;;  %s2096_s21 = smov [#allocation20]  ;;  %s1814_s24 = smov 1  }
 0x234   : >>> { %v678_v52 = vld [vmem:[%s2054_s23] sm:$0xf]  ;;  %929 = vst [vmem:[%s2048_s18] sm:$0xf] %v926_v50  ;;  %940 = vst [vmem:[%s2052_s14] sm:$0xf] %v938_v54  ;;  %s754_s17 = smov [#allocation19]  ;;  %s2099_s14 = smov [#allocation21] }
 0x235   : >>> { %v682_v55 = vmul.f32 %v678_v52, %v672_v28  ;;  %v685_v56 = vmul.f32 %v678_v52, %v670_v27  ;;  %1628 = vst [vmem:[%s2048_s18 + $0x1] sm:$0x1] %v930_v46  ;;  %s1815_s18 = smov 127  }
 0x237   : >>> { %v683_v57 = vsub.f32 %v681_v48, %v682_v55  ;;  %v686_v58 = vadd.f32 %v685_v56, %v684_v49 }
 0x238   : >>> { %v732_v60 = vld [vmem:[%s725_s30] sm:$0xf] }
 0x239   : >>> { %693 = vst [vmem:[%s2044_s25] sm:$0xf] %v683_v57  ;;  %694 = vst [vmem:[%s2054_s23] sm:$0xf] %v686_v58  ;;  %v736_v61 = vsel %vm735_vm0, 0.0, %v732_v60  ;;  %s753_s25 = smov [#allocation18]  ;;  %s817_s23 = smov [#allocation18] }
 0x23a   : >>> { %v747_v62 = vld [vmem:[%s738_s20] sm:$0xf]  ;;  %737 = vst [vmem:[%s725_s30] sm:$0xf] %v736_v61  ;;  %s818_s30 = smov [#allocation20] }
 0x23b   : >>> { %v751_v0 = vsel %vm750_vm1, %v746_v59, %v747_v62 }
 0x23c   : >>> { %752 = vst [vmem:[%s738_s20] sm:$0xf] %v751_v0  ;;  %s842_s20 = smov [#allocation21] }
 0x240   : >>> { %v706_v1 = vld [vmem:[%s697_s9] sm:$0xf] }
 0x241   : >>> { %v719_v2 = vld [vmem:[%s712_s19] sm:$0xf]  ;;  %v710_v3 = vsel %vm709_vm3, %v705_v63, %v706_v1 }
 0x242   : >>> { %v723_v4 = vsel %vm722_vm4, 0.0, %v719_v2  ;;  %711 = vst [vmem:[%s697_s9] sm:$0xf] %v710_v3  ;;  %v791_v5 = vld [vmem:[%s2096_s21] sm:$0xf]  ;;  %s406_s9 = smov (%p498_p11), [#allocation18] }
 0x243   : >>> { %724 = vst [vmem:[%s712_s19] sm:$0xf] %v723_v4  ;;  %792 = vrot.lane.b32.xlu0 %v791_v5, %s1814_s24  ;;  %v787_v11 = vld [vmem:[%s2099_s14] sm:$0xf]  ;;  %s425_s19 = smov (%p498_p11), [#allocation19] }
 0x244   : >>> { %v808_v12 = vld [vmem:[%s2099_s14] sm:$0xf] }
 0x245   : >>> { %v790_v30 = vld [vmem:[%s2096_s21] sm:$0xf] }
 0x249   : >>> { %v759_v8 = vld [vmem:[%s753_s25] sm:$0xf] }
 0x24a   : >>> { %760 = vrot.lane.b32.xlu1 %v759_v8, %s1814_s24  ;;  %v755_v9 = vld [vmem:[%s754_s17] sm:$0xf] }
 0x24b   : >>> { %v776_v10 = vld [vmem:[%s754_s17] sm:$0xf] }
 0x24c   : >>> { %v758_v18 = vld [vmem:[%s753_s25] sm:$0xf] }
 0x24e   : >>> { %756 = vrot.lane.b32.xlu1 %v755_v9, %s1814_s24 }
 0x252   : >>> { %777 = vrot.lane.b32.xlu1 %v776_v10, %s1815_s18 }
 0x256   : >>> { %788 = vrot.lane.b32.xlu1 %v787_v11, %s1814_s24  ;;  %s459_s24 = smov (%p498_p11), [#allocation21] }
 0x25a   : >>> { %809 = vrot.lane.b32.xlu1 %v808_v12, %s1815_s18 }
 0x2b5   : >>> { %v793_v20 = vpop.permute.xlu0 %792 }
 0x2b6   : >>> { %v797_v22 = vsel %vm764_vm5, %v791_v5, %v793_v20 }
 0x2bc   : >>> { %v761_v13 = vpop.permute.xlu1 %760 }
 0x2bd   : >>> { %v765_v14 = vsel %vm764_vm5, %v759_v8, %v761_v13 }
 0x2c0   : >>> { %v757_v15 = vpop.permute.xlu1 %756 }
 0x2c1   : >>> { %v769_v16 = vsel %vm768_vm6, %v757_v15, %v765_v14 }
 0x2c2   : >>> { %v775_v17 = vsel %vm1467_vm2, %v769_v16, 0.0 }
 0x2c3   : >>> { %783 = vst [vmem:[%s753_s25] sm:$0xf] %v775_v17 }
 0x2c4   : >>> { %v778_v19 = vpop.permute.xlu1 %777 }
 0x2c5   : >>> { %v782_v21 = vsel %vm781_vm7, %v758_v18, %v778_v19 }
 0x2c6   : >>> { %784 = vst [vmem:[%s754_s17] sm:$0xf] %v782_v21 }
 0x2c8   : >>> { %v789_v23 = vpop.permute.xlu1 %788 }
 0x2c9   : >>> { %v801_v24 = vsel %vm768_vm6, %v789_v23, %v797_v22 }
 0x2ca   : >>> { %v819_v25 = vld [vmem:[%s817_s23] ss:$0 sm:$0xff]  ;;  %v1615_v27 = vld [vmem:[%s817_s23 + $0x3] ss:$0 sm:$0xff]  ;;  %v807_v29 = vsel %vm1467_vm2, %v801_v24, 0.0 }
 0x2cb   : >>> { %v1614_v26 = vld [vmem:[%s817_s23 - $0x1] sm:$0xe]  ;;  %815 = vst [vmem:[%s2096_s21] sm:$0xf] %v807_v29  ;;  %s442_s21 = smov (%p498_p11), [#allocation20] }
 0x2cc   : >>> { %v826_v28 = vsel %vm825_vm14, %v819_v25, %v1614_v26  ;;  %v810_v31 = vpop.permute.xlu1 %809 }
 0x2cd   : >>> { %829 = vst [vmem:[%s817_s23] sm:$0xf] %v826_v28  ;;  %v843_v32 = vld [vmem:[%s841_s27] ss:$0 sm:$0xff]  ;;  %v1619_v34 = vld [vmem:[%s841_s27 + $0x3] ss:$0 sm:$0xff]  ;;  %v814_v35 = vsel %vm781_vm7, %v790_v30, %v810_v31 }
 0x2ce   : >>> { %v1618_v33 = vld [vmem:[%s841_s27 - $0x1] sm:$0xe]  ;;  %816 = vst [vmem:[%s2099_s14] sm:$0xf] %v814_v35 }
 0x2cf   : >>> { %v850_v36 = vsel %vm825_vm14, %v843_v32, %v1618_v33 }
 0x2d0   : >>> { %853 = vst [vmem:[%s841_s27] sm:$0xf] %v850_v36 }
 0x2d2   : >>> { %v830_v37 = vld [vmem:[%s818_s30] ss:$0 sm:$0xff]  ;;  %v1617_v38 = vld [vmem:[%s818_s30 + $0x1] sm:$0x7] }
 0x2d3   : >>> { %1616 = vst [vmem:[%s817_s23 + $0x1] sm:$0x1] %v830_v37  ;;  %v838_v39 = vsel %vm837_vm15, %v1615_v27, %v1617_v38 }
 0x2d4   : >>> { %840 = vst [vmem:[%s818_s30] sm:$0xf] %v838_v39 }
 0x2d5   : >>> { %v854_v40 = vld [vmem:[%s842_s20] ss:$0 sm:$0xff]  ;;  %v1621_v41 = vld [vmem:[%s842_s20 + $0x1] sm:$0x7] }
 0x2d6   : >>> { %1620 = vst [vmem:[%s841_s27 + $0x1] sm:$0x1] %v854_v40  ;;  %v862_v42 = vsel %vm837_vm15, %v1619_v34, %v1621_v41 }
 0x2d7   : >>> { %864 = vst [vmem:[%s842_s20] sm:$0xf] %v862_v42  ;;  %500 = sbr.rel (!%p498_p11) target bundleno = 283 (0x11b), region = 470 }
 0x2da   : >> { %v412_v43 = vld [vmem:[%s406_s9] sm:$0xf] (%p498_p11) }
 0x2db   : >> { %v413_v45 = vsel (%p498_p11), %vm1467_vm2, %v412_v43, 0.0  ;;  %v448_v47 = vld [vmem:[%s442_s21] sm:$0xf] (%p498_p11) }
 0x2dc   : >> { %v414_v49 = vmul.f32 %v413_v45, %v413_v45  ;;  %v449_v51 = vsel %vm1467_vm2, %v448_v47, 0.0 }
 0x2dd   : >> { %v431_v44 = vld [vmem:[%s425_s19] sm:$0xf]  ;;  %v450_v53 = vmul.f32 %v449_v51, %v449_v51 }
 0x2de   : >> { %v432_v46 = vsel %vm1467_vm2, %v431_v44, 0.0  ;;  %v465_v48 = vld [vmem:[%s459_s24] sm:$0xf]  ;;  %v418_v56 = vsel %vm417_vm8, 0.0, %v414_v49 }
 0x2df   : >> { %v433_v50 = vmul.f32 %v432_v46, %v432_v46  ;;  %v466_v52 = vsel %vm1467_vm2, %v465_v48, 0.0 }
 0x2e0   : >> { %v467_v55 = vmul.f32 %v466_v52, %v466_v52 }
 0x2e1   : >> { %v435_v54 = vadd.f32 %v433_v50, %v414_v49  ;;  %v434_v57 = vadd.f32 %v433_v50, %v418_v56 }
 0x2e2   : >> { %v471_v60 = vsel %vm470_vm9, 0.0, %v467_v55 }
 0x2e3   : >> { %v452_v58 = vadd.f32 %v450_v53, %v435_v54  ;;  %v451_v59 = vadd.f32 %v450_v53, %v434_v57 }
 0x2e5   : >> { %v473_v61 = vadd.f32 %v467_v55, %v452_v58  ;;  %v472_v62 = vadd.f32 %v471_v60, %v451_v59 }
 0x2e7   : >> { %474 = vadd.xlane.f32.xlu0 %v473_v61 }
 0x2eb   : >> { %482 = vadd.xlane.f32.xlu0 %v472_v62 }
 0x370   : >> { %v475_v63 = vpop.xlane.xlu0 %474 }
 0x371   : >> { %v476_v0 = vrot.slane %v475_v63, 4 }
 0x373   : >> { %v477_v1 = vadd.f32 %v476_v0, %v475_v63 }
 0x374   : >> { %v483_v2 = vpop.xlane.xlu0 %482 }
 0x375   : >> { %v478_v3 = vrot.slane %v477_v1, 2  ;;  %v484_v4 = vrot.slane %v483_v2, 4 }
 0x377   : >> { %v485_v5 = vadd.f32 %v484_v4, %v483_v2  ;;  %v479_v8 = vadd.f32 %v478_v3, %v477_v1 }
 0x379   : >> { %v486_v9 = vrot.slane %v485_v5, 2  ;;  %v480_v11 = vrot.slane %v479_v8, 1 }
 0x37b   : >> { %v487_v10 = vadd.f32 %v486_v9, %v485_v5  ;;  %v481_v14 = vadd.f32 %v480_v11, %v479_v8 }
 0x37d   : >> { %v488_v12 = vrot.slane %v487_v10, 1 }
 0x37f   : >> { %v489_v13 = vadd.f32 %v488_v12, %v487_v10 }
 0x381   : >> { %1654 = vpush %v489_v13 }
 0x382   : >> { %1656 = vpush %v481_v14 }
 0x3b2   : >> { %s1655_s16 = spop %1654 }
 0x3b3   : >> { %s1657_s25 = spop %1656 }
 0x3b4   : >> { %s492_s17 = smul.f32 1e-10, %s1657_s25 }
 0x3b6   : >> { %p493_p13 = scmp.le.f32.partialorder %s1655_s16, %s492_s17 }
 0x3b8   : >> { %p495_p0 = por %p494_p12, %p493_p13 }
 0x3ba   : > { %943 = sbr.rel (!%p495_p0) target bundleno = 282 (0x11a), region = 481 }
 0x3bf PF: > { %s948_s18 = smov [#allocation18]  ;;  %v952_v6 = vmov %v1950_v6  ;;  %v955_v7 = vmov %v1952_v7  ;;  %v992_v15 = vld [vmem:[#allocation10] sm:$0xf]  ;;  %v1000_v16 = vld [vmem:[#allocation12] sm:$0xf]  ;;  %s2258_s28 = scalar_lea.vmem [#allocation11], %s1946_s26 }
 0x3c0   : > { %v972_v6 = vmov %v1950_v6  ;;  %v975_v7 = vmov %v1952_v7  ;;  %v956_v17 = vld [vmem:[%s948_s18] sm:$0xf]  ;;  %vm959_vm10 = vcmp.eq.s32.totalorder %v955_v7, %v952_v6  ;;  %995 = vst [vmem:[%s2258_s28] sm:$0xf] %v992_v15  ;;  %s2259_s14 = scalar_lea.vmem [#allocation13], %s1946_s26  ;;  %v1016_v19 = vld [vmem:[#allocation16] sm:$0xf] }
 0x3c1   : > { %vm979_vm11 = vcmp.eq.s32.totalorder %v975_v7, %v972_v6  ;;  %1003 = vst [vmem:[%s2259_s14] sm:$0xf] %v1000_v16  ;;  %v1008_v18 = vld [vmem:[#allocation14] sm:$0xf]  ;;  %v960_v20 = vsel %vm959_vm10, %v956_v17, 0.0  ;;  %s968_s23 = smov [#allocation21]  ;;  %s2260_s27 = scalar_lea.vmem [#allocation15], %s1946_s26 }
 0x3c2   : > { %1011 = vst [vmem:[%s2260_s27] sm:$0xf] %v1008_v18  ;;  %s2261_s30 = scalar_lea.vmem [#allocation17], %s1946_s26  ;;  %v961_v21 = vrot.slane %v960_v20, 4  ;;  %v976_v22 = vld [vmem:[%s968_s23] sm:$0xf]  ;;  %s944_s20 = sand.u32 7, %s1787_s11  }
 0x3c3   : > { %1019 = vst [vmem:[%s2261_s30] sm:$0xf] %v1016_v19  ;;  %v980_v23 = vsel %vm979_vm11, %v976_v22, 0.0  ;;  %s2262_s10 = scalar_lea.vmem [#allocation8], %s1948_s29  ;;  %s2263_s19 = scalar_lea.vmem [#allocation9], %s1948_s29 }
 0x3c4   : > { %v962_v24 = vadd.f32 %v961_v21, %v960_v20  ;;  %v981_v25 = vrot.slane %v980_v23, 4  ;;  %s945_s9 = scalar_lea.vmem %s2262_s10, %s944_s20 [#allocation8]  ;;  %s947_s21 = scalar_lea.vmem %s2263_s19, %s944_s20 [#allocation9] }
 0x3c5   : > { %s949_s9 = smov %s945_s9  ;;  %s969_s21 = smov %s947_s21 }
 0x3c6   : > { %v963_v6 = vrot.slane %v962_v24, 2  ;;  %v982_v7 = vadd.f32 %v981_v25, %v980_v23  ;;  %s1047_s24 = sshrl.u32 (%p1915_p4), %s1787_s11, 3  ;;  %s1636_s16 = sshll.u32 (%p1915_p4), %s1791_s12, 3 }
 0x3c7   : > { %s1049_s25 = sadd.s32 (%p1915_p4), %s1636_s16, %s1047_s24  ;;  %s2264_s17 = scalar_lea.vmem (%p1915_p4), [#allocation8], %s1948_s29 }
 0x3c8   : > { %v964_v26 = vadd.f32 %v963_v6, %v962_v24  ;;  %v983_v27 = vrot.slane %v982_v7, 2  ;;  %s1637_s18 = sshll.u32 (%p1915_p4), %s1049_s25, 3 }
 0x3c9   : > { %s1051_s23 = scalar_lea.vmem (%p1915_p4), %s2238_s4, %s1637_s18 }
 0x3ca   : > { %v965_v28 = vrot.slane %v964_v26, 1  ;;  %v984_v29 = vadd.f32 %v983_v27, %v982_v7 }
 0x3cc   : > { %v966_v30 = vadd.f32 %v965_v28, %v964_v26  ;;  %v985_v31 = vrot.slane %v984_v29, 1  ;;  %1046 = sbr.rel (!%p1915_p4) target bundleno = 983 (0x3d7), region = 158 }
 0x3ce   : > { %967 = vst [vmem:[%s949_s9] sm:$0x1] %v966_v30  ;;  %v986_v32 = vadd.f32 %v985_v31, %v984_v29 }
 0x3d0   : > { %987 = vst [vmem:[%s969_s21] sm:$0x1] %v986_v32 }
 0x3d5   : > { %v1080_v33 = vld [vmem:[%s2264_s17] sm:$0xff] }
 0x3d6   : > { %1081 = vst [vmem:[%s1051_s23] sm:$0xff] %v1080_v33 }
 0x3d7 PF: > { %1087 = sbr.rel (!%p1915_p4) target bundleno = 991 (0x3df), region = 196  ;;  %s1088_s27 = sshrl.u32 (%p1915_p4), %s1787_s11, 3 }
 0x3d8   : > { %s1638_s30 = sshll.u32 (%p1915_p4), %s1791_s12, 3  ;;  %s2265_s10 = scalar_lea.vmem (%p1915_p4), [#allocation9], %s1948_s29 }
 0x3d9   : > { %s1090_s20 = sadd.s32 (%p1915_p4), %s1638_s30, %s1088_s27 }
 0x3da   : > { %s1639_s9 = sshll.u32 (%p1915_p4), %s1090_s20, 3 }
 0x3db   : > { %s1092_s24 = scalar_lea.vmem (%p1915_p4), %s2239_s5, %s1639_s9 }
 0x3dd   : > { %v1121_v34 = vld [vmem:[%s2265_s10] sm:$0xff] }
 0x3de   : > { %1122 = vst [vmem:[%s1092_s24] sm:$0xff] %v1121_v34 }
 0x3df PF: > { %s1640_s22 = sshll.u32 %s1791_s12, 6  ;;  %s2266_s25 = scalar_lea.vmem [#allocation11], %s1946_s26 }
 0x3e0   : > { %s1127_s16 = sadd.s32 %s1787_s11, %s1640_s22  ;;  %v1146_v35 = vld [vmem:[%s2266_s25] sm:$0xf]  ;;  %s2267_s17 = scalar_lea.vmem [#allocation13], %s1946_s26 }
 0x3e1   : > { %v1183_v36 = vld [vmem:[%s2267_s17] sm:$0xf]  ;;  %s1641_s29 = sshll.u32 %s1127_s16, 2  ;;  %s2268_s18 = scalar_lea.vmem [#allocation15], %s1946_s26 }
 0x3e2   : > { %v1220_v37 = vld [vmem:[%s2268_s18] sm:$0xf]  ;;  %s2269_s28 = scalar_lea.vmem [#allocation17], %s1946_s26  ;;  %s1129_s27 = scalar_lea.vmem %s2240_s6, %s1641_s29 }
 0x3e3   : > { %v1257_v38 = vld [vmem:[%s2269_s28] sm:$0xf]  ;;  %s1166_s10 = scalar_lea.vmem %s2241_s7, %s1641_s29  ;;  %1147 = vst [vmem:[%s1129_s27] sm:$0xf] %v1146_v35  ;;  %s1203_s9 = scalar_lea.vmem %s2242_s8, %s1641_s29 }
 0x3e4   : > { %1184 = vst [vmem:[%s1166_s10] sm:$0xf] %v1183_v36  ;;  %s2270_s24 = sld [smem:[#allocation36_spill]]  ;;  %1221 = vst [vmem:[%s1203_s9] sm:$0xf] %v1220_v37 }
 0x3ea   : > { %s1240_s22 = scalar_lea.vmem %s2270_s24, %s1641_s29 }
 0x3eb   : > { %1258 = vst [vmem:[%s1240_s22] sm:$0xf] %v1257_v38 }
 0x3ec PF: > { %s16_s15 = sadd.s32 1, %s1803_s15   ;;  %s2271_s30 = sld [smem:[#allocation31_spill]] }
 0x3ed   : > { %p13_p1 = scmp.ge.s32.totalorder %s16_s15, 130   ;;  %s2272_s10 = sld [smem:[#allocation35_spill]] }
 0x3ee   : > { %s2273_s12 = sld [smem:[#allocation32_spill]]  ;;  %s2276_s11 = smov %s1795_s13 }
 0x3ef   : > { %s2274_s26 = sld [smem:[#allocation33_spill]] }
 0x3f0   : > { %s2275_s14 = sld [smem:[#allocation34_spill]] }
 0x3f1   :  { %15 = sbr.rel (!%p13_p1) target bundleno = 6 (0x6), region = 492 }
 0x3f5   : > { %s2277_s13 = smov %s2274_s26 }

// kernel: custom-call.24
= control target key start
LH: loop header
LB: loop body
LE: loop exit
PB: predicated region body
PF: predicated region fallthrough
CT: control target
= control target key end

     0   :  { %v300_v3 = vlaneseq  ;;  %v1769_v5 = vmov 0.0   ;;  %s289_s17 = smov [#allocation22]  ;;  %s292_s18 = smov [#allocation23]  ;;  %s2052_s0 = inlined_call_operand.vmem [shape: f32[4,4], index: 0, kind: input, shape index: {}]   ;;  %s2053_s1 = inlined_call_operand.vmem [shape: f32[4,4], index: 1, kind: input, shape index: {}]   ;;  %s2054_s2 = inlined_call_operand.vmem [shape: f32[4,4], index: 2, kind: input, shape index: {}]   ;;  %s2055_s3 = inlined_call_operand.vmem [shape: f32[4,4], index: 3, kind: input, shape index: {}]   ;;  %s2056_s4 = inlined_call_operand.vmem [shape: f32[4], index: 4, kind: output, shape index: {0}]   ;;  %s2057_s5 = inlined_call_operand.vmem [shape: f32[4], index: 5, kind: output, shape index: {1}]   ;;  %s2058_s6 = inlined_call_operand.vmem [shape: f32[4,4], index: 6, kind: output, shape index: {2}]   ;;  %s2059_s7 = inlined_call_operand.vmem [shape: f32[4,4], index: 7, kind: output, shape index: {3}]   ;;  %s2060_s8 = inlined_call_operand.vmem [shape: f32[4,4], index: 8, kind: output, shape index: {4}]   ;;  %s2061_s9 = inlined_call_operand.vmem [shape: f32[4,4], index: 9, kind: output, shape index: {5}]  }
   0x1   :  { %v72_v0 = vld [vmem:[%s2052_s0] sm:$0xf]  ;;  %295 = vst [vmem:[#allocation12] sm:$0xff] %v1769_v5  ;;  %296 = vst [vmem:[#allocation14] sm:$0xff] %v1769_v5  ;;  %s299_s0 = smov [#allocation12]  ;;  %s1467_s19 = smov [#allocation20] }
   0x2   :  { %v135_v1 = vld [vmem:[%s2053_s1] sm:$0xf]  ;;  %73 = vst [vmem:[#allocation1] sm:$0xf] %v72_v0  ;;  %297 = vst [vmem:[#allocation16] sm:$0xff] %v1769_v5  ;;  %v1834_v6 = vand.u32 127, %v300_v3 }
   0x3   :  { %v198_v2 = vld [vmem:[%s2054_s2] sm:$0xf]  ;;  %136 = vst [vmem:[#allocation3] sm:$0xf] %v135_v1  ;;  %298 = vst [vmem:[#allocation18] sm:$0xff] %v1769_v5  ;;  %v1836_v7 = vshrl.u32 %v300_v3, 7 }
   0x4   :  { %199 = vst [vmem:[#allocation5] sm:$0xf] %v198_v2  ;;  %v261_v4 = vld [vmem:[%s2055_s3] sm:$0xf]  ;;  %v302_v6 = vmov %v1834_v6  ;;  %s312_s1 = smov [#allocation18]  ;;  %s283_s2 = smov [#allocation20] }
   0x5   :  { %262 = vst [vmem:[#allocation7] sm:$0xf] %v261_v4  ;;  %v305_v7 = vmov %v1836_v7  ;;  %v315_v6 = vmov %v1834_v6  ;;  %s286_s3 = smov [#allocation21]  ;;  %vm1471_vm2 = vcmp.lt.s32.totalorder %v1834_v6, 4  ;;  %s1484_s20 = smov [#allocation21] }
   0x6   :  { %v318_v7 = vmov %v1836_v7  ;;  %vm309_vm0 = vcmp.eq.s32.totalorder %v305_v7, %v302_v6  ;;  %s1501_s21 = smov [#allocation22]  ;;  %s1518_s22 = smov [#allocation23] }
   0x7   :  { %vm322_vm1 = vcmp.eq.s32.totalorder %v318_v7, %v315_v6  ;;  %v1463_v6 = vmov %v1834_v6  ;;  %v1466_v7 = vmov %v1836_v7 }
   0x8   :  { %v306_v12 = vld [vmem:[%s299_s0] sm:$0xf]  ;;  %vm1476_vm3 = vcmp.eq.s32.totalorder %v1466_v7, %v1463_v6  ;;  %v1514_v6 = vmov %v1834_v6  ;;  %v1483_v7 = vmov %v1836_v7 }
   0x9   :  { %v266_v8 = vld [vmem:[#allocation1] sm:$0xf]  ;;  %v310_v14 = vsel %vm309_vm0, 1.0, %v306_v12  ;;  %v1480_v6 = vmov %v1834_v6  ;;  %v1517_v7 = vmov %v1836_v7 }
   0xa   :  { %v271_v9 = vld [vmem:[#allocation3] sm:$0xf]  ;;  %267 = vst [vmem:[#allocation0] sm:$0xf] %v266_v8  ;;  %v319_v13 = vld [vmem:[%s312_s1] sm:$0xf]  ;;  %v1497_v6 = vmov %v1834_v6  ;;  %v1500_v7 = vmov %v1836_v7  ;;  %vm1527_vm4 = vcmp.eq.s32.totalorder %v1517_v7, %v1514_v6 }
   0xb   :  { %v276_v10 = vld [vmem:[#allocation5] sm:$0xf]  ;;  %272 = vst [vmem:[#allocation2] sm:$0xf] %v271_v9  ;;  %v323_v15 = vsel %vm322_vm1, 1.0, %v319_v13  ;;  %311 = vst [vmem:[%s299_s0] sm:$0xf] %v310_v14 }
   0xc   :  { %277 = vst [vmem:[#allocation4] sm:$0xf] %v276_v10  ;;  %v281_v11 = vld [vmem:[#allocation7] sm:$0xf]  ;;  %324 = vst [vmem:[%s312_s1] sm:$0xf] %v323_v15 }
   0xd   :  { %282 = vst [vmem:[#allocation6] sm:$0xf] %v281_v11 }
  0x11   :  { %v284_v16 = vld [vmem:[#allocation0] sm:$0xff] }
  0x12   :  { %v287_v17 = vld [vmem:[#allocation2] sm:$0xff]  ;;  %285 = vst [vmem:[%s283_s2] sm:$0xff] %v284_v16 }
  0x13   :  { %v290_v18 = vld [vmem:[#allocation4] sm:$0xff]  ;;  %288 = vst [vmem:[%s286_s3] sm:$0xff] %v287_v17 }
  0x14   :  { %291 = vst [vmem:[%s289_s17] sm:$0xff] %v290_v18  ;;  %v293_v19 = vld [vmem:[#allocation6] sm:$0xff] }
  0x15   :  { %294 = vst [vmem:[%s292_s18] sm:$0xff] %v293_v19 }
  0x19   :  { %v1473_v20 = vld [vmem:[%s1467_s19] sm:$0xf] }
  0x1a   :  { %v1490_v21 = vld [vmem:[%s1484_s20] sm:$0xf]  ;;  %v1474_v22 = vsel %vm1471_vm2, %v1473_v20, 0.0 }
  0x1b   :  { %v1491_v23 = vsel %vm1471_vm2, %v1490_v21, 0.0  ;;  %v1507_v24 = vld [vmem:[%s1501_s21] sm:$0xf]  ;;  %v1475_v26 = vmul.f32 %v1474_v22, %v1474_v22 }
  0x1c   :  { %v1524_v25 = vld [vmem:[%s1518_s22] sm:$0xf]  ;;  %v1492_v27 = vmul.f32 %v1491_v23, %v1491_v23  ;;  %v1508_v28 = vsel %vm1471_vm2, %v1507_v24, 0.0 }
  0x1d   :  { %v1525_v29 = vsel %vm1471_vm2, %v1524_v25, 0.0  ;;  %v1509_v30 = vmul.f32 %v1508_v28, %v1508_v28  ;;  %v1477_v33 = vsel %vm1476_vm3, 0.0, %v1475_v26 }
  0x1e   :  { %v1494_v31 = vadd.f32 %v1492_v27, %v1475_v26  ;;  %v1526_v32 = vmul.f32 %v1525_v29, %v1525_v29  ;;  %v1493_v34 = vadd.f32 %v1492_v27, %v1477_v33 }
  0x20   :  { %v1511_v35 = vadd.f32 %v1509_v30, %v1494_v31  ;;  %v1510_v36 = vadd.f32 %v1509_v30, %v1493_v34  ;;  %v1528_v37 = vsel %vm1527_vm4, 0.0, %v1526_v32 }
  0x22   :  { %v1530_v38 = vadd.f32 %v1526_v32, %v1511_v35  ;;  %v1529_v39 = vadd.f32 %v1528_v37, %v1510_v36 }
  0x24   :  { %1531 = vadd.xlane.f32.xlu0 %v1530_v38 }
  0x28   :  { %1539 = vadd.xlane.f32.xlu0 %v1529_v39 }
  0xad   :  { %v1532_v40 = vpop.xlane.xlu0 %1531 }
  0xae   :  { %v1533_v41 = vrot.slane %v1532_v40, 4 }
  0xb0   :  { %v1534_v42 = vadd.f32 %v1533_v41, %v1532_v40 }
  0xb1   :  { %v1540_v43 = vpop.xlane.xlu0 %1539 }
  0xb2   :  { %v1535_v44 = vrot.slane %v1534_v42, 2  ;;  %v1541_v45 = vrot.slane %v1540_v43, 4 }
  0xb4   :  { %v1542_v46 = vadd.f32 %v1541_v45, %v1540_v43  ;;  %v1536_v47 = vadd.f32 %v1535_v44, %v1534_v42 }
  0xb6   :  { %v1543_v48 = vrot.slane %v1542_v46, 2  ;;  %v1537_v50 = vrot.slane %v1536_v47, 1 }
  0xb8   :  { %v1544_v49 = vadd.f32 %v1543_v48, %v1542_v46  ;;  %v1538_v53 = vadd.f32 %v1537_v50, %v1536_v47 }
  0xba   :  { %v1545_v51 = vrot.slane %v1544_v49, 1 }
  0xbc   :  { %v1546_v52 = vadd.f32 %v1545_v51, %v1544_v49 }
  0xbe   :  { %1718 = vpush %v1546_v52 }
  0xbf   :  { %1720 = vpush %v1538_v53 }
  0xef   :  { %s1719_s23 = spop %1718 }
  0xf0   :  { %s1721_s24 = spop %1720 }
  0xf1   :  { %s1549_s25 = smul.f32 1e-10, %s1721_s24 }
  0xf3   :  { %p1550_p0 = scmp.le.f32.partialorder %s1719_s23, %s1549_s25 }
  0xf4   :  { %s1860_s26 = smov (!%p1550_p0), 0  }
  0xf5   :  { %1553 = sbr.rel (%p1550_p0) target bundleno = 927 (0x39f), region = 440 }
  0xfa LB: > { %s1865_s27 = smov 0   ;;  %s1763_s26 = sphi %s1860_s26, %s2062_s26  }
  0xfb LB: >> { %s429_s28 = smov [#allocation20]  ;;  %v433_v6 = vmov %v1834_v6  ;;  %v436_v7 = vmov %v1836_v7  ;;  %s449_s29 = smov [#allocation21]  ;;  %vm752_vm14 = vcmp.eq.s32.totalorder %v1836_v7, 0  ;;  %vm764_vm15 = vcmp.eq.s32.totalorder %v1836_v7, 3  ;;  %s1767_s27 = sphi %s1865_s27, %s428_s27  }
  0xfc   : >> { %v453_v6 = vmov %v1834_v6  ;;  %v456_v7 = vmov %v1836_v7  ;;  %v437_v54 = vld [vmem:[%s429_s28] sm:$0xf]  ;;  %vm440_vm5 = vcmp.eq.s32.totalorder %v436_v7, %v433_v6  ;;  %s469_s30 = smov [#allocation23]  ;;  %s430_s10 = smov [#allocation24] }
  0xfd   : >> { %vm460_vm6 = vcmp.eq.s32.totalorder %v456_v7, %v453_v6  ;;  %v473_v6 = vmov %v1834_v6  ;;  %v476_v7 = vmov %v1836_v7  ;;  %v441_v55 = vsel %vm440_vm5, %v437_v54, 0.0  ;;  %v457_v56 = vld [vmem:[%s449_s29] sm:$0xf]  ;;  %s450_s11 = smov [#allocation25]  ;;  %s470_s12 = smov [#allocation26] }
  0xfe   : >> { %vm480_vm7 = vcmp.eq.s32.totalorder %v476_v7, %v473_v6  ;;  %v442_v57 = vrot.slane %v441_v55, 4  ;;  %v461_v58 = vsel %vm460_vm6, %v457_v56, 0.0  ;;  %v477_v59 = vld [vmem:[%s469_s30] sm:$0xf]  ;;  %s493_s13 = smov [#allocation25]  ;;  %s491_s14 = smov [#allocation24]  ;;  %v542_v6 = vmov %v1834_v6 }
  0xff   : >> { %v462_v60 = vrot.slane %v461_v58, 4  ;;  %v481_v61 = vsel %vm480_vm7, %v477_v59, 0.0  ;;  %s495_s15 = smov [#allocation26]  ;;  %s530_s16 = smov [#allocation27]  ;;  %v545_v7 = vmov %v1836_v7  ;;  %v557_v6 = vmov %v1834_v6 }
 0x100   : >> { %v443_v62 = vadd.f32 %v442_v57, %v441_v55  ;;  %v482_v63 = vrot.slane %v481_v61, 4  ;;  %s532_s0 = smov [#allocation28]  ;;  %s489_s1 = smov [#allocation29]  ;;  %v560_v7 = vmov %v1836_v7  ;;  %vm547_vm12 = vcmp.eq.s32.totalorder %v545_v7, %v542_v6 }
 0x101   : >> { %v463_v0 = vadd.f32 %v462_v60, %v461_v58  ;;  %s490_s2 = smov [#allocation30]  ;;  %s534_s1 = smov %s489_s1  ;;  %vm562_vm13 = vcmp.eq.s32.totalorder %v560_v7, %v557_v6  ;;  %v655_v6 = vmov %v1834_v6  ;;  %v658_v7 = vmov %v1836_v7 }
 0x102   : >> { %v444_v1 = vrot.slane %v443_v62, 2  ;;  %v483_v2 = vadd.f32 %v482_v63, %v481_v61  ;;  %s536_s2 = smov %s490_s2  ;;  %s538_s3 = smov [#allocation29]  ;;  %v669_v6 = vmov %v1834_v6  ;;  %v672_v7 = vmov %v1836_v7 }
 0x103   : >> { %v464_v3 = vrot.slane %v463_v0, 2  ;;  %s553_s17 = smov [#allocation30]  ;;  %s551_s18 = smov [#allocation31]  ;;  %vm662_vm0 = vcmp.eq.s32.totalorder %v658_v7, %v655_v6  ;;  %v628_v6 = vmov %v1834_v6  ;;  %v631_v7 = vmov %v1836_v7 }
 0x104   : >> { %v445_v4 = vadd.f32 %v444_v1, %v443_v62  ;;  %v484_v5 = vrot.slane %v483_v2, 2  ;;  %s568_s19 = smov [#allocation31]  ;;  %s1880_s20 = smov [#allocation20]  ;;  %v642_v6 = vmov %v1834_v6  ;;  %v645_v7 = vmov %v1836_v7 }
 0x105   : >> { %v465_v8 = vadd.f32 %v464_v3, %v463_v0  ;;  %s566_s21 = smov [#allocation32]  ;;  %s1882_s22 = smov [#allocation21]  ;;  %v576_v53 = vld [vmem:[%s1880_s20] sm:$0xf]  ;;  %vm677_vm1 = vcmp.eq.s32.totalorder %v672_v7, %v669_v6  ;;  %vm636_vm3 = vcmp.eq.s32.totalorder %v631_v7, %v628_v6  ;;  %vm649_vm4 = vcmp.eq.s32.totalorder %v645_v7, %v642_v6 }
 0x106   : >> { %v446_v9 = vrot.slane %v445_v4, 1  ;;  %v485_v10 = vadd.f32 %v484_v5, %v483_v2  ;;  %s1884_s23 = smov [#allocation22]  ;;  %s1886_s24 = smov [#allocation23]  ;;  %v577_v54 = vld [vmem:[%s1882_s22] sm:$0xf]  ;;  %vm691_vm5 = vcmp.eq.s32.totalorder %v1834_v6, 0 }
 0x107   : >> { %v466_v11 = vrot.slane %v465_v8, 1  ;;  %s1888_s25 = smov [#allocation12]  ;;  %s1890_s28 = smov [#allocation14]  ;;  %v578_v55 = vld [vmem:[%s1884_s23] sm:$0xf]  ;;  %vm695_vm6 = vcmp.eq.s32.totalorder %v1834_v6, 1 }
 0x108   : >> { %v447_v12 = vadd.f32 %v446_v9, %v445_v4  ;;  %v486_v13 = vrot.slane %v485_v10, 1  ;;  %s1892_s29 = smov [#allocation16]  ;;  %s792_s30 = smov [#allocation31]  ;;  %v579_v56 = vld [vmem:[%s1886_s24] sm:$0xf]  ;;  %vm708_vm7 = vcmp.eq.s32.totalorder %v1834_v6, 3 }
 0x109   : >> { %v467_v14 = vadd.f32 %v466_v11, %v465_v8  ;;  %v800_v57 = vld [vmem:[%s1888_s25] sm:$0xf]  ;;  %s428_s27 = sadd.s32 1, %s1767_s27  }
 0x10a   : >> { %448 = vst [vmem:[%s430_s10] sm:$0x1] %v447_v12  ;;  %v487_v15 = vadd.f32 %v486_v13, %v485_v10  ;;  %s1896_s10 = smov [#allocation18]  ;;  %v801_v58 = vld [vmem:[%s1890_s28] sm:$0xf]  ;;  %p425_p1 = scmp.ge.s32.totalorder %s428_s27, 7  }
 0x10b   : >> { %468 = vst [vmem:[%s450_s11] sm:$0x1] %v467_v14  ;;  %v802_v59 = vld [vmem:[%s1892_s29] sm:$0xf]  ;;  %s570_s11 = smov [#allocation32]  ;;  %v329_v6 = vmov (%p425_p1), %v1834_v6  ;;  %v332_v7 = vmov (%p425_p1), %v1836_v7 }
 0x10c   : >> { %488 = vst [vmem:[%s470_s12] sm:$0x1] %v487_v15  ;;  %v803_v61 = vld [vmem:[%s1896_s10] sm:$0xf]  ;;  %s794_s12 = smov [#allocation32]  ;;  %v382_v6 = vmov (%p425_p1), %v1834_v6 }
 0x111   : >> { %v492_v18 = vld [vmem:[%s491_s14] sm:$0xff]  ;;  %s598_s14 = smov [#allocation30] }
 0x112   : >> { %v494_v16 = vld [vmem:[%s493_s13] sm:$0xff]  ;;  %v515_v33 = vand.u32 2147483647, %v492_v18  ;;  %s596_s13 = smov [#allocation29] }
 0x113   : >> { %v498_v17 = vmul.f32 2.0, %v494_v16  ;;  %v496_v19 = vld [vmem:[%s495_s15] sm:$0xff]  ;;  %v516_v36 = vand.u32 2147483647, %v494_v16  ;;  %s1912_s15 = smov [#allocation12] }
 0x114   : >> { %v497_v20 = vsub.f32 %v496_v19, %v492_v18  ;;  %v517_v34 = vand.u32 2147483647, %v496_v19 }
 0x115   : >> { %1745 = vrcp.f32 %v498_v17 }
 0x116   : >> { %v518_v35 = vmin.f32 %v515_v33, %v517_v34 }
 0x118   : >> { %v519_v37 = vmul.f32 1.1920929e-08, %v518_v35 }
 0x11a   : >> { %vm520_vm11 = vcmp.le.f32.partialorder %v516_v36, %v519_v37 }
 0x122   : >> { %v1746_v21 = vpop.eup %1745 }
 0x123   : >> { %v500_v22 = vmul.f32 %v1746_v21, %v497_v20 }
 0x125   : >> { %v502_v23 = vmul.f32 %v500_v22, %v500_v22  ;;  %vm501_vm10 = vcmp.ge.f32.partialorder %v500_v22, 0.0 }
 0x127   : >> { %v503_v24 = vadd.f32 1.0, %v502_v23 }
 0x129   : >> { %1747 = vrsqrt.f32 %v503_v24  ;;  %vm506_vm8 = vcmp.eq.f32.partialorder %v503_v24, inf  ;;  %v509_v26 = vand.u32 2147483648, %v503_v24  ;;  %vm508_vm9 = vcmp.eq.f32.partialorder %v503_v24, 0.0 }
 0x136   : >> { %v1748_v25 = vpop.eup %1747 }
 0x137   : >> { %v505_v27 = vmul.f32 %v1748_v25, %v503_v24 }
 0x139   : >> { %v507_v28 = vsel %vm506_vm8, %v503_v24, %v505_v27  ;;  %vm344_vm8 = vcmp.eq.s32.totalorder (%p425_p1), %v332_v7, %v329_v6  ;;  %v385_v7 = vmov (%p425_p1), %v1836_v7  ;;  %v348_v6 = vmov (%p425_p1), %v1834_v6 }
 0x13a   : >> { %v510_v29 = vsel %vm508_vm9, %v509_v26, %v507_v28  ;;  %v351_v7 = vmov (%p425_p1), %v1836_v7  ;;  %v365_v6 = vmov (%p425_p1), %v1834_v6  ;;  %vm397_vm9 = vcmp.eq.s32.totalorder (%p425_p1), %v385_v7, %v382_v6 }
 0x13b   : >> { %v511_v30 = vxor.u32 2147483648, %v510_v29  ;;  %v368_v7 = vmov (%p425_p1), %v1836_v7 }
 0x13d   : >> { %v512_v31 = vsel %vm501_vm10, %v510_v29, %v511_v30 }
 0x13e   : >> { %v513_v32 = vadd.f32 %v512_v31, %v500_v22 }
 0x140   : >> { %1749 = vrcp.f32 %v513_v32 }
 0x14d   : >> { %v1750_v38 = vpop.eup %1749 }
 0x14e   : >> { %v521_v39 = vsel %vm520_vm11, 0.0, %v1750_v38 }
 0x14f   : >> { %v522_v40 = vmul.f32 %v521_v39, %v521_v39  ;;  %v526_v41 = vmul.f32 %v521_v39, %v494_v16 }
 0x151   : >> { %v523_v42 = vadd.f32 1.0, %v522_v40  ;;  %v527_v43 = vsub.f32 %v492_v18, %v526_v41  ;;  %v529_v44 = vadd.f32 %v526_v41, %v496_v19 }
 0x153   : >> { %1751 = vrsqrt.f32 %v523_v42  ;;  %531 = vst [vmem:[%s530_s16] sm:$0xff] %v527_v43  ;;  %533 = vst [vmem:[%s532_s0] sm:$0xff] %v529_v44  ;;  %s1914_s16 = smov [#allocation22]  ;;  %s1916_s0 = smov [#allocation23] }
 0x160   : >> { %v1752_v45 = vpop.eup %1751 }
 0x161   : >> { %535 = vst [vmem:[%s534_s1] sm:$0xff] %v1752_v45  ;;  %v525_v46 = vmul.f32 %v1752_v45, %v521_v39  ;;  %s1918_s1 = smov [#allocation20] }
 0x163   : >> { %537 = vst [vmem:[%s536_s2] sm:$0xff] %v525_v46  ;;  %s1920_s2 = smov [#allocation16] }
 0x168   : >> { %v539_v47 = vld [vmem:[%s538_s3] ss:$0 sm:$0xff]  ;;  %s1922_s3 = smov [#allocation14] }
 0x169   : >> { %v548_v48 = vsel %vm547_vm12, %v539_v47, 0.0  ;;  %v597_v27 = vld [vmem:[%s596_s13] ss:$0 sm:$0xff]  ;;  %s768_s13 = smov [#allocation21] }
 0x16a   : >> { %549 = vadd.xlane.f32.xlu0 %v548_v48  ;;  %v554_v49 = vld [vmem:[%s553_s17] ss:$0 sm:$0xff]  ;;  %s1926_s17 = smov [#allocation18] }
 0x16b   : >> { %v563_v50 = vsel %vm562_vm13, %v554_v49, 0.0  ;;  %v599_v28 = vld [vmem:[%s598_s14] ss:$0 sm:$0xff]  ;;  %s745_s14 = smov [#allocation22] }
 0x16e   : >> { %564 = vadd.xlane.f32.xlu0 %v563_v50 }
 0x1f3   : >> { %v550_v51 = vpop.xlane.xlu0 %549 }
 0x1f4   : >> { %552 = vst [vmem:[%s551_s18] sm:$0xff] %v550_v51  ;;  %s1928_s18 = smov [#allocation21] }
 0x1f7   : >> { %v565_v52 = vpop.xlane.xlu0 %564 }
 0x1f8   : >> { %567 = vst [vmem:[%s566_s21] sm:$0xff] %v565_v52  ;;  %s665_s21 = smov [#allocation23] }
 0x1fb   : >> { %v569_v60 = vld [vmem:[%s568_s19] sm:$0xff]  ;;  %s666_s19 = smov [#allocation28] }
 0x1fc   : >> { %v793_v62 = vld [vmem:[%s792_s30] sm:$0xff]  ;;  %v580_v63 = vmul.f32 %v576_v53, %v569_v60  ;;  %v583_v0 = vmul.f32 %v577_v54, %v569_v60  ;;  %v587_v1 = vmul.f32 %v578_v55, %v569_v60  ;;  %v590_v2 = vmul.f32 %v579_v56, %v569_v60  ;;  %s681_s30 = smov [#allocation21] }
 0x1fd   : >> { %v804_v3 = vmul.f32 %v800_v57, %v793_v62  ;;  %v807_v4 = vmul.f32 %v801_v58, %v793_v62  ;;  %v811_v5 = vmul.f32 %v802_v59, %v793_v62  ;;  %v814_v8 = vmul.f32 %v803_v61, %v793_v62 }
 0x1ff   : >> { %v571_v9 = vld [vmem:[%s570_s11] sm:$0xff]  ;;  %s1973_s11 = smov [#allocation23] }
 0x200   : >> { %v795_v10 = vld [vmem:[%s794_s12] sm:$0xff]  ;;  %v581_v11 = vmul.f32 %v578_v55, %v571_v9  ;;  %v584_v12 = vmul.f32 %v579_v56, %v571_v9  ;;  %v586_v13 = vmul.f32 %v576_v53, %v571_v9  ;;  %v589_v14 = vmul.f32 %v577_v54, %v571_v9  ;;  %s744_s12 = smov [#allocation20] }
 0x201   : >> { %v805_v15 = vmul.f32 %v802_v59, %v795_v10  ;;  %v808_v16 = vmul.f32 %v803_v61, %v795_v10  ;;  %v810_v17 = vmul.f32 %v800_v57, %v795_v10  ;;  %v813_v18 = vmul.f32 %v801_v58, %v795_v10  ;;  %v673_v59 = vld [vmem:[%s666_s19] ss:$0 sm:$0xff] }
 0x202   : >> { %v582_v19 = vsub.f32 %v580_v63, %v581_v11  ;;  %v585_v20 = vsub.f32 %v583_v0, %v584_v12  ;;  %v588_v21 = vadd.f32 %v587_v1, %v586_v13  ;;  %v591_v22 = vadd.f32 %v590_v2, %v589_v14 }
 0x203   : >> { %v806_v23 = vsub.f32 %v804_v3, %v805_v15  ;;  %v809_v24 = vsub.f32 %v807_v4, %v808_v16  ;;  %v812_v25 = vadd.f32 %v811_v5, %v810_v17  ;;  %v815_v26 = vadd.f32 %v814_v8, %v813_v18 }
 0x204   : >> { %593 = vst [vmem:[%s1882_s22] sm:$0xf] %v585_v20  ;;  %595 = vst [vmem:[%s1886_s24] sm:$0xf] %v591_v22  ;;  %s625_s22 = smov [#allocation27]  ;;  %s639_s24 = smov [#allocation21] }
 0x205   : >> { %592 = vst [vmem:[%s1880_s20] sm:$0xf] %v582_v19  ;;  %594 = vst [vmem:[%s1884_s23] sm:$0xf] %v588_v21  ;;  %s652_s20 = smov [#allocation22]  ;;  %s624_s23 = smov [#allocation20]  ;;  %v632_v63 = vld [vmem:[%s625_s22] ss:$0 sm:$0xff] }
 0x206   : >> { %816 = vst [vmem:[%s1888_s25] sm:$0xf] %v806_v23  ;;  %817 = vst [vmem:[%s1890_s28] sm:$0xf] %v809_v24  ;;  %s1970_s25 = smov [#allocation22]  ;;  %s1770_s28 = smov 1  }
 0x207   : >> { %818 = vst [vmem:[%s1892_s29] sm:$0xf] %v812_v25  ;;  %819 = vst [vmem:[%s1896_s10] sm:$0xf] %v815_v26  ;;  %s680_s29 = smov [#allocation20]  ;;  %s1771_s10 = smov 127  }
 0x20b   : >> { %v607_v30 = vld [vmem:[%s1916_s0] sm:$0xf] }
 0x20c   : >> { %v606_v29 = vld [vmem:[%s1914_s16] sm:$0xf]  ;;  %v615_v36 = vmul.f32 %v607_v30, %v599_v28  ;;  %v618_v42 = vmul.f32 %v607_v30, %v597_v27 }
 0x20d   : >> { %v604_v31 = vld [vmem:[%s1918_s1] sm:$0xf]  ;;  %v614_v35 = vmul.f32 %v606_v29, %v597_v27  ;;  %v617_v37 = vmul.f32 %v606_v29, %v599_v28 }
 0x20e   : >> { %v822_v32 = vld [vmem:[%s1912_s15] ss:$0 sm:$0xff]  ;;  %v1693_v34 = vld [vmem:[%s1912_s15 + $0x3] ss:$0 sm:$0xff]  ;;  %v608_v48 = vmul.f32 %v604_v31, %v597_v27  ;;  %v611_v49 = vmul.f32 %v604_v31, %v599_v28 }
 0x20f   : >> { %v1692_v33 = vld [vmem:[%s1912_s15 - $0x1] sm:$0xe]  ;;  %v1697_v45 = vld [vmem:[%s1922_s3 + $0x3] ss:$0 sm:$0xff]  ;;  %v616_v47 = vsub.f32 %v614_v35, %v615_v36  ;;  %v619_v53 = vadd.f32 %v618_v42, %v617_v37 }
 0x210   : >> { %v829_v38 = vsel %vm752_vm14, %v822_v32, %v1692_v33  ;;  %v833_v39 = vld [vmem:[%s1920_s2] ss:$0 sm:$0xff]  ;;  %v1695_v40 = vld [vmem:[%s1920_s2 + $0x1] sm:$0x7] }
 0x211   : >> { %v846_v41 = vld [vmem:[%s1922_s3] ss:$0 sm:$0xff]  ;;  %832 = vst [vmem:[%s1912_s15] sm:$0xf] %v829_v38  ;;  %v841_v43 = vsel %vm764_vm15, %v1693_v34, %v1695_v40  ;;  %v1699_v51 = vld [vmem:[%s1926_s17 + $0x1] sm:$0x7]  ;;  %622 = vst [vmem:[%s1914_s16] sm:$0xf] %v616_v47 }
 0x212   : >> { %v1696_v44 = vld [vmem:[%s1922_s3 - $0x1] sm:$0xe]  ;;  %1694 = vst [vmem:[%s1912_s15 + $0x1] sm:$0x1] %v833_v39  ;;  %843 = vst [vmem:[%s1920_s2] sm:$0xf] %v841_v43  ;;  %v865_v54 = vsel %vm764_vm15, %v1697_v45, %v1699_v51  ;;  %s769_s15 = smov [#allocation23] }
 0x213   : >> { %v857_v46 = vld [vmem:[%s1926_s17] ss:$0 sm:$0xff]  ;;  %v853_v50 = vsel %vm752_vm14, %v846_v41, %v1696_v44  ;;  %623 = vst [vmem:[%s1916_s0] sm:$0xf] %v619_v53  ;;  %s868_s16 = sadd.s32 (%p425_p1), 1, %s1763_s26   ;;  %s333_s0 = smov (%p425_p1), [#allocation20] }
 0x214   : >> { %v605_v52 = vld [vmem:[%s1928_s18] sm:$0xf]  ;;  %856 = vst [vmem:[%s1922_s3] sm:$0xf] %v853_v50  ;;  %867 = vst [vmem:[%s1926_s17] sm:$0xf] %v865_v54  ;;  %s369_s2 = smov (%p425_p1), [#allocation22]  ;;  %p421_p2 = scmp.ge.s32.totalorder (%p425_p1), %s868_s16, 15 }
 0x215   : >> { %v609_v55 = vmul.f32 %v605_v52, %v599_v28  ;;  %v612_v56 = vmul.f32 %v605_v52, %v597_v27  ;;  %1698 = vst [vmem:[%s1922_s3 + $0x1] sm:$0x1] %v857_v46  ;;  %s386_s3 = smov (%p425_p1), [#allocation23]  ;;  %s2062_s26 = smov (%p425_p1), %s868_s16 }
 0x217   : >> { %v610_v57 = vsub.f32 %v608_v48, %v609_v55  ;;  %v613_v58 = vadd.f32 %v612_v56, %v611_v49 }
 0x218   : >> { %v659_v60 = vld [vmem:[%s652_s20] sm:$0xf] }
 0x219   : >> { %620 = vst [vmem:[%s1918_s1] sm:$0xf] %v610_v57  ;;  %621 = vst [vmem:[%s1928_s18] sm:$0xf] %v613_v58  ;;  %v663_v61 = vsel %vm662_vm0, 0.0, %v659_v60  ;;  %s352_s1 = smov (%p425_p1), [#allocation21] }
 0x21a   : >> { %v674_v62 = vld [vmem:[%s665_s21] sm:$0xf]  ;;  %664 = vst [vmem:[%s652_s20] sm:$0xf] %v663_v61 }
 0x21b   : >> { %v678_v0 = vsel %vm677_vm1, %v673_v59, %v674_v62 }
 0x21c   : >> { %679 = vst [vmem:[%s665_s21] sm:$0xf] %v678_v0 }
 0x220   : >> { %v633_v1 = vld [vmem:[%s624_s23] sm:$0xf] }
 0x221   : >> { %v646_v2 = vld [vmem:[%s639_s24] sm:$0xf]  ;;  %v637_v3 = vsel %vm636_vm3, %v632_v63, %v633_v1 }
 0x222   : >> { %v650_v4 = vsel %vm649_vm4, 0.0, %v646_v2  ;;  %638 = vst [vmem:[%s624_s23] sm:$0xf] %v637_v3  ;;  %v718_v5 = vld [vmem:[%s1970_s25] sm:$0xf] }
 0x223   : >> { %651 = vst [vmem:[%s639_s24] sm:$0xf] %v650_v4  ;;  %719 = vrot.lane.b32.xlu0 %v718_v5, %s1770_s28  ;;  %v714_v11 = vld [vmem:[%s1973_s11] sm:$0xf] }
 0x224   : >> { %v735_v12 = vld [vmem:[%s1973_s11] sm:$0xf] }
 0x225   : >> { %v717_v30 = vld [vmem:[%s1970_s25] sm:$0xf] }
 0x229   : >> { %v686_v8 = vld [vmem:[%s680_s29] sm:$0xf] }
 0x22a   : >> { %687 = vrot.lane.b32.xlu1 %v686_v8, %s1770_s28  ;;  %v682_v9 = vld [vmem:[%s681_s30] sm:$0xf] }
 0x22b   : >> { %v703_v10 = vld [vmem:[%s681_s30] sm:$0xf] }
 0x22c   : >> { %v685_v18 = vld [vmem:[%s680_s29] sm:$0xf] }
 0x22e   : >> { %683 = vrot.lane.b32.xlu1 %v682_v9, %s1770_s28 }
 0x232   : >> { %704 = vrot.lane.b32.xlu1 %v703_v10, %s1771_s10 }
 0x236   : >> { %715 = vrot.lane.b32.xlu1 %v714_v11, %s1770_s28 }
 0x23a   : >> { %736 = vrot.lane.b32.xlu1 %v735_v12, %s1771_s10 }
 0x295   : >> { %v720_v20 = vpop.permute.xlu0 %719 }
 0x296   : >> { %v724_v22 = vsel %vm691_vm5, %v718_v5, %v720_v20 }
 0x29c   : >> { %v688_v13 = vpop.permute.xlu1 %687 }
 0x29d   : >> { %v692_v14 = vsel %vm691_vm5, %v686_v8, %v688_v13 }
 0x2a0   : >> { %v684_v15 = vpop.permute.xlu1 %683 }
 0x2a1   : >> { %v696_v16 = vsel %vm695_vm6, %v684_v15, %v692_v14 }
 0x2a2   : >> { %v702_v17 = vsel %vm1471_vm2, %v696_v16, 0.0 }
 0x2a3   : >> { %710 = vst [vmem:[%s680_s29] sm:$0xf] %v702_v17 }
 0x2a4   : >> { %v705_v19 = vpop.permute.xlu1 %704 }
 0x2a5   : >> { %v709_v21 = vsel %vm708_vm7, %v685_v18, %v705_v19 }
 0x2a6   : >> { %711 = vst [vmem:[%s681_s30] sm:$0xf] %v709_v21 }
 0x2a8   : >> { %v716_v23 = vpop.permute.xlu1 %715 }
 0x2a9   : >> { %v728_v24 = vsel %vm695_vm6, %v716_v23, %v724_v22 }
 0x2aa   : >> { %v746_v25 = vld [vmem:[%s744_s12] ss:$0 sm:$0xff]  ;;  %v1685_v27 = vld [vmem:[%s744_s12 + $0x3] ss:$0 sm:$0xff]  ;;  %v734_v29 = vsel %vm1471_vm2, %v728_v24, 0.0 }
 0x2ab   : >> { %v1684_v26 = vld [vmem:[%s744_s12 - $0x1] sm:$0xe]  ;;  %742 = vst [vmem:[%s1970_s25] sm:$0xf] %v734_v29 }
 0x2ac   : >> { %v753_v28 = vsel %vm752_vm14, %v746_v25, %v1684_v26  ;;  %v737_v31 = vpop.permute.xlu1 %736 }
 0x2ad   : >> { %756 = vst [vmem:[%s744_s12] sm:$0xf] %v753_v28  ;;  %v770_v32 = vld [vmem:[%s768_s13] ss:$0 sm:$0xff]  ;;  %v1689_v34 = vld [vmem:[%s768_s13 + $0x3] ss:$0 sm:$0xff]  ;;  %v741_v35 = vsel %vm708_vm7, %v717_v30, %v737_v31 }
 0x2ae   : >> { %v1688_v33 = vld [vmem:[%s768_s13 - $0x1] sm:$0xe]  ;;  %743 = vst [vmem:[%s1973_s11] sm:$0xf] %v741_v35 }
 0x2af   : >> { %v777_v36 = vsel %vm752_vm14, %v770_v32, %v1688_v33 }
 0x2b0   : >> { %780 = vst [vmem:[%s768_s13] sm:$0xf] %v777_v36 }
 0x2b2   : >> { %v757_v37 = vld [vmem:[%s745_s14] ss:$0 sm:$0xff]  ;;  %v1687_v38 = vld [vmem:[%s745_s14 + $0x1] sm:$0x7] }
 0x2b3   : >> { %1686 = vst [vmem:[%s744_s12 + $0x1] sm:$0x1] %v757_v37  ;;  %v765_v39 = vsel %vm764_vm15, %v1685_v27, %v1687_v38 }
 0x2b4   : >> { %767 = vst [vmem:[%s745_s14] sm:$0xf] %v765_v39 }
 0x2b5   : >> { %v781_v40 = vld [vmem:[%s769_s15] ss:$0 sm:$0xff]  ;;  %v1691_v41 = vld [vmem:[%s769_s15 + $0x1] sm:$0x7] }
 0x2b6   : >> { %1690 = vst [vmem:[%s768_s13 + $0x1] sm:$0x1] %v781_v40  ;;  %v789_v42 = vsel %vm764_vm15, %v1689_v34, %v1691_v41 }
 0x2b7   : >> { %791 = vst [vmem:[%s769_s15] sm:$0xf] %v789_v42  ;;  %427 = sbr.rel (!%p425_p1) target bundleno = 251 (0xfb), region = 435 }
 0x2ba   : > { %v339_v43 = vld [vmem:[%s333_s0] sm:$0xf] (%p425_p1) }
 0x2bb   : > { %v340_v45 = vsel (%p425_p1), %vm1471_vm2, %v339_v43, 0.0  ;;  %v375_v47 = vld [vmem:[%s369_s2] sm:$0xf] (%p425_p1) }
 0x2bc   : > { %v341_v49 = vmul.f32 %v340_v45, %v340_v45  ;;  %v376_v51 = vsel %vm1471_vm2, %v375_v47, 0.0 }
 0x2bd   : > { %v358_v44 = vld [vmem:[%s352_s1] sm:$0xf]  ;;  %v377_v53 = vmul.f32 %v376_v51, %v376_v51 }
 0x2be   : > { %v359_v46 = vsel %vm1471_vm2, %v358_v44, 0.0  ;;  %v392_v48 = vld [vmem:[%s386_s3] sm:$0xf]  ;;  %v345_v56 = vsel %vm344_vm8, 0.0, %v341_v49 }
 0x2bf   : > { %v360_v50 = vmul.f32 %v359_v46, %v359_v46  ;;  %v393_v52 = vsel %vm1471_vm2, %v392_v48, 0.0 }
 0x2c0   : > { %v394_v55 = vmul.f32 %v393_v52, %v393_v52 }
 0x2c1   : > { %v362_v54 = vadd.f32 %v360_v50, %v341_v49  ;;  %v361_v57 = vadd.f32 %v360_v50, %v345_v56 }
 0x2c2   : > { %v398_v60 = vsel %vm397_vm9, 0.0, %v394_v55 }
 0x2c3   : > { %v379_v58 = vadd.f32 %v377_v53, %v362_v54  ;;  %v378_v59 = vadd.f32 %v377_v53, %v361_v57 }
 0x2c5   : > { %v400_v61 = vadd.f32 %v394_v55, %v379_v58  ;;  %v399_v62 = vadd.f32 %v398_v60, %v378_v59 }
 0x2c7   : > { %401 = vadd.xlane.f32.xlu0 %v400_v61 }
 0x2cb   : > { %409 = vadd.xlane.f32.xlu0 %v399_v62 }
 0x350   : > { %v402_v63 = vpop.xlane.xlu0 %401 }
 0x351   : > { %v403_v0 = vrot.slane %v402_v63, 4 }
 0x353   : > { %v404_v1 = vadd.f32 %v403_v0, %v402_v63 }
 0x354   : > { %v410_v2 = vpop.xlane.xlu0 %409 }
 0x355   : > { %v405_v3 = vrot.slane %v404_v1, 2  ;;  %v411_v4 = vrot.slane %v410_v2, 4 }
 0x357   : > { %v412_v5 = vadd.f32 %v411_v4, %v410_v2  ;;  %v406_v8 = vadd.f32 %v405_v3, %v404_v1 }
 0x359   : > { %v413_v9 = vrot.slane %v412_v5, 2  ;;  %v407_v11 = vrot.slane %v406_v8, 1 }
 0x35b   : > { %v414_v10 = vadd.f32 %v413_v9, %v412_v5  ;;  %v408_v14 = vadd.f32 %v407_v11, %v406_v8 }
 0x35d   : > { %v415_v12 = vrot.slane %v414_v10, 1 }
 0x35f   : > { %v416_v13 = vadd.f32 %v415_v12, %v414_v10 }
 0x361   : > { %1722 = vpush %v416_v13 }
 0x362   : > { %1724 = vpush %v408_v14 }
 0x392   : > { %s1723_s27 = spop %1722 }
 0x393   : > { %s1725_s17 = spop %1724 }
 0x394   : > { %s419_s18 = smul.f32 1e-10, %s1725_s17 }
 0x396   : > { %p420_p3 = scmp.le.f32.partialorder %s1723_s27, %s419_s18 }
 0x398   : > { %p422_p4 = por %p421_p2, %p420_p3 }
 0x39a   :  { %870 = sbr.rel (!%p422_p4) target bundleno = 250 (0xfa), region = 446 }
 0x39f PF:  { %s871_s19 = smov [#allocation20]  ;;  %v875_v6 = vmov %v1834_v6  ;;  %v878_v7 = vmov %v1836_v7  ;;  %v931_v15 = vld [vmem:[#allocation12] sm:$0xf]  ;;  %v939_v16 = vld [vmem:[#allocation14] sm:$0xf]  ;;  %s891_s20 = smov [#allocation23] }
 0x3a0   :  { %v895_v6 = vmov %v1834_v6  ;;  %v898_v7 = vmov %v1836_v7  ;;  %v879_v17 = vld [vmem:[%s871_s19] sm:$0xf]  ;;  %vm882_vm10 = vcmp.eq.s32.totalorder %v878_v7, %v875_v6  ;;  %934 = vst [vmem:[#allocation13] sm:$0xf] %v931_v15  ;;  %942 = vst [vmem:[#allocation15] sm:$0xf] %v939_v16 }
 0x3a1   :  { %vm902_vm11 = vcmp.eq.s32.totalorder %v898_v7, %v895_v6  ;;  %v947_v18 = vld [vmem:[#allocation16] sm:$0xf]  ;;  %v883_v19 = vsel %vm882_vm10, %v879_v17, 0.0  ;;  %v899_v20 = vld [vmem:[%s891_s20] sm:$0xf]  ;;  %s872_s30 = smov [#allocation8] }
 0x3a2   :  { %950 = vst [vmem:[#allocation17] sm:$0xf] %v947_v18  ;;  %v955_v21 = vld [vmem:[#allocation18] sm:$0xf]  ;;  %v884_v22 = vrot.slane %v883_v19, 4  ;;  %v903_v23 = vsel %vm902_vm11, %v899_v20, 0.0 }
 0x3a3   :  { %958 = vst [vmem:[#allocation19] sm:$0xf] %v955_v21  ;;  %v904_v24 = vrot.slane %v903_v23, 4 }
 0x3a4   :  { %v885_v25 = vadd.f32 %v884_v22, %v883_v19 }
 0x3a5   :  { %v905_v26 = vadd.f32 %v904_v24, %v903_v23 }
 0x3a6   :  { %v886_v27 = vrot.slane %v885_v25, 2 }
 0x3a7   :  { %v906_v28 = vrot.slane %v905_v26, 2  ;;  %v1150_v29 = vld [vmem:[#allocation13] sm:$0xf]  ;;  %v1213_v30 = vld [vmem:[#allocation15] sm:$0xf] }
 0x3a8   :  { %v887_v31 = vadd.f32 %v886_v27, %v885_v25  ;;  %1151 = vst [vmem:[%s2058_s6] sm:$0xf] %v1150_v29  ;;  %1214 = vst [vmem:[%s2059_s7] sm:$0xf] %v1213_v30  ;;  %s892_s6 = smov [#allocation10] }
 0x3a9   :  { %v1276_v6 = vld [vmem:[#allocation17] sm:$0xf]  ;;  %v907_v7 = vadd.f32 %v906_v28, %v905_v26 }
 0x3aa   :  { %1277 = vst [vmem:[%s2060_s8] sm:$0xf] %v1276_v6  ;;  %v1339_v32 = vld [vmem:[#allocation19] sm:$0xf]  ;;  %v888_v33 = vrot.slane %v887_v31, 1 }
 0x3ab   :  { %1340 = vst [vmem:[%s2061_s9] sm:$0xf] %v1339_v32  ;;  %v908_v34 = vrot.slane %v907_v7, 1 }
 0x3ac   :  { %v889_v35 = vadd.f32 %v888_v33, %v887_v31 }
 0x3ad   :  { %v909_v36 = vadd.f32 %v908_v34, %v907_v7 }
 0x3ae   :  { %890 = vst [vmem:[%s872_s30] sm:$0x1] %v889_v35 }
 0x3af   :  { %910 = vst [vmem:[%s892_s6] sm:$0x1] %v909_v36 }
 0x3b5   :  { %v915_v37 = vld [vmem:[#allocation8] sm:$0x1] }
 0x3b6   :  { %918 = vst [vmem:[#allocation9] sm:$0x1] %v915_v37  ;;  %v923_v38 = vld [vmem:[#allocation10] sm:$0x1] }
 0x3b7   :  { %926 = vst [vmem:[#allocation11] sm:$0x1] %v923_v38 }
 0x3bd   :  { %v1022_v39 = vld [vmem:[#allocation9] sm:$0x1] }
 0x3be   :  { %1023 = vst [vmem:[%s2056_s4] sm:$0x1] %v1022_v39  ;;  %v1087_v40 = vld [vmem:[#allocation11] sm:$0x1] }
 0x3bf   :  { %1088 = vst [vmem:[%s2057_s5] sm:$0x1] %v1087_v40 }

// kernel: custom-call.12
= control target key start
LH: loop header
LB: loop body
LE: loop exit
PB: predicated region body
PF: predicated region fallthrough
CT: control target
= control target key end

     0   :  { %s2689_s6 = smov 0   ;;  %s2691_s7 = smov 0   ;;  %s3446_s0 = inlined_call_operand.vmem [shape: f32[2,36,36], index: 0, kind: input, shape index: {}]   ;;  %s3447_s1 = inlined_call_operand.vmem [shape: f32[2,36,36], index: 1, kind: output, shape index: {}]  }
   0x1   :  { %s2693_s8 = smov 0  }
   0x2 LB: > { %s2145_s9 = sadd.s32 4294967295, %s2676_s8   ;;  %s26_s10 = sadd.s32 1, %s2672_s7  ;;  %s2676_s8 = sphi %s2693_s8, %s7_s8   ;;  %s2672_s7 = sphi %s2691_s7, %s3449_s7   ;;  %s2668_s6 = sphi %s2689_s6, %s3448_s6  }
   0x3   : > { %p28_p0 = scmp.ge.s32.totalorder %s26_s10, 2  ;;  %p2147_p1 = scmp.ge.s32.totalorder %s2676_s8, 2 }
   0x4   : > { %s42_s11 = sand.u32 (!%p2147_p1), 1, %s2676_s8   ;;  %s2552_s12 = smul.u32 (!%p2147_p1), 40, %s2672_s7 }
   0x5   : > { %s3451_s10 = smov (%p28_p0, %s26_s10), 0  ;;  %40 = sbr.rel (%p2147_p1) target bundleno = 14 (0xe), region = 16 }
   0x6   : > { %s2551_s13 = smul.u32 (!%p2147_p1), 40, %s42_s11  ;;  %s49_s16 = scalar_lea.vmem (!%p2147_p1), %s3446_s0, %s2552_s12 }
   0x8   : > { %s44_s17 = scalar_lea.vmem (!%p2147_p1), [#allocation0], %s2551_s13 }
   0xa   : > { %v86_v0 = vld [vmem:[%s49_s16] sm:$0xff]  ;;  %v88_v1 = vld [vmem:[%s49_s16 + $0x8] sm:$0xff]  ;;  %v90_v2 = vld [vmem:[%s49_s16 + $0x10] sm:$0xff] }
   0xb   : > { %87 = vst [vmem:[%s44_s17] sm:$0xff] %v86_v0  ;;  %89 = vst [vmem:[%s44_s17 + $0x8] sm:$0xff] %v88_v1  ;;  %v92_v3 = vld [vmem:[%s49_s16 + $0x18] sm:$0xff]  ;;  %v94_v4 = vld [vmem:[%s49_s16 + $0x20] sm:$0xff] }
   0xc   : > { %91 = vst [vmem:[%s44_s17 + $0x10] sm:$0xff] %v90_v2  ;;  %93 = vst [vmem:[%s44_s17 + $0x18] sm:$0xff] %v92_v3 }
   0xd   : > { %95 = vst [vmem:[%s44_s17 + $0x20] sm:$0xff] %v94_v4 }
   0xe PF: > { %p2149_p2 = scmp.ge.s32.totalorder %s2676_s8, 1  ;;  %p100_p3 = scmp.lt.s32.totalorder %s2676_s8, 3 }
  0x10   : > { %p101_p4 = pnand %p2149_p2, %p100_p3 }
  0x11   : > { %s107_s18 = sand.u32 (!%p101_p4), 1, %s2145_s9   ;;  %s2554_s22 = smul.u32 (!%p101_p4), 40, %s2668_s6 }
  0x12   : > { %104 = sbr.rel (%p101_p4) target bundleno = 6135 (0x17f7), region = 54 }
  0x13   : > { %s2553_s19 = smul.u32 (!%p101_p4), 40, %s107_s18  ;;  %s3401_s25 = scalar_lea.vmem (!%p101_p4), %s3447_s1, %s2554_s22 }
  0x15   : > { %s2716_s20 = scalar_lea.vmem (!%p101_p4), [#allocation1], %s2553_s19  ;;  %s2723_s21 = scalar_lea.vmem (!%p101_p4), [#allocation0], %s2553_s19 }
  0x17   : > { %v2678_v5 = vmov 0.0   ;;  %v129_v9 = vld [vmem:[%s2723_s21] ss:$0 sm:$0xff]  ;;  %vm127_vm0 = vcmask 7168   ;;  %v2167_v21 = vld [vmem:[%s2723_s21 + $0x1] ss:$0 sm:$0xff] }
  0x18   : > { %118 = vst [vmem:[%s2716_s20] sm:$0xff] %v2678_v5  ;;  %v2727_v13 = vld [vmem:[%s2723_s21] sm:$0xff]  ;;  %v2744_v24 = vld [vmem:[%s2723_s21 + $0x8] sm:$0xff]  ;;  %vm197_vm1 = vcmask 15368   ;;  %vm214_vm2 = vcmask 1047553   ;;  %v2770_v48 = vld [vmem:[%s2723_s21 + $0x10] sm:$0xff]  ;;  %vm271_vm4 = vcmask 23568  }
  0x19   : > { %vm215_vm3 = vmand %vm197_vm1, %vm214_vm2  ;;  %v2181_v45 = vld [vmem:[%s2723_s21 + $0x2] ss:$0 sm:$0xff]  ;;  %vm288_vm5 = vcmask 1047554   ;;  %vm345_vm7 = vcmask 31768   ;;  %vm362_vm8 = vcmask 1047555   ;;  %vm419_vm10 = vcmask 39968  }
  0x1a   : > { %vm289_vm6 = vmand %vm271_vm4, %vm288_vm5  ;;  %vm436_vm11 = vcmask 1047556   ;;  %vm493_vm13 = vcmask 48168   ;;  %vm510_vm14 = vcmask 1047557  }
  0x1b   : > { %vm363_vm9 = vmand %vm345_vm7, %vm362_vm8 }
  0x1c   : > { %vm437_vm12 = vmand %vm419_vm10, %vm436_vm11 }
  0x1d   : > { %vm511_vm15 = vmand %vm493_vm13, %vm510_vm14 }
  0x1f   : > { %v128_v6 = vld [vmem:[%s2716_s20] ss:$0 sm:$0xff] }
  0x20   : > { %v130_v7 = vmul.f32 %v128_v6, %v128_v6  ;;  %v2720_v8 = vmul.f32 0.0, %v128_v6 }
  0x22   : > { %131 = vadd.xlane.f32.xlu0 %v130_v7 }
  0x26   : > { %138 = vadd.xlane.f32.xlu0 %v2720_v8 }
  0xab   : > { %v132_v10 = vpop.xlane.xlu0 %131 }
  0xac   : > { %v133_v11 = vsub.f32 %v129_v9, %v132_v10 }
  0xae   : > { %2580 = vrsqrt.f32 %v133_v11 }
  0xaf   : > { %v139_v12 = vpop.xlane.xlu0 %138 }
  0xb0   : > { %v140_v14 = vsub.f32 %v2727_v13, %v139_v12  ;;  %v2195_v12 = vld [vmem:[%s2723_s21 + $0x3] ss:$0 sm:$0xff] }
  0xbb   : > { %v2730_v15 = vpop.eup %2580 }
  0xbc   : > { %v141_v16 = vmul.f32 %v2730_v15, %v140_v14 }
  0xbe   : > { %v142_v17 = vsel %vm127_vm0, %v141_v16, 0.0 }
  0xbf   : > { %144 = vst [vmem:[%s2716_s20] sm:$0xff] %v142_v17 }
  0xc6   : > { %v2736_v18 = vld [vmem:[%s2716_s20 + $0x1] ss:$0 sm:$0xff] }
  0xc7   : > { %v209_v19 = vmul.f32 %v2736_v18, %v142_v17  ;;  %v202_v20 = vmul.f32 %v2736_v18, %v2736_v18 }
  0xc9   : > { %210 = vadd.xlane.f32.xlu0 %v209_v19  ;;  %203 = vadd.xlane.f32.xlu1 %v202_v20 }
  0xcd   : > { %150 = vadd.xlane.f32.xlu1 %v2720_v8 }
 0x152   : > { %v204_v22 = vpop.xlane.xlu1 %203  ;;  %v211_v29 = vpop.xlane.xlu0 %210 }
 0x153   : > { %v205_v23 = vsub.f32 %v2167_v21, %v204_v22  ;;  %v212_v31 = vsub.f32 %v2727_v13, %v211_v29  ;;  %v2803_v21 = vld [vmem:[%s2723_s21 + $0x18] sm:$0xff] }
 0x155   : > { %2582 = vrsqrt.f32 %v205_v23 }
 0x156   : > { %v151_v25 = vpop.xlane.xlu1 %150 }
 0x157   : > { %v152_v26 = vsub.f32 %v2744_v24, %v151_v25 }
 0x159   : > { %v153_v27 = vmul.f32 %v2730_v15, %v152_v26 }
 0x15b   : > { %v154_v28 = vsel %vm127_vm0, %v153_v27, 0.0 }
 0x15c   : > { %v223_v30 = vmul.f32 %v2736_v18, %v154_v28 }
 0x15e   : > { %224 = vadd.xlane.f32.xlu1 %v223_v30 }
 0x162   : > { %v2751_v32 = vpop.eup %2582 }
 0x163   : > { %v213_v33 = vmul.f32 %v2751_v32, %v212_v31 }
 0x165   : > { %v216_v34 = vsel %vm215_vm3, %v213_v33, 0.0 }
 0x166   : > { %v217_v35 = vadd.f32 %v216_v34, %v142_v17 }
 0x168   : > { %218 = vst [vmem:[%s2716_s20] sm:$0xff] %v217_v35 }
 0x16f   : > { %v2758_v36 = vld [vmem:[%s2716_s20 + $0x2] ss:$0 sm:$0xff] }
 0x170   : > { %v276_v37 = vmul.f32 %v2758_v36, %v2758_v36  ;;  %v283_v38 = vmul.f32 %v2758_v36, %v217_v35 }
 0x172   : > { %277 = vadd.xlane.f32.xlu0 %v276_v37  ;;  %284 = vadd.xlane.f32.xlu1 %v283_v38 }
 0x176   : > { %163 = vadd.xlane.f32.xlu0 %v2720_v8 }
 0x1e7   : > { %v225_v39 = vpop.xlane.xlu1 %224 }
 0x1e8   : > { %v226_v40 = vsub.f32 %v2744_v24, %v225_v39 }
 0x1ea   : > { %v227_v41 = vmul.f32 %v2751_v32, %v226_v40 }
 0x1ec   : > { %v228_v42 = vsel %vm197_vm1, %v227_v41, 0.0 }
 0x1ed   : > { %v229_v43 = vadd.f32 %v228_v42, %v154_v28 }
 0x1ef   : > { %v297_v44 = vmul.f32 %v2758_v36, %v229_v43 }
 0x1f1   : > { %298 = vadd.xlane.f32.xlu1 %v297_v44 }
 0x1fb   : > { %v278_v46 = vpop.xlane.xlu0 %277  ;;  %v285_v53 = vpop.xlane.xlu1 %284 }
 0x1fc   : > { %v279_v47 = vsub.f32 %v2181_v45, %v278_v46  ;;  %v286_v55 = vsub.f32 %v2727_v13, %v285_v53 }
 0x1fe   : > { %2584 = vrsqrt.f32 %v279_v47  ;;  %v2209_v47 = vld [vmem:[%s2723_s21 + $0x4] ss:$0 sm:$0xff] }
 0x1ff   : > { %v164_v49 = vpop.xlane.xlu0 %163 }
 0x200   : > { %v165_v50 = vsub.f32 %v2770_v48, %v164_v49 }
 0x202   : > { %v166_v51 = vmul.f32 %v2730_v15, %v165_v50 }
 0x204   : > { %v167_v52 = vsel %vm127_vm0, %v166_v51, 0.0 }
 0x205   : > { %v236_v54 = vmul.f32 %v2736_v18, %v167_v52 }
 0x207   : > { %237 = vadd.xlane.f32.xlu1 %v236_v54 }
 0x20b   : > { %v2777_v56 = vpop.eup %2584  ;;  %176 = vadd.xlane.f32.xlu1 %v2720_v8 }
 0x20c   : > { %v287_v57 = vmul.f32 %v2777_v56, %v286_v55 }
 0x20e   : > { %v290_v58 = vsel %vm289_vm6, %v287_v57, 0.0  ;;  %vm715_vm6 = vcmask 72768  }
 0x20f   : > { %v291_v59 = vadd.f32 %v290_v58, %v217_v35 }
 0x211   : > { %292 = vst [vmem:[%s2716_s20] sm:$0xff] %v291_v59 }
 0x218   : > { %v2785_v60 = vld [vmem:[%s2716_s20 + $0x3] ss:$0 sm:$0xff] }
 0x219   : > { %v350_v61 = vmul.f32 %v2785_v60, %v2785_v60  ;;  %v357_v62 = vmul.f32 %v2785_v60, %v291_v59 }
 0x21b   : > { %351 = vadd.xlane.f32.xlu0 %v350_v61 }
 0x21f   : > { %358 = vadd.xlane.f32.xlu0 %v357_v62 }
 0x27a   : > { %v299_v63 = vpop.xlane.xlu1 %298 }
 0x27b   : > { %v300_v0 = vsub.f32 %v2744_v24, %v299_v63 }
 0x27d   : > { %v301_v1 = vmul.f32 %v2777_v56, %v300_v0 }
 0x27f   : > { %v302_v2 = vsel %vm271_vm4, %v301_v1, 0.0 }
 0x280   : > { %v303_v3 = vadd.f32 %v302_v2, %v229_v43 }
 0x282   : > { %v371_v4 = vmul.f32 %v2785_v60, %v303_v3 }
 0x284   : > { %372 = vadd.xlane.f32.xlu0 %v371_v4 }
 0x290   : > { %v238_v5 = vpop.xlane.xlu1 %237 }
 0x291   : > { %v239_v6 = vsub.f32 %v2770_v48, %v238_v5 }
 0x293   : > { %v240_v7 = vmul.f32 %v2751_v32, %v239_v6 }
 0x294   : > { %v177_v22 = vpop.xlane.xlu1 %176 }
 0x295   : > { %v241_v9 = vsel %vm197_vm1, %v240_v7, 0.0  ;;  %v178_v25 = vsub.f32 %v2803_v21, %v177_v22 }
 0x296   : > { %v242_v10 = vadd.f32 %v241_v9, %v167_v52  ;;  %v2830_v52 = vld [vmem:[%s2723_s21 + $0x20] sm:$0xff] }
 0x297   : > { %v179_v28 = vmul.f32 %v2730_v15, %v178_v25 }
 0x298   : > { %v310_v11 = vmul.f32 %v2758_v36, %v242_v10 }
 0x299   : > { %v180_v29 = vsel %vm127_vm0, %v179_v28, 0.0 }
 0x29a   : > { %311 = vadd.xlane.f32.xlu1 %v310_v11  ;;  %v249_v34 = vmul.f32 %v2736_v18, %v180_v29 }
 0x2a4   : > { %v352_v14 = vpop.xlane.xlu0 %351 }
 0x2a5   : > { %v353_v16 = vsub.f32 %v2195_v12, %v352_v14 }
 0x2a7   : > { %2586 = vrsqrt.f32 %v353_v16 }
 0x2a8   : > { %v359_v17 = vpop.xlane.xlu0 %358 }
 0x2a9   : > { %v360_v19 = vsub.f32 %v2727_v13, %v359_v17 }
 0x2b4   : > { %v2800_v20 = vpop.eup %2586 }
 0x2b5   : > { %v361_v23 = vmul.f32 %v2800_v20, %v360_v19 }
 0x2b7   : > { %v364_v26 = vsel %vm363_vm9, %v361_v23, 0.0 }
 0x2b8   : > { %v365_v27 = vadd.f32 %v364_v26, %v291_v59 }
 0x2ba   : > { %366 = vst [vmem:[%s2716_s20] sm:$0xff] %v365_v27 }
 0x2c1   : > { %v2813_v30 = vld [vmem:[%s2716_s20 + $0x4] ss:$0 sm:$0xff] }
 0x2c2   : > { %v424_v31 = vmul.f32 %v2813_v30, %v2813_v30  ;;  %v431_v33 = vmul.f32 %v2813_v30, %v365_v27 }
 0x2c4   : > { %425 = vadd.xlane.f32.xlu0 %v424_v31  ;;  %432 = vadd.xlane.f32.xlu1 %v431_v33 }
 0x2c8   : > { %189 = vadd.xlane.f32.xlu1 %v2720_v8  ;;  %250 = vadd.xlane.f32.xlu0 %v249_v34 }
 0x30d   : > { %v373_v35 = vpop.xlane.xlu0 %372 }
 0x30e   : > { %v374_v37 = vsub.f32 %v2744_v24, %v373_v35  ;;  %v2223_v35 = vld [vmem:[%s2723_s21 + $0x5] ss:$0 sm:$0xff] }
 0x310   : > { %v375_v38 = vmul.f32 %v2800_v20, %v374_v37 }
 0x312   : > { %v376_v39 = vsel %vm345_vm7, %v375_v38, 0.0 }
 0x313   : > { %v377_v40 = vadd.f32 %v376_v39, %v303_v3 }
 0x315   : > { %v445_v41 = vmul.f32 %v2813_v30, %v377_v40 }
 0x317   : > { %446 = vadd.xlane.f32.xlu0 %v445_v41 }
 0x323   : > { %v312_v42 = vpop.xlane.xlu1 %311 }
 0x324   : > { %v313_v43 = vsub.f32 %v2770_v48, %v312_v42 }
 0x326   : > { %v314_v44 = vmul.f32 %v2777_v56, %v313_v43 }
 0x328   : > { %v315_v8 = vsel %vm271_vm4, %v314_v44, 0.0 }
 0x329   : > { %v316_v45 = vadd.f32 %v315_v8, %v242_v10 }
 0x32b   : > { %v384_v46 = vmul.f32 %v2785_v60, %v316_v45 }
 0x32d   : > { %385 = vadd.xlane.f32.xlu1 %v384_v46 }
 0x34d   : > { %v426_v49 = vpop.xlane.xlu0 %425  ;;  %v433_v50 = vpop.xlane.xlu1 %432 }
 0x34e   : > { %v427_v51 = vsub.f32 %v2209_v47, %v426_v49  ;;  %v434_v1 = vsub.f32 %v2727_v13, %v433_v50 }
 0x350   : > { %2588 = vrsqrt.f32 %v427_v51 }
 0x351   : > { %v251_v53 = vpop.xlane.xlu0 %250  ;;  %v190_v54 = vpop.xlane.xlu1 %189 }
 0x352   : > { %v252_v55 = vsub.f32 %v2803_v21, %v251_v53  ;;  %v191_v57 = vsub.f32 %v2830_v52, %v190_v54 }
 0x354   : > { %v253_v58 = vmul.f32 %v2751_v32, %v252_v55  ;;  %v192_v59 = vmul.f32 %v2730_v15, %v191_v57 }
 0x356   : > { %v254_v61 = vsel %vm197_vm1, %v253_v58, 0.0  ;;  %v193_v62 = vsel %vm127_vm0, %v192_v59, 0.0  ;;  %vm567_vm0 = vcmask 56368  }
 0x357   : > { %v255_v63 = vadd.f32 %v254_v61, %v180_v29  ;;  %v262_v15 = vmul.f32 %v2736_v18, %v193_v62 }
 0x359   : > { %v323_v0 = vmul.f32 %v2758_v36, %v255_v63 }
 0x35b   : > { %324 = vadd.xlane.f32.xlu1 %v323_v0 }
 0x35d   : > { %v2840_v2 = vpop.eup %2588 }
 0x35e   : > { %v435_v3 = vmul.f32 %v2840_v2, %v434_v1 }
 0x35f   : > { %263 = vadd.xlane.f32.xlu1 %v262_v15 }
 0x360   : > { %v438_v4 = vsel %vm437_vm12, %v435_v3, 0.0 }
 0x361   : > { %v439_v5 = vadd.f32 %v438_v4, %v365_v27 }
 0x363   : > { %440 = vst [vmem:[%s2716_s20] sm:$0xff] %v439_v5 }
 0x36a   : > { %v2848_v6 = vld [vmem:[%s2716_s20 + $0x5] ss:$0 sm:$0xff] }
 0x36b   : > { %v498_v7 = vmul.f32 %v2848_v6, %v2848_v6  ;;  %v505_v9 = vmul.f32 %v2848_v6, %v439_v5 }
 0x36d   : > { %499 = vadd.xlane.f32.xlu0 %v498_v7 }
 0x371   : > { %506 = vadd.xlane.f32.xlu0 %v505_v9 }
 0x3a0   : > { %v447_v10 = vpop.xlane.xlu0 %446 }
 0x3a1   : > { %v448_v11 = vsub.f32 %v2744_v24, %v447_v10 }
 0x3a3   : > { %v449_v18 = vmul.f32 %v2840_v2, %v448_v11  ;;  %v2237_v11 = vld [vmem:[%s2723_s21 + $0x6] ss:$0 sm:$0xff] }
 0x3a5   : > { %v450_v12 = vsel %vm419_vm10, %v449_v18, 0.0 }
 0x3a6   : > { %v451_v14 = vadd.f32 %v450_v12, %v377_v40 }
 0x3a8   : > { %v519_v16 = vmul.f32 %v2848_v6, %v451_v14 }
 0x3aa   : > { %520 = vadd.xlane.f32.xlu0 %v519_v16 }
 0x3b6   : > { %v386_v17 = vpop.xlane.xlu1 %385 }
 0x3b7   : > { %v387_v19 = vsub.f32 %v2770_v48, %v386_v17 }
 0x3b9   : > { %v388_v22 = vmul.f32 %v2800_v20, %v387_v19 }
 0x3bb   : > { %v389_v23 = vsel %vm345_vm7, %v388_v22, 0.0 }
 0x3bc   : > { %v390_v25 = vadd.f32 %v389_v23, %v316_v45 }
 0x3be   : > { %v458_v26 = vmul.f32 %v2813_v30, %v390_v25 }
 0x3c0   : > { %459 = vadd.xlane.f32.xlu1 %v458_v26 }
 0x3e4   : > { %v325_v27 = vpop.xlane.xlu1 %324 }
 0x3e5   : > { %v326_v28 = vsub.f32 %v2803_v21, %v325_v27 }
 0x3e7   : > { %v327_v29 = vmul.f32 %v2777_v56, %v326_v28 }
 0x3e8   : > { %v264_v42 = vpop.xlane.xlu1 %263 }
 0x3e9   : > { %v328_v31 = vsel %vm271_vm4, %v327_v29, 0.0  ;;  %v265_v44 = vsub.f32 %v2830_v52, %v264_v42 }
 0x3ea   : > { %v329_v33 = vadd.f32 %v328_v31, %v255_v63 }
 0x3eb   : > { %v266_v46 = vmul.f32 %v2751_v32, %v265_v44 }
 0x3ec   : > { %v397_v34 = vmul.f32 %v2785_v60, %v329_v33 }
 0x3ed   : > { %v267_v47 = vsel %vm197_vm1, %v266_v46, 0.0  ;;  %vm584_vm1 = vcmask 1047558  }
 0x3ee   : > { %398 = vadd.xlane.f32.xlu0 %v397_v34  ;;  %v268_v50 = vadd.f32 %v267_v47, %v193_v62  ;;  %vm585_vm3 = vmand %vm567_vm0, %vm584_vm1 }
 0x3f0   : > { %v336_v54 = vmul.f32 %v2758_v36, %v268_v50 }
 0x3f6   : > { %v500_v37 = vpop.xlane.xlu0 %499 }
 0x3f7   : > { %v501_v38 = vsub.f32 %v2223_v35, %v500_v37 }
 0x3f9   : > { %2590 = vrsqrt.f32 %v501_v38 }
 0x3fa   : > { %v507_v39 = vpop.xlane.xlu0 %506 }
 0x3fb   : > { %v508_v40 = vsub.f32 %v2727_v13, %v507_v39 }
 0x406   : > { %v2867_v41 = vpop.eup %2590 }
 0x407   : > { %v509_v43 = vmul.f32 %v2867_v41, %v508_v40 }
 0x409   : > { %v512_v8 = vsel %vm511_vm15, %v509_v43, 0.0 }
 0x40a   : > { %v513_v45 = vadd.f32 %v512_v8, %v439_v5 }
 0x40c   : > { %514 = vst [vmem:[%s2716_s20] sm:$0xff] %v513_v45 }
 0x413   : > { %v2877_v49 = vld [vmem:[%s2716_s20 + $0x6] ss:$0 sm:$0xff] }
 0x414   : > { %v572_v51 = vmul.f32 %v2877_v49, %v2877_v49  ;;  %v579_v53 = vmul.f32 %v2877_v49, %v513_v45 }
 0x416   : > { %573 = vadd.xlane.f32.xlu1 %v572_v51  ;;  %580 = vadd.xlane.f32.xlu0 %v579_v53 }
 0x41a   : > { %337 = vadd.xlane.f32.xlu1 %v336_v54 }
 0x433   : > { %v521_v55 = vpop.xlane.xlu0 %520 }
 0x434   : > { %v522_v57 = vsub.f32 %v2744_v24, %v521_v55 }
 0x436   : > { %v523_v32 = vmul.f32 %v2867_v41, %v522_v57 }
 0x438   : > { %v524_v58 = vsel %vm493_vm13, %v523_v32, 0.0 }
 0x439   : > { %v525_v59 = vadd.f32 %v524_v58, %v451_v14 }
 0x43b   : > { %v593_v61 = vmul.f32 %v2877_v49, %v525_v59 }
 0x43d   : > { %594 = vadd.xlane.f32.xlu0 %v593_v61  ;;  %v2251_v61 = vld [vmem:[%s2723_s21 + $0x7] ss:$0 sm:$0xff] }
 0x449   : > { %v460_v62 = vpop.xlane.xlu1 %459 }
 0x44a   : > { %v461_v63 = vsub.f32 %v2770_v48, %v460_v62 }
 0x44c   : > { %v462_v0 = vmul.f32 %v2840_v2, %v461_v63 }
 0x44e   : > { %v463_v36 = vsel %vm419_vm10, %v462_v0, 0.0 }
 0x44f   : > { %v464_v1 = vadd.f32 %v463_v36, %v390_v25 }
 0x451   : > { %v532_v15 = vmul.f32 %v2848_v6, %v464_v1 }
 0x453   : > { %533 = vadd.xlane.f32.xlu1 %v532_v15 }
 0x477   : > { %v399_v3 = vpop.xlane.xlu0 %398 }
 0x478   : > { %v400_v4 = vsub.f32 %v2803_v21, %v399_v3 }
 0x47a   : > { %v401_v5 = vmul.f32 %v2800_v20, %v400_v4 }
 0x47c   : > { %v402_v7 = vsel %vm345_vm7, %v401_v5, 0.0 }
 0x47d   : > { %v403_v9 = vadd.f32 %v402_v7, %v329_v33 }
 0x47f   : > { %v471_v10 = vmul.f32 %v2813_v30, %v403_v9 }
 0x481   : > { %472 = vadd.xlane.f32.xlu0 %v471_v10 }
 0x49f   : > { %v574_v18 = vpop.xlane.xlu1 %573  ;;  %v581_v23 = vpop.xlane.xlu0 %580 }
 0x4a0   : > { %v575_v12 = vsub.f32 %v2237_v11, %v574_v18  ;;  %v582_v26 = vsub.f32 %v2727_v13, %v581_v23 }
 0x4a2   : > { %2592 = vrsqrt.f32 %v575_v12 }
 0x4a3   : > { %v338_v14 = vpop.xlane.xlu1 %337 }
 0x4a4   : > { %v339_v16 = vsub.f32 %v2830_v52, %v338_v14 }
 0x4a6   : > { %v340_v17 = vmul.f32 %v2777_v56, %v339_v16 }
 0x4a8   : > { %v341_v19 = vsel %vm271_vm4, %v340_v17, 0.0  ;;  %vm641_vm4 = vcmask 64568  }
 0x4a9   : > { %v342_v22 = vadd.f32 %v341_v19, %v268_v50 }
 0x4ab   : > { %v410_v25 = vmul.f32 %v2785_v60, %v342_v22 }
 0x4ad   : > { %411 = vadd.xlane.f32.xlu0 %v410_v25 }
 0x4af   : > { %v2901_v27 = vpop.eup %2592 }
 0x4b0   : > { %v583_v28 = vmul.f32 %v2901_v27, %v582_v26 }
 0x4b2   : > { %v586_v29 = vsel %vm585_vm3, %v583_v28, 0.0 }
 0x4b3   : > { %v587_v56 = vadd.f32 %v586_v29, %v513_v45 }
 0x4b5   : > { %588 = vst [vmem:[%s2716_s20] sm:$0xff] %v587_v56 }
 0x4bc   : > { %v2908_v31 = vld [vmem:[%s2716_s20 + $0x7] ss:$0 sm:$0xff] }
 0x4bd   : > { %v646_v60 = vmul.f32 %v2908_v31, %v2908_v31 }
 0x4bf   : > { %647 = vadd.xlane.f32.xlu1 %v646_v60 }
 0x4c6   : > { %v595_v33 = vpop.xlane.xlu0 %594 }
 0x4c7   : > { %v596_v34 = vsub.f32 %v2744_v24, %v595_v33  ;;  %v2265_v33 = vld [vmem:[%s2723_s21 + $0x8] ss:$0 sm:$0xff] }
 0x4c9   : > { %v597_v13 = vmul.f32 %v2901_v27, %v596_v34 }
 0x4cb   : > { %v598_v35 = vsel %vm567_vm0, %v597_v13, 0.0 }
 0x4cc   : > { %v599_v37 = vadd.f32 %v598_v35, %v525_v59 }
 0x4ce   : > { %v667_v38 = vmul.f32 %v2908_v31, %v599_v37 }
 0x4d0   : > { %668 = vadd.xlane.f32.xlu1 %v667_v38 }
 0x4dc   : > { %v534_v39 = vpop.xlane.xlu1 %533 }
 0x4dd   : > { %v535_v40 = vsub.f32 %v2770_v48, %v534_v39 }
 0x4df   : > { %v536_v42 = vmul.f32 %v2867_v41, %v535_v40 }
 0x4e1   : > { %v537_v43 = vsel %vm493_vm13, %v536_v42, 0.0 }
 0x4e2   : > { %v538_v44 = vadd.f32 %v537_v43, %v464_v1 }
 0x4e4   : > { %v606_v8 = vmul.f32 %v2877_v49, %v538_v44 }
 0x4e6   : > { %607 = vadd.xlane.f32.xlu0 %v606_v8 }
 0x50a   : > { %v473_v45 = vpop.xlane.xlu0 %472 }
 0x50b   : > { %v474_v46 = vsub.f32 %v2803_v21, %v473_v45 }
 0x50d   : > { %v475_v47 = vmul.f32 %v2840_v2, %v474_v46 }
 0x50f   : > { %v476_v50 = vsel %vm419_vm10, %v475_v47, 0.0 }
 0x510   : > { %v477_v51 = vadd.f32 %v476_v50, %v403_v9 }
 0x512   : > { %v545_v53 = vmul.f32 %v2848_v6, %v477_v51 }
 0x514   : > { %546 = vadd.xlane.f32.xlu1 %v545_v53 }
 0x536   : > { %v412_v54 = vpop.xlane.xlu0 %411 }
 0x537   : > { %v413_v55 = vsub.f32 %v2830_v52, %v412_v54 }
 0x539   : > { %v414_v57 = vmul.f32 %v2800_v20, %v413_v55 }
 0x53b   : > { %v415_v32 = vsel %vm345_vm7, %v414_v57, 0.0  ;;  %vm777_vm7 = vcmask 80968  }
 0x53c   : > { %v416_v58 = vadd.f32 %v415_v32, %v342_v22  ;;  %vm797_vm9 = vmand %vm777_vm7, %vm214_vm2 }
 0x53e   : > { %v484_v59 = vmul.f32 %v2813_v30, %v416_v58 }
 0x540   : > { %485 = vadd.xlane.f32.xlu0 %v484_v59 }
 0x548   : > { %v648_v62 = vpop.xlane.xlu1 %647 }
 0x549   : > { %v649_v63 = vsub.f32 %v2251_v61, %v648_v62 }
 0x54b   : > { %2594 = vrsqrt.f32 %v649_v63 }
 0x558   : > { %v2930_v1 = vpop.eup %2594 }
 0x559   : > { %v669_v0 = vpop.xlane.xlu1 %668 }
 0x55a   : > { %v670_v36 = vsub.f32 %v2744_v24, %v669_v0 }
 0x55c   : > { %v671_v20 = vmul.f32 %v2930_v1, %v670_v36 }
 0x55e   : > { %v672_v15 = vsel %vm641_vm4, %v671_v20, 0.0 }
 0x55f   : > { %v673_v3 = vadd.f32 %v672_v15, %v599_v37 }
 0x561   : > { %2254 = vst [vmem:[%s2716_s20 + $0x8] sm:$0xff] %v673_v3 }
 0x568   : > { %v2936_v4 = vld [vmem:[%s2716_s20 + $0x8] ss:$0 sm:$0xff] }
 0x569   : > { %v729_v30 = vmul.f32 %v2936_v4, %v673_v3  ;;  %v720_v5 = vmul.f32 %v2936_v4, %v2936_v4 }
 0x56b   : > { %730 = vadd.xlane.f32.xlu0 %v729_v30  ;;  %721 = vadd.xlane.f32.xlu1 %v720_v5  ;;  %v2279_v30 = vld [vmem:[%s2723_s21 + $0x9] ss:$0 sm:$0xff] }
 0x56f   : > { %v608_v7 = vpop.xlane.xlu0 %607 }
 0x570   : > { %v609_v9 = vsub.f32 %v2770_v48, %v608_v7 }
 0x572   : > { %v610_v10 = vmul.f32 %v2901_v27, %v609_v9 }
 0x574   : > { %v611_v11 = vsel %vm567_vm0, %v610_v10, 0.0 }
 0x575   : > { %v612_v18 = vadd.f32 %v611_v11, %v538_v44 }
 0x577   : > { %v680_v12 = vmul.f32 %v2908_v31, %v612_v18 }
 0x579   : > { %681 = vadd.xlane.f32.xlu1 %v680_v12 }
 0x59d   : > { %v547_v14 = vpop.xlane.xlu1 %546 }
 0x59e   : > { %v548_v16 = vsub.f32 %v2803_v21, %v547_v14 }
 0x5a0   : > { %v549_v17 = vmul.f32 %v2867_v41, %v548_v16 }
 0x5a2   : > { %v550_v19 = vsel %vm493_vm13, %v549_v17, 0.0 }
 0x5a3   : > { %v551_v22 = vadd.f32 %v550_v19, %v477_v51 }
 0x5a5   : > { %v619_v23 = vmul.f32 %v2877_v49, %v551_v22 }
 0x5a7   : > { %620 = vadd.xlane.f32.xlu0 %v619_v23 }
 0x5c9   : > { %v486_v25 = vpop.xlane.xlu0 %485 }
 0x5ca   : > { %v487_v26 = vsub.f32 %v2830_v52, %v486_v25 }
 0x5cc   : > { %v488_v28 = vmul.f32 %v2840_v2, %v487_v26 }
 0x5ce   : > { %v489_v29 = vsel %vm419_vm10, %v488_v28, 0.0  ;;  %vm841_vm10 = vcmask 89168  }
 0x5cf   : > { %v490_v56 = vadd.f32 %v489_v29, %v416_v58  ;;  %vm861_vm12 = vmand %vm841_vm10, %vm288_vm5 }
 0x5d1   : > { %v558_v60 = vmul.f32 %v2848_v6, %v490_v56 }
 0x5d3   : > { %559 = vadd.xlane.f32.xlu1 %v558_v60 }
 0x5f4   : > { %v722_v34 = vpop.xlane.xlu1 %721  ;;  %v731_v35 = vpop.xlane.xlu0 %730 }
 0x5f5   : > { %v723_v13 = vsub.f32 %v2265_v33, %v722_v34  ;;  %v732_v38 = vsub.f32 %v2744_v24, %v731_v35 }
 0x5f7   : > { %2596 = vrsqrt.f32 %v723_v13 }
 0x602   : > { %v682_v37 = vpop.xlane.xlu1 %681 }
 0x603   : > { %v683_v39 = vsub.f32 %v2770_v48, %v682_v37 }
 0x604   : > { %v2956_v40 = vpop.eup %2596 }
 0x605   : > { %v733_v2 = vmul.f32 %v2956_v40, %v732_v38  ;;  %v684_v6 = vmul.f32 %v2930_v1, %v683_v39 }
 0x607   : > { %v734_v42 = vsel %vm715_vm6, %v733_v2, 0.0  ;;  %v685_v43 = vsel %vm641_vm4, %v684_v6, 0.0 }
 0x608   : > { %v735_v44 = vadd.f32 %v734_v42, %v673_v3  ;;  %v686_v8 = vadd.f32 %v685_v43, %v612_v18  ;;  %v2293_v43 = vld [vmem:[%s2723_s21 + $0xa] ss:$0 sm:$0xff] }
 0x60a   : > { %2268 = vst [vmem:[%s2716_s20 + $0x8] sm:$0xff] %v735_v44  ;;  %v742_v45 = vmul.f32 %v2936_v4, %v686_v8 }
 0x60c   : > { %743 = vadd.xlane.f32.xlu1 %v742_v45 }
 0x611   : > { %v2965_v46 = vld [vmem:[%s2716_s20 + $0x9] ss:$0 sm:$0xff] }
 0x612   : > { %v782_v47 = vmul.f32 %v2965_v46, %v2965_v46  ;;  %v791_v50 = vmul.f32 %v2965_v46, %v735_v44 }
 0x614   : > { %783 = vadd.xlane.f32.xlu0 %v782_v47 }
 0x618   : > { %792 = vadd.xlane.f32.xlu0 %v791_v50 }
 0x630   : > { %v621_v51 = vpop.xlane.xlu0 %620 }
 0x631   : > { %v622_v53 = vsub.f32 %v2803_v21, %v621_v51 }
 0x633   : > { %v623_v54 = vmul.f32 %v2901_v27, %v622_v53 }
 0x635   : > { %v624_v55 = vsel %vm567_vm0, %v623_v54, 0.0 }
 0x636   : > { %v625_v57 = vadd.f32 %v624_v55, %v551_v22 }
 0x638   : > { %v693_v32 = vmul.f32 %v2908_v31, %v625_v57 }
 0x63a   : > { %694 = vadd.xlane.f32.xlu1 %v693_v32 }
 0x65c   : > { %v560_v58 = vpop.xlane.xlu1 %559 }
 0x65d   : > { %v561_v59 = vsub.f32 %v2830_v52, %v560_v58 }
 0x65f   : > { %v562_v61 = vmul.f32 %v2867_v41, %v561_v59 }
 0x661   : > { %v563_v62 = vsel %vm493_vm13, %v562_v61, 0.0  ;;  %vm905_vm13 = vcmask 97368  }
 0x662   : > { %v564_v63 = vadd.f32 %v563_v62, %v490_v56  ;;  %vm925_vm15 = vmand %vm905_vm13, %vm362_vm8 }
 0x664   : > { %v632_v0 = vmul.f32 %v2877_v49, %v564_v63 }
 0x666   : > { %633 = vadd.xlane.f32.xlu0 %v632_v0 }
 0x695   : > { %v744_v36 = vpop.xlane.xlu1 %743 }
 0x696   : > { %v745_v20 = vsub.f32 %v2770_v48, %v744_v36 }
 0x698   : > { %v746_v15 = vmul.f32 %v2956_v40, %v745_v20 }
 0x69a   : > { %v747_v3 = vsel %vm715_vm6, %v746_v15, 0.0 }
 0x69b   : > { %v748_v5 = vadd.f32 %v747_v3, %v686_v8 }
 0x69d   : > { %v784_v7 = vpop.xlane.xlu0 %783  ;;  %v806_v41 = vmul.f32 %v2965_v46, %v748_v5 }
 0x69e   : > { %v785_v9 = vsub.f32 %v2279_v30, %v784_v7 }
 0x69f   : > { %807 = vadd.xlane.f32.xlu1 %v806_v41 }
 0x6a0   : > { %2598 = vrsqrt.f32 %v785_v9 }
 0x6a1   : > { %v793_v10 = vpop.xlane.xlu0 %792 }
 0x6a2   : > { %v794_v49 = vsub.f32 %v2744_v24, %v793_v10 }
 0x6ad   : > { %v2984_v11 = vpop.eup %2598 }
 0x6ae   : > { %v795_v18 = vmul.f32 %v2984_v11, %v794_v49 }
 0x6b0   : > { %v798_v12 = vsel %vm797_vm9, %v795_v18, 0.0  ;;  %vm1097_vm9 = vcmask 121968  }
 0x6b1   : > { %v799_v14 = vadd.f32 %v798_v12, %v735_v44 }
 0x6b3   : > { %2282 = vst [vmem:[%s2716_s20 + $0x8] sm:$0xff] %v799_v14 }
 0x6ba   : > { %v2991_v16 = vld [vmem:[%s2716_s20 + $0xa] ss:$0 sm:$0xff] }
 0x6bb   : > { %v846_v17 = vmul.f32 %v2991_v16, %v2991_v16  ;;  %v855_v19 = vmul.f32 %v2991_v16, %v799_v14 }
 0x6bd   : > { %847 = vadd.xlane.f32.xlu0 %v846_v17  ;;  %856 = vadd.xlane.f32.xlu1 %v855_v19 }
 0x6c3   : > { %v695_v22 = vpop.xlane.xlu1 %694 }
 0x6c4   : > { %v696_v23 = vsub.f32 %v2803_v21, %v695_v22  ;;  %v3040_v22 = vld [vmem:[%s2723_s21 + $0x8] sm:$0xff] }
 0x6c6   : > { %v697_v25 = vmul.f32 %v2930_v1, %v696_v23 }
 0x6c8   : > { %v698_v26 = vsel %vm641_vm4, %v697_v25, 0.0 }
 0x6c9   : > { %v699_v28 = vadd.f32 %v698_v26, %v625_v57 }
 0x6cb   : > { %v755_v29 = vmul.f32 %v2936_v4, %v699_v28 }
 0x6cd   : > { %756 = vadd.xlane.f32.xlu0 %v755_v29 }
 0x6ef   : > { %v634_v56 = vpop.xlane.xlu0 %633 }
 0x6f0   : > { %v635_v60 = vsub.f32 %v2830_v52, %v634_v56 }
 0x6f2   : > { %v636_v33 = vmul.f32 %v2901_v27, %v635_v60 }
 0x6f4   : > { %v637_v34 = vsel %vm567_vm0, %v636_v33, 0.0  ;;  %vm969_vm0 = vcmask 105568  }
 0x6f5   : > { %v638_v13 = vadd.f32 %v637_v34, %v564_v63  ;;  %vm989_vm3 = vmand %vm969_vm0, %vm436_vm11 }
 0x6f7   : > { %v706_v35 = vmul.f32 %v2908_v31, %v638_v13 }
 0x6f9   : > { %707 = vadd.xlane.f32.xlu1 %v706_v35 }
 0x728   : > { %v808_v37 = vpop.xlane.xlu1 %807 }
 0x729   : > { %v809_v38 = vsub.f32 %v2770_v48, %v808_v37 }
 0x72b   : > { %v810_v39 = vmul.f32 %v2984_v11, %v809_v38 }
 0x72d   : > { %v811_v2 = vsel %vm777_vm7, %v810_v39, 0.0 }
 0x72e   : > { %v812_v6 = vadd.f32 %v811_v2, %v748_v5 }
 0x730   : > { %v870_v42 = vmul.f32 %v2991_v16, %v812_v6 }
 0x732   : > { %871 = vadd.xlane.f32.xlu0 %v870_v42 }
 0x746   : > { %v848_v44 = vpop.xlane.xlu0 %847  ;;  %v857_v8 = vpop.xlane.xlu1 %856 }
 0x747   : > { %v849_v27 = vsub.f32 %v2293_v43, %v848_v44  ;;  %v858_v45 = vsub.f32 %v2744_v24, %v857_v8 }
 0x749   : > { %2600 = vrsqrt.f32 %v849_v27 }
 0x756   : > { %v757_v31 = vpop.xlane.xlu0 %756  ;;  %v3011_v50 = vpop.eup %2600 }
 0x757   : > { %v758_v47 = vsub.f32 %v2803_v21, %v757_v31  ;;  %v859_v51 = vmul.f32 %v3011_v50, %v858_v45 }
 0x759   : > { %v759_v53 = vmul.f32 %v2956_v40, %v758_v47  ;;  %v862_v54 = vsel %vm861_vm12, %v859_v51, 0.0  ;;  %vm1161_vm12 = vcmask 130168  }
 0x75a   : > { %v863_v57 = vadd.f32 %v862_v54, %v799_v14  ;;  %v2307_v14 = vld [vmem:[%s2723_s21 + $0xb] ss:$0 sm:$0xff]  ;;  %v2321_v54 = vld [vmem:[%s2723_s21 + $0xc] ss:$0 sm:$0xff] }
 0x75b   : > { %v760_v55 = vsel %vm715_vm6, %v759_v53, 0.0 }
 0x75c   : > { %v761_v32 = vadd.f32 %v760_v55, %v699_v28  ;;  %2296 = vst [vmem:[%s2716_s20 + $0x8] sm:$0xff] %v863_v57 }
 0x75e   : > { %v819_v58 = vmul.f32 %v2965_v46, %v761_v32 }
 0x760   : > { %820 = vadd.xlane.f32.xlu0 %v819_v58 }
 0x763   : > { %v3021_v24 = vld [vmem:[%s2716_s20 + $0xb] ss:$0 sm:$0xff] }
 0x764   : > { %v910_v59 = vmul.f32 %v3021_v24, %v3021_v24  ;;  %v919_v61 = vmul.f32 %v3021_v24, %v863_v57 }
 0x766   : > { %911 = vadd.xlane.f32.xlu1 %v910_v59 }
 0x76a   : > { %920 = vadd.xlane.f32.xlu1 %v919_v61 }
 0x782   : > { %v708_v62 = vpop.xlane.xlu1 %707 }
 0x783   : > { %v709_v63 = vsub.f32 %v2830_v52, %v708_v62 }
 0x785   : > { %v710_v0 = vmul.f32 %v2930_v1, %v709_v63 }
 0x787   : > { %v711_v36 = vsel %vm641_vm4, %v710_v0, 0.0 }
 0x788   : > { %v712_v20 = vadd.f32 %v711_v36, %v638_v13 }
 0x78a   : > { %v768_v15 = vmul.f32 %v2936_v4, %v712_v20 }
 0x78c   : > { %769 = vadd.xlane.f32.xlu0 %v768_v15 }
 0x7bb   : > { %v872_v3 = vpop.xlane.xlu0 %871 }
 0x7bc   : > { %v873_v30 = vsub.f32 %v2770_v48, %v872_v3 }
 0x7be   : > { %v874_v5 = vmul.f32 %v3011_v50, %v873_v30 }
 0x7c0   : > { %v875_v7 = vsel %vm841_vm10, %v874_v5, 0.0 }
 0x7c1   : > { %v876_v41 = vadd.f32 %v875_v7, %v812_v6  ;;  %v3060_v6 = vld [vmem:[%s2723_s21 + $0x10] sm:$0xff] }
 0x7c3   : > { %v934_v9 = vmul.f32 %v3021_v24, %v876_v41 }
 0x7c5   : > { %935 = vadd.xlane.f32.xlu1 %v934_v9 }
 0x7e9   : > { %v821_v10 = vpop.xlane.xlu0 %820 }
 0x7ea   : > { %v822_v49 = vsub.f32 %v2803_v21, %v821_v10 }
 0x7ec   : > { %v823_v18 = vmul.f32 %v2984_v11, %v822_v49 }
 0x7ee   : > { %v824_v4 = vsel %vm777_vm7, %v823_v18, 0.0  ;;  %v3093_v18 = vld [vmem:[%s2723_s21 + $0x18] sm:$0xff] }
 0x7ef   : > { %v825_v12 = vadd.f32 %v824_v4, %v761_v32  ;;  %v912_v48 = vpop.xlane.xlu1 %911 }
 0x7f0   : > { %v913_v19 = vsub.f32 %v2307_v14, %v912_v48 }
 0x7f1   : > { %v883_v17 = vmul.f32 %v2991_v16, %v825_v12 }
 0x7f2   : > { %2602 = vrsqrt.f32 %v913_v19 }
 0x7f3   : > { %884 = vadd.xlane.f32.xlu0 %v883_v17  ;;  %v921_v23 = vpop.xlane.xlu1 %920 }
 0x7f4   : > { %v922_v25 = vsub.f32 %v3040_v22, %v921_v23 }
 0x7ff   : > { %v3043_v26 = vpop.eup %2602 }
 0x800   : > { %v923_v28 = vmul.f32 %v3043_v26, %v922_v25 }
 0x802   : > { %v926_v29 = vsel %vm925_vm15, %v923_v28, 0.0  ;;  %vm1274_vm15 = vcmask 146568  }
 0x803   : > { %v927_v56 = vadd.f32 %v926_v29, %v863_v57 }
 0x805   : > { %2310 = vst [vmem:[%s2716_s20 + $0x8] sm:$0xff] %v927_v56 }
 0x80c   : > { %v3050_v60 = vld [vmem:[%s2716_s20 + $0xc] ss:$0 sm:$0xff] }
 0x80d   : > { %v983_v33 = vmul.f32 %v3050_v60, %v927_v56  ;;  %v974_v34 = vmul.f32 %v3050_v60, %v3050_v60 }
 0x80f   : > { %984 = vadd.xlane.f32.xlu0 %v983_v33  ;;  %975 = vadd.xlane.f32.xlu1 %v974_v34 }
 0x815   : > { %v770_v13 = vpop.xlane.xlu0 %769 }
 0x816   : > { %v771_v35 = vsub.f32 %v2830_v52, %v770_v13 }
 0x818   : > { %v772_v37 = vmul.f32 %v2956_v40, %v771_v35 }
 0x81a   : > { %v773_v38 = vsel %vm715_vm6, %v772_v37, 0.0  ;;  %vm1033_vm6 = vcmask 113768  }
 0x81b   : > { %v774_v39 = vadd.f32 %v773_v38, %v712_v20 }
 0x81d   : > { %v832_v2 = vmul.f32 %v2965_v46, %v774_v39 }
 0x81f   : > { %833 = vadd.xlane.f32.xlu1 %v832_v2 }
 0x84e   : > { %v936_v42 = vpop.xlane.xlu1 %935 }
 0x84f   : > { %v937_v43 = vsub.f32 %v3060_v6, %v936_v42 }
 0x851   : > { %v938_v44 = vmul.f32 %v3043_v26, %v937_v43 }
 0x853   : > { %v939_v27 = vsel %vm905_vm13, %v938_v44, 0.0 }
 0x854   : > { %v940_v8 = vadd.f32 %v939_v27, %v876_v41 }
 0x856   : > { %v998_v31 = vmul.f32 %v3050_v60, %v940_v8 }
 0x858   : > { %999 = vadd.xlane.f32.xlu0 %v998_v31 }
 0x87c   : > { %v885_v40 = vpop.xlane.xlu0 %884 }
 0x87d   : > { %v886_v45 = vsub.f32 %v2803_v21, %v885_v40 }
 0x87f   : > { %v887_v46 = vmul.f32 %v3011_v50, %v886_v45 }
 0x881   : > { %v888_v47 = vsel %vm841_vm10, %v887_v46, 0.0 }
 0x882   : > { %v889_v51 = vadd.f32 %v888_v47, %v825_v12 }
 0x884   : > { %v947_v53 = vmul.f32 %v3021_v24, %v889_v51 }
 0x886   : > { %948 = vadd.xlane.f32.xlu1 %v947_v53 }
 0x898   : > { %v976_v55 = vpop.xlane.xlu1 %975  ;;  %v985_v32 = vpop.xlane.xlu0 %984 }
 0x899   : > { %v977_v57 = vsub.f32 %v2321_v54, %v976_v55  ;;  %v986_v59 = vsub.f32 %v3040_v22, %v985_v32 }
 0x89b   : > { %2604 = vrsqrt.f32 %v977_v57  ;;  %v3126_v57 = vld [vmem:[%s2723_s21 + $0x20] sm:$0xff] }
 0x8a8   : > { %v834_v58 = vpop.xlane.xlu1 %833  ;;  %v3073_v61 = vpop.eup %2604 }
 0x8a9   : > { %v835_v21 = vsub.f32 %v2830_v52, %v834_v58  ;;  %v987_v62 = vmul.f32 %v3073_v61, %v986_v59 }
 0x8ab   : > { %v836_v63 = vmul.f32 %v2984_v11, %v835_v21  ;;  %v990_v0 = vsel %vm989_vm3, %v987_v62, 0.0  ;;  %vm1325_vm3 = vcmask 154768  }
 0x8ac   : > { %v991_v20 = vadd.f32 %v990_v0, %v927_v56  ;;  %v2335_v56 = vld [vmem:[%s2723_s21 + $0xd] ss:$0 sm:$0xff]  ;;  %v2349_v0 = vld [vmem:[%s2723_s21 + $0xe] ss:$0 sm:$0xff] }
 0x8ad   : > { %v837_v36 = vsel %vm777_vm7, %v836_v63, 0.0  ;;  %vm1053_vm7 = vmand %vm1033_vm6, %vm510_vm14 }
 0x8ae   : > { %v838_v15 = vadd.f32 %v837_v36, %v774_v39  ;;  %2324 = vst [vmem:[%s2716_s20 + $0x8] sm:$0xff] %v991_v20 }
 0x8b0   : > { %v896_v3 = vmul.f32 %v2991_v16, %v838_v15 }
 0x8b2   : > { %897 = vadd.xlane.f32.xlu1 %v896_v3 }
 0x8b5   : > { %v3083_v30 = vld [vmem:[%s2716_s20 + $0xd] ss:$0 sm:$0xff] }
 0x8b6   : > { %v1038_v5 = vmul.f32 %v3083_v30, %v3083_v30  ;;  %v1047_v7 = vmul.f32 %v3083_v30, %v991_v20 }
 0x8b8   : > { %1039 = vadd.xlane.f32.xlu0 %v1038_v5 }
 0x8bc   : > { %1048 = vadd.xlane.f32.xlu0 %v1047_v7 }
 0x8e1   : > { %v1000_v11 = vpop.xlane.xlu0 %999 }
 0x8e2   : > { %v1001_v41 = vsub.f32 %v3060_v6, %v1000_v11 }
 0x8e4   : > { %v1002_v9 = vmul.f32 %v3073_v61, %v1001_v41 }
 0x8e6   : > { %v1003_v10 = vsel %vm969_vm0, %v1002_v9, 0.0 }
 0x8e7   : > { %v1004_v49 = vadd.f32 %v1003_v10, %v940_v8 }
 0x8e9   : > { %v1062_v16 = vmul.f32 %v3083_v30, %v1004_v49 }
 0x8eb   : > { %1063 = vadd.xlane.f32.xlu1 %v1062_v16 }
 0x90f   : > { %v949_v4 = vpop.xlane.xlu1 %948 }
 0x910   : > { %v950_v12 = vsub.f32 %v3093_v18, %v949_v4 }
 0x912   : > { %v951_v14 = vmul.f32 %v3043_v26, %v950_v12 }
 0x914   : > { %v952_v48 = vsel %vm905_vm13, %v951_v14, 0.0 }
 0x915   : > { %v953_v17 = vadd.f32 %v952_v48, %v889_v51 }
 0x917   : > { %v1011_v19 = vmul.f32 %v3050_v60, %v953_v17 }
 0x919   : > { %1012 = vadd.xlane.f32.xlu0 %v1011_v19 }
 0x93b   : > { %v898_v23 = vpop.xlane.xlu1 %897 }
 0x93c   : > { %v899_v25 = vsub.f32 %v2830_v52, %v898_v23 }
 0x93e   : > { %v900_v28 = vmul.f32 %v3011_v50, %v899_v25 }
 0x940   : > { %v901_v29 = vsel %vm841_vm10, %v900_v28, 0.0  ;;  %vm1117_vm10 = vmand %vm1097_vm9, %vm584_vm1 }
 0x941   : > { %v902_v33 = vadd.f32 %v901_v29, %v838_v15  ;;  %v1040_v34 = vpop.xlane.xlu0 %1039 }
 0x942   : > { %v1041_v35 = vsub.f32 %v2335_v56, %v1040_v34 }
 0x943   : > { %v960_v13 = vmul.f32 %v3021_v24, %v902_v33 }
 0x944   : > { %2606 = vrsqrt.f32 %v1041_v35 }
 0x945   : > { %961 = vadd.xlane.f32.xlu1 %v960_v13  ;;  %v1049_v37 = vpop.xlane.xlu0 %1048  ;;  %v2363_v13 = vld [vmem:[%s2723_s21 + $0xf] ss:$0 sm:$0xff] }
 0x946   : > { %v1050_v38 = vsub.f32 %v3040_v22, %v1049_v37 }
 0x951   : > { %v3105_v39 = vpop.eup %2606 }
 0x952   : > { %v1051_v52 = vmul.f32 %v3105_v39, %v1050_v38 }
 0x954   : > { %v1054_v50 = vsel %vm1053_vm7, %v1051_v52, 0.0  ;;  %vm1376_vm7 = vcmask 162968  }
 0x955   : > { %v1055_v2 = vadd.f32 %v1054_v50, %v991_v20 }
 0x957   : > { %2338 = vst [vmem:[%s2716_s20 + $0x8] sm:$0xff] %v1055_v2 }
 0x95e   : > { %v3112_v42 = vld [vmem:[%s2716_s20 + $0xe] ss:$0 sm:$0xff] }
 0x95f   : > { %v1102_v24 = vmul.f32 %v3112_v42, %v3112_v42  ;;  %v1111_v43 = vmul.f32 %v3112_v42, %v1055_v2 }
 0x961   : > { %1103 = vadd.xlane.f32.xlu0 %v1102_v24  ;;  %1112 = vadd.xlane.f32.xlu1 %v1111_v43 }
 0x974   : > { %v1064_v44 = vpop.xlane.xlu1 %1063 }
 0x975   : > { %v1065_v27 = vsub.f32 %v3060_v6, %v1064_v44 }
 0x977   : > { %v1066_v8 = vmul.f32 %v3105_v39, %v1065_v27 }
 0x979   : > { %v1067_v31 = vsel %vm1033_vm6, %v1066_v8, 0.0 }
 0x97a   : > { %v1068_v40 = vadd.f32 %v1067_v31, %v1004_v49 }
 0x97c   : > { %v1126_v45 = vmul.f32 %v3112_v42, %v1068_v40 }
 0x97e   : > { %1127 = vadd.xlane.f32.xlu0 %v1126_v45 }
 0x9a2   : > { %v1013_v46 = vpop.xlane.xlu0 %1012 }
 0x9a3   : > { %v1014_v47 = vsub.f32 %v3093_v18, %v1013_v46 }
 0x9a5   : > { %v1015_v51 = vmul.f32 %v3073_v61, %v1014_v47 }
 0x9a7   : > { %v1016_v53 = vsel %vm969_vm0, %v1015_v51, 0.0 }
 0x9a8   : > { %v1017_v54 = vadd.f32 %v1016_v53, %v953_v17 }
 0x9aa   : > { %v1075_v55 = vmul.f32 %v3083_v30, %v1017_v54 }
 0x9ac   : > { %1076 = vadd.xlane.f32.xlu1 %v1075_v55 }
 0x9ce   : > { %v962_v32 = vpop.xlane.xlu1 %961 }
 0x9cf   : > { %v963_v58 = vsub.f32 %v3126_v57, %v962_v32 }
 0x9d1   : > { %v964_v59 = vmul.f32 %v3043_v26, %v963_v58  ;;  %v2377_v58 = vld [vmem:[%s2723_s21 + $0x10] ss:$0 sm:$0xff] }
 0x9d3   : > { %v965_v21 = vsel %vm905_vm13, %v964_v59, 0.0  ;;  %vm1225_vm13 = vcmask 138368  }
 0x9d4   : > { %v966_v62 = vadd.f32 %v965_v21, %v902_v33 }
 0x9d6   : > { %v1024_v63 = vmul.f32 %v3050_v60, %v966_v62 }
 0x9d8   : > { %1025 = vadd.xlane.f32.xlu0 %v1024_v63 }
 0x9ea   : > { %v1104_v36 = vpop.xlane.xlu0 %1103  ;;  %v1113_v15 = vpop.xlane.xlu1 %1112 }
 0x9eb   : > { %v1105_v20 = vsub.f32 %v2349_v0, %v1104_v36  ;;  %v1114_v3 = vsub.f32 %v3040_v22, %v1113_v15 }
 0x9ed   : > { %2608 = vrsqrt.f32 %v1105_v20 }
 0x9fa   : > { %v3134_v5 = vpop.eup %2608 }
 0x9fb   : > { %v1115_v26 = vmul.f32 %v3134_v5, %v1114_v3 }
 0x9fd   : > { %v1118_v7 = vsel %vm1117_vm10, %v1115_v26, 0.0  ;;  %vm1427_vm10 = vcmask 171168  }
 0x9fe   : > { %v1119_v11 = vadd.f32 %v1118_v7, %v1055_v2 }
 0xa00   : > { %2352 = vst [vmem:[%s2716_s20 + $0x8] sm:$0xff] %v1119_v11 }
 0xa07   : > { %v3141_v60 = vld [vmem:[%s2716_s20 + $0xf] ss:$0 sm:$0xff]  ;;  %v1128_v41 = vpop.xlane.xlu0 %1127 }
 0xa08   : > { %v1166_v9 = vmul.f32 %v3141_v60, %v3141_v60  ;;  %v1129_v10 = vsub.f32 %v3060_v6, %v1128_v41 }
 0xa0a   : > { %1167 = vadd.xlane.f32.xlu1 %v1166_v9  ;;  %v1130_v22 = vmul.f32 %v3134_v5, %v1129_v10 }
 0xa0c   : > { %v1131_v49 = vsel %vm1097_vm9, %v1130_v22, 0.0 }
 0xa0d   : > { %v1132_v16 = vadd.f32 %v1131_v49, %v1068_v40 }
 0xa0f   : > { %v1190_v4 = vmul.f32 %v3141_v60, %v1132_v16 }
 0xa11   : > { %1191 = vadd.xlane.f32.xlu0 %v1190_v4 }
 0xa35   : > { %v1077_v12 = vpop.xlane.xlu1 %1076 }
 0xa36   : > { %v1078_v14 = vsub.f32 %v3093_v18, %v1077_v12 }
 0xa38   : > { %v1079_v48 = vmul.f32 %v3105_v39, %v1078_v14 }
 0xa3a   : > { %v1080_v17 = vsel %vm1033_vm6, %v1079_v48, 0.0  ;;  %v2388_v48 = vld [vmem:[%s2723_s21 + $0x11] ss:$0 sm:$0xff] }
 0xa3b   : > { %v1081_v19 = vadd.f32 %v1080_v17, %v1017_v54 }
 0xa3d   : > { %v1139_v23 = vmul.f32 %v3112_v42, %v1081_v19 }
 0xa3f   : > { %1140 = vadd.xlane.f32.xlu1 %v1139_v23 }
 0xa61   : > { %v1026_v25 = vpop.xlane.xlu0 %1025 }
 0xa62   : > { %v1027_v28 = vsub.f32 %v3126_v57, %v1026_v25 }
 0xa64   : > { %v1028_v29 = vmul.f32 %v3073_v61, %v1027_v28 }
 0xa66   : > { %v1029_v56 = vsel %vm969_vm0, %v1028_v29, 0.0  ;;  %vm1294_vm0 = vmand %vm1274_vm15, %vm214_vm2 }
 0xa67   : > { %v1030_v33 = vadd.f32 %v1029_v56, %v966_v62 }
 0xa69   : > { %v1088_v34 = vmul.f32 %v3083_v30, %v1030_v33 }
 0xa6b   : > { %1089 = vadd.xlane.f32.xlu0 %v1088_v34 }
 0xa93   : > { %v1168_v35 = vpop.xlane.xlu1 %1167 }
 0xa94   : > { %v1169_v37 = vsub.f32 %v2363_v13, %v1168_v35 }
 0xa96   : > { %2610 = vrsqrt.f32 %v1169_v37 }
 0xa9a   : > { %v1192_v38 = vpop.xlane.xlu0 %1191 }
 0xa9b   : > { %v1193_v52 = vsub.f32 %v3060_v6, %v1192_v38 }
 0xaa3   : > { %v3159_v50 = vpop.eup %2610 }
 0xaa4   : > { %v1194_v61 = vmul.f32 %v3159_v50, %v1193_v52 }
 0xaa6   : > { %v1195_v2 = vsel %vm1161_vm12, %v1194_v61, 0.0 }
 0xaa7   : > { %v1196_v24 = vadd.f32 %v1195_v2, %v1132_v16 }
 0xaa9   : > { %2369 = vst [vmem:[%s2716_s20 + $0x10] sm:$0xff] %v1196_v24 }
 0xab0   : > { %v3165_v43 = vld [vmem:[%s2716_s20 + $0x10] ss:$0 sm:$0xff] }
 0xab1   : > { %v1239_v30 = vmul.f32 %v3165_v43, %v1196_v24  ;;  %v1230_v44 = vmul.f32 %v3165_v43, %v3165_v43 }
 0xab3   : > { %1240 = vadd.xlane.f32.xlu0 %v1239_v30  ;;  %1231 = vadd.xlane.f32.xlu1 %v1230_v44 }
 0xac8   : > { %v1141_v27 = vpop.xlane.xlu1 %1140 }
 0xac9   : > { %v1142_v8 = vsub.f32 %v3093_v18, %v1141_v27 }
 0xacb   : > { %v1143_v31 = vmul.f32 %v3134_v5, %v1142_v8 }
 0xacd   : > { %v1144_v40 = vsel %vm1097_vm9, %v1143_v31, 0.0 }
 0xace   : > { %v1145_v45 = vadd.f32 %v1144_v40, %v1081_v19 }
 0xad0   : > { %v1203_v46 = vmul.f32 %v3141_v60, %v1145_v45 }
 0xad2   : > { %1204 = vadd.xlane.f32.xlu1 %v1203_v46 }
 0xaf4   : > { %v1090_v47 = vpop.xlane.xlu0 %1089 }
 0xaf5   : > { %v1091_v51 = vsub.f32 %v3126_v57, %v1090_v47 }
 0xaf7   : > { %v1092_v53 = vmul.f32 %v3105_v39, %v1091_v51 }
 0xaf9   : > { %v1093_v54 = vsel %vm1033_vm6, %v1092_v53, 0.0  ;;  %v2399_v53 = vld [vmem:[%s2723_s21 + $0x12] ss:$0 sm:$0xff]  ;;  %vm1345_vm6 = vmand %vm1325_vm3, %vm288_vm5 }
 0xafa   : > { %v1094_v55 = vadd.f32 %v1093_v54, %v1030_v33 }
 0xafc   : > { %v1152_v32 = vmul.f32 %v3112_v42, %v1094_v55 }
 0xafe   : > { %1153 = vadd.xlane.f32.xlu0 %v1152_v32 }
 0xb3c   : > { %v1232_v59 = vpop.xlane.xlu1 %1231  ;;  %v1241_v62 = vpop.xlane.xlu0 %1240 }
 0xb3d   : > { %v1233_v21 = vsub.f32 %v2377_v58, %v1232_v59  ;;  %v1242_v63 = vsub.f32 %v3060_v6, %v1241_v62 }
 0xb3f   : > { %2612 = vrsqrt.f32 %v1233_v21 }
 0xb4c   : > { %v3180_v0 = vpop.eup %2612 }
 0xb4d   : > { %v1243_v39 = vmul.f32 %v3180_v0, %v1242_v63 }
 0xb4f   : > { %v1244_v36 = vsel %vm1225_vm13, %v1243_v39, 0.0 }
 0xb50   : > { %v1245_v20 = vadd.f32 %v1244_v36, %v1196_v24 }
 0xb52   : > { %2380 = vst [vmem:[%s2716_s20 + $0x10] sm:$0xff] %v1245_v20 }
 0xb59   : > { %v3186_v3 = vld [vmem:[%s2716_s20 + $0x11] ss:$0 sm:$0xff] }
 0xb5a   : > { %v1279_v26 = vmul.f32 %v3186_v3, %v3186_v3  ;;  %v1288_v41 = vmul.f32 %v3186_v3, %v1245_v20 }
 0xb5b   : > { %v1205_v15 = vpop.xlane.xlu1 %1204 }
 0xb5c   : > { %v1206_v42 = vsub.f32 %v3093_v18, %v1205_v15  ;;  %1280 = vadd.xlane.f32.xlu1 %v1279_v26 }
 0xb5e   : > { %v1207_v7 = vmul.f32 %v3159_v50, %v1206_v42 }
 0xb60   : > { %v1208_v11 = vsel %vm1161_vm12, %v1207_v7, 0.0  ;;  %1289 = vadd.xlane.f32.xlu1 %v1288_v41 }
 0xb61   : > { %v1209_v9 = vadd.f32 %v1208_v11, %v1145_v45 }
 0xb63   : > { %v1252_v10 = vmul.f32 %v3165_v43, %v1209_v9 }
 0xb65   : > { %1253 = vadd.xlane.f32.xlu0 %v1252_v10 }
 0xb87   : > { %v1154_v22 = vpop.xlane.xlu0 %1153 }
 0xb88   : > { %v1155_v49 = vsub.f32 %v3126_v57, %v1154_v22 }
 0xb8a   : > { %v1156_v16 = vmul.f32 %v3134_v5, %v1155_v49 }
 0xb8c   : > { %v1157_v4 = vsel %vm1097_vm9, %v1156_v16, 0.0  ;;  %vm1396_vm9 = vmand %vm1376_vm7, %vm362_vm8 }
 0xb8d   : > { %v1158_v12 = vadd.f32 %v1157_v4, %v1094_v55  ;;  %v2410_v4 = vld [vmem:[%s2723_s21 + $0x13] ss:$0 sm:$0xff] }
 0xb8f   : > { %v1216_v14 = vmul.f32 %v3141_v60, %v1158_v12 }
 0xb91   : > { %1217 = vadd.xlane.f32.xlu0 %v1216_v14 }
 0xbe5   : > { %v1281_v17 = vpop.xlane.xlu1 %1280 }
 0xbe6   : > { %v1282_v19 = vsub.f32 %v2388_v48, %v1281_v17 }
 0xbe8   : > { %2614 = vrsqrt.f32 %v1282_v19 }
 0xbe9   : > { %v1290_v29 = vpop.xlane.xlu1 %1289 }
 0xbea   : > { %v1291_v33 = vsub.f32 %v3060_v6, %v1290_v29 }
 0xbee   : > { %v1254_v23 = vpop.xlane.xlu0 %1253 }
 0xbef   : > { %v1255_v25 = vsub.f32 %v3093_v18, %v1254_v23 }
 0xbf1   : > { %v1256_v28 = vmul.f32 %v3180_v0, %v1255_v25 }
 0xbf3   : > { %v1257_v5 = vsel %vm1225_vm13, %v1256_v28, 0.0 }
 0xbf4   : > { %v1258_v56 = vadd.f32 %v1257_v5, %v1209_v9 }
 0xbf5   : > { %v3205_v34 = vpop.eup %2614 }
 0xbf6   : > { %v1303_v60 = vmul.f32 %v3186_v3, %v1258_v56  ;;  %v1292_v13 = vmul.f32 %v3205_v34, %v1291_v33 }
 0xbf8   : > { %1304 = vadd.xlane.f32.xlu1 %v1303_v60  ;;  %v1295_v35 = vsel %vm1294_vm0, %v1292_v13, 0.0 }
 0xbf9   : > { %v1296_v37 = vadd.f32 %v1295_v35, %v1245_v20 }
 0xbfb   : > { %2391 = vst [vmem:[%s2716_s20 + $0x10] sm:$0xff] %v1296_v37 }
 0xc02   : > { %v3212_v38 = vld [vmem:[%s2716_s20 + $0x12] ss:$0 sm:$0xff] }
 0xc03   : > { %v1330_v52 = vmul.f32 %v3212_v38, %v3212_v38  ;;  %v1339_v61 = vmul.f32 %v3212_v38, %v1296_v37 }
 0xc05   : > { %1331 = vadd.xlane.f32.xlu0 %v1330_v52  ;;  %1340 = vadd.xlane.f32.xlu1 %v1339_v61 }
 0xc1a   : > { %v1218_v2 = vpop.xlane.xlu0 %1217 }
 0xc1b   : > { %v1219_v24 = vsub.f32 %v3126_v57, %v1218_v2 }
 0xc1d   : > { %v1220_v30 = vmul.f32 %v3159_v50, %v1219_v24 }
 0xc1f   : > { %v1221_v44 = vsel %vm1161_vm12, %v1220_v30, 0.0 }
 0xc20   : > { %v1222_v27 = vadd.f32 %v1221_v44, %v1158_v12 }
 0xc22   : > { %v1265_v8 = vmul.f32 %v3165_v43, %v1222_v27 }
 0xc24   : > { %1266 = vadd.xlane.f32.xlu0 %v1265_v8 }
 0xc81   : > { %v1305_v31 = vpop.xlane.xlu1 %1304 }
 0xc82   : > { %v1306_v40 = vsub.f32 %v3093_v18, %v1305_v31 }
 0xc84   : > { %v1307_v45 = vmul.f32 %v3205_v34, %v1306_v40  ;;  %v2421_v40 = vld [vmem:[%s2723_s21 + $0x14] ss:$0 sm:$0xff] }
 0xc86   : > { %v1308_v46 = vsel %vm1274_vm15, %v1307_v45, 0.0 }
 0xc87   : > { %v1309_v47 = vadd.f32 %v1308_v46, %v1258_v56 }
 0xc89   : > { %v1354_v51 = vmul.f32 %v3212_v38, %v1309_v47 }
 0xc8b   : > { %1355 = vadd.xlane.f32.xlu1 %v1354_v51 }
 0xc8e   : > { %v1332_v54 = vpop.xlane.xlu0 %1331  ;;  %v1341_v32 = vpop.xlane.xlu1 %1340 }
 0xc8f   : > { %v1333_v55 = vsub.f32 %v2399_v53, %v1332_v54  ;;  %v1342_v43 = vsub.f32 %v3060_v6, %v1341_v32 }
 0xc91   : > { %2616 = vrsqrt.f32 %v1333_v55 }
 0xc9e   : > { %v2617_v58 = vpop.eup %2616 }
 0xc9f   : > { %v1343_v59 = vmul.f32 %v2617_v58, %v1342_v43 }
 0xca1   : > { %v1346_v21 = vsel %vm1345_vm6, %v1343_v59, 0.0 }
 0xca2   : > { %v1347_v62 = vadd.f32 %v1346_v21, %v1296_v37 }
 0xca4   : > { %2402 = vst [vmem:[%s2716_s20 + $0x10] sm:$0xff] %v1347_v62 }
 0xcab   : > { %v2409_v39 = vld [vmem:[%s2716_s20 + $0x13] ss:$0 sm:$0xff] }
 0xcac   : > { %v1381_v20 = vmul.f32 %v2409_v39, %v2409_v39  ;;  %v1390_v26 = vmul.f32 %v2409_v39, %v1347_v62 }
 0xcad   : > { %v1267_v63 = vpop.xlane.xlu0 %1266 }
 0xcae   : > { %v1268_v36 = vsub.f32 %v3126_v57, %v1267_v63  ;;  %1382 = vadd.xlane.f32.xlu0 %v1381_v20 }
 0xcb0   : > { %v1269_v15 = vmul.f32 %v3180_v0, %v1268_v36 }
 0xcb2   : > { %v1270_v42 = vsel %vm1225_vm13, %v1269_v15, 0.0  ;;  %1391 = vadd.xlane.f32.xlu0 %v1390_v26  ;;  %vm1447_vm13 = vmand %vm1427_vm10, %vm436_vm11 }
 0xcb3   : > { %v1271_v7 = vadd.f32 %v1270_v42, %v1222_v27 }
 0xcb5   : > { %v1316_v11 = vmul.f32 %v3186_v3, %v1271_v7 }
 0xcb7   : > { %1317 = vadd.xlane.f32.xlu1 %v1316_v11 }
 0xd14   : > { %v1356_v41 = vpop.xlane.xlu1 %1355 }
 0xd15   : > { %v1357_v9 = vsub.f32 %v3093_v18, %v1356_v41 }
 0xd17   : > { %v1358_v10 = vmul.f32 %v2617_v58, %v1357_v9  ;;  %v2432_v9 = vld [vmem:[%s2723_s21 + $0x15] ss:$0 sm:$0xff] }
 0xd19   : > { %v1359_v22 = vsel %vm1325_vm3, %v1358_v10, 0.0 }
 0xd1a   : > { %v1360_v49 = vadd.f32 %v1359_v22, %v1309_v47 }
 0xd1c   : > { %v1405_v16 = vmul.f32 %v2409_v39, %v1360_v49 }
 0xd1e   : > { %1406 = vadd.xlane.f32.xlu1 %v1405_v16 }
 0xd37   : > { %v1383_v0 = vpop.xlane.xlu0 %1382 }
 0xd38   : > { %v1384_v12 = vsub.f32 %v2410_v4, %v1383_v0 }
 0xd3a   : > { %2618 = vrsqrt.f32 %v1384_v12 }
 0xd3b   : > { %v1392_v17 = vpop.xlane.xlu0 %1391 }
 0xd3c   : > { %v1393_v25 = vsub.f32 %v3060_v6, %v1392_v17 }
 0xd40   : > { %v1318_v14 = vpop.xlane.xlu1 %1317 }
 0xd41   : > { %v1319_v48 = vsub.f32 %v3126_v57, %v1318_v14 }
 0xd43   : > { %v1320_v3 = vmul.f32 %v3205_v34, %v1319_v48 }
 0xd45   : > { %v1321_v19 = vsel %vm1274_vm15, %v1320_v3, 0.0  ;;  %vm1478_vm15 = vcmask 179368  }
 0xd46   : > { %v1322_v23 = vadd.f32 %v1321_v19, %v1271_v7  ;;  %vm1498_vm0 = vmand %vm1478_vm15, %vm510_vm14 }
 0xd47   : > { %v2619_v29 = vpop.eup %2618 }
 0xd48   : > { %v1367_v28 = vmul.f32 %v3212_v38, %v1322_v23  ;;  %v1394_v5 = vmul.f32 %v2619_v29, %v1393_v25 }
 0xd4a   : > { %1368 = vadd.xlane.f32.xlu0 %v1367_v28  ;;  %v1397_v56 = vsel %vm1396_vm9, %v1394_v5, 0.0  ;;  %vm1631_vm9 = vcmask 203968  }
 0xd4b   : > { %v1398_v33 = vadd.f32 %v1397_v56, %v1347_v62 }
 0xd4d   : > { %2413 = vst [vmem:[%s2716_s20 + $0x10] sm:$0xff] %v1398_v33 }
 0xd54   : > { %v2420_v60 = vld [vmem:[%s2716_s20 + $0x14] ss:$0 sm:$0xff] }
 0xd55   : > { %v1432_v34 = vmul.f32 %v2420_v60, %v2420_v60  ;;  %v1441_v13 = vmul.f32 %v2420_v60, %v1398_v33 }
 0xd57   : > { %1433 = vadd.xlane.f32.xlu1 %v1432_v34  ;;  %1442 = vadd.xlane.f32.xlu0 %v1441_v13 }
 0xda7   : > { %v1407_v35 = vpop.xlane.xlu1 %1406 }
 0xda8   : > { %v1408_v37 = vsub.f32 %v3093_v18, %v1407_v35 }
 0xdaa   : > { %v1409_v52 = vmul.f32 %v2619_v29, %v1408_v37  ;;  %v2443_v37 = vld [vmem:[%s2723_s21 + $0x16] ss:$0 sm:$0xff] }
 0xdac   : > { %v1410_v38 = vsel %vm1376_vm7, %v1409_v52, 0.0 }
 0xdad   : > { %v1411_v61 = vadd.f32 %v1410_v38, %v1360_v49 }
 0xdaf   : > { %v1456_v2 = vmul.f32 %v2420_v60, %v1411_v61 }
 0xdb1   : > { %1457 = vadd.xlane.f32.xlu1 %v1456_v2 }
 0xdd3   : > { %v1369_v24 = vpop.xlane.xlu0 %1368 }
 0xdd4   : > { %v1370_v30 = vsub.f32 %v3126_v57, %v1369_v24 }
 0xdd6   : > { %v1371_v44 = vmul.f32 %v2617_v58, %v1370_v30 }
 0xdd8   : > { %v1372_v27 = vsel %vm1325_vm3, %v1371_v44, 0.0  ;;  %vm1529_vm3 = vcmask 187568  }
 0xdd9   : > { %v1373_v8 = vadd.f32 %v1372_v27, %v1322_v23  ;;  %vm1549_vm6 = vmand %vm1529_vm3, %vm584_vm1 }
 0xddb   : > { %v1418_v31 = vmul.f32 %v2409_v39, %v1373_v8 }
 0xddd   : > { %1419 = vadd.xlane.f32.xlu0 %v1418_v31 }
 0xde0   : > { %v1434_v45 = vpop.xlane.xlu1 %1433  ;;  %v1443_v47 = vpop.xlane.xlu0 %1442 }
 0xde1   : > { %v1435_v46 = vsub.f32 %v2421_v40, %v1434_v45  ;;  %v1444_v51 = vsub.f32 %v3060_v6, %v1443_v47 }
 0xde3   : > { %2620 = vrsqrt.f32 %v1435_v46 }
 0xdf0   : > { %v2621_v53 = vpop.eup %2620 }
 0xdf1   : > { %v1445_v54 = vmul.f32 %v2621_v53, %v1444_v51 }
 0xdf3   : > { %v1448_v55 = vsel %vm1447_vm13, %v1445_v54, 0.0 }
 0xdf4   : > { %v1449_v32 = vadd.f32 %v1448_v55, %v1398_v33 }
 0xdf6   : > { %2424 = vst [vmem:[%s2716_s20 + $0x10] sm:$0xff] %v1449_v32 }
 0xdfd   : > { %v2431_v43 = vld [vmem:[%s2716_s20 + $0x15] ss:$0 sm:$0xff] }
 0xdfe   : > { %v1492_v58 = vmul.f32 %v2431_v43, %v1449_v32  ;;  %v1483_v59 = vmul.f32 %v2431_v43, %v2431_v43 }
 0xe00   : > { %1493 = vadd.xlane.f32.xlu0 %v1492_v58  ;;  %1484 = vadd.xlane.f32.xlu1 %v1483_v59  ;;  %v2454_v59 = vld [vmem:[%s2723_s21 + $0x17] ss:$0 sm:$0xff] }
 0xe3a   : > { %v1458_v21 = vpop.xlane.xlu1 %1457 }
 0xe3b   : > { %v1459_v62 = vsub.f32 %v3093_v18, %v1458_v21 }
 0xe3d   : > { %v1460_v63 = vmul.f32 %v2621_v53, %v1459_v62 }
 0xe3f   : > { %v1461_v39 = vsel %vm1427_vm10, %v1460_v63, 0.0 }
 0xe40   : > { %v1462_v36 = vadd.f32 %v1461_v39, %v1411_v61 }
 0xe42   : > { %v1507_v20 = vmul.f32 %v2431_v43, %v1462_v36 }
 0xe44   : > { %1508 = vadd.xlane.f32.xlu1 %v1507_v20 }
 0xe66   : > { %v1420_v15 = vpop.xlane.xlu0 %1419 }
 0xe67   : > { %v1421_v42 = vsub.f32 %v3126_v57, %v1420_v15 }
 0xe69   : > { %v1422_v26 = vmul.f32 %v2619_v29, %v1421_v42 }
 0xe6b   : > { %v1423_v7 = vsel %vm1376_vm7, %v1422_v26, 0.0  ;;  %vm1580_vm7 = vcmask 195768  }
 0xe6c   : > { %v1424_v11 = vadd.f32 %v1423_v7, %v1373_v8 }
 0xe6e   : > { %v1469_v41 = vmul.f32 %v2420_v60, %v1424_v11 }
 0xe70   : > { %1470 = vadd.xlane.f32.xlu0 %v1469_v41 }
 0xe89   : > { %v1485_v10 = vpop.xlane.xlu1 %1484  ;;  %v1494_v49 = vpop.xlane.xlu0 %1493 }
 0xe8a   : > { %v1486_v22 = vsub.f32 %v2432_v9, %v1485_v10  ;;  %v1495_v16 = vsub.f32 %v3060_v6, %v1494_v49 }
 0xe8c   : > { %2622 = vrsqrt.f32 %v1486_v22 }
 0xe99   : > { %v2623_v4 = vpop.eup %2622 }
 0xe9a   : > { %v1496_v0 = vmul.f32 %v2623_v4, %v1495_v16 }
 0xe9c   : > { %v1499_v12 = vsel %vm1498_vm0, %v1496_v0, 0.0 }
 0xe9d   : > { %v1500_v14 = vadd.f32 %v1499_v12, %v1449_v32 }
 0xe9f   : > { %2435 = vst [vmem:[%s2716_s20 + $0x10] sm:$0xff] %v1500_v14 }
 0xea6   : > { %v2442_v48 = vld [vmem:[%s2716_s20 + $0x16] ss:$0 sm:$0xff] }
 0xea7   : > { %v1543_v3 = vmul.f32 %v2442_v48, %v1500_v14  ;;  %v1534_v17 = vmul.f32 %v2442_v48, %v2442_v48 }
 0xea9   : > { %1544 = vadd.xlane.f32.xlu0 %v1543_v3  ;;  %1535 = vadd.xlane.f32.xlu1 %v1534_v17 }
 0xecd   : > { %v1509_v19 = vpop.xlane.xlu1 %1508 }
 0xece   : > { %v1510_v23 = vsub.f32 %v3093_v18, %v1509_v19 }
 0xed0   : > { %v1511_v25 = vmul.f32 %v2623_v4, %v1510_v23 }
 0xed2   : > { %v1512_v28 = vsel %vm1478_vm15, %v1511_v25, 0.0 }
 0xed3   : > { %v1513_v29 = vadd.f32 %v1512_v28, %v1462_v36 }
 0xed5   : > { %v1558_v5 = vmul.f32 %v2442_v48, %v1513_v29 }
 0xed7   : > { %1559 = vadd.xlane.f32.xlu1 %v1558_v5 }
 0xef9   : > { %v1471_v56 = vpop.xlane.xlu0 %1470 }
 0xefa   : > { %v1472_v33 = vsub.f32 %v3126_v57, %v1471_v56 }
 0xefc   : > { %v1473_v60 = vmul.f32 %v2621_v53, %v1472_v33 }
 0xefe   : > { %v1474_v34 = vsel %vm1427_vm10, %v1473_v60, 0.0  ;;  %vm1667_vm10 = vcmask 212168  }
 0xeff   : > { %v1475_v13 = vadd.f32 %v1474_v34, %v1424_v11  ;;  %vm1687_vm13 = vmand %vm1667_vm10, %vm214_vm2 }
 0xf01   : > { %v1520_v35 = vmul.f32 %v2431_v43, %v1475_v13 }
 0xf03   : > { %1521 = vadd.xlane.f32.xlu0 %v1520_v35  ;;  %v2473_v35 = vld [vmem:[%s2723_s21 + $0x19] ss:$0 sm:$0xff] }
 0xf32   : > { %v1536_v52 = vpop.xlane.xlu1 %1535  ;;  %v1545_v61 = vpop.xlane.xlu0 %1544 }
 0xf33   : > { %v1537_v38 = vsub.f32 %v2443_v37, %v1536_v52  ;;  %v1546_v2 = vsub.f32 %v3060_v6, %v1545_v61 }
 0xf35   : > { %2624 = vrsqrt.f32 %v1537_v38 }
 0xf42   : > { %v2625_v24 = vpop.eup %2624 }
 0xf43   : > { %v1547_v30 = vmul.f32 %v2625_v24, %v1546_v2 }
 0xf45   : > { %v1550_v44 = vsel %vm1549_vm6, %v1547_v30, 0.0 }
 0xf46   : > { %v3275_v27 = vadd.f32 %v1550_v44, %v1500_v14 }
 0xf48   : > { %2446 = vst [vmem:[%s2716_s20 + $0x10] sm:$0xff] %v3275_v27 }
 0xf4f   : > { %v3280_v8 = vld [vmem:[%s2716_s20 + $0x17] ss:$0 sm:$0xff] }
 0xf50   : > { %v1585_v31 = vmul.f32 %v3280_v8, %v3280_v8 }
 0xf52   : > { %1586 = vadd.xlane.f32.xlu1 %v1585_v31 }
 0xf60   : > { %v1560_v40 = vpop.xlane.xlu1 %1559 }
 0xf61   : > { %v1561_v6 = vsub.f32 %v3093_v18, %v1560_v40 }
 0xf63   : > { %v1562_v45 = vmul.f32 %v2625_v24, %v1561_v6 }
 0xf65   : > { %v1563_v46 = vsel %vm1529_vm3, %v1562_v45, 0.0 }
 0xf66   : > { %v1564_v47 = vadd.f32 %v1563_v46, %v1513_v29 }
 0xf68   : > { %v1609_v51 = vmul.f32 %v3280_v8, %v1564_v47 }
 0xf6a   : > { %1610 = vadd.xlane.f32.xlu0 %v1609_v51 }
 0xf8c   : > { %v1522_v53 = vpop.xlane.xlu0 %1521 }
 0xf8d   : > { %v1523_v54 = vsub.f32 %v3126_v57, %v1522_v53 }
 0xf8f   : > { %v1524_v55 = vmul.f32 %v2623_v4, %v1523_v54  ;;  %v2465_v4 = vld [vmem:[%s2723_s21 + $0x18] ss:$0 sm:$0xff] }
 0xf91   : > { %v1525_v32 = vsel %vm1478_vm15, %v1524_v55, 0.0  ;;  %vm1705_vm15 = vcmask 220368  }
 0xf92   : > { %v1526_v43 = vadd.f32 %v1525_v32, %v1475_v13  ;;  %vm1725_vm0 = vmand %vm1705_vm15, %vm288_vm5 }
 0xf94   : > { %v1571_v58 = vmul.f32 %v2442_v48, %v1526_v43 }
 0xf96   : > { %1572 = vadd.xlane.f32.xlu1 %v1571_v58 }
 0xfdb   : > { %v1587_v21 = vpop.xlane.xlu1 %1586 }
 0xfdc   : > { %v1588_v62 = vsub.f32 %v2454_v59, %v1587_v21  ;;  %v2481_v59 = vld [vmem:[%s2723_s21 + $0x1a] ss:$0 sm:$0xff] }
 0xfde   : > { %2626 = vrsqrt.f32 %v1588_v62 }
 0xfeb   : > { %v3291_v36 = vpop.eup %2626 }
 0xff3   : > { %v1611_v63 = vpop.xlane.xlu0 %1610 }
 0xff4   : > { %v1612_v39 = vsub.f32 %v3093_v18, %v1611_v63 }
 0xff6   : > { %v1613_v20 = vmul.f32 %v3291_v36, %v1612_v39  ;;  %v3320_v39 = vld [vmem:[%s2723_s21 + $0x18] sm:$0xff] }
 0xff8   : > { %v1614_v15 = vsel %vm1580_vm7, %v1613_v20, 0.0 }
 0xff9   : > { %v1615_v42 = vadd.f32 %v1614_v15, %v1564_v47 }
 0xffb   : > { %2460 = vst [vmem:[%s2716_s20 + $0x18] sm:$0xff] %v1615_v42 }
0x1002   : > { %v2464_v26 = vld [vmem:[%s2716_s20 + $0x18] ss:$0 sm:$0xff] }
0x1003   : > { %v1645_v7 = vmul.f32 %v2464_v26, %v1615_v42  ;;  %v1636_v11 = vmul.f32 %v2464_v26, %v2464_v26 }
0x1005   : > { %1646 = vadd.xlane.f32.xlu1 %v1645_v7  ;;  %1637 = vadd.xlane.f32.xlu0 %v1636_v11 }
0x101f   : > { %v1573_v41 = vpop.xlane.xlu1 %1572 }
0x1020   : > { %v1574_v9 = vsub.f32 %v3126_v57, %v1573_v41 }
0x1022   : > { %v1575_v10 = vmul.f32 %v2625_v24, %v1574_v9 }
0x1024   : > { %v1576_v22 = vsel %vm1529_vm3, %v1575_v10, 0.0  ;;  %vm1743_vm3 = vcmask 228568  }
0x1025   : > { %v1577_v49 = vadd.f32 %v1576_v22, %v1526_v43  ;;  %vm1763_vm6 = vmand %vm1743_vm3, %vm362_vm8 }
0x1027   : > { %v1622_v16 = vmul.f32 %v3280_v8, %v1577_v49 }
0x1029   : > { %1623 = vadd.xlane.f32.xlu0 %v1622_v16 }
0x108e   : > { %v1638_v0 = vpop.xlane.xlu0 %1637  ;;  %v1647_v14 = vpop.xlane.xlu1 %1646 }
0x108f   : > { %v1639_v12 = vsub.f32 %v2465_v4, %v1638_v0  ;;  %v1648_v48 = vsub.f32 %v3093_v18, %v1647_v14  ;;  %v2489_v14 = vld [vmem:[%s2723_s21 + $0x1b] ss:$0 sm:$0xff] }
0x1091   : > { %2628 = vrsqrt.f32 %v1639_v12 }
0x109e   : > { %v2629_v3 = vpop.eup %2628 }
0x109f   : > { %v1649_v17 = vmul.f32 %v2629_v3, %v1648_v48 }
0x10a1   : > { %v1650_v19 = vsel %vm1631_vm9, %v1649_v17, 0.0 }
0x10a2   : > { %v1651_v23 = vadd.f32 %v1650_v19, %v1615_v42 }
0x10a4   : > { %2468 = vst [vmem:[%s2716_s20 + $0x18] sm:$0xff] %v1651_v23 }
0x10ab   : > { %v2472_v25 = vld [vmem:[%s2716_s20 + $0x19] ss:$0 sm:$0xff] }
0x10ac   : > { %v1672_v28 = vmul.f32 %v2472_v25, %v2472_v25  ;;  %v1681_v29 = vmul.f32 %v2472_v25, %v1651_v23 }
0x10ae   : > { %1673 = vadd.xlane.f32.xlu1 %v1672_v28 }
0x10b2   : > { %v1624_v5 = vpop.xlane.xlu0 %1623  ;;  %1682 = vadd.xlane.f32.xlu1 %v1681_v29 }
0x10b3   : > { %v1625_v56 = vsub.f32 %v3126_v57, %v1624_v5 }
0x10b5   : > { %v1626_v33 = vmul.f32 %v3291_v36, %v1625_v56 }
0x10b7   : > { %v1627_v60 = vsel %vm1580_vm7, %v1626_v33, 0.0  ;;  %v3336_v33 = vld [vmem:[%s2723_s21 + $0x20] sm:$0xff] }
0x10b8   : > { %v1628_v34 = vadd.f32 %v1627_v60, %v1577_v49 }
0x10ba   : > { %v1658_v13 = vmul.f32 %v2464_v26, %v1628_v34 }
0x10bc   : > { %1659 = vadd.xlane.f32.xlu0 %v1658_v13 }
0x1137   : > { %v1674_v37 = vpop.xlane.xlu1 %1673 }
0x1138   : > { %v1675_v52 = vsub.f32 %v2473_v35, %v1674_v37 }
0x113a   : > { %2630 = vrsqrt.f32 %v1675_v52 }
0x113b   : > { %v1683_v38 = vpop.xlane.xlu1 %1682 }
0x113c   : > { %v1684_v2 = vsub.f32 %v3093_v18, %v1683_v38  ;;  %v2497_v38 = vld [vmem:[%s2723_s21 + $0x1c] ss:$0 sm:$0xff] }
0x1145   : > { %v1660_v61 = vpop.xlane.xlu0 %1659 }
0x1146   : > { %v1661_v24 = vsub.f32 %v3126_v57, %v1660_v61 }
0x1147   : > { %v2631_v30 = vpop.eup %2630 }
0x1148   : > { %v1685_v44 = vmul.f32 %v2631_v30, %v1684_v2  ;;  %v1662_v31 = vmul.f32 %v2629_v3, %v1661_v24 }
0x114a   : > { %v1688_v40 = vsel %vm1687_vm13, %v1685_v44, 0.0  ;;  %v1663_v6 = vsel %vm1631_vm9, %v1662_v31, 0.0  ;;  %vm1781_vm9 = vcmask 236768  }
0x114b   : > { %v1689_v45 = vadd.f32 %v1688_v40, %v1651_v23  ;;  %v1664_v46 = vadd.f32 %v1663_v6, %v1628_v34 }
0x114d   : > { %2476 = vst [vmem:[%s2716_s20 + $0x18] sm:$0xff] %v1689_v45  ;;  %v1696_v47 = vmul.f32 %v2472_v25, %v1664_v46 }
0x114f   : > { %1697 = vadd.xlane.f32.xlu0 %v1696_v47 }
0x1154   : > { %v2480_v51 = vld [vmem:[%s2716_s20 + $0x1a] ss:$0 sm:$0xff] }
0x1155   : > { %v1710_v18 = vmul.f32 %v2480_v51, %v2480_v51  ;;  %v1719_v53 = vmul.f32 %v2480_v51, %v1689_v45 }
0x1157   : > { %1711 = vadd.xlane.f32.xlu1 %v1710_v18  ;;  %1720 = vadd.xlane.f32.xlu0 %v1719_v53 }
0x11d8   : > { %v1698_v54 = vpop.xlane.xlu0 %1697 }
0x11d9   : > { %v1699_v55 = vsub.f32 %v3126_v57, %v1698_v54 }
0x11db   : > { %v1700_v32 = vmul.f32 %v2631_v30, %v1699_v55 }
0x11dd   : > { %v1701_v43 = vsel %vm1667_vm10, %v1700_v32, 0.0  ;;  %vm1801_vm10 = vmand %vm1781_vm9, %vm436_vm11  ;;  %vm1819_vm11 = vcmask 244968  }
0x11de   : > { %v1702_v58 = vadd.f32 %v1701_v43, %v1664_v46  ;;  %v2505_v43 = vld [vmem:[%s2723_s21 + $0x1d] ss:$0 sm:$0xff]  ;;  %vm1839_vm13 = vmand %vm1819_vm11, %vm510_vm14  ;;  %vm1857_vm14 = vcmask 253168  }
0x11e0   : > { %v1712_v21 = vpop.xlane.xlu1 %1711  ;;  %v1734_v62 = vmul.f32 %v2480_v51, %v1702_v58  ;;  %v1721_v20 = vpop.xlane.xlu0 %1720 }
0x11e1   : > { %v1713_v63 = vsub.f32 %v2481_v59, %v1712_v21  ;;  %v1722_v15 = vsub.f32 %v3320_v39, %v1721_v20 }
0x11e2   : > { %1735 = vadd.xlane.f32.xlu1 %v1734_v62 }
0x11e3   : > { %2632 = vrsqrt.f32 %v1713_v63 }
0x11f0   : > { %v2633_v42 = vpop.eup %2632 }
0x11f1   : > { %v1723_v26 = vmul.f32 %v2633_v42, %v1722_v15 }
0x11f3   : > { %v1726_v7 = vsel %vm1725_vm0, %v1723_v26, 0.0  ;;  %vm1933_vm0 = vcmask 269568  }
0x11f4   : > { %v1727_v11 = vadd.f32 %v1726_v7, %v1689_v45 }
0x11f6   : > { %2484 = vst [vmem:[%s2716_s20 + $0x18] sm:$0xff] %v1727_v11 }
0x11fd   : > { %v2488_v41 = vld [vmem:[%s2716_s20 + $0x1b] ss:$0 sm:$0xff] }
0x11fe   : > { %v1757_v9 = vmul.f32 %v2488_v41, %v1727_v11  ;;  %v1748_v10 = vmul.f32 %v2488_v41, %v2488_v41 }
0x1200   : > { %1758 = vadd.xlane.f32.xlu1 %v1757_v9  ;;  %1749 = vadd.xlane.f32.xlu0 %v1748_v10 }
0x126b   : > { %v1736_v22 = vpop.xlane.xlu1 %1735 }
0x126c   : > { %v1737_v49 = vsub.f32 %v3126_v57, %v1736_v22 }
0x126e   : > { %v1738_v16 = vmul.f32 %v2633_v42, %v1737_v49 }
0x1270   : > { %v1739_v4 = vsel %vm1705_vm15, %v1738_v16, 0.0  ;;  %vm1877_vm15 = vmand %vm1857_vm14, %vm584_vm1  ;;  %vm1895_vm1 = vcmask 261368  }
0x1271   : > { %v1740_v0 = vadd.f32 %v1739_v4, %v1702_v58  ;;  %v2513_v4 = vld [vmem:[%s2723_s21 + $0x1e] ss:$0 sm:$0xff] }
0x1273   : > { %v1772_v12 = vmul.f32 %v2488_v41, %v1740_v0 }
0x1275   : > { %1773 = vadd.xlane.f32.xlu0 %v1772_v12 }
0x1289   : > { %v1750_v48 = vpop.xlane.xlu0 %1749  ;;  %v1759_v17 = vpop.xlane.xlu1 %1758 }
0x128a   : > { %v1751_v3 = vsub.f32 %v2489_v14, %v1750_v48  ;;  %v1760_v19 = vsub.f32 %v3320_v39, %v1759_v17 }
0x128c   : > { %2634 = vrsqrt.f32 %v1751_v3 }
0x1299   : > { %v2635_v23 = vpop.eup %2634 }
0x129a   : > { %v1761_v57 = vmul.f32 %v2635_v23, %v1760_v19 }
0x129c   : > { %v1764_v25 = vsel %vm1763_vm6, %v1761_v57, 0.0 }
0x129d   : > { %v1765_v28 = vadd.f32 %v1764_v25, %v1727_v11 }
0x129f   : > { %2492 = vst [vmem:[%s2716_s20 + $0x18] sm:$0xff] %v1765_v28 }
0x12a6   : > { %v2496_v29 = vld [vmem:[%s2716_s20 + $0x1c] ss:$0 sm:$0xff] }
0x12a7   : > { %v1795_v5 = vmul.f32 %v2496_v29, %v1765_v28  ;;  %v1786_v56 = vmul.f32 %v2496_v29, %v2496_v29 }
0x12a9   : > { %1796 = vadd.xlane.f32.xlu0 %v1795_v5  ;;  %1787 = vadd.xlane.f32.xlu1 %v1786_v56 }
0x12fe   : > { %v1774_v60 = vpop.xlane.xlu0 %1773 }
0x12ff   : > { %v1775_v34 = vsub.f32 %v3336_v33, %v1774_v60 }
0x1301   : > { %v1776_v13 = vmul.f32 %v2635_v23, %v1775_v34 }
0x1303   : > { %v1777_v35 = vsel %vm1743_vm3, %v1776_v13, 0.0  ;;  %v2521_v13 = vld [vmem:[%s2723_s21 + $0x1f] ss:$0 sm:$0xff]  ;;  %vm1956_vm3 = vcmask 277768  }
0x1304   : > { %v1778_v37 = vadd.f32 %v1777_v35, %v1740_v0  ;;  %vm1976_vm6 = vmand %vm1956_vm3, %vm214_vm2  ;;  %vm658_vm2 = vcmask 1047559  }
0x1306   : > { %v1810_v52 = vmul.f32 %v2496_v29, %v1778_v37 }
0x1308   : > { %1811 = vadd.xlane.f32.xlu1 %v1810_v52 }
0x1332   : > { %v1788_v61 = vpop.xlane.xlu1 %1787  ;;  %v1797_v24 = vpop.xlane.xlu0 %1796 }
0x1333   : > { %v1789_v2 = vsub.f32 %v2497_v38, %v1788_v61  ;;  %v1798_v30 = vsub.f32 %v3320_v39, %v1797_v24 }
0x1335   : > { %2636 = vrsqrt.f32 %v1789_v2 }
0x1342   : > { %v2637_v44 = vpop.eup %2636 }
0x1343   : > { %v1799_v31 = vmul.f32 %v2637_v44, %v1798_v30 }
0x1345   : > { %v1802_v40 = vsel %vm1801_vm10, %v1799_v31, 0.0  ;;  %vm1600_vm10 = vmand %vm1580_vm7, %vm658_vm2 }
0x1346   : > { %v1803_v6 = vadd.f32 %v1802_v40, %v1765_v28  ;;  %vm1915_vm7 = vmand %vm1895_vm1, %vm658_vm2 }
0x1348   : > { %2500 = vst [vmem:[%s2716_s20 + $0x18] sm:$0xff] %v1803_v6 }
0x134f   : > { %v2504_v45 = vld [vmem:[%s2716_s20 + $0x1d] ss:$0 sm:$0xff] }
0x1350   : > { %v1833_v46 = vmul.f32 %v2504_v45, %v1803_v6  ;;  %v1824_v47 = vmul.f32 %v2504_v45, %v2504_v45 }
0x1352   : > { %1834 = vadd.xlane.f32.xlu1 %v1833_v46  ;;  %1825 = vadd.xlane.f32.xlu0 %v1824_v47 }
0x1391   : > { %v1812_v51 = vpop.xlane.xlu1 %1811 }
0x1392   : > { %v1813_v18 = vsub.f32 %v3336_v33, %v1812_v51 }
0x1394   : > { %v1814_v53 = vmul.f32 %v2637_v44, %v1813_v18 }
0x1396   : > { %v1815_v54 = vsel %vm1781_vm9, %v1814_v53, 0.0  ;;  %vm659_vm9 = vmand %vm641_vm4, %vm658_vm2  ;;  %vm1981_vm4 = vcmask 285968  }
0x1397   : > { %v1816_v55 = vadd.f32 %v1815_v54, %v1778_v37 }
0x1399   : > { %v1848_v32 = vmul.f32 %v2504_v45, %v1816_v55 }
0x139b   : > { %1849 = vadd.xlane.f32.xlu0 %v1848_v32 }
0x13db   : > { %v1826_v58 = vpop.xlane.xlu0 %1825  ;;  %v1835_v21 = vpop.xlane.xlu1 %1834 }
0x13dc   : > { %v1827_v59 = vsub.f32 %v2505_v43, %v1826_v58  ;;  %v1836_v62 = vsub.f32 %v3320_v39, %v1835_v21 }
0x13de   : > { %2638 = vrsqrt.f32 %v1827_v59  ;;  %v2534_v59 = vld [vmem:[%s2723_s21 + $0x21] ss:$0 sm:$0xff] }
0x13eb   : > { %v2639_v63 = vpop.eup %2638 }
0x13ec   : > { %v1837_v20 = vmul.f32 %v2639_v63, %v1836_v62 }
0x13ee   : > { %v1840_v15 = vsel %vm1839_vm13, %v1837_v20, 0.0 }
0x13ef   : > { %v1841_v42 = vadd.f32 %v1840_v15, %v1803_v6  ;;  %v2529_v6 = vld [vmem:[%s2723_s21 + $0x20] ss:$0 sm:$0xff] }
0x13f1   : > { %2508 = vst [vmem:[%s2716_s20 + $0x18] sm:$0xff] %v1841_v42 }
0x13f8   : > { %v2512_v26 = vld [vmem:[%s2716_s20 + $0x1e] ss:$0 sm:$0xff] }
0x13f9   : > { %v1871_v7 = vmul.f32 %v2512_v26, %v1841_v42  ;;  %v1862_v11 = vmul.f32 %v2512_v26, %v2512_v26 }
0x13fb   : > { %1872 = vadd.xlane.f32.xlu0 %v1871_v7  ;;  %1863 = vadd.xlane.f32.xlu1 %v1862_v11 }
0x1424   : > { %v1850_v41 = vpop.xlane.xlu0 %1849 }
0x1425   : > { %v1851_v9 = vsub.f32 %v3336_v33, %v1850_v41 }
0x1427   : > { %v1852_v10 = vmul.f32 %v2639_v63, %v1851_v9 }
0x1429   : > { %v1853_v22 = vsel %vm1819_vm11, %v1852_v10, 0.0  ;;  %v652_v10 = vld [vmem:[%s2716_s20] sm:$0xff]  ;;  %vm2001_vm11 = vmand %vm1981_vm4, %vm288_vm5 }
0x142a   : > { %v1854_v49 = vadd.f32 %v1853_v22, %v1816_v55  ;;  %v2652_v22 = vld [vmem:[%s2716_s20 + $0x7] ss:$0 sm:$0xff]  ;;  %vm1181_vm5 = vmand %vm1161_vm12, %vm658_vm2  ;;  %vm2006_vm12 = vcmask 294168  }
0x142b   : > { %vm2026_vm13 = vmand %vm2006_vm12, %vm362_vm8 }
0x142c   : > { %v1886_v16 = vmul.f32 %v2512_v26, %v1854_v49 }
0x142e   : > { %1887 = vadd.xlane.f32.xlu1 %v1886_v16  ;;  %v1594_v16 = vmul.f32 %v3280_v8, %v3275_v27 }
0x1484   : > { %v1864_v0 = vpop.xlane.xlu1 %1863  ;;  %v1873_v14 = vpop.xlane.xlu0 %1872 }
0x1485   : > { %v1865_v12 = vsub.f32 %v2513_v4, %v1864_v0  ;;  %v1874_v48 = vsub.f32 %v3320_v39, %v1873_v14  ;;  %v2539_v4 = vld [vmem:[%s2723_s21 + $0x22] ss:$0 sm:$0xff] }
0x1487   : > { %2640 = vrsqrt.f32 %v1865_v12 }
0x1494   : > { %v2641_v3 = vpop.eup %2640 }
0x1495   : > { %v1875_v17 = vmul.f32 %v2641_v3, %v1874_v48  ;;  %v651_v48 = vld [vmem:[%s2723_s21] sm:$0xff] }
0x1497   : > { %v1878_v19 = vsel %vm1877_vm15, %v1875_v17, 0.0 }
0x1498   : > { %v3359_v23 = vadd.f32 %v1878_v19, %v1841_v42  ;;  %v2455_v19 = vld [vmem:[%s2723_s21 + $0x10] sm:$0xff] }
0x149a   : > { %2516 = vst [vmem:[%s2716_s20 + $0x18] sm:$0xff] %v3359_v23 }
0x14a1   : > { %v3364_v57 = vld [vmem:[%s2716_s20 + $0x1f] ss:$0 sm:$0xff] }
0x14a2   : > { %v1900_v25 = vmul.f32 %v3364_v57, %v3364_v57 }
0x14a4   : > { %1901 = vadd.xlane.f32.xlu0 %v1900_v25 }
0x14b7   : > { %v1888_v28 = vpop.xlane.xlu1 %1887 }
0x14b8   : > { %v1889_v29 = vsub.f32 %v3336_v33, %v1888_v28 }
0x14ba   : > { %v1890_v5 = vmul.f32 %v2641_v3, %v1889_v29 }
0x14bc   : > { %v1891_v56 = vsel %vm1857_vm14, %v1890_v5, 0.0 }
0x14bd   : > { %v1892_v60 = vadd.f32 %v1891_v56, %v1854_v49  ;;  %v653_v49 = vmul.f32 %v2652_v22, %v652_v10 }
0x14bf   : > { %v1924_v34 = vmul.f32 %v3364_v57, %v1892_v60 }
0x14c1   : > { %1925 = vadd.xlane.f32.xlu1 %v1924_v34 }
0x152d   : > { %v1902_v35 = vpop.xlane.xlu0 %1901 }
0x152e   : > { %v1903_v37 = vsub.f32 %v2521_v13, %v1902_v35 }
0x1530   : > { %2642 = vrsqrt.f32 %v1903_v37 }
0x153d   : > { %v3372_v61 = vpop.eup %2642 }
0x154a   : > { %v1926_v52 = vpop.xlane.xlu1 %1925 }
0x154b   : > { %v1927_v38 = vsub.f32 %v3336_v33, %v1926_v52 }
0x154d   : > { %v1928_v2 = vmul.f32 %v3372_v61, %v1927_v38 }
0x154f   : > { %v1929_v24 = vsel %vm1895_vm1, %v1928_v2, 0.0 }
0x1550   : > { %v1930_v30 = vadd.f32 %v1929_v24, %v1892_v60  ;;  %v2365_v24 = vld [vmem:[%s2716_s20 + $0x8] sm:$0xff] }
0x1552   : > { %2527 = vst [vmem:[%s2716_s20 + $0x20] sm:$0xff] %v1930_v30 }
0x1559   : > { %v2528_v44 = vld [vmem:[%s2716_s20 + $0x20] ss:$0 sm:$0xff] }
0x155a   : > { %v1947_v31 = vmul.f32 %v2528_v44, %v1930_v30  ;;  %v1938_v40 = vmul.f32 %v2528_v44, %v2528_v44  ;;  %v1909_v44 = vmul.f32 %v3364_v57, %v3359_v23 }
0x155c   : > { %1948 = vadd.xlane.f32.xlu1 %v1947_v31  ;;  %1939 = vadd.xlane.f32.xlu0 %v1938_v40  ;;  %v2544_v31 = vld [vmem:[%s2723_s21 + $0x23] ss:$0 sm:$0xff] }
0x15e5   : > { %v1940_v45 = vpop.xlane.xlu0 %1939  ;;  %v1949_v47 = vpop.xlane.xlu1 %1948 }
0x15e6   : > { %v1941_v46 = vsub.f32 %v2529_v6, %v1940_v45  ;;  %v1950_v51 = vsub.f32 %v3336_v33, %v1949_v47  ;;  %v2364_v45 = vld [vmem:[%s2723_s21 + $0x8] sm:$0xff] }
0x15e8   : > { %2644 = vrsqrt.f32 %v1941_v46 }
0x15f5   : > { %v2645_v18 = vpop.eup %2644 }
0x15f6   : > { %v1951_v53 = vmul.f32 %v2645_v18, %v1950_v51 }
0x15f8   : > { %v1952_v54 = vsel %vm1933_vm0, %v1951_v53, 0.0 }
0x15f9   : > { %v1953_v55 = vadd.f32 %v1952_v54, %v1930_v30 }
0x15fb   : > { %2532 = vst [vmem:[%s2716_s20 + $0x20] sm:$0xff] %v1953_v55 }
0x1602   : > { %v2533_v32 = vld [vmem:[%s2716_s20 + $0x21] ss:$0 sm:$0xff] }
0x1603   : > { %v1970_v43 = vmul.f32 %v2533_v32, %v1953_v55  ;;  %v1961_v58 = vmul.f32 %v2533_v32, %v2533_v32 }
0x1605   : > { %1971 = vadd.xlane.f32.xlu1 %v1970_v43  ;;  %1962 = vadd.xlane.f32.xlu0 %v1961_v58 }
0x168e   : > { %v1963_v21 = vpop.xlane.xlu0 %1962  ;;  %v1972_v63 = vpop.xlane.xlu1 %1971 }
0x168f   : > { %v1964_v62 = vsub.f32 %v2534_v59, %v1963_v21  ;;  %v1973_v20 = vsub.f32 %v3336_v33, %v1972_v63 }
0x1691   : > { %2646 = vrsqrt.f32 %v1964_v62 }
0x169e   : > { %v2647_v15 = vpop.eup %2646 }
0x169f   : > { %v1974_v42 = vmul.f32 %v2647_v15, %v1973_v20 }
0x16a1   : > { %v1977_v26 = vsel %vm1976_vm6, %v1974_v42, 0.0 }
0x16a2   : > { %v1978_v7 = vadd.f32 %v1977_v26, %v1953_v55 }
0x16a4   : > { %2537 = vst [vmem:[%s2716_s20 + $0x20] sm:$0xff] %v1978_v7 }
0x16ab   : > { %v2538_v11 = vld [vmem:[%s2716_s20 + $0x22] ss:$0 sm:$0xff] }
0x16ac   : > { %v1995_v41 = vmul.f32 %v2538_v11, %v1978_v7  ;;  %v1986_v9 = vmul.f32 %v2538_v11, %v2538_v11 }
0x16ae   : > { %1996 = vadd.xlane.f32.xlu1 %v1995_v41  ;;  %1987 = vadd.xlane.f32.xlu0 %v1986_v9 }
0x16b2   : > { %654 = vadd.xlane.f32.xlu1 %v653_v49 }
0x16b6   : > { %1595 = vadd.xlane.f32.xlu1 %v1594_v16 }
0x1737   : > { %v1997_v0 = vpop.xlane.xlu1 %1996  ;;  %v1988_v12 = vpop.xlane.xlu0 %1987 }
0x1738   : > { %v1989_v14 = vsub.f32 %v2539_v4, %v1988_v12  ;;  %v1998_v34 = vsub.f32 %v3336_v33, %v1997_v0 }
0x173a   : > { %2648 = vrsqrt.f32 %v1989_v14 }
0x173b   : > { %v655_v3 = vpop.xlane.xlu1 %654 }
0x173c   : > { %v656_v17 = vsub.f32 %v651_v48, %v655_v3 }
0x173e   : > { %v657_v25 = vmul.f32 %v2930_v1, %v656_v17 }
0x173f   : > { %v1596_v8 = vpop.xlane.xlu1 %1595 }
0x1740   : > { %v660_v28 = vsel %vm659_vm9, %v657_v25, 0.0  ;;  %v1597_v29 = vsub.f32 %v2455_v19, %v1596_v8 }
0x1741   : > { %v661_v5 = vadd.f32 %v660_v28, %v652_v10 }
0x1742   : > { %v1598_v56 = vmul.f32 %v3291_v36, %v1597_v29 }
0x1743   : > { %662 = vst [vmem:[%s2716_s20] sm:$0xff] %v661_v5  ;;  %2077 = vst [vmem:[%s3401_s25] sm:$0xff] %v661_v5 }
0x1744   : > { %v1601_v1 = vsel %vm1600_vm10, %v1598_v56, 0.0 }
0x1745   : > { %v1602_v60 = vadd.f32 %v1601_v1, %v3275_v27  ;;  %v2653_v27 = vld [vmem:[%s2716_s20 + $0xf] ss:$0 sm:$0xff] }
0x1746   : > { %v1175_v30 = vmul.f32 %v2653_v27, %v2365_v24 }
0x1747   : > { %v2649_v13 = vpop.eup %2648  ;;  %2457 = vst [vmem:[%s2716_s20 + $0x10] sm:$0xff] %v1602_v60  ;;  %2081 = vst [vmem:[%s3401_s25 + $0x10] sm:$0xff] %v1602_v60 }
0x1748   : > { %v1999_v35 = vmul.f32 %v2649_v13, %v1998_v34 }
0x174a   : > { %v2002_v37 = vsel %vm2001_vm11, %v1999_v35, 0.0 }
0x174b   : > { %v2003_v52 = vadd.f32 %v2002_v37, %v1978_v7 }
0x174d   : > { %2542 = vst [vmem:[%s2716_s20 + $0x20] sm:$0xff] %v2003_v52 }
0x1754   : > { %v2543_v36 = vld [vmem:[%s2716_s20 + $0x23] ss:$0 sm:$0xff] }
0x1755   : > { %v2020_v38 = vmul.f32 %v2543_v36, %v2003_v52  ;;  %v2011_v2 = vmul.f32 %v2543_v36, %v2543_v36 }
0x1757   : > { %2021 = vadd.xlane.f32.xlu1 %v2020_v38  ;;  %2012 = vadd.xlane.f32.xlu0 %v2011_v2 }
0x175b   : > { %1176 = vadd.xlane.f32.xlu0 %v1175_v30 }
0x175f   : > { %1910 = vadd.xlane.f32.xlu0 %v1909_v44 }
0x17e0   : > { %v2013_v40 = vpop.xlane.xlu0 %2012  ;;  %v2022_v32 = vpop.xlane.xlu1 %2021 }
0x17e1   : > { %v2014_v6 = vsub.f32 %v2544_v31, %v2013_v40  ;;  %v2023_v58 = vsub.f32 %v3336_v33, %v2022_v32 }
0x17e3   : > { %2650 = vrsqrt.f32 %v2014_v6 }
0x17e4   : > { %v1177_v46 = vpop.xlane.xlu0 %1176 }
0x17e5   : > { %v1178_v47 = vsub.f32 %v2364_v45, %v1177_v46 }
0x17e7   : > { %v1179_v51 = vmul.f32 %v3159_v50, %v1178_v47 }
0x17e8   : > { %v1911_v18 = vpop.xlane.xlu0 %1910 }
0x17e9   : > { %v1182_v53 = vsel %vm1181_vm5, %v1179_v51, 0.0  ;;  %v1912_v57 = vsub.f32 %v3320_v39, %v1911_v18 }
0x17ea   : > { %v1183_v54 = vadd.f32 %v2365_v24, %v1182_v53 }
0x17eb   : > { %v1913_v55 = vmul.f32 %v3372_v61, %v1912_v57 }
0x17ec   : > { %2366 = vst [vmem:[%s2716_s20 + $0x8] sm:$0xff] %v1183_v54  ;;  %2079 = vst [vmem:[%s3401_s25 + $0x8] sm:$0xff] %v1183_v54 }
0x17ed   : > { %v1916_v43 = vsel %vm1915_vm7, %v1913_v55, 0.0 }
0x17ee   : > { %v1917_v50 = vadd.f32 %v1916_v43, %v3359_v23 }
0x17f0   : > { %v2651_v59 = vpop.eup %2650  ;;  %2524 = vst [vmem:[%s2716_s20 + $0x18] sm:$0xff] %v1917_v50  ;;  %2083 = vst [vmem:[%s3401_s25 + $0x18] sm:$0xff] %v1917_v50 }
0x17f1   : > { %v2024_v39 = vmul.f32 %v2651_v59, %v2023_v58 }
0x17f3   : > { %v2027_v21 = vsel %vm2026_vm13, %v2024_v39, 0.0 }
0x17f4   : > { %v2028_v62 = vadd.f32 %v2027_v21, %v2003_v52 }
0x17f6   : > { %2547 = vst [vmem:[%s2716_s20 + $0x20] sm:$0xff] %v2028_v62  ;;  %2085 = vst [vmem:[%s3401_s25 + $0x20] sm:$0xff] %v2028_v62 }
0x17f7 PF: > { %s7_s8 = sadd.s32 1, %s2676_s8   ;;  %s3448_s6 = smov %s2672_s7 }
0x17f8   : > { %p4_p5 = scmp.ge.s32.totalorder %s7_s8, 4   ;;  %s3449_s7 = smov %s3451_s10 }
0x17fa   :  { %6 = sbr.rel (!%p4_p5) target bundleno = 2 (0x2), region = 516 }

// kernel: custom-call.13
= control target key start
LH: loop header
LB: loop body
LE: loop exit
PB: predicated region body
PF: predicated region fallthrough
CT: control target
= control target key end

     0   :  { %s4219_s0 = inlined_call_operand.vmem [shape: f32[20,20], index: 0, kind: input, shape index: {}]   ;;  %s4220_s1 = inlined_call_operand.vmem [shape: f32[20,20], index: 1, kind: input, shape index: {}]   ;;  %s4221_s2 = inlined_call_operand.vmem [shape: f32[20,20], index: 2, kind: input, shape index: {}]   ;;  %s4222_s3 = inlined_call_operand.vmem [shape: f32[20,20], index: 3, kind: input, shape index: {}]   ;;  %s4223_s4 = inlined_call_operand.vmem [shape: f32[20], index: 4, kind: output, shape index: {0}]   ;;  %s4224_s5 = inlined_call_operand.vmem [shape: f32[20], index: 5, kind: output, shape index: {1}]   ;;  %s4225_s6 = inlined_call_operand.vmem [shape: f32[20,20], index: 6, kind: output, shape index: {2}]   ;;  %s4226_s7 = inlined_call_operand.vmem [shape: f32[20,20], index: 7, kind: output, shape index: {3}]   ;;  %s4227_s8 = inlined_call_operand.vmem [shape: f32[20,20], index: 8, kind: output, shape index: {4}]   ;;  %s4228_s9 = inlined_call_operand.vmem [shape: f32[20,20], index: 9, kind: output, shape index: {5}]  }
   0x1   :  { %s24_s11 = scalar_lea.vmem %s4219_s0, 16 }
   0x2   :  { %p2173_p0 = scmp.gt.s32.totalorder %s4219_s0, %s24_s11 }
   0x3   :  { %s3475_s14 = smov (!%p2173_p0), [#allocation0]   ;;  %s3479_s17 = smov (!%p2173_p0), %s4219_s0  }
   0x4   :  { %2174 = sbr.rel (%p2173_p0) target bundleno = 17 (0x11), region = 490 }
   0x9 LB: > { %v58_v0 = vld [vmem:[%s3481_s17] sm:$0xff]  ;;  %s60_s17 = scalar_lea.vmem %s3481_s17, 8   ;;  %s3481_s17 = sphi %s3479_s17, %s60_s17   ;;  %s3477_s14 = sphi %s3475_s14, %s61_s14  }
   0xa   : > { %59 = vst [vmem:[%s3477_s14] sm:$0xff] %v58_v0  ;;  %s61_s14 = scalar_lea.vmem %s3477_s14, 8   ;;  %p55_p1 = scmp.gt.s32.totalorder %s60_s17, %s24_s11 }
   0xc   :  { %57 = sbr.rel (!%p55_p1) target bundleno = 9 (0x9), region = 496 }
  0x11 PF:  { %s87_s20 = scalar_lea.vmem %s4220_s1, 16 }
  0x12   :  { %p2193_p2 = scmp.gt.s32.totalorder %s4220_s1, %s87_s20 }
  0x13   :  { %s3483_s0 = smov (!%p2193_p2), [#allocation1]   ;;  %s3487_s25 = smov (!%p2193_p2), %s4220_s1  }
  0x14   :  { %2194 = sbr.rel (%p2193_p2) target bundleno = 33 (0x21), region = 512 }
  0x19 LB: > { %v121_v1 = vld [vmem:[%s3489_s25] sm:$0xff]  ;;  %s123_s25 = scalar_lea.vmem %s3489_s25, 8   ;;  %s3489_s25 = sphi %s3487_s25, %s123_s25   ;;  %s3485_s0 = sphi %s3483_s0, %s124_s0  }
  0x1a   : > { %122 = vst [vmem:[%s3485_s0] sm:$0xff] %v121_v1  ;;  %s124_s0 = scalar_lea.vmem %s3485_s0, 8   ;;  %p118_p3 = scmp.gt.s32.totalorder %s123_s25, %s87_s20 }
  0x1c   :  { %120 = sbr.rel (!%p118_p3) target bundleno = 25 (0x19), region = 518 }
  0x21 PF:  { %s150_s28 = scalar_lea.vmem %s4221_s2, 16 }
  0x22   :  { %p2213_p4 = scmp.gt.s32.totalorder %s4221_s2, %s150_s28 }
  0x23   :  { %s3491_s1 = smov (!%p2213_p4), [#allocation2]   ;;  %s3495_s12 = smov (!%p2213_p4), %s4221_s2  }
  0x24   :  { %2214 = sbr.rel (%p2213_p4) target bundleno = 49 (0x31), region = 534 }
  0x29 LB: > { %v184_v2 = vld [vmem:[%s3497_s12] sm:$0xff]  ;;  %s186_s12 = scalar_lea.vmem %s3497_s12, 8   ;;  %s3497_s12 = sphi %s3495_s12, %s186_s12   ;;  %s3493_s1 = sphi %s3491_s1, %s187_s1  }
  0x2a   : > { %185 = vst [vmem:[%s3493_s1] sm:$0xff] %v184_v2  ;;  %s187_s1 = scalar_lea.vmem %s3493_s1, 8   ;;  %p181_p5 = scmp.gt.s32.totalorder %s186_s12, %s150_s28 }
  0x2c   :  { %183 = sbr.rel (!%p181_p5) target bundleno = 41 (0x29), region = 540 }
  0x31 PF:  { %s213_s15 = scalar_lea.vmem %s4222_s3, 16 }
  0x32   :  { %p2233_p6 = scmp.gt.s32.totalorder %s4222_s3, %s213_s15 }
  0x33   :  { %s3499_s2 = smov (!%p2233_p6), [#allocation3]   ;;  %s3503_s20 = smov (!%p2233_p6), %s4222_s3  }
  0x34   :  { %2234 = sbr.rel (%p2233_p6) target bundleno = 65 (0x41), region = 556 }
  0x39 LB: > { %v247_v3 = vld [vmem:[%s3505_s20] sm:$0xff]  ;;  %s249_s20 = scalar_lea.vmem %s3505_s20, 8   ;;  %s3505_s20 = sphi %s3503_s20, %s249_s20   ;;  %s3501_s2 = sphi %s3499_s2, %s250_s2  }
  0x3a   : > { %248 = vst [vmem:[%s3501_s2] sm:$0xff] %v247_v3  ;;  %s250_s2 = scalar_lea.vmem %s3501_s2, 8   ;;  %p244_p7 = scmp.gt.s32.totalorder %s249_s20, %s213_s15 }
  0x3c   :  { %246 = sbr.rel (!%p244_p7) target bundleno = 57 (0x39), region = 562 }
  0x41 PF:  { %s263_s21 = smov [#allocation12]  ;;  %v264_v4 = vld [vmem:[#allocation0] sm:$0xff]  ;;  %v268_v5 = vld [vmem:[#allocation0 + $0x8] sm:$0xff]  ;;  %v272_v6 = vld [vmem:[#allocation0 + $0x10] sm:$0xff]  ;;  %s274_s22 = smov [#allocation13]  ;;  %v328_v7 = vlaneseq  ;;  %v3547_v11 = vmov 0.0  }
  0x42   :  { %265 = vst [vmem:[%s263_s21] sm:$0xff] %v264_v4  ;;  %2528 = vst [vmem:[%s263_s21 + $0x8] sm:$0xff] %v268_v5  ;;  %v275_v8 = vld [vmem:[#allocation1] sm:$0xff]  ;;  %v279_v9 = vld [vmem:[#allocation1 + $0x8] sm:$0xff]  ;;  %s285_s3 = smov [#allocation14]  ;;  %s296_s0 = smov [#allocation15] }
  0x43   :  { %2529 = vst [vmem:[%s263_s21 + $0x10] sm:$0xff] %v272_v6  ;;  %v283_v10 = vld [vmem:[#allocation1 + $0x10] sm:$0xff]  ;;  %307 = vst [vmem:[#allocation8] sm:$0xff] %v3547_v11  ;;  %v286_v12 = vld [vmem:[#allocation2] sm:$0xff]  ;;  %v3636_v15 = vand.u32 127, %v328_v7  ;;  %v3638_v16 = vshrl.u32 %v328_v7, 7 }
  0x44   :  { %309 = vst [vmem:[#allocation8 + $0x8] sm:$0xff] %v3547_v11  ;;  %311 = vst [vmem:[#allocation8 + $0x10] sm:$0xff] %v3547_v11  ;;  %v290_v13 = vld [vmem:[#allocation2 + $0x8] sm:$0xff]  ;;  %v294_v14 = vld [vmem:[#allocation2 + $0x10] sm:$0xff]  ;;  %s327_s23 = smov [#allocation8]  ;;  %s354_s24 = smov [#allocation11] }
  0x45   :  { %312 = vst [vmem:[#allocation9] sm:$0xff] %v3547_v11  ;;  %314 = vst [vmem:[#allocation9 + $0x8] sm:$0xff] %v3547_v11  ;;  %v297_v17 = vld [vmem:[#allocation3] sm:$0xff]  ;;  %v301_v18 = vld [vmem:[#allocation3 + $0x8] sm:$0xff]  ;;  %v330_v15 = vmov %v3636_v15  ;;  %v333_v16 = vmov %v3638_v16  ;;  %s2251_s25 = smov [#allocation12]  ;;  %vm2255_vm6 = vcmp.lt.s32.totalorder %v3636_v15, 20 }
  0x46   :  { %316 = vst [vmem:[#allocation9 + $0x10] sm:$0xff] %v3547_v11  ;;  %317 = vst [vmem:[#allocation10] sm:$0xff] %v3547_v11  ;;  %v305_v19 = vld [vmem:[#allocation3 + $0x10] sm:$0xff]  ;;  %v357_v15 = vmov %v3636_v15  ;;  %v360_v16 = vmov %v3638_v16  ;;  %v343_v20 = vadd.s32 8, %v333_v16  ;;  %v350_v21 = vadd.s32 16, %v333_v16  ;;  %s2286_s26 = smov [#allocation13] }
  0x47   :  { %319 = vst [vmem:[#allocation10 + $0x8] sm:$0xff] %v3547_v11  ;;  %321 = vst [vmem:[#allocation10 + $0x10] sm:$0xff] %v3547_v11  ;;  %vm337_vm0 = vcmp.eq.s32.totalorder %v333_v16, %v330_v15  ;;  %v370_v22 = vadd.s32 8, %v360_v16  ;;  %v377_v23 = vadd.s32 16, %v360_v16  ;;  %vm364_vm3 = vcmp.eq.s32.totalorder %v360_v16, %v357_v15  ;;  %s2315_s27 = smov [#allocation14]  ;;  %s2344_s28 = smov [#allocation15] }
  0x48   :  { %322 = vst [vmem:[#allocation11] sm:$0xff] %v3547_v11  ;;  %324 = vst [vmem:[#allocation11 + $0x8] sm:$0xff] %v3547_v11  ;;  %vm344_vm1 = vcmp.eq.s32.totalorder %v343_v20, %v330_v15  ;;  %vm351_vm2 = vcmp.eq.s32.totalorder %v350_v21, %v330_v15  ;;  %v2285_v16 = vmov %v3638_v16 }
  0x49   :  { %326 = vst [vmem:[#allocation11 + $0x10] sm:$0xff] %v3547_v11  ;;  %276 = vst [vmem:[%s274_s22] sm:$0xff] %v275_v8  ;;  %vm371_vm4 = vcmp.eq.s32.totalorder %v370_v22, %v357_v15  ;;  %vm378_vm5 = vcmp.eq.s32.totalorder %v377_v23, %v357_v15  ;;  %v2282_v15 = vmov %v3636_v15  ;;  %v2250_v16 = vmov %v3638_v16 }
  0x4a   :  { %2530 = vst [vmem:[%s274_s22 + $0x8] sm:$0xff] %v279_v9  ;;  %2531 = vst [vmem:[%s274_s22 + $0x10] sm:$0xff] %v283_v10  ;;  %v2257_v36 = vld [vmem:[%s2251_s25] sm:$0xff]  ;;  %v2544_v37 = vld [vmem:[%s2251_s25 + $0x8] sm:$0xff]  ;;  %v2247_v15 = vmov %v3636_v15  ;;  %v2266_v58 = vadd.s32 8, %v2250_v16  ;;  %v2275_v63 = vadd.s32 16, %v2250_v16 }
  0x4b   :  { %287 = vst [vmem:[%s285_s3] sm:$0xff] %v286_v12  ;;  %2532 = vst [vmem:[%s285_s3 + $0x8] sm:$0xff] %v290_v13  ;;  %v334_v24 = vld [vmem:[%s327_s23] sm:$0xff]  ;;  %v2536_v25 = vld [vmem:[%s327_s23 + $0x8] sm:$0xff]  ;;  %v2258_v39 = vsel %vm2255_vm6, %v2257_v36, 0.0  ;;  %v2264_v40 = vsel %vm2255_vm6, %v2544_v37, 0.0  ;;  %vm2260_vm7 = vcmp.eq.s32.totalorder %v2250_v16, %v2247_v15  ;;  %v2314_v16 = vmov %v3638_v16 }
  0x4c   :  { %2533 = vst [vmem:[%s285_s3 + $0x10] sm:$0xff] %v294_v14  ;;  %298 = vst [vmem:[%s296_s0] sm:$0xff] %v297_v17  ;;  %v2538_v26 = vld [vmem:[%s327_s23 + $0x10] sm:$0xf]  ;;  %v338_v27 = vsel %vm337_vm0, 1.0, %v334_v24  ;;  %v345_v28 = vsel %vm344_vm1, 1.0, %v2536_v25  ;;  %v2259_v44 = vmul.f32 %v2258_v39, %v2258_v39  ;;  %v2265_v45 = vmul.f32 %v2264_v40, %v2264_v40 }
  0x4d   :  { %2534 = vst [vmem:[%s296_s0 + $0x8] sm:$0xff] %v301_v18  ;;  %2535 = vst [vmem:[%s296_s0 + $0x10] sm:$0xff] %v305_v19  ;;  %v352_v29 = vsel %vm351_vm2, 1.0, %v2538_v26  ;;  %v2545_v38 = vld [vmem:[%s2251_s25 + $0x10] sm:$0xf]  ;;  %vm2267_vm8 = vcmp.eq.s32.totalorder %v2266_v58, %v2247_v15  ;;  %v2311_v15 = vmov %v3636_v15  ;;  %vm2276_vm9 = vcmp.eq.s32.totalorder %v2275_v63, %v2247_v15 }
  0x4e   :  { %339 = vst [vmem:[%s327_s23] sm:$0xff] %v338_v27  ;;  %2537 = vst [vmem:[%s327_s23 + $0x8] sm:$0xff] %v345_v28  ;;  %v2273_v41 = vsel %vm2255_vm6, %v2545_v38, 0.0  ;;  %v2270_v51 = vadd.f32 %v2265_v45, %v2259_v44  ;;  %v2261_v62 = vsel %vm2260_vm7, 0.0, %v2259_v44  ;;  %v2268_v4 = vsel %vm2267_vm8, 0.0, %v2265_v45 }
  0x4f   :  { %2539 = vst [vmem:[%s327_s23 + $0x10] sm:$0xf] %v352_v29  ;;  %v2274_v46 = vmul.f32 %v2273_v41, %v2273_v41  ;;  %v2269_v6 = vadd.f32 %v2268_v4, %v2261_v62  ;;  %v2343_v16 = vmov %v3638_v16  ;;  %v2340_v15 = vmov %v3636_v15 }
  0x50   :  { %v361_v30 = vld [vmem:[%s354_s24] sm:$0xff]  ;;  %v2540_v31 = vld [vmem:[%s354_s24 + $0x8] sm:$0xff]  ;;  %v2542_v34 = vld [vmem:[%s354_s24 + $0x10] sm:$0xf]  ;;  %v2361_v27 = vadd.s32 8, %v2343_v16  ;;  %vm2353_vm10 = vcmp.eq.s32.totalorder %v2343_v16, %v2340_v15 }
  0x51   :  { %v365_v32 = vsel %vm364_vm3, 1.0, %v361_v30  ;;  %v372_v33 = vsel %vm371_vm4, 1.0, %v2540_v31  ;;  %v379_v35 = vsel %vm378_vm5, 1.0, %v2542_v34  ;;  %v2292_v42 = vld [vmem:[%s2286_s26] sm:$0xff]  ;;  %v2546_v43 = vld [vmem:[%s2286_s26 + $0x8] sm:$0xff]  ;;  %v2279_v54 = vadd.f32 %v2274_v46, %v2270_v51 }
  0x52   :  { %366 = vst [vmem:[%s354_s24] sm:$0xff] %v365_v32  ;;  %2541 = vst [vmem:[%s354_s24 + $0x8] sm:$0xff] %v372_v33  ;;  %v2293_v47 = vsel %vm2255_vm6, %v2292_v42, 0.0  ;;  %v2547_v48 = vld [vmem:[%s2286_s26 + $0x10] sm:$0xf]  ;;  %v2299_v49 = vsel %vm2255_vm6, %v2546_v43, 0.0  ;;  %v2277_v7 = vsel %vm2276_vm9, 0.0, %v2274_v46  ;;  %vm2362_vm11 = vcmp.eq.s32.totalorder %v2361_v27, %v2340_v15 }
  0x53   :  { %2543 = vst [vmem:[%s354_s24 + $0x10] sm:$0xf] %v379_v35  ;;  %v2321_v50 = vld [vmem:[%s2315_s27] sm:$0xff]  ;;  %v2294_v52 = vmul.f32 %v2293_v47, %v2293_v47  ;;  %v2305_v53 = vsel %vm2255_vm6, %v2547_v48, 0.0  ;;  %v2300_v55 = vmul.f32 %v2299_v49, %v2299_v49  ;;  %v2548_v57 = vld [vmem:[%s2315_s27 + $0x8] sm:$0xff]  ;;  %v2278_v12 = vadd.f32 %v2277_v7, %v2269_v6 }
  0x54   :  { %v2322_v56 = vsel %vm2255_vm6, %v2321_v50, 0.0  ;;  %v2306_v60 = vmul.f32 %v2305_v53, %v2305_v53  ;;  %v2549_v61 = vld [vmem:[%s2315_s27 + $0x10] sm:$0xf]  ;;  %v2328_v1 = vsel %vm2255_vm6, %v2548_v57, 0.0  ;;  %v2350_v3 = vld [vmem:[%s2344_s28] sm:$0xff]  ;;  %v2550_v10 = vld [vmem:[%s2344_s28 + $0x8] sm:$0xff] }
  0x55   :  { %v2296_v59 = vadd.f32 %v2294_v52, %v2279_v54  ;;  %v2323_v0 = vmul.f32 %v2322_v56, %v2322_v56  ;;  %v2334_v5 = vsel %vm2255_vm6, %v2549_v61, 0.0  ;;  %v2329_v9 = vmul.f32 %v2328_v1, %v2328_v1  ;;  %v2551_v17 = vld [vmem:[%s2344_s28 + $0x10] sm:$0xf] }
  0x56   :  { %v2351_v11 = vsel %vm2255_vm6, %v2350_v3, 0.0  ;;  %v2335_v14 = vmul.f32 %v2334_v5, %v2334_v5  ;;  %v2359_v18 = vsel %vm2255_vm6, %v2550_v10, 0.0  ;;  %v2295_v19 = vadd.f32 %v2294_v52, %v2278_v12 }
  0x57   :  { %v2302_v2 = vadd.f32 %v2300_v55, %v2296_v59  ;;  %v2352_v21 = vmul.f32 %v2351_v11, %v2351_v11  ;;  %v2368_v22 = vsel %vm2255_vm6, %v2551_v17, 0.0  ;;  %v2360_v25 = vmul.f32 %v2359_v18, %v2359_v18 }
  0x58   :  { %v2301_v23 = vadd.f32 %v2300_v55, %v2295_v19  ;;  %v2369_v29 = vmul.f32 %v2368_v22, %v2368_v22  ;;  %v2370_v31 = vadd.s32 16, %v2343_v16 }
  0x59   :  { %v2308_v8 = vadd.f32 %v2306_v60, %v2302_v2  ;;  %v2354_v35 = vsel %vm2353_vm10, 0.0, %v2352_v21  ;;  %v2363_v37 = vsel %vm2362_vm11, 0.0, %v2360_v25 }
  0x5a   :  { %v2307_v26 = vadd.f32 %v2306_v60, %v2301_v23  ;;  %vm2371_vm12 = vcmp.eq.s32.totalorder %v2370_v31, %v2340_v15 }
  0x5b   :  { %v2325_v13 = vadd.f32 %v2323_v0, %v2308_v8  ;;  %v2372_v39 = vsel %vm2371_vm12, 0.0, %v2369_v29 }
  0x5c   :  { %v2324_v30 = vadd.f32 %v2323_v0, %v2307_v26 }
  0x5d   :  { %v2331_v20 = vadd.f32 %v2329_v9, %v2325_v13 }
  0x5e   :  { %v2330_v33 = vadd.f32 %v2329_v9, %v2324_v30 }
  0x5f   :  { %v2337_v24 = vadd.f32 %v2335_v14, %v2331_v20 }
  0x60   :  { %v2336_v36 = vadd.f32 %v2335_v14, %v2330_v33 }
  0x61   :  { %v2356_v28 = vadd.f32 %v2352_v21, %v2337_v24 }
  0x62   :  { %v2355_v38 = vadd.f32 %v2354_v35, %v2336_v36 }
  0x63   :  { %v2365_v32 = vadd.f32 %v2360_v25, %v2356_v28 }
  0x64   :  { %v2364_v40 = vadd.f32 %v2363_v37, %v2355_v38 }
  0x65   :  { %v2374_v34 = vadd.f32 %v2369_v29, %v2365_v32 }
  0x66   :  { %v2373_v41 = vadd.f32 %v2372_v39, %v2364_v40 }
  0x67   :  { %2375 = vadd.xlane.f32.xlu0 %v2374_v34 }
  0x6b   :  { %2383 = vadd.xlane.f32.xlu0 %v2373_v41 }
  0xf0   :  { %v2376_v42 = vpop.xlane.xlu0 %2375 }
  0xf1   :  { %v2377_v43 = vrot.slane %v2376_v42, 4 }
  0xf3   :  { %v2378_v44 = vadd.f32 %v2377_v43, %v2376_v42 }
  0xf4   :  { %v2384_v46 = vpop.xlane.xlu0 %2383 }
  0xf5   :  { %v2379_v45 = vrot.slane %v2378_v44, 2  ;;  %v2385_v47 = vrot.slane %v2384_v46, 4 }
  0xf7   :  { %v2386_v48 = vadd.f32 %v2385_v47, %v2384_v46  ;;  %v2380_v49 = vadd.f32 %v2379_v45, %v2378_v44 }
  0xf9   :  { %v2387_v50 = vrot.slane %v2386_v48, 2  ;;  %v2381_v52 = vrot.slane %v2380_v49, 1 }
  0xfb   :  { %v2388_v51 = vadd.f32 %v2387_v50, %v2386_v48  ;;  %v2382_v55 = vadd.f32 %v2381_v52, %v2380_v49 }
  0xfd   :  { %v2389_v53 = vrot.slane %v2388_v51, 1 }
  0xff   :  { %v2390_v54 = vadd.f32 %v2389_v53, %v2388_v51 }
 0x101   :  { %2756 = vpush %v2390_v54 }
 0x102   :  { %2758 = vpush %v2382_v55 }
 0x132   :  { %s2757_s29 = spop %2756 }
 0x133   :  { %s2759_s30 = spop %2758 }
 0x134   :  { %s2393_s1 = smul.f32 1e-10, %s2759_s30 }
 0x136   :  { %p2394_p8 = scmp.le.f32.partialorder %s2757_s29, %s2393_s1 }
 0x137   :  { %s3677_s10 = smov (!%p2394_p8), 0  }
 0x138   :  { %2397 = sbr.rel (%p2394_p8) target bundleno = 1094 (0x446), region = 578 }
 0x13d LB: > { %s3682_s11 = smov 0   ;;  %s3509_s10 = sphi %s3677_s10, %s4229_s10  }
 0x13e LB: >> { %s549_s12 = smov [#allocation12]  ;;  %v553_v15 = vmov %v3636_v15  ;;  %v556_v16 = vmov %v3638_v16  ;;  %s581_s13 = smov [#allocation13]  ;;  %s3513_s11 = sphi %s3682_s11, %s548_s11  }
 0x13f   : >> { %v585_v15 = vmov %v3636_v15  ;;  %v588_v16 = vmov %v3638_v16  ;;  %v557_v56 = vld [vmem:[%s549_s12] sm:$0xff]  ;;  %vm560_vm13 = vcmp.eq.s32.totalorder %v556_v16, %v553_v15  ;;  %v2552_v57 = vld [vmem:[%s549_s12 + $0x8] sm:$0xff]  ;;  %v565_v58 = vadd.s32 8, %v556_v16  ;;  %v2553_v61 = vld [vmem:[%s549_s12 + $0x10] sm:$0xf]  ;;  %s613_s14 = smov [#allocation15] }
 0x140   : >> { %v571_v59 = vadd.s32 16, %v556_v16  ;;  %vm592_vm14 = vcmp.eq.s32.totalorder %v588_v16, %v585_v15  ;;  %v561_v60 = vsel %vm560_vm13, %v557_v56, 0.0  ;;  %v597_v62 = vadd.s32 8, %v588_v16  ;;  %v589_v0 = vld [vmem:[%s581_s13] sm:$0xff]  ;;  %v2554_v1 = vld [vmem:[%s581_s13 + $0x8] sm:$0xff]  ;;  %s550_s15 = smov [#allocation16] }
 0x141   : >> { %v603_v63 = vadd.s32 16, %v588_v16  ;;  %v617_v15 = vmov %v3636_v15  ;;  %vm566_vm15 = vcmp.eq.s32.totalorder %v565_v58, %v553_v15  ;;  %v2555_v2 = vld [vmem:[%s581_s13 + $0x10] sm:$0xf]  ;;  %v620_v16 = vmov %v3638_v16  ;;  %v621_v5 = vld [vmem:[%s613_s14] sm:$0xff]  ;;  %v2556_v8 = vld [vmem:[%s613_s14 + $0x8] sm:$0xff]  ;;  %s582_s16 = smov [#allocation17] }
 0x142   : >> { %vm572_vm0 = vcmp.eq.s32.totalorder %v571_v59, %v553_v15  ;;  %v567_v3 = vsel %vm566_vm15, %v2552_v57, %v561_v60  ;;  %v593_v4 = vsel %vm592_vm14, %v589_v0, 0.0  ;;  %vm598_vm1 = vcmp.eq.s32.totalorder %v597_v62, %v585_v15  ;;  %v2557_v13 = vld [vmem:[%s613_s14 + $0x10] sm:$0xf]  ;;  %s614_s17 = smov [#allocation18]  ;;  %s649_s2 = smov [#allocation17] }
 0x143   : >> { %vm604_vm2 = vcmp.eq.s32.totalorder %v603_v63, %v585_v15  ;;  %v573_v6 = vsel %vm572_vm0, %v2553_v61, %v567_v3  ;;  %v599_v7 = vsel %vm598_vm1, %v2554_v1, %v593_v4  ;;  %vm624_vm3 = vcmp.eq.s32.totalorder %v620_v16, %v617_v15  ;;  %s647_s18 = smov [#allocation16]  ;;  %s651_s19 = smov [#allocation18] }
 0x144   : >> { %v629_v9 = vadd.s32 8, %v620_v16  ;;  %v574_v10 = vrot.slane %v573_v6, 4  ;;  %v605_v11 = vsel %vm604_vm2, %v2555_v2, %v599_v7  ;;  %v625_v12 = vsel %vm624_vm3, %v621_v5, 0.0  ;;  %s686_s20 = smov [#allocation19]  ;;  %s688_s21 = smov [#allocation20] }
 0x145   : >> { %v635_v14 = vadd.s32 16, %v620_v16  ;;  %v606_v17 = vrot.slane %v605_v11, 4  ;;  %s645_s22 = smov [#allocation21]  ;;  %s646_s3 = smov [#allocation22]  ;;  %v716_v16 = vmov %v3638_v16  ;;  %vm1292_vm1 = vcmp.eq.s32.totalorder %v3638_v16, 0 }
 0x146   : >> { %vm630_vm4 = vcmp.eq.s32.totalorder %v629_v9, %v617_v15  ;;  %v575_v18 = vadd.f32 %v574_v10, %v573_v6  ;;  %s690_s22 = smov %s645_s22  ;;  %s692_s3 = smov %s646_s3  ;;  %v763_v16 = vmov %v3638_v16  ;;  %v717_v3 = vadd.s32 8, %v716_v16 }
 0x147   : >> { %v631_v19 = vsel %vm630_vm4, %v2556_v8, %v625_v12  ;;  %vm636_vm5 = vcmp.eq.s32.totalorder %v635_v14, %v617_v15  ;;  %v607_v20 = vadd.f32 %v606_v17, %v605_v11  ;;  %v713_v15 = vmov %v3636_v15  ;;  %s709_s0 = smov [#allocation21]  ;;  %s694_s23 = smov [#allocation21] }
 0x148   : >> { %v637_v21 = vsel %vm636_vm5, %v2557_v13, %v631_v19  ;;  %v576_v22 = vrot.slane %v575_v18, 2  ;;  %v698_v15 = vmov %v3636_v15  ;;  %v701_v16 = vmov %v3638_v16  ;;  %s756_s24 = smov [#allocation22]  ;;  %s741_s25 = smov [#allocation22] }
 0x149   : >> { %v638_v23 = vrot.slane %v637_v21, 4  ;;  %v608_v24 = vrot.slane %v607_v20, 2  ;;  %v760_v15 = vmov %v3636_v15  ;;  %v764_v4 = vadd.s32 8, %v763_v16  ;;  %s772_s26 = smov [#allocation22]  ;;  %s725_s27 = smov [#allocation21] }
 0x14a   : >> { %v577_v25 = vadd.f32 %v576_v22, %v575_v18  ;;  %v745_v15 = vmov %v3636_v15  ;;  %v748_v16 = vmov %v3638_v16  ;;  %vm718_vm11 = vcmp.eq.s32.totalorder %v717_v3, %v713_v15  ;;  %s707_s28 = smov [#allocation23]  ;;  %s722_s29 = smov [#allocation23] }
 0x14b   : >> { %v639_v26 = vadd.f32 %v638_v23, %v637_v21  ;;  %v609_v27 = vadd.f32 %v608_v24, %v607_v20  ;;  %v779_v16 = vmov %v3638_v16  ;;  %vm703_vm12 = vcmp.eq.s32.totalorder %v701_v16, %v698_v15  ;;  %s754_s30 = smov [#allocation24]  ;;  %s769_s1 = smov [#allocation24] }
 0x14c   : >> { %v578_v28 = vrot.slane %v577_v25, 1  ;;  %v732_v16 = vmov %v3638_v16  ;;  %vm765_vm13 = vcmp.eq.s32.totalorder %v764_v4, %v760_v15  ;;  %vm750_vm14 = vcmp.eq.s32.totalorder %v748_v16, %v745_v15  ;;  %s785_s12 = smov [#allocation24]  ;;  %s738_s13 = smov [#allocation23] }
 0x14d   : >> { %v640_v29 = vrot.slane %v639_v26, 2  ;;  %v610_v30 = vrot.slane %v609_v27, 1  ;;  %v780_v7 = vadd.s32 16, %v779_v16  ;;  %v733_v8 = vadd.s32 16, %v732_v16  ;;  %s3705_s14 = smov [#allocation12]  ;;  %s548_s11 = sadd.s32 1, %s3513_s11  }
 0x14e   : >> { %v579_v31 = vadd.f32 %v578_v28, %v577_v25  ;;  %v776_v15 = vmov %v3636_v15  ;;  %vm1327_vm2 = vcmp.eq.s32.totalorder %v3638_v16, 3  ;;  %vm1336_vm3 = vcmp.eq.s32.totalorder %v3638_v16, 7  ;;  %p545_p9 = scmp.ge.s32.totalorder %s548_s11, 39  }
 0x14f   : >> { %v641_v32 = vadd.f32 %v640_v29, %v639_v26  ;;  %v611_v33 = vadd.f32 %v610_v30, %v609_v27  ;;  %v729_v15 = vmov %v3636_v15  ;;  %vm781_vm15 = vcmp.eq.s32.totalorder %v780_v7, %v776_v15  ;;  %v796_v27 = vld [vmem:[%s3705_s14] sm:$0xff]  ;;  %s457_s11 = smov (%p545_p9), [#allocation14] }
 0x150   : >> { %580 = vst [vmem:[%s550_s15] sm:$0x1] %v579_v31  ;;  %vm734_vm0 = vcmp.eq.s32.totalorder %v733_v8, %v729_v15  ;;  %s3707_s15 = smov [#allocation13]  ;;  %v1005_v16 = vmov %v3638_v16  ;;  %v1002_v15 = vmov %v3636_v15 }
 0x151   : >> { %v642_v34 = vrot.slane %v641_v32, 1  ;;  %612 = vst [vmem:[%s582_s16] sm:$0x1] %v611_v33  ;;  %s3709_s16 = smov [#allocation14]  ;;  %v797_v28 = vld [vmem:[%s3707_s15] sm:$0xff]  ;;  %v975_v16 = vmov %v3638_v16  ;;  %v972_v15 = vmov %v3636_v15  ;;  %vm1009_vm4 = vcmp.eq.s32.totalorder %v1005_v16, %v1002_v15 }
 0x152   : >> { %v798_v29 = vld [vmem:[%s3709_s16] sm:$0xff]  ;;  %v1032_v16 = vmov %v3638_v16  ;;  %v1029_v15 = vmov %v3636_v15 }
 0x153   : >> { %v643_v35 = vadd.f32 %v642_v34, %v641_v32  ;;  %v3911_v16 = vmov %v3638_v16  ;;  %v1057_v15 = vmov %v3636_v15 }
 0x155   : >> { %644 = vst [vmem:[%s614_s17] sm:$0x1] %v643_v35  ;;  %s3711_s17 = smov [#allocation15] }
 0x156   : >> { %v799_v30 = vld [vmem:[%s3711_s17] sm:$0xff] }
 0x157   : >> { %v648_v38 = vld [vmem:[%s647_s18] sm:$0xff]  ;;  %s3715_s18 = smov [#allocation9] }
 0x158   : >> { %v650_v36 = vld [vmem:[%s649_s2] sm:$0xff]  ;;  %v671_v53 = vand.u32 2147483647, %v648_v38  ;;  %s3713_s2 = smov [#allocation8] }
 0x159   : >> { %v654_v37 = vmul.f32 2.0, %v650_v36  ;;  %v672_v56 = vand.u32 2147483647, %v650_v36  ;;  %v1420_v31 = vld [vmem:[%s3713_s2] sm:$0xff] }
 0x15a   : >> { %v1421_v32 = vld [vmem:[%s3715_s18] sm:$0xff] }
 0x15b   : >> { %3235 = vrcp.f32 %v654_v37 }
 0x15c   : >> { %v652_v39 = vld [vmem:[%s651_s19] sm:$0xff]  ;;  %s3717_s19 = smov [#allocation10] }
 0x15d   : >> { %v653_v40 = vsub.f32 %v652_v39, %v648_v38  ;;  %v673_v54 = vand.u32 2147483647, %v652_v39  ;;  %v1422_v33 = vld [vmem:[%s3717_s19] sm:$0xff] }
 0x15f   : >> { %v674_v55 = vmin.f32 %v671_v53, %v673_v54 }
 0x161   : >> { %v675_v57 = vmul.f32 1.1920929e-08, %v674_v55 }
 0x163   : >> { %vm676_vm10 = vcmp.le.f32.partialorder %v672_v56, %v675_v57 }
 0x168   : >> { %v3236_v41 = vpop.eup %3235 }
 0x169   : >> { %v656_v42 = vmul.f32 %v3236_v41, %v653_v40 }
 0x16b   : >> { %v658_v43 = vmul.f32 %v656_v42, %v656_v42  ;;  %vm657_vm9 = vcmp.ge.f32.partialorder %v656_v42, 0.0 }
 0x16d   : >> { %v659_v44 = vadd.f32 1.0, %v658_v43 }
 0x16f   : >> { %3237 = vrsqrt.f32 %v659_v44  ;;  %vm662_vm7 = vcmp.eq.f32.partialorder %v659_v44, inf  ;;  %v665_v46 = vand.u32 2147483648, %v659_v44  ;;  %vm664_vm8 = vcmp.eq.f32.partialorder %v659_v44, 0.0 }
 0x17c   : >> { %v3238_v45 = vpop.eup %3237 }
 0x17d   : >> { %v661_v47 = vmul.f32 %v3238_v45, %v659_v44 }
 0x17f   : >> { %v663_v48 = vsel %vm662_vm7, %v659_v44, %v661_v47 }
 0x180   : >> { %v666_v49 = vsel %vm664_vm8, %v665_v46, %v663_v48  ;;  %vm980_vm8 = vcmp.eq.s32.totalorder %v975_v16, %v972_v15 }
 0x181   : >> { %v667_v50 = vxor.u32 2147483648, %v666_v49 }
 0x183   : >> { %v668_v51 = vsel %vm657_vm9, %v666_v49, %v667_v50 }
 0x184   : >> { %v669_v52 = vadd.f32 %v668_v51, %v656_v42 }
 0x186   : >> { %3239 = vrcp.f32 %v669_v52 }
 0x193   : >> { %v3240_v58 = vpop.eup %3239 }
 0x194   : >> { %v677_v59 = vsel %vm676_vm10, 0.0, %v3240_v58 }
 0x195   : >> { %v678_v60 = vmul.f32 %v677_v59, %v677_v59  ;;  %v682_v61 = vmul.f32 %v677_v59, %v650_v36 }
 0x197   : >> { %v679_v62 = vadd.f32 1.0, %v678_v60  ;;  %v683_v63 = vsub.f32 %v648_v38, %v682_v61  ;;  %v685_v0 = vadd.f32 %v682_v61, %v652_v39 }
 0x199   : >> { %3241 = vrsqrt.f32 %v679_v62  ;;  %687 = vst [vmem:[%s686_s20] sm:$0xff] %v683_v63  ;;  %689 = vst [vmem:[%s688_s21] sm:$0xff] %v685_v0  ;;  %s3719_s20 = smov [#allocation11]  ;;  %s790_s21 = smov [#allocation24] }
 0x19a   : >> { %v1423_v34 = vld [vmem:[%s3719_s20] sm:$0xff] }
 0x1a6   : >> { %v3242_v1 = vpop.eup %3241 }
 0x1a7   : >> { %691 = vst [vmem:[%s690_s22] sm:$0xff] %v3242_v1  ;;  %v681_v2 = vmul.f32 %v3242_v1, %v677_v59  ;;  %s1414_s22 = smov [#allocation24] }
 0x1a9   : >> { %693 = vst [vmem:[%s692_s3] sm:$0xff] %v681_v2  ;;  %s788_s3 = smov [#allocation23] }
 0x1ae   : >> { %v710_v5 = vld [vmem:[%s709_s0] ss:$0 sm:$0xff]  ;;  %s1412_s0 = smov [#allocation23] }
 0x1af   : >> { %v695_v6 = vld [vmem:[%s694_s23] ss:$0 sm:$0xff]  ;;  %v719_v9 = vsel %vm718_vm11, %v710_v5, 0.0  ;;  %s819_s23 = smov [#allocation24]  ;;  %vm1036_vm11 = vcmp.eq.s32.totalorder %v1032_v16, %v1029_v15 }
 0x1b0   : >> { %v704_v10 = vsel %vm703_vm12, %v695_v6, 0.0  ;;  %720 = vadd.xlane.f32.xlu1 %v719_v9  ;;  %v757_v11 = vld [vmem:[%s756_s24] ss:$0 sm:$0xff]  ;;  %s1443_s24 = smov [#allocation24] }
 0x1b1   : >> { %705 = vadd.xlane.f32.xlu0 %v704_v10  ;;  %v742_v12 = vld [vmem:[%s741_s25] ss:$0 sm:$0xff]  ;;  %v766_v13 = vsel %vm765_vm13, %v757_v11, 0.0  ;;  %s816_s25 = smov [#allocation23] }
 0x1b2   : >> { %v751_v14 = vsel %vm750_vm14, %v742_v12, 0.0  ;;  %v773_v17 = vld [vmem:[%s772_s26] ss:$0 sm:$0xff]  ;;  %s3737_s26 = smov [#allocation12]  ;;  %vm1065_vm14 = vcmp.eq.s32.totalorder %v3911_v16, %v1057_v15 }
 0x1b3   : >> { %v726_v18 = vld [vmem:[%s725_s27] ss:$0 sm:$0xff]  ;;  %v782_v19 = vsel %vm781_vm15, %v773_v17, 0.0  ;;  %s3739_s27 = smov [#allocation14] }
 0x1b4   : >> { %767 = vadd.xlane.f32.xlu1 %v766_v13  ;;  %v735_v20 = vsel %vm734_vm0, %v726_v18, 0.0 }
 0x1b5   : >> { %752 = vadd.xlane.f32.xlu0 %v751_v14 }
 0x1b8   : >> { %783 = vadd.xlane.f32.xlu1 %v782_v19 }
 0x1b9   : >> { %736 = vadd.xlane.f32.xlu0 %v735_v20 }
 0x239   : >> { %v721_v21 = vpop.xlane.xlu1 %720 }
 0x23a   : >> { %v706_v22 = vpop.xlane.xlu0 %705 }
 0x23b   : >> { %708 = vst [vmem:[%s707_s28] sm:$0xff] %v706_v22  ;;  %s1440_s28 = smov [#allocation23] }
 0x23c   : >> { %2558 = vst [vmem:[%s722_s29 + $0x8] sm:$0xff] %v721_v21  ;;  %s3741_s29 = smov [#allocation15] }
 0x23d   : >> { %v768_v23 = vpop.xlane.xlu1 %767 }
 0x23e   : >> { %v753_v24 = vpop.xlane.xlu0 %752 }
 0x23f   : >> { %755 = vst [vmem:[%s754_s30] sm:$0xff] %v753_v24  ;;  %s3743_s30 = smov [#allocation8] }
 0x240   : >> { %2560 = vst [vmem:[%s769_s1 + $0x8] sm:$0xff] %v768_v23  ;;  %s3745_s1 = smov [#allocation9] }
 0x241   : >> { %v784_v25 = vpop.xlane.xlu1 %783 }
 0x242   : >> { %v737_v26 = vpop.xlane.xlu0 %736  ;;  %2561 = vst [vmem:[%s785_s12 + $0x10] sm:$0xff] %v784_v25  ;;  %s3747_s12 = smov [#allocation10] }
 0x243   : >> { %2559 = vst [vmem:[%s738_s13 + $0x10] sm:$0xff] %v737_v26  ;;  %s3749_s13 = smov [#allocation11] }
 0x249   : >> { %v791_v35 = vld [vmem:[%s790_s21] sm:$0xff]  ;;  %v2563_v63 = vld [vmem:[%s819_s23 + $0x8] sm:$0xff]  ;;  %s3775_s21 = smov [#allocation9]  ;;  %s3786_s23 = smov [#allocation15] }
 0x24a   : >> { %v801_v36 = vmul.f32 %v798_v29, %v791_v35  ;;  %v804_v37 = vmul.f32 %v799_v30, %v791_v35  ;;  %v806_v38 = vmul.f32 %v796_v27, %v791_v35  ;;  %v809_v39 = vmul.f32 %v797_v28, %v791_v35  ;;  %v1415_v40 = vld [vmem:[%s1414_s22] sm:$0xff]  ;;  %v2671_v0 = vld [vmem:[%s1443_s24 + $0x8] sm:$0xff]  ;;  %s3777_s22 = smov [#allocation10]  ;;  %s884_s24 = smov [#allocation21] }
 0x24b   : >> { %v1425_v41 = vmul.f32 %v1422_v33, %v1415_v40  ;;  %v1428_v42 = vmul.f32 %v1423_v34, %v1415_v40  ;;  %v1430_v43 = vmul.f32 %v1420_v31, %v1415_v40  ;;  %v1433_v44 = vmul.f32 %v1421_v32, %v1415_v40  ;;  %v789_v45 = vld [vmem:[%s788_s3] sm:$0xff]  ;;  %v2562_v1 = vld [vmem:[%s816_s25 + $0x8] sm:$0xff]  ;;  %s3779_s3 = smov [#allocation11]  ;;  %s886_s25 = smov [#allocation22] }
 0x24c   : >> { %v800_v46 = vmul.f32 %v796_v27, %v789_v45  ;;  %v803_v47 = vmul.f32 %v797_v28, %v789_v45  ;;  %v807_v48 = vmul.f32 %v798_v29, %v789_v45  ;;  %v810_v49 = vmul.f32 %v799_v30, %v789_v45  ;;  %v1413_v50 = vld [vmem:[%s1412_s0] sm:$0xff]  ;;  %v2670_v2 = vld [vmem:[%s1440_s28 + $0x8] sm:$0xff]  ;;  %s3782_s0 = smov [#allocation13]  ;;  %s3803_s28 = smov [#allocation9] }
 0x24d   : >> { %v1424_v51 = vmul.f32 %v1420_v31, %v1413_v50  ;;  %v1427_v52 = vmul.f32 %v1421_v32, %v1413_v50  ;;  %v1431_v53 = vmul.f32 %v1422_v33, %v1413_v50  ;;  %v1434_v54 = vmul.f32 %v1423_v34, %v1413_v50 }
 0x24e   : >> { %v802_v55 = vsub.f32 %v800_v46, %v801_v36  ;;  %v805_v56 = vsub.f32 %v803_v47, %v804_v37  ;;  %v808_v57 = vadd.f32 %v807_v48, %v806_v38  ;;  %v811_v58 = vadd.f32 %v810_v49, %v809_v39 }
 0x24f   : >> { %v1426_v59 = vsub.f32 %v1424_v51, %v1425_v41  ;;  %v1429_v60 = vsub.f32 %v1427_v52, %v1428_v42  ;;  %v1432_v61 = vadd.f32 %v1431_v53, %v1430_v43  ;;  %v1435_v62 = vadd.f32 %v1434_v54, %v1433_v44 }
 0x250   : >> { %812 = vst [vmem:[%s3705_s14] sm:$0xff] %v802_v55  ;;  %814 = vst [vmem:[%s3709_s16] sm:$0xff] %v808_v57  ;;  %s3751_s14 = smov [#allocation13]  ;;  %s1477_s16 = smov [#allocation24] }
 0x251   : >> { %815 = vst [vmem:[%s3711_s17] sm:$0xff] %v811_v58  ;;  %813 = vst [vmem:[%s3707_s15] sm:$0xff] %v805_v56  ;;  %s853_s15 = smov [#allocation24]  ;;  %s850_s17 = smov [#allocation23]  ;;  %v2681_v38 = vld [vmem:[%s1477_s16 + $0x10] sm:$0xff] }
 0x252   : >> { %1436 = vst [vmem:[%s3713_s2] sm:$0xff] %v1426_v59  ;;  %1437 = vst [vmem:[%s3715_s18] sm:$0xff] %v1429_v60  ;;  %s3766_s2 = smov [#allocation12]  ;;  %s3768_s18 = smov [#allocation14]  ;;  %v2573_v37 = vld [vmem:[%s853_s15 + $0x10] sm:$0xff] }
 0x253   : >> { %1438 = vst [vmem:[%s3717_s19] sm:$0xff] %v1432_v61  ;;  %1439 = vst [vmem:[%s3719_s20] sm:$0xff] %v1435_v62  ;;  %s1474_s19 = smov [#allocation23]  ;;  %s3773_s20 = smov [#allocation8]  ;;  %v2572_v39 = vld [vmem:[%s850_s17 + $0x10] sm:$0xff] }
 0x254   : >> { %v2680_v44 = vld [vmem:[%s1474_s19 + $0x10] sm:$0xff]  ;;  %s914_s15 = smov [#allocation13]  ;;  %s916_s16 = smov [#allocation14] }
 0x255   : >> { %s918_s17 = smov [#allocation15]  ;;  %s944_s19 = smov [#allocation14] }
 0x257   : >> { %v2564_v3 = vld [vmem:[%s3737_s26 + $0x8] sm:$0xff] }
 0x258   : >> { %v2566_v4 = vld [vmem:[%s3739_s27 + $0x8] sm:$0xff]  ;;  %v834_v6 = vmul.f32 %v2564_v3, %v2562_v1  ;;  %v840_v9 = vmul.f32 %v2564_v3, %v2563_v63 }
 0x259   : >> { %v2567_v5 = vld [vmem:[%s3741_s29 + $0x8] sm:$0xff]  ;;  %v835_v7 = vmul.f32 %v2566_v4, %v2563_v63  ;;  %v841_v13 = vmul.f32 %v2566_v4, %v2562_v1 }
 0x25a   : >> { %v838_v8 = vmul.f32 %v2567_v5, %v2563_v63  ;;  %v2672_v10 = vld [vmem:[%s3743_s30 + $0x8] sm:$0xff]  ;;  %v844_v14 = vmul.f32 %v2567_v5, %v2562_v1 }
 0x25b   : >> { %v2673_v11 = vld [vmem:[%s3745_s1 + $0x8] sm:$0xff]  ;;  %v1458_v18 = vmul.f32 %v2672_v10, %v2670_v2  ;;  %v836_v21 = vsub.f32 %v834_v6, %v835_v7  ;;  %v1464_v24 = vmul.f32 %v2672_v10, %v2671_v0  ;;  %v842_v25 = vadd.f32 %v841_v13, %v840_v9 }
 0x25c   : >> { %v2674_v12 = vld [vmem:[%s3747_s12 + $0x8] sm:$0xff]  ;;  %v1461_v22 = vmul.f32 %v2673_v11, %v2670_v2  ;;  %v1467_v28 = vmul.f32 %v2673_v11, %v2671_v0 }
 0x25d   : >> { %v2675_v17 = vld [vmem:[%s3749_s13 + $0x8] sm:$0xff]  ;;  %v1459_v19 = vmul.f32 %v2674_v12, %v2671_v0  ;;  %v1465_v27 = vmul.f32 %v2674_v12, %v2670_v2  ;;  %2568 = vst [vmem:[%s3737_s26 + $0x8] sm:$0xff] %v836_v21  ;;  %2570 = vst [vmem:[%s3739_s27 + $0x8] sm:$0xff] %v842_v25  ;;  %s1508_s26 = smov [#allocation8]  ;;  %s3801_s27 = smov [#allocation10] }
 0x25e   : >> { %v2565_v20 = vld [vmem:[%s3751_s14 + $0x8] sm:$0xff]  ;;  %v1462_v23 = vmul.f32 %v2675_v17, %v2671_v0  ;;  %v1468_v30 = vmul.f32 %v2675_v17, %v2670_v2 }
 0x25f   : >> { %v1460_v26 = vsub.f32 %v1458_v18, %v1459_v19  ;;  %v837_v31 = vmul.f32 %v2565_v20, %v2562_v1  ;;  %v843_v32 = vmul.f32 %v2565_v20, %v2563_v63  ;;  %v1466_v33 = vadd.f32 %v1465_v27, %v1464_v24  ;;  %v3820_v18 = vld [vmem:[%s884_s24] ss:$0 sm:$0xff]  ;;  %s3928_s24 = smov [#allocation15] }
 0x260   : >> { %v1463_v29 = vsub.f32 %v1461_v22, %v1462_v23  ;;  %v1469_v34 = vadd.f32 %v1468_v30, %v1467_v28  ;;  %v3822_v19 = vld [vmem:[%s886_s25] ss:$0 sm:$0xff]  ;;  %s3965_s25 = smov [#allocation13] }
 0x261   : >> { %2676 = vst [vmem:[%s3743_s30 + $0x8] sm:$0xff] %v1460_v26  ;;  %v839_v35 = vsub.f32 %v837_v31, %v838_v8  ;;  %v845_v36 = vadd.f32 %v844_v14, %v843_v32  ;;  %2678 = vst [vmem:[%s3747_s12 + $0x8] sm:$0xff] %v1466_v33  ;;  %s3808_s30 = smov [#allocation12]  ;;  %s3814_s12 = smov [#allocation14] }
 0x262   : >> { %2677 = vst [vmem:[%s3745_s1 + $0x8] sm:$0xff] %v1463_v29  ;;  %2679 = vst [vmem:[%s3749_s13 + $0x8] sm:$0xff] %v1469_v34  ;;  %s3810_s1 = smov [#allocation13]  ;;  %s3816_s13 = smov [#allocation15] }
 0x263   : >> { %2569 = vst [vmem:[%s3751_s14 + $0x8] sm:$0xff] %v839_v35  ;;  %2571 = vst [vmem:[%s3741_s29 + $0x8] sm:$0xff] %v845_v36  ;;  %s3805_s29 = smov [#allocation11]  ;;  %s912_s14 = smov [#allocation12] }
 0x264   : >> { %v2574_v40 = vld [vmem:[%s3766_s2 + $0x10] sm:$0xf] }
 0x265   : >> { %v2576_v41 = vld [vmem:[%s3768_s18 + $0x10] sm:$0xf]  ;;  %v868_v42 = vmul.f32 %v2574_v40, %v2572_v39  ;;  %v874_v43 = vmul.f32 %v2574_v40, %v2573_v37 }
 0x266   : >> { %v869_v46 = vmul.f32 %v2576_v41, %v2573_v37  ;;  %v875_v47 = vmul.f32 %v2576_v41, %v2572_v39 }
 0x268   : >> { %v2682_v45 = vld [vmem:[%s3773_s20 + $0x10] sm:$0xf]  ;;  %v870_v54 = vsub.f32 %v868_v42, %v869_v46  ;;  %v876_v55 = vadd.f32 %v875_v47, %v874_v43 }
 0x269   : >> { %v2683_v48 = vld [vmem:[%s3775_s21 + $0x10] sm:$0xf]  ;;  %v1492_v49 = vmul.f32 %v2682_v45, %v2680_v44  ;;  %v1498_v50 = vmul.f32 %v2682_v45, %v2681_v38 }
 0x26a   : >> { %v2684_v51 = vld [vmem:[%s3777_s22 + $0x10] sm:$0xf]  ;;  %v1495_v52 = vmul.f32 %v2683_v48, %v2680_v44  ;;  %v1501_v53 = vmul.f32 %v2683_v48, %v2681_v38  ;;  %2578 = vst [vmem:[%s3766_s2 + $0x10] sm:$0xf] %v870_v54  ;;  %2580 = vst [vmem:[%s3768_s18 + $0x10] sm:$0xf] %v876_v55 }
 0x26b   : >> { %v2685_v56 = vld [vmem:[%s3779_s3 + $0x10] sm:$0xf]  ;;  %v1493_v57 = vmul.f32 %v2684_v51, %v2681_v38  ;;  %v1499_v58 = vmul.f32 %v2684_v51, %v2680_v44  ;;  %s940_s2 = smov [#allocation12]  ;;  %s942_s18 = smov [#allocation13] }
 0x26c   : >> { %v2575_v59 = vld [vmem:[%s3782_s0 + $0x10] sm:$0xf]  ;;  %v1496_v61 = vmul.f32 %v2685_v56, %v2681_v38  ;;  %v1502_v62 = vmul.f32 %v2685_v56, %v2680_v44 }
 0x26d   : >> { %v2577_v60 = vld [vmem:[%s3786_s23 + $0x10] sm:$0xf]  ;;  %v871_v63 = vmul.f32 %v2575_v59, %v2572_v39  ;;  %v1494_v1 = vsub.f32 %v1492_v49, %v1493_v57  ;;  %v1500_v2 = vadd.f32 %v1499_v58, %v1498_v50  ;;  %v877_v3 = vmul.f32 %v2575_v59, %v2573_v37 }
 0x26e   : >> { %v872_v0 = vmul.f32 %v2577_v60, %v2573_v37  ;;  %v878_v4 = vmul.f32 %v2577_v60, %v2572_v39  ;;  %v1497_v5 = vsub.f32 %v1495_v52, %v1496_v61  ;;  %v1503_v6 = vadd.f32 %v1502_v62, %v1501_v53 }
 0x26f   : >> { %2686 = vst [vmem:[%s3773_s20 + $0x10] sm:$0xf] %v1494_v1  ;;  %2688 = vst [vmem:[%s3777_s22 + $0x10] sm:$0xf] %v1500_v2  ;;  %s946_s20 = smov [#allocation15]  ;;  %s1054_s22 = smov [#allocation20] }
 0x270   : >> { %v873_v7 = vsub.f32 %v871_v63, %v872_v0  ;;  %v879_v8 = vadd.f32 %v878_v4, %v877_v3  ;;  %2687 = vst [vmem:[%s3775_s21 + $0x10] sm:$0xf] %v1497_v5  ;;  %2689 = vst [vmem:[%s3779_s3 + $0x10] sm:$0xf] %v1503_v6  ;;  %s969_s21 = smov [#allocation19]  ;;  %s3917_s3 = smov [#allocation13] }
 0x271   : >> { %v892_v25 = vld [vmem:[%s3808_s30] sm:$0xff] }
 0x272   : >> { %2579 = vst [vmem:[%s3782_s0 + $0x10] sm:$0xf] %v873_v7  ;;  %2581 = vst [vmem:[%s3786_s23 + $0x10] sm:$0xf] %v879_v8  ;;  %v894_v30 = vld [vmem:[%s3814_s12] sm:$0xff]  ;;  %v896_v48 = vmul.f32 %v892_v25, %v3820_v18  ;;  %v899_v49 = vmul.f32 %v892_v25, %v3822_v19  ;;  %s3921_s0 = smov [#allocation12] }
 0x273   : >> { %v902_v55 = vmul.f32 %v894_v30, %v3820_v18  ;;  %v905_v56 = vmul.f32 %v894_v30, %v3822_v19  ;;  %s3923_s23 = smov [#allocation14] }
 0x276   : >> { %v1510_v9 = vld [vmem:[%s1508_s26] ss:$0 sm:$0xff]  ;;  %v2691_v11 = vld [vmem:[%s1508_s26 + $0x7] ss:$0 sm:$0xff]  ;;  %v2692_v13 = vld [vmem:[%s1508_s26 + $0x7] sm:$0xfe] }
 0x277   : >> { %v2690_v10 = vld [vmem:[%s1508_s26 - $0x1] sm:$0xfe]  ;;  %v2693_v14 = vld [vmem:[%s1508_s26 + $0xf] ss:$0 sm:$0xff]  ;;  %v2695_v17 = vld [vmem:[%s1508_s26 + $0xf] sm:$0xe]  ;;  %v1528_v20 = vsel %vm1292_vm1, %v2691_v11, %v2692_v13 }
 0x278   : >> { %v1517_v12 = vsel %vm1292_vm1, %v1510_v9, %v2690_v10  ;;  %v1539_v21 = vsel %vm1292_vm1, %v2693_v14, %v2695_v17  ;;  %v2696_v22 = vld [vmem:[%s1508_s26 + $0x13] ss:$0 sm:$0xff]  ;;  %v1543_v23 = vld [vmem:[%s3801_s27] ss:$0 sm:$0xff]  ;;  %2694 = vst [vmem:[%s1508_s26 + $0x8] sm:$0xff] %v1528_v20 }
 0x279   : >> { %1520 = vst [vmem:[%s1508_s26] sm:$0xff] %v1517_v12  ;;  %v2699_v24 = vld [vmem:[%s3801_s27 + $0x11] sm:$0x7]  ;;  %2697 = vst [vmem:[%s1508_s26 + $0x10] sm:$0xf] %v1539_v21  ;;  %v2700_v27 = vld [vmem:[%s3801_s27 + $0x10] ss:$0 sm:$0xff] }
 0x27a   : >> { %2698 = vst [vmem:[%s1508_s26 + $0x1] sm:$0x1] %v1543_v23  ;;  %v1552_v26 = vsel %vm1327_vm2, %v2696_v22, %v2699_v24  ;;  %v2702_v28 = vld [vmem:[%s3801_s27 + $0x9] sm:$0x7f]  ;;  %v2703_v29 = vld [vmem:[%s3801_s27 + $0x8] ss:$0 sm:$0xff] }
 0x27b   : >> { %2701 = vst [vmem:[%s3801_s27 + $0x10] sm:$0xf] %v1552_v26  ;;  %v1561_v31 = vsel %vm1336_vm3, %v2700_v27, %v2702_v28  ;;  %v2705_v32 = vld [vmem:[%s3801_s27 + $0x1] sm:$0x7f]  ;;  %v1574_v33 = vld [vmem:[%s3803_s28] ss:$0 sm:$0xff] }
 0x27c   : >> { %v2706_v34 = vld [vmem:[%s3803_s28 - $0x1] sm:$0xfe]  ;;  %2704 = vst [vmem:[%s3801_s27 + $0x8] sm:$0xff] %v1561_v31  ;;  %v1569_v35 = vsel %vm1336_vm3, %v2703_v29, %v2705_v32  ;;  %v2707_v37 = vld [vmem:[%s3803_s28 + $0x7] ss:$0 sm:$0xff]  ;;  %s3967_s26 = smov [#allocation12] }
 0x27d   : >> { %v1581_v36 = vsel %vm1292_vm1, %v1574_v33, %v2706_v34  ;;  %v2708_v38 = vld [vmem:[%s3803_s28 + $0x7] sm:$0xfe]  ;;  %v2709_v39 = vld [vmem:[%s3803_s28 + $0xf] ss:$0 sm:$0xff]  ;;  %1571 = vst [vmem:[%s3801_s27] sm:$0xff] %v1569_v35  ;;  %v2711_v41 = vld [vmem:[%s3803_s28 + $0xf] sm:$0xe] }
 0x27e   : >> { %1584 = vst [vmem:[%s3803_s28] sm:$0xff] %v1581_v36  ;;  %v1592_v40 = vsel %vm1292_vm1, %v2707_v37, %v2708_v38  ;;  %v2712_v42 = vld [vmem:[%s3803_s28 + $0x13] ss:$0 sm:$0xff]  ;;  %v1607_v43 = vld [vmem:[%s3805_s29] ss:$0 sm:$0xff]  ;;  %v1603_v44 = vsel %vm1292_vm1, %v2709_v39, %v2711_v41  ;;  %v2716_v46 = vld [vmem:[%s3805_s29 + $0x10] ss:$0 sm:$0xff] }
 0x27f   : >> { %2710 = vst [vmem:[%s3803_s28 + $0x8] sm:$0xff] %v1592_v40  ;;  %2714 = vst [vmem:[%s3803_s28 + $0x1] sm:$0x1] %v1607_v43  ;;  %v2715_v45 = vld [vmem:[%s3805_s29 + $0x11] sm:$0x7]  ;;  %v893_v54 = vld [vmem:[%s3810_s1] sm:$0xff] }
 0x280   : >> { %v2718_v47 = vld [vmem:[%s3805_s29 + $0x9] sm:$0x7f]  ;;  %2713 = vst [vmem:[%s3803_s28 + $0x10] sm:$0xf] %v1603_v44  ;;  %v1616_v50 = vsel %vm1327_vm2, %v2712_v42, %v2715_v45  ;;  %v2719_v52 = vld [vmem:[%s3805_s29 + $0x8] ss:$0 sm:$0xff]  ;;  %v897_v58 = vmul.f32 %v893_v54, %v3822_v19  ;;  %v900_v59 = vmul.f32 %v893_v54, %v3820_v18 }
 0x281   : >> { %v1625_v51 = vsel %vm1336_vm3, %v2716_v46, %v2718_v47  ;;  %v2721_v53 = vld [vmem:[%s3805_s29 + $0x1] sm:$0x7f]  ;;  %2717 = vst [vmem:[%s3805_s29 + $0x10] sm:$0xf] %v1616_v50  ;;  %v1015_v39 = vadd.s32 8, %v1005_v16  ;;  %v1022_v40 = vadd.s32 16, %v1005_v16 }
 0x282   : >> { %2720 = vst [vmem:[%s3805_s29 + $0x8] sm:$0xff] %v1625_v51  ;;  %v1633_v57 = vsel %vm1336_vm3, %v2719_v52, %v2721_v53  ;;  %v895_v60 = vld [vmem:[%s3816_s13] sm:$0xff]  ;;  %v898_v63 = vsub.f32 %v896_v48, %v897_v58  ;;  %v901_v0 = vadd.f32 %v900_v59, %v899_v49  ;;  %v1042_v41 = vadd.s32 8, %v1032_v16  ;;  %s3548_s27 = smov 1   ;;  %s3971_s28 = smov [#allocation12] }
 0x283   : >> { %1635 = vst [vmem:[%s3805_s29] sm:$0xff] %v1633_v57  ;;  %v903_v61 = vmul.f32 %v895_v60, %v3822_v19  ;;  %v906_v62 = vmul.f32 %v895_v60, %v3820_v18  ;;  %v1049_v42 = vadd.s32 16, %v1032_v16  ;;  %v1072_v43 = vadd.s32 8, %v3911_v16  ;;  %v976_v45 = vld [vmem:[%s969_s21] ss:$0 sm:$0xff]  ;;  %s3980_s29 = smov [#allocation14]  ;;  %s1349_s21 = smov [#allocation15] }
 0x284   : >> { %908 = vst [vmem:[%s3808_s30] sm:$0xff] %v898_v63  ;;  %909 = vst [vmem:[%s3810_s1] sm:$0xff] %v901_v0  ;;  %v1080_v44 = vadd.s32 16, %v3911_v16  ;;  %vm1016_vm5 = vcmp.eq.s32.totalorder %v1015_v39, %v1002_v15  ;;  %vm1023_vm7 = vcmp.eq.s32.totalorder %v1022_v40, %v1002_v15  ;;  %v1061_v46 = vld [vmem:[%s1054_s22] ss:$0 sm:$0xff]  ;;  %vm1043_vm12 = vcmp.eq.s32.totalorder %v1042_v41, %v1029_v15  ;;  %s3549_s30 = smov 127   ;;  %s3983_s1 = smov [#allocation12] }
 0x285   : >> { %v904_v1 = vsub.f32 %v902_v55, %v903_v61  ;;  %v907_v2 = vadd.f32 %v906_v62, %v905_v56  ;;  %vm1050_vm13 = vcmp.eq.s32.totalorder %v1049_v42, %v1029_v15  ;;  %vm1073_vm15 = vcmp.eq.s32.totalorder %v1072_v43, %v1057_v15  ;;  %s1636_s22 = sadd.s32 (%p545_p9), 1, %s3509_s10  }
 0x286   : >> { %vm1081_vm0 = vcmp.eq.s32.totalorder %v1080_v44, %v1057_v15  ;;  %p541_p10 = scmp.ge.s32.totalorder (%p545_p9), %s1636_s22, 15  ;;  %s4229_s10 = smov (%p545_p9), %s1636_s22 }
 0x287   : >> { %910 = vst [vmem:[%s3814_s12] sm:$0xff] %v904_v1  ;;  %911 = vst [vmem:[%s3816_s13] sm:$0xff] %v907_v2  ;;  %s3990_s12 = smov [#allocation13]  ;;  %s3994_s13 = smov [#allocation14] }
 0x28b   : >> { %v2582_v3 = vld [vmem:[%s912_s14 + $0x8] sm:$0xff] }
 0x28c   : >> { %v2583_v4 = vld [vmem:[%s914_s15 + $0x8] sm:$0xff]  ;;  %v924_v5 = vmul.f32 %v2582_v3, %v3820_v18  ;;  %v927_v7 = vmul.f32 %v2582_v3, %v3822_v19 }
 0x28d   : >> { %v925_v6 = vmul.f32 %v2583_v4, %v3822_v19  ;;  %v928_v8 = vmul.f32 %v2583_v4, %v3820_v18 }
 0x28e   : >> { %v2584_v9 = vld [vmem:[%s916_s16 + $0x8] sm:$0xff] }
 0x28f   : >> { %v2585_v10 = vld [vmem:[%s918_s17 + $0x8] sm:$0xff]  ;;  %v930_v11 = vmul.f32 %v2584_v9, %v3820_v18  ;;  %v933_v13 = vmul.f32 %v2584_v9, %v3822_v19  ;;  %v926_v17 = vsub.f32 %v924_v5, %v925_v6  ;;  %v929_v20 = vadd.f32 %v928_v8, %v927_v7 }
 0x290   : >> { %v931_v12 = vmul.f32 %v2585_v10, %v3822_v19  ;;  %v934_v14 = vmul.f32 %v2585_v10, %v3820_v18 }
 0x291   : >> { %2586 = vst [vmem:[%s912_s14 + $0x8] sm:$0xff] %v926_v17  ;;  %2587 = vst [vmem:[%s914_s15 + $0x8] sm:$0xff] %v929_v20  ;;  %s3998_s14 = smov [#allocation15]  ;;  %s4005_s15 = smov [#allocation13] }
 0x292   : >> { %v932_v21 = vsub.f32 %v930_v11, %v931_v12  ;;  %v935_v22 = vadd.f32 %v934_v14, %v933_v13 }
 0x294   : >> { %2588 = vst [vmem:[%s916_s16 + $0x8] sm:$0xff] %v932_v21  ;;  %2589 = vst [vmem:[%s918_s17 + $0x8] sm:$0xff] %v935_v22  ;;  %s4011_s16 = smov [#allocation15]  ;;  %s4017_s17 = smov [#allocation14] }
 0x298   : >> { %v2590_v23 = vld [vmem:[%s940_s2 + $0x10] sm:$0xf] }
 0x299   : >> { %v2591_v24 = vld [vmem:[%s942_s18 + $0x10] sm:$0xf]  ;;  %v955_v25 = vmul.f32 %v2590_v23, %v3822_v19  ;;  %v952_v27 = vmul.f32 %v2590_v23, %v3820_v18 }
 0x29a   : >> { %v956_v26 = vmul.f32 %v2591_v24, %v3820_v18  ;;  %v953_v28 = vmul.f32 %v2591_v24, %v3822_v19 }
 0x29b   : >> { %v2592_v29 = vld [vmem:[%s944_s19 + $0x10] sm:$0xf] }
 0x29c   : >> { %v2593_v30 = vld [vmem:[%s946_s20 + $0x10] sm:$0xf]  ;;  %v958_v31 = vmul.f32 %v2592_v29, %v3820_v18  ;;  %v961_v33 = vmul.f32 %v2592_v29, %v3822_v19  ;;  %v957_v35 = vadd.f32 %v956_v26, %v955_v25  ;;  %v954_v36 = vsub.f32 %v952_v27, %v953_v28 }
 0x29d   : >> { %v959_v32 = vmul.f32 %v2593_v30, %v3822_v19  ;;  %v962_v34 = vmul.f32 %v2593_v30, %v3820_v18  ;;  %v987_v18 = vadd.s32 8, %v975_v16  ;;  %v995_v19 = vadd.s32 16, %v975_v16 }
 0x29e   : >> { %2595 = vst [vmem:[%s942_s18 + $0x10] sm:$0xf] %v957_v35  ;;  %2594 = vst [vmem:[%s940_s2 + $0x10] sm:$0xf] %v954_v36  ;;  %s4021_s2 = smov [#allocation15]  ;;  %s4085_s18 = smov [#allocation12]  ;;  %v427_v16 = vmov (%p545_p9), %v3638_v16 }
 0x29f   : >> { %v960_v37 = vsub.f32 %v958_v31, %v959_v32  ;;  %v963_v38 = vadd.f32 %v962_v34, %v961_v33  ;;  %vm988_vm9 = vcmp.eq.s32.totalorder %v987_v18, %v972_v15  ;;  %vm996_vm10 = vcmp.eq.s32.totalorder %v995_v19, %v972_v15 }
 0x2a0   : > { %v388_v16 = vmov (%p545_p9), %v3638_v16 }
 0x2a1   : >> { %2596 = vst [vmem:[%s944_s19 + $0x10] sm:$0xf] %v960_v37  ;;  %2597 = vst [vmem:[%s946_s20 + $0x10] sm:$0xf] %v963_v38  ;;  %s4113_s19 = smov [#allocation13]  ;;  %s1285_s20 = smov [#allocation14] }
 0x2a5   : >> { %v1006_v47 = vld [vmem:[%s3917_s3] sm:$0xff]  ;;  %v2602_v48 = vld [vmem:[%s3917_s3 + $0x8] sm:$0xff]  ;;  %v2604_v49 = vld [vmem:[%s3917_s3 + $0x10] sm:$0xf] }
 0x2a6   : >> { %v1010_v50 = vsel %vm1009_vm4, 0.0, %v1006_v47  ;;  %v1017_v51 = vsel %vm1016_vm5, 0.0, %v2602_v48  ;;  %v1024_v52 = vsel %vm1023_vm7, 0.0, %v2604_v49  ;;  %v977_v53 = vld [vmem:[%s3921_s0] sm:$0xff]  ;;  %v2598_v54 = vld [vmem:[%s3921_s0 + $0x8] sm:$0xff]  ;;  %vm1095_vm4 = vcmp.eq.s32.totalorder %v3636_v15, 0 }
 0x2a7   : >> { %1011 = vst [vmem:[%s3917_s3] sm:$0xff] %v1010_v50  ;;  %2603 = vst [vmem:[%s3917_s3 + $0x8] sm:$0xff] %v1017_v51  ;;  %v981_v56 = vsel %vm980_vm8, %v976_v45, %v977_v53  ;;  %v989_v57 = vsel %vm988_vm9, %v976_v45, %v2598_v54  ;;  %v2600_v58 = vld [vmem:[%s3921_s0 + $0x10] sm:$0xf]  ;;  %vm1099_vm5 = vcmp.eq.s32.totalorder %v3636_v15, 1  ;;  %vm1112_vm7 = vcmp.eq.s32.totalorder %v3636_v15, 19 }
 0x2a8   : >> { %v1033_v55 = vld [vmem:[%s3923_s23] sm:$0xff]  ;;  %2605 = vst [vmem:[%s3917_s3 + $0x10] sm:$0xf] %v1024_v52  ;;  %v2606_v60 = vld [vmem:[%s3923_s23 + $0x8] sm:$0xff]  ;;  %v2608_v61 = vld [vmem:[%s3923_s23 + $0x10] sm:$0xf]  ;;  %v997_v62 = vsel %vm996_vm10, %v976_v45, %v2600_v58  ;;  %v385_v15 = vmov (%p545_p9), %v3636_v15 }
 0x2a9   : >> { %v1037_v59 = vsel %vm1036_vm11, 0.0, %v1033_v55  ;;  %982 = vst [vmem:[%s3921_s0] sm:$0xff] %v981_v56  ;;  %2599 = vst [vmem:[%s3921_s0 + $0x8] sm:$0xff] %v989_v57  ;;  %v1044_v63 = vsel %vm1043_vm12, 0.0, %v2606_v60  ;;  %v1051_v0 = vsel %vm1050_vm13, 0.0, %v2608_v61  ;;  %v1062_v1 = vld [vmem:[%s3928_s24] sm:$0xff]  ;;  %v2610_v2 = vld [vmem:[%s3928_s24 + $0x8] sm:$0xff]  ;;  %v424_v15 = vmov (%p545_p9), %v3636_v15 }
 0x2aa   : >> { %1038 = vst [vmem:[%s3923_s23] sm:$0xff] %v1037_v59  ;;  %v2612_v3 = vld [vmem:[%s3928_s24 + $0x10] sm:$0xf]  ;;  %2601 = vst [vmem:[%s3921_s0 + $0x10] sm:$0xf] %v997_v62  ;;  %v1066_v4 = vsel %vm1065_vm14, %v1061_v46, %v1062_v1  ;;  %v1074_v5 = vsel %vm1073_vm15, %v1061_v46, %v2610_v2  ;;  %s389_s3 = smov (%p545_p9), [#allocation12]  ;;  %s428_s0 = smov (%p545_p9), [#allocation13]  ;;  %v453_v15 = vmov (%p545_p9), %v3636_v15 }
 0x2ab   : >> { %2607 = vst [vmem:[%s3923_s23 + $0x8] sm:$0xff] %v1044_v63  ;;  %2609 = vst [vmem:[%s3923_s23 + $0x10] sm:$0xf] %v1051_v0  ;;  %v1082_v6 = vsel %vm1081_vm0, %v1061_v46, %v2612_v3  ;;  %s486_s23 = smov (%p545_p9), [#allocation15] }
 0x2ac   : >> { %1067 = vst [vmem:[%s3928_s24] sm:$0xff] %v1066_v4  ;;  %2611 = vst [vmem:[%s3928_s24 + $0x8] sm:$0xff] %v1074_v5 }
 0x2ad   : >> { %2613 = vst [vmem:[%s3928_s24 + $0x10] sm:$0xf] %v1082_v6 }
 0x2af   : >> { %v1086_v7 = vld [vmem:[%s3965_s25] sm:$0xff]  ;;  %v2614_v12 = vld [vmem:[%s3990_s12 + $0x8] sm:$0xff]  ;;  %v2618_v17 = vld [vmem:[%s4005_s15 + $0x10] sm:$0xf] }
 0x2b0   : >> { %1087 = vrot.lane.b32.xlu1 %v1086_v7, %s3548_s27  ;;  %v2621_v21 = vld [vmem:[%s4005_s15 + $0x10] sm:$0xf] }
 0x2b1   : >> { %v1090_v8 = vld [vmem:[%s3967_s26] sm:$0xff]  ;;  %v3976_v9 = vld [vmem:[%s3971_s28 + $0x8] sm:$0xff]  ;;  %v2620_v11 = vld [vmem:[%s3983_s1 + $0x10] sm:$0xf] }
 0x2b2   : >> { %1091 = vrot.lane.b32.xlu0 %v1090_v8, %s3548_s27  ;;  %v3986_v10 = vld [vmem:[%s3980_s29] sm:$0xff]  ;;  %v4001_v13 = vld [vmem:[%s3994_s13 + $0x8] sm:$0xff]  ;;  %v4024_v22 = vld [vmem:[%s4017_s17 + $0x10] sm:$0xf] }
 0x2b3   : >> { %v2619_v31 = vld [vmem:[%s3983_s1 + $0x10] sm:$0xf] }
 0x2b4   : >> { %1123 = vrot.lane.b32.xlu1 %v3976_v9, %s3548_s27  ;;  %v1186_v14 = vld [vmem:[%s3998_s14] sm:$0xff]  ;;  %v2626_v20 = vld [vmem:[%s4011_s16 + $0x8] sm:$0xff]  ;;  %v2630_v23 = vld [vmem:[%s4021_s2 + $0x10] sm:$0xf] }
 0x2b5   : >> { %v2633_v24 = vld [vmem:[%s4021_s2 + $0x10] sm:$0xf] }
 0x2b6   : >> { %1108 = vrot.lane.b32.xlu0 %v1086_v7, %s3549_s30  ;;  %v2631_v45 = vld [vmem:[%s4017_s17 + $0x10] sm:$0xf] }
 0x2b8   : >> { %1191 = vrot.lane.b32.xlu1 %v3986_v10, %s3548_s27 }
 0x2ba   : >> { %1155 = vrot.lane.b32.xlu0 %v2620_v11, %s3548_s27 }
 0x2bc   : >> { %1119 = vrot.lane.b32.xlu1 %v2614_v12, %s3548_s27 }
 0x2be   : >> { %1223 = vrot.lane.b32.xlu0 %v4001_v13, %s3548_s27 }
 0x2c0   : >> { %1187 = vrot.lane.b32.xlu1 %v1186_v14, %s3548_s27 }
 0x2c2   : >> { %1151 = vrot.lane.b32.xlu0 %v2618_v17, %s3548_s27 }
 0x2c4   : >> { %1140 = vrot.lane.b32.xlu1 %v2614_v12, %s3549_s30 }
 0x2c6   : >> { %1219 = vrot.lane.b32.xlu0 %v2626_v20, %s3548_s27 }
 0x2c8   : >> { %1208 = vrot.lane.b32.xlu1 %v1186_v14, %s3549_s30 }
 0x2ca   : >> { %1172 = vrot.lane.b32.xlu0 %v2621_v21, %s3549_s30 }
 0x2cc   : >> { %1255 = vrot.lane.b32.xlu1 %v4024_v22, %s3548_s27 }
 0x2ce   : >> { %1251 = vrot.lane.b32.xlu0 %v2630_v23, %s3548_s27 }
 0x2d0   : >> { %1240 = vrot.lane.b32.xlu1 %v2626_v20, %s3549_s30 }
 0x2d4   : >> { %1272 = vrot.lane.b32.xlu1 %v2633_v24, %s3549_s30 }
 0x322   : >> { %v1088_v25 = vpop.permute.xlu1 %1087 }
 0x324   : >> { %v1092_v26 = vpop.permute.xlu0 %1091 }
 0x325   : >> { %v1096_v27 = vsel %vm1095_vm4, %v1090_v8, %v1092_v26 }
 0x326   : >> { %v1100_v28 = vsel %vm1099_vm5, %v1088_v25, %v1096_v27  ;;  %v1124_v29 = vpop.permute.xlu1 %1123 }
 0x327   : >> { %v1106_v30 = vsel %vm2255_vm6, %v1100_v28, 0.0  ;;  %v1128_v36 = vsel %vm1095_vm4, %v3976_v9, %v1124_v29 }
 0x328   : >> { %v1109_v32 = vpop.permute.xlu0 %1108  ;;  %1178 = vst [vmem:[%s3967_s26] sm:$0xff] %v1106_v30 }
 0x329   : >> { %v1113_v33 = vsel %vm1112_vm7, %v1090_v8, %v1109_v32 }
 0x32a   : >> { %1179 = vst [vmem:[%s3965_s25] sm:$0xff] %v1113_v33  ;;  %v1192_v34 = vpop.permute.xlu1 %1191 }
 0x32b   : >> { %v1196_v18 = vsel %vm1095_vm4, %v3986_v10, %v1192_v34 }
 0x32c   : >> { %v1156_v35 = vpop.permute.xlu0 %1155 }
 0x32d   : >> { %v1160_v42 = vsel %vm1095_vm4, %v2620_v11, %v1156_v35 }
 0x32e   : >> { %v1120_v37 = vpop.permute.xlu1 %1119 }
 0x32f   : >> { %v1132_v38 = vsel %vm1099_vm5, %v1120_v37, %v1128_v36 }
 0x330   : >> { %v1138_v39 = vsel %vm2255_vm6, %v1132_v38, 0.0  ;;  %v1224_v40 = vpop.permute.xlu0 %1223 }
 0x331   : >> { %2622 = vst [vmem:[%s3971_s28 + $0x8] sm:$0xff] %v1138_v39  ;;  %v1228_v50 = vsel %vm1095_vm4, %v4001_v13, %v1224_v40 }
 0x332   : >> { %v1188_v19 = vpop.permute.xlu1 %1187 }
 0x333   : >> { %v1200_v41 = vsel %vm1099_vm5, %v1188_v19, %v1196_v18 }
 0x334   : >> { %v1206_v43 = vsel %vm2255_vm6, %v1200_v41, 0.0  ;;  %v1152_v44 = vpop.permute.xlu0 %1151 }
 0x335   : >> { %v1164_v46 = vsel %vm1099_vm5, %v1152_v44, %v1160_v42  ;;  %1278 = vst [vmem:[%s3980_s29] sm:$0xff] %v1206_v43 }
 0x336   : >> { %v1170_v47 = vsel %vm2255_vm6, %v1164_v46, 0.0  ;;  %v1141_v48 = vpop.permute.xlu1 %1140 }
 0x337   : >> { %v1145_v49 = vsel %vm1112_vm7, %v3976_v9, %v1141_v48  ;;  %2624 = vst [vmem:[%s3983_s1 + $0x10] sm:$0xf] %v1170_v47 }
 0x338   : >> { %2623 = vst [vmem:[%s3990_s12 + $0x8] sm:$0xff] %v1145_v49  ;;  %v1220_v51 = vpop.permute.xlu0 %1219 }
 0x339   : >> { %v1232_v52 = vsel %vm1099_vm5, %v1220_v51, %v1228_v50 }
 0x33a   : >> { %v1238_v53 = vsel %vm2255_vm6, %v1232_v52, 0.0  ;;  %v1209_v54 = vpop.permute.xlu1 %1208 }
 0x33b   : >> { %v1213_v55 = vsel %vm1112_vm7, %v3986_v10, %v1209_v54  ;;  %2634 = vst [vmem:[%s3994_s13 + $0x8] sm:$0xff] %v1238_v53 }
 0x33c   : >> { %1279 = vst [vmem:[%s3998_s14] sm:$0xff] %v1213_v55  ;;  %v1173_v56 = vpop.permute.xlu0 %1172 }
 0x33d   : >> { %v1177_v57 = vsel %vm1112_vm7, %v2619_v31, %v1173_v56 }
 0x33e   : >> { %2625 = vst [vmem:[%s4005_s15 + $0x10] sm:$0xf] %v1177_v57  ;;  %v1286_v58 = vld [vmem:[%s4085_s18] ss:$0 sm:$0xff]  ;;  %v2639_v60 = vld [vmem:[%s4085_s18 + $0x7] ss:$0 sm:$0xff]  ;;  %v1256_v61 = vpop.permute.xlu1 %1255 }
 0x33f   : >> { %v2638_v59 = vld [vmem:[%s4085_s18 - $0x1] sm:$0xfe]  ;;  %v2640_v63 = vld [vmem:[%s4085_s18 + $0x7] sm:$0xfe]  ;;  %v2641_v0 = vld [vmem:[%s4085_s18 + $0xf] ss:$0 sm:$0xff]  ;;  %v1260_v2 = vsel %vm1095_vm4, %v4024_v22, %v1256_v61 }
 0x340   : >> { %v1293_v62 = vsel %vm1292_vm1, %v1286_v58, %v2638_v59  ;;  %v2643_v1 = vld [vmem:[%s4085_s18 + $0xf] sm:$0xe]  ;;  %v1304_v3 = vsel %vm1292_vm1, %v2639_v60, %v2640_v63  ;;  %v1252_v5 = vpop.permute.xlu0 %1251  ;;  %v2644_v6 = vld [vmem:[%s4085_s18 + $0x13] ss:$0 sm:$0xff] }
 0x341   : >> { %1296 = vst [vmem:[%s4085_s18] sm:$0xff] %v1293_v62  ;;  %v1315_v4 = vsel %vm1292_vm1, %v2641_v0, %v2643_v1  ;;  %2642 = vst [vmem:[%s4085_s18 + $0x8] sm:$0xff] %v1304_v3  ;;  %v1264_v7 = vsel %vm1099_vm5, %v1252_v5, %v1260_v2  ;;  %v407_v1 = vadd.s32 (%p545_p9), 8, %v388_v16 }
 0x342   : >> { %2645 = vst [vmem:[%s4085_s18 + $0x10] sm:$0xf] %v1315_v4  ;;  %v1270_v8 = vsel %vm2255_vm6, %v1264_v7, 0.0  ;;  %v1241_v9 = vpop.permute.xlu1 %1240 }
 0x343   : >> { %v1245_v10 = vsel %vm1112_vm7, %v4001_v13, %v1241_v9  ;;  %2636 = vst [vmem:[%s4017_s17 + $0x10] sm:$0xf] %v1270_v8 }
 0x344   : >> { %2635 = vst [vmem:[%s4011_s16 + $0x8] sm:$0xff] %v1245_v10 }
 0x345   : >> { %v1350_v11 = vld [vmem:[%s4113_s19] ss:$0 sm:$0xff]  ;;  %v2655_v14 = vld [vmem:[%s4113_s19 + $0x7] ss:$0 sm:$0xff]  ;;  %v2656_v20 = vld [vmem:[%s4113_s19 + $0x7] sm:$0xfe] }
 0x346   : >> { %v2654_v12 = vld [vmem:[%s4113_s19 - $0x1] sm:$0xfe]  ;;  %v2657_v21 = vld [vmem:[%s4113_s19 + $0xf] ss:$0 sm:$0xff]  ;;  %v2659_v22 = vld [vmem:[%s4113_s19 + $0xf] sm:$0xe]  ;;  %v1273_v23 = vpop.permute.xlu1 %1272  ;;  %v1368_v13 = vsel %vm1292_vm1, %v2655_v14, %v2656_v20 }
 0x347   : >> { %v1357_v17 = vsel %vm1292_vm1, %v1350_v11, %v2654_v12  ;;  %v1379_v24 = vsel %vm1292_vm1, %v2657_v21, %v2659_v22  ;;  %v2660_v25 = vld [vmem:[%s4113_s19 + $0x13] ss:$0 sm:$0xff]  ;;  %v1277_v26 = vsel %vm1112_vm7, %v2631_v45, %v1273_v23  ;;  %2658 = vst [vmem:[%s4113_s19 + $0x8] sm:$0xff] %v1368_v13  ;;  %vm400_vm1 = vcmp.eq.s32.totalorder (%p545_p9), %v388_v16, %v385_v15 }
 0x348   : >> { %1360 = vst [vmem:[%s4113_s19] sm:$0xff] %v1357_v17  ;;  %2661 = vst [vmem:[%s4113_s19 + $0x10] sm:$0xf] %v1379_v24 }
 0x349   : >> { %2637 = vst [vmem:[%s4021_s2 + $0x10] sm:$0xf] %v1277_v26 }
 0x34a   : >> { %v1319_v27 = vld [vmem:[%s1285_s20] ss:$0 sm:$0xff]  ;;  %v2647_v28 = vld [vmem:[%s1285_s20 + $0x11] sm:$0x7]  ;;  %v2648_v29 = vld [vmem:[%s1285_s20 + $0x10] ss:$0 sm:$0xff] }
 0x34b   : >> { %2646 = vst [vmem:[%s4085_s18 + $0x1] sm:$0x1] %v1319_v27  ;;  %v1328_v30 = vsel %vm1327_vm2, %v2644_v6, %v2647_v28  ;;  %v2650_v31 = vld [vmem:[%s1285_s20 + $0x9] sm:$0x7f]  ;;  %v2651_v32 = vld [vmem:[%s1285_s20 + $0x8] ss:$0 sm:$0xff] }
 0x34c   : >> { %v2653_v33 = vld [vmem:[%s1285_s20 + $0x1] sm:$0x7f]  ;;  %2649 = vst [vmem:[%s1285_s20 + $0x10] sm:$0xf] %v1328_v30  ;;  %v1337_v34 = vsel %vm1336_vm3, %v2648_v29, %v2650_v31  ;;  %v417_v6 = vadd.s32 (%p545_p9), 16, %v388_v16  ;;  %v456_v16 = vmov (%p545_p9), %v3638_v16 }
 0x34d   : >> { %v1345_v35 = vsel %vm1336_vm3, %v2651_v32, %v2653_v33  ;;  %2652 = vst [vmem:[%s1285_s20 + $0x8] sm:$0xff] %v1337_v34  ;;  %v485_v16 = vmov (%p545_p9), %v3638_v16 }
 0x34e   : >> { %1347 = vst [vmem:[%s1285_s20] sm:$0xff] %v1345_v35 }
 0x350   : >> { %v1383_v36 = vld [vmem:[%s1349_s21] ss:$0 sm:$0xff]  ;;  %v2663_v37 = vld [vmem:[%s1349_s21 + $0x11] sm:$0x7]  ;;  %v2664_v38 = vld [vmem:[%s1349_s21 + $0x10] ss:$0 sm:$0xff] }
 0x351   : >> { %2662 = vst [vmem:[%s4113_s19 + $0x1] sm:$0x1] %v1383_v36  ;;  %v1392_v39 = vsel %vm1327_vm2, %v2660_v25, %v2663_v37  ;;  %v2666_v40 = vld [vmem:[%s1349_s21 + $0x9] sm:$0x7f]  ;;  %v2667_v18 = vld [vmem:[%s1349_s21 + $0x8] ss:$0 sm:$0xff]  ;;  %vm408_vm2 = vcmp.eq.s32.totalorder (%p545_p9), %v407_v1, %v385_v15 }
 0x352   : >> { %v2669_v19 = vld [vmem:[%s1349_s21 + $0x1] sm:$0x7f]  ;;  %2665 = vst [vmem:[%s1349_s21 + $0x10] sm:$0xf] %v1392_v39  ;;  %v1401_v41 = vsel %vm1336_vm3, %v2664_v38, %v2666_v40  ;;  %v2722_v44 = vld [vmem:[%s389_s3 + $0x8] sm:$0xff] (%p545_p9)  ;;  %v506_v36 = vadd.s32 (%p545_p9), 8, %v485_v16 }
 0x353   : >> { %v1409_v42 = vsel %vm1336_vm3, %v2667_v18, %v2669_v19  ;;  %2668 = vst [vmem:[%s1349_s21 + $0x8] sm:$0xff] %v1401_v41  ;;  %v395_v43 = vld [vmem:[%s389_s3] sm:$0xff] (%p545_p9)  ;;  %v2723_v45 = vld [vmem:[%s389_s3 + $0x10] sm:$0xf] (%p545_p9)  ;;  %v404_v47 = vsel (%p545_p9), %vm2255_vm6, %v2722_v44, 0.0  ;;  %vm418_vm3 = vcmp.eq.s32.totalorder (%p545_p9), %v417_v6, %v385_v15  ;;  %v482_v15 = vmov (%p545_p9), %v3636_v15 }
 0x354   : >> { %1411 = vst [vmem:[%s1349_s21] sm:$0xff] %v1409_v42  ;;  %v396_v46 = vsel (%p545_p9), %vm2255_vm6, %v395_v43, 0.0  ;;  %v414_v48 = vsel (%p545_p9), %vm2255_vm6, %v2723_v45, 0.0  ;;  %v405_v52 = vmul.f32 (%p545_p9), %v404_v47, %v404_v47  ;;  %vm497_vm8 = vcmp.eq.s32.totalorder (%p545_p9), %v485_v16, %v482_v15 }
 0x355   : > { %547 = sbr.rel (!%p545_p9) target bundleno = 318 (0x13e), region = 573  ;;  %v397_v51 = vmul.f32 (%p545_p9), %v396_v46, %v396_v46  ;;  %v415_v53 = vmul.f32 (%p545_p9), %v414_v48, %v414_v48  ;;  %v463_v59 = vld [vmem:[%s457_s11] sm:$0xff] (%p545_p9)  ;;  %v2726_v63 = vld [vmem:[%s457_s11 + $0x8] sm:$0xff] (%p545_p9)  ;;  %v2727_v4 = vld [vmem:[%s457_s11 + $0x10] sm:$0xf] (%p545_p9)  ;;  %v516_v40 = vadd.s32 (%p545_p9), 16, %v485_v16  ;;  %vm507_vm9 = vcmp.eq.s32.totalorder (%p545_p9), %v506_v36, %v482_v15 }
 0x356   : > { %v464_v0 = vsel (%p545_p9), %vm2255_vm6, %v463_v59, 0.0  ;;  %v470_v7 = vsel (%p545_p9), %vm2255_vm6, %v2726_v63, 0.0  ;;  %v409_v11 = vsel (%p545_p9), %vm408_vm2, 0.0, %v405_v52  ;;  %v476_v12 = vsel (%p545_p9), %vm2255_vm6, %v2727_v4, 0.0 }
 0x357   : > { %v411_v57 = vadd.f32 (%p545_p9), %v405_v52, %v397_v51  ;;  %v401_v5 = vsel (%p545_p9), %vm400_vm1, 0.0, %v397_v51  ;;  %v465_v9 = vmul.f32 (%p545_p9), %v464_v0, %v464_v0  ;;  %v419_v17 = vsel (%p545_p9), %vm418_vm3, 0.0, %v415_v53 }
 0x358   : > { %v434_v49 = vld [vmem:[%s428_s0] sm:$0xff] (%p545_p9)  ;;  %v2724_v50 = vld [vmem:[%s428_s0 + $0x8] sm:$0xff] (%p545_p9)  ;;  %v2725_v55 = vld [vmem:[%s428_s0 + $0x10] sm:$0xf] (%p545_p9)  ;;  %v410_v14 = vadd.f32 (%p545_p9), %v409_v11, %v401_v5  ;;  %v471_v21 = vmul.f32 (%p545_p9), %v470_v7, %v470_v7  ;;  %v477_v25 = vmul.f32 (%p545_p9), %v476_v12, %v476_v12  ;;  %vm517_vm10 = vcmp.eq.s32.totalorder (%p545_p9), %v516_v40, %v482_v15 }
 0x359   : > { %v435_v54 = vsel (%p545_p9), %vm2255_vm6, %v434_v49, 0.0  ;;  %v441_v56 = vsel (%p545_p9), %vm2255_vm6, %v2724_v50, 0.0  ;;  %v447_v60 = vsel (%p545_p9), %vm2255_vm6, %v2725_v55, 0.0  ;;  %v421_v61 = vadd.f32 (%p545_p9), %v415_v53, %v411_v57 }
 0x35a   : > { %v436_v58 = vmul.f32 %v435_v54, %v435_v54  ;;  %v442_v62 = vmul.f32 %v441_v56, %v441_v56  ;;  %v448_v3 = vmul.f32 %v447_v60, %v447_v60  ;;  %v420_v13 = vadd.f32 %v419_v17, %v410_v14 }
 0x35b   : > { %v492_v10 = vld [vmem:[%s486_s23] sm:$0xff]  ;;  %v2728_v22 = vld [vmem:[%s486_s23 + $0x8] sm:$0xff]  ;;  %v2729_v26 = vld [vmem:[%s486_s23 + $0x10] sm:$0xf] }
 0x35c   : > { %v438_v2 = vadd.f32 %v436_v58, %v421_v61  ;;  %v493_v23 = vsel %vm2255_vm6, %v492_v10, 0.0  ;;  %v503_v27 = vsel %vm2255_vm6, %v2728_v22, 0.0  ;;  %v437_v28 = vadd.f32 %v436_v58, %v420_v13 }
 0x35d   : > { %v494_v30 = vmul.f32 %v493_v23, %v493_v23  ;;  %v513_v31 = vsel %vm2255_vm6, %v2729_v26, 0.0  ;;  %v504_v34 = vmul.f32 %v503_v27, %v503_v27 }
 0x35e   : > { %v444_v8 = vadd.f32 %v442_v62, %v438_v2  ;;  %v443_v32 = vadd.f32 %v442_v62, %v437_v28  ;;  %v514_v38 = vmul.f32 %v513_v31, %v513_v31 }
 0x35f   : > { %v498_v42 = vsel %vm497_vm8, 0.0, %v494_v30  ;;  %v508_v44 = vsel %vm507_vm9, 0.0, %v504_v34 }
 0x360   : > { %v450_v20 = vadd.f32 %v448_v3, %v444_v8  ;;  %v449_v35 = vadd.f32 %v448_v3, %v443_v32  ;;  %v518_v46 = vsel %vm517_vm10, 0.0, %v514_v38 }
 0x362   : > { %v467_v24 = vadd.f32 %v465_v9, %v450_v20  ;;  %v466_v39 = vadd.f32 %v465_v9, %v449_v35 }
 0x364   : > { %v473_v29 = vadd.f32 %v471_v21, %v467_v24  ;;  %v472_v19 = vadd.f32 %v471_v21, %v466_v39 }
 0x366   : > { %v479_v33 = vadd.f32 %v477_v25, %v473_v29  ;;  %v478_v43 = vadd.f32 %v477_v25, %v472_v19 }
 0x368   : > { %v500_v37 = vadd.f32 %v494_v30, %v479_v33  ;;  %v499_v45 = vadd.f32 %v498_v42, %v478_v43 }
 0x36a   : > { %v510_v18 = vadd.f32 %v504_v34, %v500_v37  ;;  %v509_v47 = vadd.f32 %v508_v44, %v499_v45 }
 0x36c   : > { %v520_v41 = vadd.f32 %v514_v38, %v510_v18  ;;  %v519_v48 = vadd.f32 %v518_v46, %v509_v47 }
 0x36e   : > { %521 = vadd.xlane.f32.xlu0 %v520_v41 }
 0x372   : > { %529 = vadd.xlane.f32.xlu0 %v519_v48 }
 0x3f7   : > { %v522_v49 = vpop.xlane.xlu0 %521 }
 0x3f8   : > { %v523_v50 = vrot.slane %v522_v49, 4 }
 0x3fa   : > { %v524_v51 = vadd.f32 %v523_v50, %v522_v49 }
 0x3fb   : > { %v530_v53 = vpop.xlane.xlu0 %529 }
 0x3fc   : > { %v525_v52 = vrot.slane %v524_v51, 2  ;;  %v531_v54 = vrot.slane %v530_v53, 4 }
 0x3fe   : > { %v532_v55 = vadd.f32 %v531_v54, %v530_v53  ;;  %v526_v56 = vadd.f32 %v525_v52, %v524_v51 }
 0x400   : > { %v533_v57 = vrot.slane %v532_v55, 2  ;;  %v527_v59 = vrot.slane %v526_v56, 1 }
 0x402   : > { %v534_v58 = vadd.f32 %v533_v57, %v532_v55  ;;  %v528_v62 = vadd.f32 %v527_v59, %v526_v56 }
 0x404   : > { %v535_v60 = vrot.slane %v534_v58, 1 }
 0x406   : > { %v536_v61 = vadd.f32 %v535_v60, %v534_v58 }
 0x408   : > { %2760 = vpush %v536_v61 }
 0x409   : > { %2762 = vpush %v528_v62 }
 0x439   : > { %s2761_s24 = spop %2760 }
 0x43a   : > { %s2763_s25 = spop %2762 }
 0x43b   : > { %s539_s26 = smul.f32 1e-10, %s2763_s25 }
 0x43d   : > { %p540_p11 = scmp.le.f32.partialorder %s2761_s24, %s539_s26 }
 0x43f   : > { %p542_p12 = por %p541_p10, %p540_p11 }
 0x441   :  { %1638 = sbr.rel (!%p542_p12) target bundleno = 317 (0x13d), region = 584 }
 0x446 PF:  { %s1639_s27 = smov [#allocation12]  ;;  %v1643_v15 = vmov %v3636_v15  ;;  %v1646_v16 = vmov %v3638_v16  ;;  %s1671_s10 = smov [#allocation15] }
 0x447   :  { %v1675_v15 = vmov %v3636_v15  ;;  %v1678_v16 = vmov %v3638_v16  ;;  %v1647_v63 = vld [vmem:[%s1639_s27] sm:$0xff]  ;;  %vm1650_vm11 = vcmp.eq.s32.totalorder %v1646_v16, %v1643_v15  ;;  %v2730_v0 = vld [vmem:[%s1639_s27 + $0x8] sm:$0xff]  ;;  %v1655_v1 = vadd.s32 8, %v1646_v16  ;;  %v2731_v4 = vld [vmem:[%s1639_s27 + $0x10] sm:$0xf]  ;;  %s1640_s28 = smov [#allocation4]  ;;  %s3515_s16 = smov %s4225_s6  }
 0x448   :  { %v1661_v2 = vadd.s32 16, %v1646_v16  ;;  %vm1682_vm12 = vcmp.eq.s32.totalorder %v1678_v16, %v1675_v15  ;;  %v1651_v3 = vsel %vm1650_vm11, %v1647_v63, 0.0  ;;  %v1687_v5 = vadd.s32 8, %v1678_v16  ;;  %v1679_v7 = vld [vmem:[%s1671_s10] sm:$0xff]  ;;  %v2732_v8 = vld [vmem:[%s1671_s10 + $0x8] sm:$0xff]  ;;  %s1672_s29 = smov [#allocation6] }
 0x449   :  { %v1693_v6 = vadd.s32 16, %v1678_v16  ;;  %vm1656_vm6 = vcmp.eq.s32.totalorder %v1655_v1, %v1643_v15  ;;  %v2733_v9 = vld [vmem:[%s1671_s10 + $0x10] sm:$0xf]  ;;  %v1683_v11 = vsel %vm1682_vm12, %v1679_v7, 0.0  ;;  %s3519_s17 = smov [#allocation8]  }
 0x44a   :  { %vm1662_vm13 = vcmp.eq.s32.totalorder %v1661_v2, %v1643_v15  ;;  %v1657_v10 = vsel %vm1656_vm6, %v2730_v0, %v1651_v3  ;;  %vm1688_vm14 = vcmp.eq.s32.totalorder %v1687_v5, %v1675_v15 }
 0x44b   :  { %vm1694_vm15 = vcmp.eq.s32.totalorder %v1693_v6, %v1675_v15  ;;  %v1663_v12 = vsel %vm1662_vm13, %v2731_v4, %v1657_v10  ;;  %v1689_v14 = vsel %vm1688_vm14, %v2732_v8, %v1683_v11 }
 0x44c   :  { %v1664_v17 = vrot.slane %v1663_v12, 4  ;;  %v1695_v20 = vsel %vm1694_vm15, %v2733_v9, %v1689_v14 }
 0x44d   :  { %v1696_v21 = vrot.slane %v1695_v20, 4 }
 0x44e   :  { %v1665_v22 = vadd.f32 %v1664_v17, %v1663_v12 }
 0x44f   :  { %v1697_v23 = vadd.f32 %v1696_v21, %v1695_v20 }
 0x450   :  { %v1666_v13 = vrot.slane %v1665_v22, 2 }
 0x451   :  { %v1698_v24 = vrot.slane %v1697_v23, 2 }
 0x452   :  { %v1667_v25 = vadd.f32 %v1666_v13, %v1665_v22 }
 0x453   :  { %v1699_v16 = vadd.f32 %v1698_v24, %v1697_v23 }
 0x454   :  { %v1668_v26 = vrot.slane %v1667_v25, 1 }
 0x455   :  { %v1700_v27 = vrot.slane %v1699_v16, 1 }
 0x456   :  { %v1669_v28 = vadd.f32 %v1668_v26, %v1667_v25 }
 0x457   :  { %v1701_v29 = vadd.f32 %v1700_v27, %v1699_v16 }
 0x458   :  { %1670 = vst [vmem:[%s1640_s28] sm:$0x1] %v1669_v28 }
 0x459   :  { %1702 = vst [vmem:[%s1672_s29] sm:$0x1] %v1701_v29 }
 0x45f   :  { %v1707_v15 = vld [vmem:[#allocation4] sm:$0x1] }
 0x460   :  { %1710 = vst [vmem:[#allocation5] sm:$0x1] %v1707_v15  ;;  %v1715_v30 = vld [vmem:[#allocation6] sm:$0x1] }
 0x461   :  { %1718 = vst [vmem:[#allocation7] sm:$0x1] %v1715_v30 }
 0x467   :  { %v1782_v31 = vld [vmem:[#allocation5] sm:$0x1] }
 0x468   :  { %1783 = vst [vmem:[%s4223_s4] sm:$0x1] %v1782_v31  ;;  %v1847_v32 = vld [vmem:[#allocation7] sm:$0x1] }
 0x469   :  { %1848 = vst [vmem:[%s4224_s5] sm:$0x1] %v1847_v32 }
 0x46a LB: > { %v1896_v33 = vld [vmem:[%s3521_s17] sm:$0xff]  ;;  %s1898_s17 = scalar_lea.vmem %s3521_s17, 8   ;;  %s3521_s17 = sphi %s3519_s17, %s1898_s17   ;;  %s3517_s16 = sphi %s3515_s16, %s1899_s16  }
 0x46b   : > { %1897 = vst [vmem:[%s3517_s16] sm:$0xff] %v1896_v33  ;;  %s1899_s16 = scalar_lea.vmem %s3517_s16, 8   ;;  %p1893_p13 = scmp.gt.s32.totalorder %s1898_s17, [#allocation8 + $0x10] }
 0x46c   :  { %s3523_s5 = smov (%p1893_p13), %s4226_s7   ;;  %s3527_s18 = smov (%p1893_p13), [#allocation9]  }
 0x46d   :  { %1895 = sbr.rel (!%p1893_p13) target bundleno = 1130 (0x46a), region = 650 }
 0x472 LB: > { %v1959_v34 = vld [vmem:[%s3529_s18] sm:$0xff]  ;;  %s1961_s18 = scalar_lea.vmem %s3529_s18, 8   ;;  %s3529_s18 = sphi %s3527_s18, %s1961_s18   ;;  %s3525_s5 = sphi %s3523_s5, %s1962_s5  }
 0x473   : > { %1960 = vst [vmem:[%s3525_s5] sm:$0xff] %v1959_v34  ;;  %s1962_s5 = scalar_lea.vmem %s3525_s5, 8   ;;  %p1956_p0 = scmp.gt.s32.totalorder %s1961_s18, [#allocation9 + $0x10] }
 0x474   :  { %s3531_s20 = smov (%p1956_p0), %s4227_s8   ;;  %s3535_s21 = smov (%p1956_p0), [#allocation10]  }
 0x475   :  { %1958 = sbr.rel (!%p1956_p0) target bundleno = 1138 (0x472), region = 672 }
 0x47a LB: > { %v2022_v35 = vld [vmem:[%s3537_s21] sm:$0xff]  ;;  %s2024_s21 = scalar_lea.vmem %s3537_s21, 8   ;;  %s3537_s21 = sphi %s3535_s21, %s2024_s21   ;;  %s3533_s20 = sphi %s3531_s20, %s2025_s20  }
 0x47b   : > { %2023 = vst [vmem:[%s3533_s20] sm:$0xff] %v2022_v35  ;;  %s2025_s20 = scalar_lea.vmem %s3533_s20, 8   ;;  %p2019_p1 = scmp.gt.s32.totalorder %s2024_s21, [#allocation10 + $0x10] }
 0x47c   :  { %s3539_s3 = smov (%p2019_p1), %s4228_s9   ;;  %s3543_s0 = smov (%p2019_p1), [#allocation11]  }
 0x47d   :  { %2021 = sbr.rel (!%p2019_p1) target bundleno = 1146 (0x47a), region = 694 }
 0x482 LB: > { %v2085_v36 = vld [vmem:[%s3545_s0] sm:$0xff]  ;;  %s2087_s0 = scalar_lea.vmem %s3545_s0, 8   ;;  %s3545_s0 = sphi %s3543_s0, %s2087_s0   ;;  %s3541_s3 = sphi %s3539_s3, %s2088_s3  }
 0x483   : > { %2086 = vst [vmem:[%s3541_s3] sm:$0xff] %v2085_v36  ;;  %s2088_s3 = scalar_lea.vmem %s3541_s3, 8   ;;  %p2082_p2 = scmp.gt.s32.totalorder %s2087_s0, [#allocation11 + $0x10] }
 0x485   :  { %2084 = sbr.rel (!%p2082_p2) target bundleno = 1154 (0x482), region = 716 }

// kernel: custom-call.14
= control target key start
LH: loop header
LB: loop body
LE: loop exit
PB: predicated region body
PF: predicated region fallthrough
CT: control target
= control target key end

     0   :  { %v2177_v0 = vmov 0.0   ;;  %vm60_vm0 = vcmask 7168   ;;  %vm130_vm1 = vcmask 15368   ;;  %vm147_vm2 = vcmask 1047553   ;;  %s2804_s0 = inlined_call_operand.vmem [shape: f32[39,39], index: 0, kind: input, shape index: {}]   ;;  %s2805_s1 = inlined_call_operand.vmem [shape: f32[39,39], index: 1, kind: output, shape index: {}]  }
   0x1   :  { %51 = vst [vmem:[#allocation1] sm:$0xff] %v2177_v0  ;;  %v2193_v4 = vld [vmem:[%s2804_s0] sm:$0xff]  ;;  %v2211_v16 = vld [vmem:[%s2804_s0 + $0x8] sm:$0xff]  ;;  %vm148_vm3 = vmand %vm130_vm1, %vm147_vm2  ;;  %vm204_vm4 = vcmask 23568   ;;  %vm221_vm5 = vcmask 1047554   ;;  %vm278_vm7 = vcmask 31768  }
   0x2   :  { %39 = vst [vmem:[#allocation0] sm:$0xff] %v2193_v4  ;;  %41 = vst [vmem:[#allocation0 + $0x8] sm:$0xff] %v2211_v16  ;;  %v2233_v34 = vld [vmem:[%s2804_s0 + $0x10] sm:$0xff]  ;;  %v2254_v55 = vld [vmem:[%s2804_s0 + $0x18] sm:$0xff]  ;;  %vm295_vm8 = vcmask 1047555   ;;  %vm352_vm10 = vcmask 39968  }
   0x3   :  { %43 = vst [vmem:[#allocation0 + $0x10] sm:$0xff] %v2233_v34  ;;  %vm222_vm6 = vmand %vm204_vm4, %vm221_vm5  ;;  %vm369_vm11 = vcmask 1047556   ;;  %vm426_vm13 = vcmask 48168   ;;  %vm443_vm14 = vcmask 1047557  }
   0x4   :  { %45 = vst [vmem:[#allocation0 + $0x18] sm:$0xff] %v2254_v55  ;;  %vm296_vm9 = vmand %vm278_vm7, %vm295_vm8 }
   0x5   :  { %vm370_vm12 = vmand %vm352_vm10, %vm369_vm11 }
   0x6   :  { %vm444_vm15 = vmand %vm426_vm13, %vm443_vm14 }
   0x8   :  { %v61_v1 = vld [vmem:[#allocation1] ss:$0 sm:$0xff] }
   0x9   :  { %v63_v2 = vmul.f32 %v61_v1, %v61_v1  ;;  %v2188_v3 = vmul.f32 0.0, %v61_v1  ;;  %v62_v5 = vld [vmem:[#allocation0] ss:$0 sm:$0xff]  ;;  %v134_v17 = vld [vmem:[#allocation0 + $0x1] ss:$0 sm:$0xff] }
   0xa   :  { %v208_v41 = vld [vmem:[#allocation0 + $0x2] ss:$0 sm:$0xff] }
   0xb   :  { %64 = vadd.xlane.f32.xlu0 %v63_v2 }
   0xf   :  { %71 = vadd.xlane.f32.xlu0 %v2188_v3 }
  0x94   :  { %v65_v6 = vpop.xlane.xlu0 %64 }
  0x95   :  { %v66_v7 = vsub.f32 %v62_v5, %v65_v6 }
  0x97   :  { %2097 = vrsqrt.f32 %v66_v7 }
  0x98   :  { %v72_v8 = vpop.xlane.xlu0 %71 }
  0x99   :  { %v73_v9 = vsub.f32 %v2193_v4, %v72_v8 }
  0xa4   :  { %v2198_v10 = vpop.eup %2097 }
  0xa5   :  { %v74_v11 = vmul.f32 %v2198_v10, %v73_v9  ;;  %v282_v9 = vld [vmem:[#allocation0 + $0x3] ss:$0 sm:$0xff] }
  0xa7   :  { %v75_v12 = vsel %vm60_vm0, %v74_v11, 0.0 }
  0xa8   :  { %77 = vst [vmem:[#allocation1] sm:$0xff] %v75_v12 }
  0xaf   :  { %v2202_v13 = vld [vmem:[#allocation1 + $0x1] ss:$0 sm:$0xff] }
  0xb0   :  { %v142_v14 = vmul.f32 %v2202_v13, %v75_v12  ;;  %v135_v15 = vmul.f32 %v2202_v13, %v2202_v13 }
  0xb2   :  { %143 = vadd.xlane.f32.xlu0 %v142_v14  ;;  %136 = vadd.xlane.f32.xlu1 %v135_v15 }
  0xb6   :  { %83 = vadd.xlane.f32.xlu1 %v2188_v3 }
 0x13b   :  { %v137_v18 = vpop.xlane.xlu1 %136  ;;  %v144_v24 = vpop.xlane.xlu0 %143 }
 0x13c   :  { %v138_v19 = vsub.f32 %v134_v17, %v137_v18  ;;  %v145_v26 = vsub.f32 %v2193_v4, %v144_v24 }
 0x13e   :  { %2099 = vrsqrt.f32 %v138_v19 }
 0x13f   :  { %v84_v20 = vpop.xlane.xlu1 %83 }
 0x140   :  { %v85_v21 = vsub.f32 %v2211_v16, %v84_v20 }
 0x142   :  { %v86_v22 = vmul.f32 %v2198_v10, %v85_v21 }
 0x144   :  { %v87_v23 = vsel %vm60_vm0, %v86_v22, 0.0 }
 0x145   :  { %v156_v25 = vmul.f32 %v2202_v13, %v87_v23 }
 0x147   :  { %157 = vadd.xlane.f32.xlu1 %v156_v25 }
 0x14b   :  { %v2219_v27 = vpop.eup %2099 }
 0x14c   :  { %v146_v28 = vmul.f32 %v2219_v27, %v145_v26 }
 0x14e   :  { %v149_v29 = vsel %vm148_vm3, %v146_v28, 0.0 }
 0x14f   :  { %v150_v30 = vadd.f32 %v149_v29, %v75_v12 }
 0x151   :  { %151 = vst [vmem:[#allocation1] sm:$0xff] %v150_v30 }
 0x158   :  { %v2224_v31 = vld [vmem:[#allocation1 + $0x2] ss:$0 sm:$0xff] }
 0x159   :  { %v209_v32 = vmul.f32 %v2224_v31, %v2224_v31  ;;  %v216_v33 = vmul.f32 %v2224_v31, %v150_v30 }
 0x15b   :  { %210 = vadd.xlane.f32.xlu0 %v209_v32  ;;  %217 = vadd.xlane.f32.xlu1 %v216_v33 }
 0x15f   :  { %96 = vadd.xlane.f32.xlu0 %v2188_v3 }
 0x1d0   :  { %v158_v35 = vpop.xlane.xlu1 %157 }
 0x1d1   :  { %v159_v36 = vsub.f32 %v2211_v16, %v158_v35 }
 0x1d3   :  { %v160_v37 = vmul.f32 %v2219_v27, %v159_v36 }
 0x1d5   :  { %v161_v38 = vsel %vm130_vm1, %v160_v37, 0.0 }
 0x1d6   :  { %v162_v39 = vadd.f32 %v161_v38, %v87_v23 }
 0x1d8   :  { %v230_v40 = vmul.f32 %v2224_v31, %v162_v39 }
 0x1da   :  { %231 = vadd.xlane.f32.xlu1 %v230_v40 }
 0x1e4   :  { %v211_v42 = vpop.xlane.xlu0 %210  ;;  %v218_v48 = vpop.xlane.xlu1 %217 }
 0x1e5   :  { %v212_v43 = vsub.f32 %v208_v41, %v211_v42  ;;  %v219_v50 = vsub.f32 %v2193_v4, %v218_v48 }
 0x1e7   :  { %2101 = vrsqrt.f32 %v212_v43 }
 0x1e8   :  { %v97_v44 = vpop.xlane.xlu0 %96 }
 0x1e9   :  { %v98_v45 = vsub.f32 %v2233_v34, %v97_v44  ;;  %v356_v44 = vld [vmem:[#allocation0 + $0x4] ss:$0 sm:$0xff] }
 0x1eb   :  { %v99_v46 = vmul.f32 %v2198_v10, %v98_v45 }
 0x1ed   :  { %v100_v47 = vsel %vm60_vm0, %v99_v46, 0.0 }
 0x1ee   :  { %v169_v49 = vmul.f32 %v2202_v13, %v100_v47 }
 0x1f0   :  { %170 = vadd.xlane.f32.xlu1 %v169_v49 }
 0x1f4   :  { %v2245_v51 = vpop.eup %2101  ;;  %109 = vadd.xlane.f32.xlu1 %v2188_v3 }
 0x1f5   :  { %v220_v52 = vmul.f32 %v2245_v51, %v219_v50 }
 0x1f7   :  { %v223_v53 = vsel %vm222_vm6, %v220_v52, 0.0  ;;  %vm648_vm6 = vcmask 72768  }
 0x1f8   :  { %v224_v54 = vadd.f32 %v223_v53, %v150_v30  ;;  %v2289_v30 = vld [vmem:[%s2804_s0 + $0x20] sm:$0xff] }
 0x1f9   :  { %47 = vst [vmem:[#allocation0 + $0x20] sm:$0xff] %v2289_v30 }
 0x1fa   :  { %225 = vst [vmem:[#allocation1] sm:$0xff] %v224_v54 }
 0x201   :  { %v2257_v56 = vld [vmem:[#allocation1 + $0x3] ss:$0 sm:$0xff] }
 0x202   :  { %v283_v57 = vmul.f32 %v2257_v56, %v2257_v56  ;;  %v290_v58 = vmul.f32 %v2257_v56, %v224_v54 }
 0x204   :  { %284 = vadd.xlane.f32.xlu0 %v283_v57 }
 0x208   :  { %291 = vadd.xlane.f32.xlu0 %v290_v58 }
 0x263   :  { %v232_v59 = vpop.xlane.xlu1 %231 }
 0x264   :  { %v233_v60 = vsub.f32 %v2211_v16, %v232_v59 }
 0x266   :  { %v234_v61 = vmul.f32 %v2245_v51, %v233_v60 }
 0x268   :  { %v235_v62 = vsel %vm204_vm4, %v234_v61, 0.0 }
 0x269   :  { %v236_v63 = vadd.f32 %v235_v62, %v162_v39 }
 0x26b   :  { %v304_v0 = vmul.f32 %v2257_v56, %v236_v63 }
 0x26d   :  { %305 = vadd.xlane.f32.xlu0 %v304_v0 }
 0x279   :  { %v171_v1 = vpop.xlane.xlu1 %170 }
 0x27a   :  { %v172_v2 = vsub.f32 %v2233_v34, %v171_v1 }
 0x27c   :  { %v173_v5 = vmul.f32 %v2219_v27, %v172_v2 }
 0x27d   :  { %v110_v18 = vpop.xlane.xlu1 %109 }
 0x27e   :  { %v174_v6 = vsel %vm130_vm1, %v173_v5, 0.0  ;;  %v111_v20 = vsub.f32 %v2254_v55, %v110_v18 }
 0x27f   :  { %v175_v7 = vadd.f32 %v174_v6, %v100_v47 }
 0x280   :  { %v112_v23 = vmul.f32 %v2198_v10, %v111_v20 }
 0x281   :  { %v243_v8 = vmul.f32 %v2224_v31, %v175_v7 }
 0x282   :  { %v113_v24 = vsel %vm60_vm0, %v112_v23, 0.0 }
 0x283   :  { %244 = vadd.xlane.f32.xlu1 %v243_v8  ;;  %v182_v29 = vmul.f32 %v2202_v13, %v113_v24 }
 0x28d   :  { %v285_v11 = vpop.xlane.xlu0 %284 }
 0x28e   :  { %v286_v12 = vsub.f32 %v282_v9, %v285_v11 }
 0x290   :  { %2103 = vrsqrt.f32 %v286_v12 }
 0x291   :  { %v292_v14 = vpop.xlane.xlu0 %291 }
 0x292   :  { %v293_v15 = vsub.f32 %v2193_v4, %v292_v14 }
 0x29d   :  { %v2271_v17 = vpop.eup %2103 }
 0x29e   :  { %v294_v19 = vmul.f32 %v2271_v17, %v293_v15 }
 0x2a0   :  { %v297_v21 = vsel %vm296_vm9, %v294_v19, 0.0 }
 0x2a1   :  { %v298_v22 = vadd.f32 %v297_v21, %v224_v54 }
 0x2a3   :  { %299 = vst [vmem:[#allocation1] sm:$0xff] %v298_v22 }
 0x2aa   :  { %v2279_v25 = vld [vmem:[#allocation1 + $0x4] ss:$0 sm:$0xff] }
 0x2ab   :  { %v357_v26 = vmul.f32 %v2279_v25, %v2279_v25  ;;  %v364_v28 = vmul.f32 %v2279_v25, %v298_v22 }
 0x2ad   :  { %358 = vadd.xlane.f32.xlu0 %v357_v26  ;;  %365 = vadd.xlane.f32.xlu1 %v364_v28 }
 0x2b1   :  { %122 = vadd.xlane.f32.xlu1 %v2188_v3  ;;  %183 = vadd.xlane.f32.xlu0 %v182_v29 }
 0x2f6   :  { %v306_v32 = vpop.xlane.xlu0 %305 }
 0x2f7   :  { %v307_v33 = vsub.f32 %v2211_v16, %v306_v32  ;;  %v430_v32 = vld [vmem:[#allocation0 + $0x5] ss:$0 sm:$0xff] }
 0x2f9   :  { %v308_v35 = vmul.f32 %v2271_v17, %v307_v33 }
 0x2fb   :  { %v309_v36 = vsel %vm278_vm7, %v308_v35, 0.0 }
 0x2fc   :  { %v310_v37 = vadd.f32 %v309_v36, %v236_v63 }
 0x2fe   :  { %v378_v38 = vmul.f32 %v2279_v25, %v310_v37 }
 0x300   :  { %379 = vadd.xlane.f32.xlu0 %v378_v38 }
 0x30c   :  { %v245_v3 = vpop.xlane.xlu1 %244 }
 0x30d   :  { %v246_v39 = vsub.f32 %v2233_v34, %v245_v3 }
 0x30f   :  { %v247_v40 = vmul.f32 %v2245_v51, %v246_v39 }
 0x311   :  { %v248_v41 = vsel %vm204_vm4, %v247_v40, 0.0 }
 0x312   :  { %v249_v42 = vadd.f32 %v248_v41, %v175_v7 }
 0x314   :  { %v317_v43 = vmul.f32 %v2257_v56, %v249_v42 }
 0x316   :  { %318 = vadd.xlane.f32.xlu1 %v317_v43 }
 0x336   :  { %v359_v45 = vpop.xlane.xlu0 %358  ;;  %v366_v46 = vpop.xlane.xlu1 %365 }
 0x337   :  { %v360_v47 = vsub.f32 %v356_v44, %v359_v45  ;;  %v367_v61 = vsub.f32 %v2193_v4, %v366_v46 }
 0x339   :  { %2105 = vrsqrt.f32 %v360_v47 }
 0x33a   :  { %v184_v48 = vpop.xlane.xlu0 %183  ;;  %v123_v49 = vpop.xlane.xlu1 %122 }
 0x33b   :  { %v185_v50 = vsub.f32 %v2254_v55, %v184_v48  ;;  %v124_v52 = vsub.f32 %v2289_v30, %v123_v49 }
 0x33d   :  { %v186_v53 = vmul.f32 %v2219_v27, %v185_v50  ;;  %v125_v54 = vmul.f32 %v2198_v10, %v124_v52 }
 0x33f   :  { %v187_v57 = vsel %vm130_vm1, %v186_v53, 0.0  ;;  %v126_v58 = vsel %vm60_vm0, %v125_v54, 0.0  ;;  %vm500_vm0 = vcmask 56368  }
 0x340   :  { %v188_v59 = vadd.f32 %v187_v57, %v113_v24  ;;  %v195_v63 = vmul.f32 %v2202_v13, %v126_v58 }
 0x342   :  { %v256_v60 = vmul.f32 %v2224_v31, %v188_v59 }
 0x344   :  { %257 = vadd.xlane.f32.xlu1 %v256_v60 }
 0x346   :  { %v2308_v62 = vpop.eup %2105 }
 0x347   :  { %v368_v10 = vmul.f32 %v2308_v62, %v367_v61 }
 0x348   :  { %196 = vadd.xlane.f32.xlu1 %v195_v63 }
 0x349   :  { %v371_v0 = vsel %vm370_vm12, %v368_v10, 0.0 }
 0x34a   :  { %v372_v1 = vadd.f32 %v371_v0, %v298_v22 }
 0x34c   :  { %373 = vst [vmem:[#allocation1] sm:$0xff] %v372_v1 }
 0x353   :  { %v2314_v2 = vld [vmem:[#allocation1 + $0x5] ss:$0 sm:$0xff] }
 0x354   :  { %v431_v5 = vmul.f32 %v2314_v2, %v2314_v2  ;;  %v438_v6 = vmul.f32 %v2314_v2, %v372_v1 }
 0x356   :  { %432 = vadd.xlane.f32.xlu0 %v431_v5 }
 0x35a   :  { %439 = vadd.xlane.f32.xlu0 %v438_v6 }
 0x389   :  { %v380_v7 = vpop.xlane.xlu0 %379 }
 0x38a   :  { %v381_v8 = vsub.f32 %v2211_v16, %v380_v7 }
 0x38c   :  { %v382_v13 = vmul.f32 %v2308_v62, %v381_v8  ;;  %v504_v8 = vld [vmem:[#allocation0 + $0x6] ss:$0 sm:$0xff] }
 0x38e   :  { %v383_v9 = vsel %vm352_vm10, %v382_v13, 0.0 }
 0x38f   :  { %v384_v11 = vadd.f32 %v383_v9, %v310_v37 }
 0x391   :  { %v452_v12 = vmul.f32 %v2314_v2, %v384_v11 }
 0x393   :  { %453 = vadd.xlane.f32.xlu0 %v452_v12 }
 0x39f   :  { %v319_v14 = vpop.xlane.xlu1 %318 }
 0x3a0   :  { %v320_v15 = vsub.f32 %v2233_v34, %v319_v14 }
 0x3a2   :  { %v321_v18 = vmul.f32 %v2271_v17, %v320_v15 }
 0x3a4   :  { %v322_v19 = vsel %vm278_vm7, %v321_v18, 0.0 }
 0x3a5   :  { %v323_v20 = vadd.f32 %v322_v19, %v249_v42 }
 0x3a7   :  { %v391_v21 = vmul.f32 %v2279_v25, %v323_v20 }
 0x3a9   :  { %392 = vadd.xlane.f32.xlu1 %v391_v21 }
 0x3cd   :  { %v258_v22 = vpop.xlane.xlu1 %257 }
 0x3ce   :  { %v259_v23 = vsub.f32 %v2254_v55, %v258_v22 }
 0x3d0   :  { %v260_v24 = vmul.f32 %v2245_v51, %v259_v23 }
 0x3d1   :  { %v197_v3 = vpop.xlane.xlu1 %196 }
 0x3d2   :  { %v261_v26 = vsel %vm204_vm4, %v260_v24, 0.0  ;;  %v198_v40 = vsub.f32 %v2289_v30, %v197_v3 }
 0x3d3   :  { %v262_v28 = vadd.f32 %v261_v26, %v188_v59 }
 0x3d4   :  { %v199_v43 = vmul.f32 %v2219_v27, %v198_v40 }
 0x3d5   :  { %v330_v29 = vmul.f32 %v2257_v56, %v262_v28 }
 0x3d6   :  { %v200_v44 = vsel %vm130_vm1, %v199_v43, 0.0  ;;  %vm517_vm1 = vcmask 1047558  }
 0x3d7   :  { %331 = vadd.xlane.f32.xlu0 %v330_v29  ;;  %v201_v46 = vadd.f32 %v200_v44, %v126_v58  ;;  %vm518_vm3 = vmand %vm500_vm0, %vm517_vm1 }
 0x3d9   :  { %v269_v49 = vmul.f32 %v2224_v31, %v201_v46 }
 0x3df   :  { %v433_v33 = vpop.xlane.xlu0 %432 }
 0x3e0   :  { %v434_v35 = vsub.f32 %v430_v32, %v433_v33 }
 0x3e2   :  { %2107 = vrsqrt.f32 %v434_v35 }
 0x3e3   :  { %v440_v36 = vpop.xlane.xlu0 %439 }
 0x3e4   :  { %v441_v37 = vsub.f32 %v2193_v4, %v440_v36 }
 0x3ef   :  { %v2332_v38 = vpop.eup %2107 }
 0x3f0   :  { %v442_v39 = vmul.f32 %v2332_v38, %v441_v37 }
 0x3f2   :  { %v445_v41 = vsel %vm444_vm15, %v442_v39, 0.0 }
 0x3f3   :  { %v446_v42 = vadd.f32 %v445_v41, %v372_v1 }
 0x3f5   :  { %447 = vst [vmem:[#allocation1] sm:$0xff] %v446_v42 }
 0x3fc   :  { %v2340_v45 = vld [vmem:[#allocation1 + $0x6] ss:$0 sm:$0xff] }
 0x3fd   :  { %v505_v47 = vmul.f32 %v2340_v45, %v2340_v45  ;;  %v512_v48 = vmul.f32 %v2340_v45, %v446_v42 }
 0x3ff   :  { %506 = vadd.xlane.f32.xlu1 %v505_v47  ;;  %513 = vadd.xlane.f32.xlu0 %v512_v48 }
 0x403   :  { %270 = vadd.xlane.f32.xlu1 %v269_v49 }
 0x41c   :  { %v454_v50 = vpop.xlane.xlu0 %453 }
 0x41d   :  { %v455_v52 = vsub.f32 %v2211_v16, %v454_v50 }
 0x41f   :  { %v456_v27 = vmul.f32 %v2332_v38, %v455_v52 }
 0x421   :  { %v457_v53 = vsel %vm426_vm13, %v456_v27, 0.0 }
 0x422   :  { %v458_v54 = vadd.f32 %v457_v53, %v384_v11 }
 0x424   :  { %v526_v57 = vmul.f32 %v2340_v45, %v458_v54 }
 0x426   :  { %527 = vadd.xlane.f32.xlu0 %v526_v57  ;;  %v578_v57 = vld [vmem:[#allocation0 + $0x7] ss:$0 sm:$0xff] }
 0x432   :  { %v393_v58 = vpop.xlane.xlu1 %392 }
 0x433   :  { %v394_v59 = vsub.f32 %v2233_v34, %v393_v58 }
 0x435   :  { %v395_v60 = vmul.f32 %v2308_v62, %v394_v59 }
 0x437   :  { %v396_v61 = vsel %vm352_vm10, %v395_v60, 0.0 }
 0x438   :  { %v397_v31 = vadd.f32 %v396_v61, %v323_v20 }
 0x43a   :  { %v465_v63 = vmul.f32 %v2314_v2, %v397_v31 }
 0x43c   :  { %466 = vadd.xlane.f32.xlu1 %v465_v63 }
 0x460   :  { %v332_v10 = vpop.xlane.xlu0 %331 }
 0x461   :  { %v333_v0 = vsub.f32 %v2254_v55, %v332_v10 }
 0x463   :  { %v334_v1 = vmul.f32 %v2271_v17, %v333_v0 }
 0x465   :  { %v335_v5 = vsel %vm278_vm7, %v334_v1, 0.0 }
 0x466   :  { %v336_v6 = vadd.f32 %v335_v5, %v262_v28 }
 0x468   :  { %v404_v7 = vmul.f32 %v2279_v25, %v336_v6 }
 0x46a   :  { %405 = vadd.xlane.f32.xlu0 %v404_v7 }
 0x488   :  { %v507_v13 = vpop.xlane.xlu1 %506  ;;  %v514_v19 = vpop.xlane.xlu0 %513 }
 0x489   :  { %v508_v9 = vsub.f32 %v504_v8, %v507_v13  ;;  %v515_v21 = vsub.f32 %v2193_v4, %v514_v19 }
 0x48b   :  { %2109 = vrsqrt.f32 %v508_v9 }
 0x48c   :  { %v271_v11 = vpop.xlane.xlu1 %270 }
 0x48d   :  { %v272_v12 = vsub.f32 %v2289_v30, %v271_v11 }
 0x48f   :  { %v273_v14 = vmul.f32 %v2245_v51, %v272_v12 }
 0x491   :  { %v274_v15 = vsel %vm204_vm4, %v273_v14, 0.0  ;;  %vm574_vm4 = vcmask 64568  }
 0x492   :  { %v275_v18 = vadd.f32 %v274_v15, %v201_v46 }
 0x494   :  { %v343_v20 = vmul.f32 %v2257_v56, %v275_v18 }
 0x496   :  { %344 = vadd.xlane.f32.xlu0 %v343_v20 }
 0x498   :  { %v2363_v22 = vpop.eup %2109 }
 0x499   :  { %v516_v23 = vmul.f32 %v2363_v22, %v515_v21 }
 0x49b   :  { %v519_v24 = vsel %vm518_vm3, %v516_v23, 0.0 }
 0x49c   :  { %v520_v51 = vadd.f32 %v519_v24, %v446_v42 }
 0x49e   :  { %521 = vst [vmem:[#allocation1] sm:$0xff] %v520_v51 }
 0x4a5   :  { %v2368_v26 = vld [vmem:[#allocation1 + $0x7] ss:$0 sm:$0xff] }
 0x4a6   :  { %v579_v56 = vmul.f32 %v2368_v26, %v2368_v26 }
 0x4a8   :  { %580 = vadd.xlane.f32.xlu1 %v579_v56 }
 0x4af   :  { %v528_v28 = vpop.xlane.xlu0 %527 }
 0x4b0   :  { %v529_v29 = vsub.f32 %v2211_v16, %v528_v28  ;;  %v652_v28 = vld [vmem:[#allocation0 + $0x8] ss:$0 sm:$0xff] }
 0x4b2   :  { %v530_v4 = vmul.f32 %v2363_v22, %v529_v29 }
 0x4b4   :  { %v531_v32 = vsel %vm500_vm0, %v530_v4, 0.0 }
 0x4b5   :  { %v532_v33 = vadd.f32 %v531_v32, %v458_v54 }
 0x4b7   :  { %v600_v35 = vmul.f32 %v2368_v26, %v532_v33 }
 0x4b9   :  { %601 = vadd.xlane.f32.xlu1 %v600_v35 }
 0x4c5   :  { %v467_v36 = vpop.xlane.xlu1 %466 }
 0x4c6   :  { %v468_v37 = vsub.f32 %v2233_v34, %v467_v36 }
 0x4c8   :  { %v469_v3 = vmul.f32 %v2332_v38, %v468_v37 }
 0x4ca   :  { %v470_v39 = vsel %vm426_vm13, %v469_v3, 0.0 }
 0x4cb   :  { %v471_v40 = vadd.f32 %v470_v39, %v397_v31 }
 0x4cd   :  { %v539_v41 = vmul.f32 %v2340_v45, %v471_v40 }
 0x4cf   :  { %540 = vadd.xlane.f32.xlu0 %v539_v41 }
 0x4f3   :  { %v406_v42 = vpop.xlane.xlu0 %405 }
 0x4f4   :  { %v407_v43 = vsub.f32 %v2254_v55, %v406_v42 }
 0x4f6   :  { %v408_v44 = vmul.f32 %v2308_v62, %v407_v43 }
 0x4f8   :  { %v409_v46 = vsel %vm352_vm10, %v408_v44, 0.0 }
 0x4f9   :  { %v410_v47 = vadd.f32 %v409_v46, %v336_v6 }
 0x4fb   :  { %v478_v48 = vmul.f32 %v2314_v2, %v410_v47 }
 0x4fd   :  { %479 = vadd.xlane.f32.xlu1 %v478_v48 }
 0x51f   :  { %v345_v49 = vpop.xlane.xlu0 %344 }
 0x520   :  { %v346_v50 = vsub.f32 %v2289_v30, %v345_v49 }
 0x522   :  { %v347_v52 = vmul.f32 %v2271_v17, %v346_v50 }
 0x524   :  { %v348_v27 = vsel %vm278_vm7, %v347_v52, 0.0  ;;  %vm710_vm7 = vcmask 80968  }
 0x525   :  { %v349_v53 = vadd.f32 %v348_v27, %v275_v18  ;;  %vm730_vm9 = vmand %vm710_vm7, %vm147_vm2 }
 0x527   :  { %v417_v54 = vmul.f32 %v2279_v25, %v349_v53 }
 0x529   :  { %418 = vadd.xlane.f32.xlu0 %v417_v54 }
 0x531   :  { %v581_v58 = vpop.xlane.xlu1 %580 }
 0x532   :  { %v582_v59 = vsub.f32 %v578_v57, %v581_v58 }
 0x534   :  { %2111 = vrsqrt.f32 %v582_v59 }
 0x541   :  { %v2389_v31 = vpop.eup %2111 }
 0x542   :  { %v602_v60 = vpop.xlane.xlu1 %601 }
 0x543   :  { %v603_v61 = vsub.f32 %v2211_v16, %v602_v60 }
 0x545   :  { %v604_v63 = vmul.f32 %v2389_v31, %v603_v61 }
 0x547   :  { %v605_v17 = vsel %vm574_vm4, %v604_v63, 0.0 }
 0x548   :  { %v606_v10 = vadd.f32 %v605_v17, %v532_v33 }
 0x54a   :  { %608 = vst [vmem:[#allocation1 + $0x8] sm:$0xff] %v606_v10 }
 0x551   :  { %v2393_v0 = vld [vmem:[#allocation1 + $0x8] ss:$0 sm:$0xff] }
 0x552   :  { %v662_v25 = vmul.f32 %v2393_v0, %v606_v10  ;;  %v653_v1 = vmul.f32 %v2393_v0, %v2393_v0 }
 0x554   :  { %663 = vadd.xlane.f32.xlu0 %v662_v25  ;;  %654 = vadd.xlane.f32.xlu1 %v653_v1  ;;  %v714_v25 = vld [vmem:[#allocation0 + $0x9] ss:$0 sm:$0xff] }
 0x558   :  { %v541_v5 = vpop.xlane.xlu0 %540 }
 0x559   :  { %v542_v6 = vsub.f32 %v2233_v34, %v541_v5 }
 0x55b   :  { %v543_v7 = vmul.f32 %v2363_v22, %v542_v6 }
 0x55d   :  { %v544_v8 = vsel %vm500_vm0, %v543_v7, 0.0 }
 0x55e   :  { %v545_v13 = vadd.f32 %v544_v8, %v471_v40 }
 0x560   :  { %v613_v9 = vmul.f32 %v2368_v26, %v545_v13 }
 0x562   :  { %614 = vadd.xlane.f32.xlu1 %v613_v9 }
 0x586   :  { %v480_v11 = vpop.xlane.xlu1 %479 }
 0x587   :  { %v481_v12 = vsub.f32 %v2254_v55, %v480_v11 }
 0x589   :  { %v482_v14 = vmul.f32 %v2332_v38, %v481_v12 }
 0x58b   :  { %v483_v15 = vsel %vm426_vm13, %v482_v14, 0.0 }
 0x58c   :  { %v484_v18 = vadd.f32 %v483_v15, %v410_v47 }
 0x58e   :  { %v552_v19 = vmul.f32 %v2340_v45, %v484_v18 }
 0x590   :  { %553 = vadd.xlane.f32.xlu0 %v552_v19 }
 0x5b2   :  { %v419_v20 = vpop.xlane.xlu0 %418 }
 0x5b3   :  { %v420_v21 = vsub.f32 %v2289_v30, %v419_v20 }
 0x5b5   :  { %v421_v23 = vmul.f32 %v2308_v62, %v420_v21 }
 0x5b7   :  { %v422_v24 = vsel %vm352_vm10, %v421_v23, 0.0  ;;  %vm774_vm10 = vcmask 89168  }
 0x5b8   :  { %v423_v51 = vadd.f32 %v422_v24, %v349_v53  ;;  %vm794_vm12 = vmand %vm774_vm10, %vm221_vm5 }
 0x5ba   :  { %v491_v56 = vmul.f32 %v2314_v2, %v423_v51 }
 0x5bc   :  { %492 = vadd.xlane.f32.xlu1 %v491_v56 }
 0x5dd   :  { %v655_v29 = vpop.xlane.xlu1 %654  ;;  %v664_v32 = vpop.xlane.xlu0 %663 }
 0x5de   :  { %v656_v4 = vsub.f32 %v652_v28, %v655_v29  ;;  %v665_v35 = vsub.f32 %v2211_v16, %v664_v32 }
 0x5e0   :  { %2113 = vrsqrt.f32 %v656_v4 }
 0x5eb   :  { %v615_v33 = vpop.xlane.xlu1 %614 }
 0x5ec   :  { %v616_v36 = vsub.f32 %v2233_v34, %v615_v33 }
 0x5ed   :  { %v2412_v37 = vpop.eup %2113 }
 0x5ee   :  { %v666_v62 = vmul.f32 %v2412_v37, %v665_v35  ;;  %v617_v3 = vmul.f32 %v2389_v31, %v616_v36 }
 0x5f0   :  { %v667_v2 = vsel %vm648_vm6, %v666_v62, 0.0  ;;  %v618_v39 = vsel %vm574_vm4, %v617_v3, 0.0 }
 0x5f1   :  { %v668_v40 = vadd.f32 %v667_v2, %v606_v10  ;;  %v619_v41 = vadd.f32 %v618_v39, %v545_v13  ;;  %v778_v39 = vld [vmem:[#allocation0 + $0xa] ss:$0 sm:$0xff] }
 0x5f3   :  { %670 = vst [vmem:[#allocation1 + $0x8] sm:$0xff] %v668_v40  ;;  %v675_v42 = vmul.f32 %v2393_v0, %v619_v41 }
 0x5f5   :  { %676 = vadd.xlane.f32.xlu1 %v675_v42 }
 0x5fa   :  { %v2419_v43 = vld [vmem:[#allocation1 + $0x9] ss:$0 sm:$0xff] }
 0x5fb   :  { %v715_v44 = vmul.f32 %v2419_v43, %v2419_v43  ;;  %v724_v46 = vmul.f32 %v2419_v43, %v668_v40 }
 0x5fd   :  { %716 = vadd.xlane.f32.xlu0 %v715_v44 }
 0x601   :  { %725 = vadd.xlane.f32.xlu0 %v724_v46 }
 0x619   :  { %v554_v47 = vpop.xlane.xlu0 %553 }
 0x61a   :  { %v555_v48 = vsub.f32 %v2254_v55, %v554_v47 }
 0x61c   :  { %v556_v49 = vmul.f32 %v2363_v22, %v555_v48 }
 0x61e   :  { %v557_v50 = vsel %vm500_vm0, %v556_v49, 0.0 }
 0x61f   :  { %v558_v52 = vadd.f32 %v557_v50, %v484_v18 }
 0x621   :  { %v626_v27 = vmul.f32 %v2368_v26, %v558_v52 }
 0x623   :  { %627 = vadd.xlane.f32.xlu1 %v626_v27 }
 0x645   :  { %v493_v53 = vpop.xlane.xlu1 %492 }
 0x646   :  { %v494_v54 = vsub.f32 %v2289_v30, %v493_v53 }
 0x648   :  { %v495_v57 = vmul.f32 %v2332_v38, %v494_v54 }
 0x64a   :  { %v496_v58 = vsel %vm426_vm13, %v495_v57, 0.0  ;;  %vm838_vm13 = vcmask 97368  }
 0x64b   :  { %v497_v59 = vadd.f32 %v496_v58, %v423_v51  ;;  %vm858_vm15 = vmand %vm838_vm13, %vm295_vm8 }
 0x64d   :  { %v565_v60 = vmul.f32 %v2340_v45, %v497_v59 }
 0x64f   :  { %566 = vadd.xlane.f32.xlu0 %v565_v60 }
 0x67e   :  { %v677_v61 = vpop.xlane.xlu1 %676 }
 0x67f   :  { %v678_v63 = vsub.f32 %v2233_v34, %v677_v61 }
 0x681   :  { %v679_v17 = vmul.f32 %v2412_v37, %v678_v63 }
 0x683   :  { %v680_v10 = vsel %vm648_vm6, %v679_v17, 0.0 }
 0x684   :  { %v681_v1 = vadd.f32 %v680_v10, %v619_v41 }
 0x686   :  { %v717_v5 = vpop.xlane.xlu0 %716  ;;  %v739_v6 = vmul.f32 %v2419_v43, %v681_v1 }
 0x687   :  { %v718_v7 = vsub.f32 %v714_v25, %v717_v5 }
 0x688   :  { %740 = vadd.xlane.f32.xlu1 %v739_v6 }
 0x689   :  { %2115 = vrsqrt.f32 %v718_v7 }
 0x68a   :  { %v726_v38 = vpop.xlane.xlu0 %725 }
 0x68b   :  { %v727_v45 = vsub.f32 %v2211_v16, %v726_v38 }
 0x696   :  { %v2437_v8 = vpop.eup %2115 }
 0x697   :  { %v728_v13 = vmul.f32 %v2437_v8, %v727_v45 }
 0x699   :  { %v731_v9 = vsel %vm730_vm9, %v728_v13, 0.0  ;;  %vm1030_vm9 = vcmask 121968  }
 0x69a   :  { %v732_v11 = vadd.f32 %v731_v9, %v668_v40 }
 0x69c   :  { %734 = vst [vmem:[#allocation1 + $0x8] sm:$0xff] %v732_v11 }
 0x6a3   :  { %v2442_v12 = vld [vmem:[#allocation1 + $0xa] ss:$0 sm:$0xff] }
 0x6a4   :  { %v779_v14 = vmul.f32 %v2442_v12, %v2442_v12  ;;  %v788_v15 = vmul.f32 %v2442_v12, %v732_v11 }
 0x6a6   :  { %780 = vadd.xlane.f32.xlu0 %v779_v14  ;;  %789 = vadd.xlane.f32.xlu1 %v788_v15 }
 0x6ac   :  { %v628_v18 = vpop.xlane.xlu1 %627 }
 0x6ad   :  { %v629_v19 = vsub.f32 %v2254_v55, %v628_v18  ;;  %v2486_v18 = vld [vmem:[#allocation0 + $0x8] sm:$0xff] }
 0x6af   :  { %v630_v20 = vmul.f32 %v2389_v31, %v629_v19 }
 0x6b1   :  { %v631_v21 = vsel %vm574_vm4, %v630_v20, 0.0 }
 0x6b2   :  { %v632_v23 = vadd.f32 %v631_v21, %v558_v52 }
 0x6b4   :  { %v688_v24 = vmul.f32 %v2393_v0, %v632_v23 }
 0x6b6   :  { %689 = vadd.xlane.f32.xlu0 %v688_v24 }
 0x6d8   :  { %v567_v51 = vpop.xlane.xlu0 %566 }
 0x6d9   :  { %v568_v56 = vsub.f32 %v2289_v30, %v567_v51 }
 0x6db   :  { %v569_v28 = vmul.f32 %v2363_v22, %v568_v56 }
 0x6dd   :  { %v570_v29 = vsel %vm500_vm0, %v569_v28, 0.0  ;;  %vm902_vm0 = vcmask 105568  }
 0x6de   :  { %v571_v4 = vadd.f32 %v570_v29, %v497_v59  ;;  %vm922_vm3 = vmand %vm902_vm0, %vm369_vm11 }
 0x6e0   :  { %v639_v32 = vmul.f32 %v2368_v26, %v571_v4 }
 0x6e2   :  { %640 = vadd.xlane.f32.xlu1 %v639_v32 }
 0x711   :  { %v741_v33 = vpop.xlane.xlu1 %740 }
 0x712   :  { %v742_v35 = vsub.f32 %v2233_v34, %v741_v33 }
 0x714   :  { %v743_v36 = vmul.f32 %v2437_v8, %v742_v35 }
 0x716   :  { %v744_v62 = vsel %vm710_vm7, %v743_v36, 0.0 }
 0x717   :  { %v745_v3 = vadd.f32 %v744_v62, %v681_v1  ;;  %v2503_v62 = vld [vmem:[#allocation0 + $0x10] sm:$0xff] }
 0x719   :  { %v803_v2 = vmul.f32 %v2442_v12, %v745_v3 }
 0x71b   :  { %804 = vadd.xlane.f32.xlu0 %v803_v2 }
 0x72f   :  { %v781_v40 = vpop.xlane.xlu0 %780  ;;  %v790_v41 = vpop.xlane.xlu1 %789 }
 0x730   :  { %v782_v22 = vsub.f32 %v778_v39, %v781_v40  ;;  %v791_v26 = vsub.f32 %v2211_v16, %v790_v41 }
 0x732   :  { %2117 = vrsqrt.f32 %v782_v22 }
 0x73f   :  { %v690_v42 = vpop.xlane.xlu0 %689  ;;  %v2461_v46 = vpop.eup %2117 }
 0x740   :  { %v691_v44 = vsub.f32 %v2254_v55, %v690_v42  ;;  %v792_v47 = vmul.f32 %v2461_v46, %v791_v26 }
 0x742   :  { %v692_v48 = vmul.f32 %v2412_v37, %v691_v44  ;;  %v795_v49 = vsel %vm794_vm12, %v792_v47, 0.0  ;;  %vm1094_vm12 = vcmask 130168  }
 0x743   :  { %v796_v52 = vadd.f32 %v795_v49, %v732_v11  ;;  %v842_v11 = vld [vmem:[#allocation0 + $0xb] ss:$0 sm:$0xff]  ;;  %v906_v49 = vld [vmem:[#allocation0 + $0xc] ss:$0 sm:$0xff] }
 0x744   :  { %v693_v50 = vsel %vm648_vm6, %v692_v48, 0.0 }
 0x745   :  { %v694_v27 = vadd.f32 %v693_v50, %v632_v23  ;;  %798 = vst [vmem:[#allocation1 + $0x8] sm:$0xff] %v796_v52 }
 0x747   :  { %v752_v53 = vmul.f32 %v2419_v43, %v694_v27 }
 0x749   :  { %753 = vadd.xlane.f32.xlu0 %v752_v53 }
 0x74c   :  { %v2469_v16 = vld [vmem:[#allocation1 + $0xb] ss:$0 sm:$0xff] }
 0x74d   :  { %v843_v54 = vmul.f32 %v2469_v16, %v2469_v16  ;;  %v852_v57 = vmul.f32 %v2469_v16, %v796_v52 }
 0x74f   :  { %844 = vadd.xlane.f32.xlu1 %v843_v54 }
 0x753   :  { %853 = vadd.xlane.f32.xlu1 %v852_v57 }
 0x76b   :  { %v641_v58 = vpop.xlane.xlu1 %640 }
 0x76c   :  { %v642_v59 = vsub.f32 %v2289_v30, %v641_v58 }
 0x76e   :  { %v643_v60 = vmul.f32 %v2389_v31, %v642_v59 }
 0x770   :  { %v644_v61 = vsel %vm574_vm4, %v643_v60, 0.0 }
 0x771   :  { %v645_v63 = vadd.f32 %v644_v61, %v571_v4 }
 0x773   :  { %v701_v17 = vmul.f32 %v2393_v0, %v645_v63 }
 0x775   :  { %702 = vadd.xlane.f32.xlu0 %v701_v17 }
 0x7a4   :  { %v805_v10 = vpop.xlane.xlu0 %804 }
 0x7a5   :  { %v806_v25 = vsub.f32 %v2233_v34, %v805_v10 }
 0x7a7   :  { %v807_v1 = vmul.f32 %v2461_v46, %v806_v25 }
 0x7a9   :  { %v808_v5 = vsel %vm774_vm10, %v807_v1, 0.0 }
 0x7aa   :  { %v809_v6 = vadd.f32 %v808_v5, %v745_v3 }
 0x7ac   :  { %v867_v7 = vmul.f32 %v2469_v16, %v809_v6 }
 0x7ae   :  { %868 = vadd.xlane.f32.xlu1 %v867_v7 }
 0x7d2   :  { %v754_v38 = vpop.xlane.xlu0 %753 }
 0x7d3   :  { %v755_v45 = vsub.f32 %v2254_v55, %v754_v38 }
 0x7d5   :  { %v756_v13 = vmul.f32 %v2437_v8, %v755_v45 }
 0x7d7   :  { %v757_v9 = vsel %vm710_vm7, %v756_v13, 0.0 }
 0x7d8   :  { %v758_v0 = vadd.f32 %v757_v9, %v694_v27  ;;  %v845_v14 = vpop.xlane.xlu1 %844 }
 0x7d9   :  { %v846_v15 = vsub.f32 %v842_v11, %v845_v14 }
 0x7da   :  { %v816_v34 = vmul.f32 %v2442_v12, %v758_v0 }
 0x7db   :  { %2119 = vrsqrt.f32 %v846_v15 }
 0x7dc   :  { %817 = vadd.xlane.f32.xlu0 %v816_v34  ;;  %v854_v19 = vpop.xlane.xlu1 %853 }
 0x7dd   :  { %v855_v20 = vsub.f32 %v2486_v18, %v854_v19 }
 0x7e8   :  { %v2489_v21 = vpop.eup %2119 }
 0x7e9   :  { %v856_v55 = vmul.f32 %v2489_v21, %v855_v20 }
 0x7eb   :  { %v859_v23 = vsel %vm858_vm15, %v856_v55, 0.0  ;;  %vm1207_vm15 = vcmask 146568  }
 0x7ec   :  { %v860_v24 = vadd.f32 %v859_v23, %v796_v52 }
 0x7ee   :  { %862 = vst [vmem:[#allocation1 + $0x8] sm:$0xff] %v860_v24 }
 0x7f5   :  { %v2494_v51 = vld [vmem:[#allocation1 + $0xc] ss:$0 sm:$0xff] }
 0x7f6   :  { %v916_v56 = vmul.f32 %v2494_v51, %v860_v24  ;;  %v907_v28 = vmul.f32 %v2494_v51, %v2494_v51 }
 0x7f8   :  { %917 = vadd.xlane.f32.xlu0 %v916_v56  ;;  %908 = vadd.xlane.f32.xlu1 %v907_v28 }
 0x7fe   :  { %v703_v29 = vpop.xlane.xlu0 %702 }
 0x7ff   :  { %v704_v4 = vsub.f32 %v2289_v30, %v703_v29 }
 0x801   :  { %v705_v32 = vmul.f32 %v2412_v37, %v704_v4  ;;  %v2509_v37 = vld [vmem:[#allocation0 + $0x18] sm:$0xff] }
 0x803   :  { %v706_v33 = vsel %vm648_vm6, %v705_v32, 0.0  ;;  %vm966_vm6 = vcmask 113768  }
 0x804   :  { %v707_v35 = vadd.f32 %v706_v33, %v645_v63 }
 0x806   :  { %v765_v36 = vmul.f32 %v2419_v43, %v707_v35 }
 0x808   :  { %766 = vadd.xlane.f32.xlu1 %v765_v36 }
 0x837   :  { %v869_v3 = vpop.xlane.xlu1 %868 }
 0x838   :  { %v870_v2 = vsub.f32 %v2503_v62, %v869_v3 }
 0x83a   :  { %v871_v39 = vmul.f32 %v2489_v21, %v870_v2 }
 0x83c   :  { %v872_v40 = vsel %vm838_vm13, %v871_v39, 0.0 }
 0x83d   :  { %v873_v22 = vadd.f32 %v872_v40, %v809_v6 }
 0x83f   :  { %v931_v41 = vmul.f32 %v2494_v51, %v873_v22 }
 0x841   :  { %932 = vadd.xlane.f32.xlu0 %v931_v41 }
 0x865   :  { %v818_v42 = vpop.xlane.xlu0 %817 }
 0x866   :  { %v819_v26 = vsub.f32 %v2509_v37, %v818_v42 }
 0x868   :  { %v820_v43 = vmul.f32 %v2461_v46, %v819_v26 }
 0x86a   :  { %v821_v44 = vsel %vm774_vm10, %v820_v43, 0.0 }
 0x86b   :  { %v822_v47 = vadd.f32 %v821_v44, %v758_v0 }
 0x86d   :  { %v880_v48 = vmul.f32 %v2469_v16, %v822_v47 }
 0x86f   :  { %881 = vadd.xlane.f32.xlu1 %v880_v48 }
 0x881   :  { %v909_v50 = vpop.xlane.xlu1 %908  ;;  %v918_v27 = vpop.xlane.xlu0 %917 }
 0x882   :  { %v910_v52 = vsub.f32 %v906_v49, %v909_v50  ;;  %v919_v54 = vsub.f32 %v2486_v18, %v918_v27 }
 0x884   :  { %2121 = vrsqrt.f32 %v910_v52  ;;  %v2561_v52 = vld [vmem:[#allocation0 + $0x20] sm:$0xff] }
 0x891   :  { %v767_v53 = vpop.xlane.xlu1 %766  ;;  %v2517_v58 = vpop.eup %2121 }
 0x892   :  { %v768_v57 = vsub.f32 %v2289_v30, %v767_v53  ;;  %v920_v59 = vmul.f32 %v2517_v58, %v919_v54 }
 0x894   :  { %v769_v60 = vmul.f32 %v2437_v8, %v768_v57  ;;  %v923_v61 = vsel %vm922_vm3, %v920_v59, 0.0  ;;  %vm1258_vm3 = vcmask 154768  }
 0x895   :  { %v924_v17 = vadd.f32 %v923_v61, %v860_v24  ;;  %v970_v24 = vld [vmem:[#allocation0 + $0xd] ss:$0 sm:$0xff]  ;;  %v1034_v61 = vld [vmem:[#allocation0 + $0xe] ss:$0 sm:$0xff] }
 0x896   :  { %v770_v63 = vsel %vm710_vm7, %v769_v60, 0.0  ;;  %vm986_vm7 = vmand %vm966_vm6, %vm443_vm14 }
 0x897   :  { %v771_v10 = vadd.f32 %v770_v63, %v707_v35  ;;  %926 = vst [vmem:[#allocation1 + $0x8] sm:$0xff] %v924_v17 }
 0x899   :  { %v829_v25 = vmul.f32 %v2442_v12, %v771_v10 }
 0x89b   :  { %830 = vadd.xlane.f32.xlu1 %v829_v25 }
 0x89e   :  { %v2525_v1 = vld [vmem:[#allocation1 + $0xd] ss:$0 sm:$0xff] }
 0x89f   :  { %v971_v5 = vmul.f32 %v2525_v1, %v2525_v1  ;;  %v980_v6 = vmul.f32 %v2525_v1, %v924_v17 }
 0x8a1   :  { %972 = vadd.xlane.f32.xlu0 %v971_v5 }
 0x8a5   :  { %981 = vadd.xlane.f32.xlu0 %v980_v6 }
 0x8ca   :  { %v933_v7 = vpop.xlane.xlu0 %932 }
 0x8cb   :  { %v934_v8 = vsub.f32 %v2503_v62, %v933_v7 }
 0x8cd   :  { %v935_v38 = vmul.f32 %v2517_v58, %v934_v8 }
 0x8cf   :  { %v936_v45 = vsel %vm902_vm0, %v935_v38, 0.0 }
 0x8d0   :  { %v937_v13 = vadd.f32 %v936_v45, %v873_v22 }
 0x8d2   :  { %v995_v12 = vmul.f32 %v2525_v1, %v937_v13 }
 0x8d4   :  { %996 = vadd.xlane.f32.xlu1 %v995_v12 }
 0x8f8   :  { %v882_v9 = vpop.xlane.xlu1 %881 }
 0x8f9   :  { %v883_v0 = vsub.f32 %v2509_v37, %v882_v9 }
 0x8fb   :  { %v884_v11 = vmul.f32 %v2489_v21, %v883_v0 }
 0x8fd   :  { %v885_v14 = vsel %vm838_vm13, %v884_v11, 0.0 }
 0x8fe   :  { %v886_v34 = vadd.f32 %v885_v14, %v822_v47 }
 0x900   :  { %v944_v15 = vmul.f32 %v2494_v51, %v886_v34 }
 0x902   :  { %945 = vadd.xlane.f32.xlu0 %v944_v15 }
 0x924   :  { %v831_v19 = vpop.xlane.xlu1 %830 }
 0x925   :  { %v832_v20 = vsub.f32 %v2289_v30, %v831_v19 }
 0x927   :  { %v833_v55 = vmul.f32 %v2461_v46, %v832_v20 }
 0x929   :  { %v834_v23 = vsel %vm774_vm10, %v833_v55, 0.0  ;;  %vm1050_vm10 = vmand %vm1030_vm9, %vm517_vm1 }
 0x92a   :  { %v835_v56 = vadd.f32 %v834_v23, %v771_v10  ;;  %v973_v28 = vpop.xlane.xlu0 %972 }
 0x92b   :  { %v974_v4 = vsub.f32 %v970_v24, %v973_v28 }
 0x92c   :  { %v893_v29 = vmul.f32 %v2469_v16, %v835_v56 }
 0x92d   :  { %2123 = vrsqrt.f32 %v974_v4 }
 0x92e   :  { %894 = vadd.xlane.f32.xlu1 %v893_v29  ;;  %v982_v32 = vpop.xlane.xlu0 %981  ;;  %v1098_v29 = vld [vmem:[#allocation0 + $0xf] ss:$0 sm:$0xff] }
 0x92f   :  { %v983_v33 = vsub.f32 %v2486_v18, %v982_v32 }
 0x93a   :  { %v2543_v35 = vpop.eup %2123 }
 0x93b   :  { %v984_v30 = vmul.f32 %v2543_v35, %v983_v33 }
 0x93d   :  { %v987_v46 = vsel %vm986_vm7, %v984_v30, 0.0  ;;  %vm1309_vm7 = vcmask 162968  }
 0x93e   :  { %v988_v36 = vadd.f32 %v987_v46, %v924_v17 }
 0x940   :  { %990 = vst [vmem:[#allocation1 + $0x8] sm:$0xff] %v988_v36 }
 0x947   :  { %v2548_v3 = vld [vmem:[#allocation1 + $0xe] ss:$0 sm:$0xff] }
 0x948   :  { %v1035_v16 = vmul.f32 %v2548_v3, %v2548_v3  ;;  %v1044_v2 = vmul.f32 %v2548_v3, %v988_v36 }
 0x94a   :  { %1036 = vadd.xlane.f32.xlu0 %v1035_v16  ;;  %1045 = vadd.xlane.f32.xlu1 %v1044_v2 }
 0x95d   :  { %v997_v39 = vpop.xlane.xlu1 %996 }
 0x95e   :  { %v998_v40 = vsub.f32 %v2503_v62, %v997_v39 }
 0x960   :  { %v999_v22 = vmul.f32 %v2543_v35, %v998_v40 }
 0x962   :  { %v1000_v41 = vsel %vm966_vm6, %v999_v22, 0.0 }
 0x963   :  { %v1001_v42 = vadd.f32 %v1000_v41, %v937_v13 }
 0x965   :  { %v1059_v26 = vmul.f32 %v2548_v3, %v1001_v42 }
 0x967   :  { %1060 = vadd.xlane.f32.xlu0 %v1059_v26 }
 0x98b   :  { %v946_v43 = vpop.xlane.xlu0 %945 }
 0x98c   :  { %v947_v44 = vsub.f32 %v2509_v37, %v946_v43 }
 0x98e   :  { %v948_v47 = vmul.f32 %v2517_v58, %v947_v44 }
 0x990   :  { %v949_v48 = vsel %vm902_vm0, %v948_v47, 0.0 }
 0x991   :  { %v950_v49 = vadd.f32 %v949_v48, %v886_v34 }
 0x993   :  { %v1008_v50 = vmul.f32 %v2525_v1, %v950_v49 }
 0x995   :  { %1009 = vadd.xlane.f32.xlu1 %v1008_v50 }
 0x9b7   :  { %v895_v27 = vpop.xlane.xlu1 %894 }
 0x9b8   :  { %v896_v53 = vsub.f32 %v2561_v52, %v895_v27 }
 0x9ba   :  { %v897_v54 = vmul.f32 %v2489_v21, %v896_v53  ;;  %v1162_v53 = vld [vmem:[#allocation0 + $0x10] ss:$0 sm:$0xff] }
 0x9bc   :  { %v898_v57 = vsel %vm838_vm13, %v897_v54, 0.0  ;;  %vm1158_vm13 = vcmask 138368  }
 0x9bd   :  { %v899_v59 = vadd.f32 %v898_v57, %v835_v56 }
 0x9bf   :  { %v957_v60 = vmul.f32 %v2494_v51, %v899_v59 }
 0x9c1   :  { %958 = vadd.xlane.f32.xlu0 %v957_v60 }
 0x9d3   :  { %v1037_v63 = vpop.xlane.xlu0 %1036  ;;  %v1046_v10 = vpop.xlane.xlu1 %1045 }
 0x9d4   :  { %v1038_v17 = vsub.f32 %v1034_v61, %v1037_v63  ;;  %v1047_v25 = vsub.f32 %v2486_v18, %v1046_v10 }
 0x9d6   :  { %2125 = vrsqrt.f32 %v1038_v17 }
 0x9e3   :  { %v2568_v5 = vpop.eup %2125 }
 0x9e4   :  { %v1048_v21 = vmul.f32 %v2568_v5, %v1047_v25 }
 0x9e6   :  { %v1051_v6 = vsel %vm1050_vm10, %v1048_v21, 0.0  ;;  %vm1360_vm10 = vcmask 171168  }
 0x9e7   :  { %v1052_v7 = vadd.f32 %v1051_v6, %v988_v36 }
 0x9e9   :  { %1054 = vst [vmem:[#allocation1 + $0x8] sm:$0xff] %v1052_v7 }
 0x9f0   :  { %v2573_v51 = vld [vmem:[#allocation1 + $0xf] ss:$0 sm:$0xff]  ;;  %v1061_v8 = vpop.xlane.xlu0 %1060 }
 0x9f1   :  { %v1099_v38 = vmul.f32 %v2573_v51, %v2573_v51  ;;  %v1062_v45 = vsub.f32 %v2503_v62, %v1061_v8 }
 0x9f3   :  { %1100 = vadd.xlane.f32.xlu1 %v1099_v38  ;;  %v1063_v18 = vmul.f32 %v2568_v5, %v1062_v45 }
 0x9f5   :  { %v1064_v13 = vsel %vm1030_vm9, %v1063_v18, 0.0 }
 0x9f6   :  { %v1065_v12 = vadd.f32 %v1064_v13, %v1001_v42 }
 0x9f8   :  { %v1123_v9 = vmul.f32 %v2573_v51, %v1065_v12 }
 0x9fa   :  { %1124 = vadd.xlane.f32.xlu0 %v1123_v9 }
 0xa1e   :  { %v1010_v0 = vpop.xlane.xlu1 %1009 }
 0xa1f   :  { %v1011_v11 = vsub.f32 %v2509_v37, %v1010_v0 }
 0xa21   :  { %v1012_v14 = vmul.f32 %v2543_v35, %v1011_v11 }
 0xa23   :  { %v1013_v34 = vsel %vm966_vm6, %v1012_v14, 0.0  ;;  %v1211_v14 = vld [vmem:[#allocation0 + $0x11] ss:$0 sm:$0xff] }
 0xa24   :  { %v1014_v15 = vadd.f32 %v1013_v34, %v950_v49 }
 0xa26   :  { %v1072_v19 = vmul.f32 %v2548_v3, %v1014_v15 }
 0xa28   :  { %1073 = vadd.xlane.f32.xlu1 %v1072_v19 }
 0xa4a   :  { %v959_v20 = vpop.xlane.xlu0 %958 }
 0xa4b   :  { %v960_v55 = vsub.f32 %v2561_v52, %v959_v20 }
 0xa4d   :  { %v961_v23 = vmul.f32 %v2517_v58, %v960_v55 }
 0xa4f   :  { %v962_v24 = vsel %vm902_vm0, %v961_v23, 0.0  ;;  %vm1227_vm0 = vmand %vm1207_vm15, %vm147_vm2 }
 0xa50   :  { %v963_v56 = vadd.f32 %v962_v24, %v899_v59 }
 0xa52   :  { %v1021_v28 = vmul.f32 %v2525_v1, %v963_v56 }
 0xa54   :  { %1022 = vadd.xlane.f32.xlu0 %v1021_v28 }
 0xa7c   :  { %v1101_v4 = vpop.xlane.xlu1 %1100 }
 0xa7d   :  { %v1102_v32 = vsub.f32 %v1098_v29, %v1101_v4 }
 0xa7f   :  { %2127 = vrsqrt.f32 %v1102_v32 }
 0xa83   :  { %v1125_v33 = vpop.xlane.xlu0 %1124 }
 0xa84   :  { %v1126_v30 = vsub.f32 %v2503_v62, %v1125_v33 }
 0xa8c   :  { %v2590_v46 = vpop.eup %2127 }
 0xa8d   :  { %v1127_v36 = vmul.f32 %v2590_v46, %v1126_v30 }
 0xa8f   :  { %v1128_v58 = vsel %vm1094_vm12, %v1127_v36, 0.0 }
 0xa90   :  { %v1129_v16 = vadd.f32 %v1128_v58, %v1065_v12 }
 0xa92   :  { %1131 = vst [vmem:[#allocation1 + $0x10] sm:$0xff] %v1129_v16 }
 0xa99   :  { %v2594_v2 = vld [vmem:[#allocation1 + $0x10] ss:$0 sm:$0xff] }
 0xa9a   :  { %v1172_v1 = vmul.f32 %v2594_v2, %v1129_v16  ;;  %v1163_v39 = vmul.f32 %v2594_v2, %v2594_v2 }
 0xa9c   :  { %1173 = vadd.xlane.f32.xlu0 %v1172_v1  ;;  %1164 = vadd.xlane.f32.xlu1 %v1163_v39 }
 0xab1   :  { %v1074_v40 = vpop.xlane.xlu1 %1073 }
 0xab2   :  { %v1075_v22 = vsub.f32 %v2509_v37, %v1074_v40 }
 0xab4   :  { %v1076_v41 = vmul.f32 %v2568_v5, %v1075_v22 }
 0xab6   :  { %v1077_v42 = vsel %vm1030_vm9, %v1076_v41, 0.0 }
 0xab7   :  { %v1078_v26 = vadd.f32 %v1077_v42, %v1014_v15 }
 0xab9   :  { %v1136_v43 = vmul.f32 %v2573_v51, %v1078_v26 }
 0xabb   :  { %1137 = vadd.xlane.f32.xlu1 %v1136_v43 }
 0xadd   :  { %v1023_v44 = vpop.xlane.xlu0 %1022 }
 0xade   :  { %v1024_v47 = vsub.f32 %v2561_v52, %v1023_v44 }
 0xae0   :  { %v1025_v48 = vmul.f32 %v2543_v35, %v1024_v47 }
 0xae2   :  { %v1026_v49 = vsel %vm966_vm6, %v1025_v48, 0.0  ;;  %v1262_v48 = vld [vmem:[#allocation0 + $0x12] ss:$0 sm:$0xff]  ;;  %vm1278_vm6 = vmand %vm1258_vm3, %vm221_vm5 }
 0xae3   :  { %v1027_v50 = vadd.f32 %v1026_v49, %v963_v56 }
 0xae5   :  { %v1085_v27 = vmul.f32 %v2548_v3, %v1027_v50 }
 0xae7   :  { %1086 = vadd.xlane.f32.xlu0 %v1085_v27 }
 0xb25   :  { %v1165_v54 = vpop.xlane.xlu1 %1164  ;;  %v1174_v59 = vpop.xlane.xlu0 %1173 }
 0xb26   :  { %v1166_v57 = vsub.f32 %v1162_v53, %v1165_v54  ;;  %v1175_v60 = vsub.f32 %v2503_v62, %v1174_v59 }
 0xb28   :  { %2129 = vrsqrt.f32 %v1166_v57 }
 0xb35   :  { %v2608_v61 = vpop.eup %2129 }
 0xb36   :  { %v1176_v63 = vmul.f32 %v2608_v61, %v1175_v60 }
 0xb38   :  { %v1177_v35 = vsel %vm1158_vm13, %v1176_v63, 0.0 }
 0xb39   :  { %v1178_v17 = vadd.f32 %v1177_v35, %v1129_v16 }
 0xb3b   :  { %1180 = vst [vmem:[#allocation1 + $0x10] sm:$0xff] %v1178_v17 }
 0xb42   :  { %v2612_v25 = vld [vmem:[#allocation1 + $0x11] ss:$0 sm:$0xff] }
 0xb43   :  { %v1212_v21 = vmul.f32 %v2612_v25, %v2612_v25  ;;  %v1221_v8 = vmul.f32 %v2612_v25, %v1178_v17 }
 0xb44   :  { %v1138_v10 = vpop.xlane.xlu1 %1137 }
 0xb45   :  { %v1139_v3 = vsub.f32 %v2509_v37, %v1138_v10  ;;  %1213 = vadd.xlane.f32.xlu1 %v1212_v21 }
 0xb47   :  { %v1140_v6 = vmul.f32 %v2590_v46, %v1139_v3 }
 0xb49   :  { %v1141_v7 = vsel %vm1094_vm12, %v1140_v6, 0.0  ;;  %1222 = vadd.xlane.f32.xlu1 %v1221_v8 }
 0xb4a   :  { %v1142_v38 = vadd.f32 %v1141_v7, %v1078_v26 }
 0xb4c   :  { %v1185_v45 = vmul.f32 %v2594_v2, %v1142_v38 }
 0xb4e   :  { %1186 = vadd.xlane.f32.xlu0 %v1185_v45 }
 0xb70   :  { %v1087_v18 = vpop.xlane.xlu0 %1086 }
 0xb71   :  { %v1088_v13 = vsub.f32 %v2561_v52, %v1087_v18 }
 0xb73   :  { %v1089_v12 = vmul.f32 %v2568_v5, %v1088_v13 }
 0xb75   :  { %v1090_v9 = vsel %vm1030_vm9, %v1089_v12, 0.0  ;;  %vm1329_vm9 = vmand %vm1309_vm7, %vm295_vm8 }
 0xb76   :  { %v1091_v0 = vadd.f32 %v1090_v9, %v1027_v50  ;;  %v1313_v9 = vld [vmem:[#allocation0 + $0x13] ss:$0 sm:$0xff] }
 0xb78   :  { %v1149_v11 = vmul.f32 %v2573_v51, %v1091_v0 }
 0xb7a   :  { %1150 = vadd.xlane.f32.xlu0 %v1149_v11 }
 0xbce   :  { %v1214_v34 = vpop.xlane.xlu1 %1213 }
 0xbcf   :  { %v1215_v15 = vsub.f32 %v1211_v14, %v1214_v34 }
 0xbd1   :  { %2131 = vrsqrt.f32 %v1215_v15 }
 0xbd2   :  { %v1223_v23 = vpop.xlane.xlu1 %1222 }
 0xbd3   :  { %v1224_v56 = vsub.f32 %v2503_v62, %v1223_v23 }
 0xbd7   :  { %v1187_v19 = vpop.xlane.xlu0 %1186 }
 0xbd8   :  { %v1188_v20 = vsub.f32 %v2509_v37, %v1187_v19 }
 0xbda   :  { %v1189_v55 = vmul.f32 %v2608_v61, %v1188_v20 }
 0xbdc   :  { %v1190_v24 = vsel %vm1158_vm13, %v1189_v55, 0.0 }
 0xbdd   :  { %v1191_v5 = vadd.f32 %v1190_v24, %v1142_v38 }
 0xbde   :  { %v2630_v51 = vpop.eup %2131 }
 0xbdf   :  { %v1236_v28 = vmul.f32 %v2612_v25, %v1191_v5  ;;  %v1225_v29 = vmul.f32 %v2630_v51, %v1224_v56 }
 0xbe1   :  { %1237 = vadd.xlane.f32.xlu1 %v1236_v28  ;;  %v1228_v4 = vsel %vm1227_vm0, %v1225_v29, 0.0 }
 0xbe2   :  { %v1229_v32 = vadd.f32 %v1228_v4, %v1178_v17 }
 0xbe4   :  { %1231 = vst [vmem:[#allocation1 + $0x10] sm:$0xff] %v1229_v32 }
 0xbeb   :  { %v2635_v33 = vld [vmem:[#allocation1 + $0x12] ss:$0 sm:$0xff] }
 0xbec   :  { %v1263_v30 = vmul.f32 %v2635_v33, %v2635_v33  ;;  %v1272_v36 = vmul.f32 %v2635_v33, %v1229_v32 }
 0xbee   :  { %1264 = vadd.xlane.f32.xlu0 %v1263_v30  ;;  %1273 = vadd.xlane.f32.xlu1 %v1272_v36 }
 0xc03   :  { %v1151_v58 = vpop.xlane.xlu0 %1150 }
 0xc04   :  { %v1152_v16 = vsub.f32 %v2561_v52, %v1151_v58 }
 0xc06   :  { %v1153_v1 = vmul.f32 %v2590_v46, %v1152_v16 }
 0xc08   :  { %v1154_v39 = vsel %vm1094_vm12, %v1153_v1, 0.0 }
 0xc09   :  { %v1155_v40 = vadd.f32 %v1154_v39, %v1091_v0 }
 0xc0b   :  { %v1198_v22 = vmul.f32 %v2594_v2, %v1155_v40 }
 0xc0d   :  { %1199 = vadd.xlane.f32.xlu0 %v1198_v22 }
 0xc6a   :  { %v1238_v41 = vpop.xlane.xlu1 %1237 }
 0xc6b   :  { %v1239_v42 = vsub.f32 %v2509_v37, %v1238_v41 }
 0xc6d   :  { %v1240_v26 = vmul.f32 %v2630_v51, %v1239_v42  ;;  %v1364_v42 = vld [vmem:[#allocation0 + $0x14] ss:$0 sm:$0xff] }
 0xc6f   :  { %v1241_v43 = vsel %vm1207_vm15, %v1240_v26, 0.0 }
 0xc70   :  { %v1242_v44 = vadd.f32 %v1241_v43, %v1191_v5 }
 0xc72   :  { %v1287_v47 = vmul.f32 %v2635_v33, %v1242_v44 }
 0xc74   :  { %1288 = vadd.xlane.f32.xlu1 %v1287_v47 }
 0xc77   :  { %v1265_v49 = vpop.xlane.xlu0 %1264  ;;  %v1274_v27 = vpop.xlane.xlu1 %1273 }
 0xc78   :  { %v1266_v50 = vsub.f32 %v1262_v48, %v1265_v49  ;;  %v1275_v2 = vsub.f32 %v2503_v62, %v1274_v27 }
 0xc7a   :  { %2133 = vrsqrt.f32 %v1266_v50 }
 0xc87   :  { %v2134_v53 = vpop.eup %2133 }
 0xc88   :  { %v1276_v54 = vmul.f32 %v2134_v53, %v1275_v2 }
 0xc8a   :  { %v1279_v57 = vsel %vm1278_vm6, %v1276_v54, 0.0 }
 0xc8b   :  { %v1280_v59 = vadd.f32 %v1279_v57, %v1229_v32 }
 0xc8d   :  { %1282 = vst [vmem:[#allocation1 + $0x10] sm:$0xff] %v1280_v59 }
 0xc94   :  { %v1311_v63 = vld [vmem:[#allocation1 + $0x13] ss:$0 sm:$0xff] }
 0xc95   :  { %v1314_v17 = vmul.f32 %v1311_v63, %v1311_v63  ;;  %v1323_v21 = vmul.f32 %v1311_v63, %v1280_v59 }
 0xc96   :  { %v1200_v60 = vpop.xlane.xlu0 %1199 }
 0xc97   :  { %v1201_v35 = vsub.f32 %v2561_v52, %v1200_v60  ;;  %1315 = vadd.xlane.f32.xlu0 %v1314_v17 }
 0xc99   :  { %v1202_v10 = vmul.f32 %v2608_v61, %v1201_v35 }
 0xc9b   :  { %v1203_v3 = vsel %vm1158_vm13, %v1202_v10, 0.0  ;;  %1324 = vadd.xlane.f32.xlu0 %v1323_v21  ;;  %vm1380_vm13 = vmand %vm1360_vm10, %vm369_vm11 }
 0xc9c   :  { %v1204_v6 = vadd.f32 %v1203_v3, %v1155_v40 }
 0xc9e   :  { %v1249_v7 = vmul.f32 %v2612_v25, %v1204_v6 }
 0xca0   :  { %1250 = vadd.xlane.f32.xlu1 %v1249_v7 }
 0xcfd   :  { %v1289_v8 = vpop.xlane.xlu1 %1288 }
 0xcfe   :  { %v1290_v38 = vsub.f32 %v2509_v37, %v1289_v8 }
 0xd00   :  { %v1291_v45 = vmul.f32 %v2134_v53, %v1290_v38  ;;  %v1415_v38 = vld [vmem:[#allocation0 + $0x15] ss:$0 sm:$0xff] }
 0xd02   :  { %v1292_v18 = vsel %vm1258_vm3, %v1291_v45, 0.0 }
 0xd03   :  { %v1293_v13 = vadd.f32 %v1292_v18, %v1242_v44 }
 0xd05   :  { %v1338_v12 = vmul.f32 %v1311_v63, %v1293_v13 }
 0xd07   :  { %1339 = vadd.xlane.f32.xlu1 %v1338_v12 }
 0xd20   :  { %v1316_v61 = vpop.xlane.xlu0 %1315 }
 0xd21   :  { %v1317_v0 = vsub.f32 %v1313_v9, %v1316_v61 }
 0xd23   :  { %2135 = vrsqrt.f32 %v1317_v0 }
 0xd24   :  { %v1325_v25 = vpop.xlane.xlu0 %1324 }
 0xd25   :  { %v1326_v20 = vsub.f32 %v2503_v62, %v1325_v25 }
 0xd29   :  { %v1251_v11 = vpop.xlane.xlu1 %1250 }
 0xd2a   :  { %v1252_v14 = vsub.f32 %v2561_v52, %v1251_v11 }
 0xd2c   :  { %v1253_v34 = vmul.f32 %v2630_v51, %v1252_v14 }
 0xd2e   :  { %v1254_v15 = vsel %vm1207_vm15, %v1253_v34, 0.0  ;;  %vm1411_vm15 = vcmask 179368  }
 0xd2f   :  { %v1255_v19 = vadd.f32 %v1254_v15, %v1204_v6  ;;  %vm1431_vm0 = vmand %vm1411_vm15, %vm443_vm14 }
 0xd30   :  { %v2136_v23 = vpop.eup %2135 }
 0xd31   :  { %v1300_v55 = vmul.f32 %v2635_v33, %v1255_v19  ;;  %v1327_v24 = vmul.f32 %v2136_v23, %v1326_v20 }
 0xd33   :  { %1301 = vadd.xlane.f32.xlu0 %v1300_v55  ;;  %v1330_v5 = vsel %vm1329_vm9, %v1327_v24, 0.0  ;;  %vm1564_vm9 = vcmask 203968  }
 0xd34   :  { %v1331_v56 = vadd.f32 %v1330_v5, %v1280_v59 }
 0xd36   :  { %1333 = vst [vmem:[#allocation1 + $0x10] sm:$0xff] %v1331_v56 }
 0xd3d   :  { %v1362_v28 = vld [vmem:[#allocation1 + $0x14] ss:$0 sm:$0xff] }
 0xd3e   :  { %v1365_v51 = vmul.f32 %v1362_v28, %v1362_v28  ;;  %v1374_v29 = vmul.f32 %v1362_v28, %v1331_v56 }
 0xd40   :  { %1366 = vadd.xlane.f32.xlu1 %v1365_v51  ;;  %1375 = vadd.xlane.f32.xlu0 %v1374_v29 }
 0xd90   :  { %v1340_v4 = vpop.xlane.xlu1 %1339 }
 0xd91   :  { %v1341_v32 = vsub.f32 %v2509_v37, %v1340_v4 }
 0xd93   :  { %v1342_v30 = vmul.f32 %v2136_v23, %v1341_v32  ;;  %v1466_v32 = vld [vmem:[#allocation0 + $0x16] ss:$0 sm:$0xff] }
 0xd95   :  { %v1343_v33 = vsel %vm1309_vm7, %v1342_v30, 0.0 }
 0xd96   :  { %v1344_v36 = vadd.f32 %v1343_v33, %v1293_v13 }
 0xd98   :  { %v1389_v58 = vmul.f32 %v1362_v28, %v1344_v36 }
 0xd9a   :  { %1390 = vadd.xlane.f32.xlu1 %v1389_v58 }
 0xdbc   :  { %v1302_v16 = vpop.xlane.xlu0 %1301 }
 0xdbd   :  { %v1303_v1 = vsub.f32 %v2561_v52, %v1302_v16 }
 0xdbf   :  { %v1304_v39 = vmul.f32 %v2134_v53, %v1303_v1 }
 0xdc1   :  { %v1305_v40 = vsel %vm1258_vm3, %v1304_v39, 0.0  ;;  %vm1462_vm3 = vcmask 187568  }
 0xdc2   :  { %v1306_v22 = vadd.f32 %v1305_v40, %v1255_v19  ;;  %vm1482_vm6 = vmand %vm1462_vm3, %vm517_vm1 }
 0xdc4   :  { %v1351_v41 = vmul.f32 %v1311_v63, %v1306_v22 }
 0xdc6   :  { %1352 = vadd.xlane.f32.xlu0 %v1351_v41 }
 0xdc9   :  { %v1367_v26 = vpop.xlane.xlu1 %1366  ;;  %v1376_v44 = vpop.xlane.xlu0 %1375 }
 0xdca   :  { %v1368_v43 = vsub.f32 %v1364_v42, %v1367_v26  ;;  %v1377_v47 = vsub.f32 %v2503_v62, %v1376_v44 }
 0xdcc   :  { %2137 = vrsqrt.f32 %v1368_v43 }
 0xdd9   :  { %v2138_v48 = vpop.eup %2137 }
 0xdda   :  { %v1378_v49 = vmul.f32 %v2138_v48, %v1377_v47 }
 0xddc   :  { %v1381_v50 = vsel %vm1380_vm13, %v1378_v49, 0.0 }
 0xddd   :  { %v1382_v27 = vadd.f32 %v1381_v50, %v1331_v56 }
 0xddf   :  { %1384 = vst [vmem:[#allocation1 + $0x10] sm:$0xff] %v1382_v27 }
 0xde6   :  { %v1413_v2 = vld [vmem:[#allocation1 + $0x15] ss:$0 sm:$0xff] }
 0xde7   :  { %v1425_v53 = vmul.f32 %v1413_v2, %v1382_v27  ;;  %v1416_v54 = vmul.f32 %v1413_v2, %v1413_v2 }
 0xde9   :  { %1426 = vadd.xlane.f32.xlu0 %v1425_v53  ;;  %1417 = vadd.xlane.f32.xlu1 %v1416_v54  ;;  %v1517_v54 = vld [vmem:[#allocation0 + $0x17] ss:$0 sm:$0xff] }
 0xe23   :  { %v1391_v57 = vpop.xlane.xlu1 %1390 }
 0xe24   :  { %v1392_v59 = vsub.f32 %v2509_v37, %v1391_v57 }
 0xe26   :  { %v1393_v60 = vmul.f32 %v2138_v48, %v1392_v59 }
 0xe28   :  { %v1394_v63 = vsel %vm1360_vm10, %v1393_v60, 0.0 }
 0xe29   :  { %v1395_v35 = vadd.f32 %v1394_v63, %v1344_v36 }
 0xe2b   :  { %v1440_v17 = vmul.f32 %v1413_v2, %v1395_v35 }
 0xe2d   :  { %1441 = vadd.xlane.f32.xlu1 %v1440_v17 }
 0xe4f   :  { %v1353_v10 = vpop.xlane.xlu0 %1352 }
 0xe50   :  { %v1354_v3 = vsub.f32 %v2561_v52, %v1353_v10 }
 0xe52   :  { %v1355_v21 = vmul.f32 %v2136_v23, %v1354_v3 }
 0xe54   :  { %v1356_v6 = vsel %vm1309_vm7, %v1355_v21, 0.0  ;;  %vm1513_vm7 = vcmask 195768  }
 0xe55   :  { %v1357_v7 = vadd.f32 %v1356_v6, %v1306_v22 }
 0xe57   :  { %v1402_v8 = vmul.f32 %v1362_v28, %v1357_v7 }
 0xe59   :  { %1403 = vadd.xlane.f32.xlu0 %v1402_v8 }
 0xe72   :  { %v1418_v45 = vpop.xlane.xlu1 %1417  ;;  %v1427_v13 = vpop.xlane.xlu0 %1426 }
 0xe73   :  { %v1419_v18 = vsub.f32 %v1415_v38, %v1418_v45  ;;  %v1428_v12 = vsub.f32 %v2503_v62, %v1427_v13 }
 0xe75   :  { %2139 = vrsqrt.f32 %v1419_v18 }
 0xe82   :  { %v2140_v9 = vpop.eup %2139 }
 0xe83   :  { %v1429_v61 = vmul.f32 %v2140_v9, %v1428_v12  ;;  %v1568_v12 = vld [vmem:[#allocation0 + $0x18] ss:$0 sm:$0xff] }
 0xe85   :  { %v1432_v0 = vsel %vm1431_vm0, %v1429_v61, 0.0 }
 0xe86   :  { %v1433_v11 = vadd.f32 %v1432_v0, %v1382_v27  ;;  %v2705_v0 = vld [vmem:[#allocation0 + $0x18] sm:$0xff] }
 0xe88   :  { %1435 = vst [vmem:[#allocation1 + $0x10] sm:$0xff] %v1433_v11 }
 0xe8f   :  { %v1464_v14 = vld [vmem:[#allocation1 + $0x16] ss:$0 sm:$0xff] }
 0xe90   :  { %v1476_v34 = vmul.f32 %v1464_v14, %v1433_v11  ;;  %v1467_v25 = vmul.f32 %v1464_v14, %v1464_v14 }
 0xe92   :  { %1477 = vadd.xlane.f32.xlu0 %v1476_v34  ;;  %1468 = vadd.xlane.f32.xlu1 %v1467_v25 }
 0xeb6   :  { %v1442_v15 = vpop.xlane.xlu1 %1441 }
 0xeb7   :  { %v1443_v19 = vsub.f32 %v2509_v37, %v1442_v15 }
 0xeb9   :  { %v1444_v20 = vmul.f32 %v2140_v9, %v1443_v19 }
 0xebb   :  { %v1445_v55 = vsel %vm1411_vm15, %v1444_v20, 0.0 }
 0xebc   :  { %v1446_v23 = vadd.f32 %v1445_v55, %v1395_v35 }
 0xebe   :  { %v1491_v24 = vmul.f32 %v1464_v14, %v1446_v23 }
 0xec0   :  { %1492 = vadd.xlane.f32.xlu1 %v1491_v24 }
 0xee2   :  { %v1404_v5 = vpop.xlane.xlu0 %1403 }
 0xee3   :  { %v1405_v56 = vsub.f32 %v2561_v52, %v1404_v5 }
 0xee5   :  { %v1406_v28 = vmul.f32 %v2138_v48, %v1405_v56 }
 0xee7   :  { %v1407_v51 = vsel %vm1360_vm10, %v1406_v28, 0.0  ;;  %vm1600_vm10 = vcmask 212168  }
 0xee8   :  { %v1408_v29 = vadd.f32 %v1407_v51, %v1357_v7  ;;  %vm1620_vm13 = vmand %vm1600_vm10, %vm147_vm2 }
 0xeea   :  { %v1453_v4 = vmul.f32 %v1413_v2, %v1408_v29 }
 0xeec   :  { %1454 = vadd.xlane.f32.xlu0 %v1453_v4  ;;  %v1604_v4 = vld [vmem:[#allocation0 + $0x19] ss:$0 sm:$0xff] }
 0xf1b   :  { %v1469_v30 = vpop.xlane.xlu1 %1468  ;;  %v1478_v36 = vpop.xlane.xlu0 %1477 }
 0xf1c   :  { %v1470_v33 = vsub.f32 %v1466_v32, %v1469_v30  ;;  %v1479_v58 = vsub.f32 %v2503_v62, %v1478_v36 }
 0xf1e   :  { %2141 = vrsqrt.f32 %v1470_v33 }
 0xf2b   :  { %v2142_v16 = vpop.eup %2141 }
 0xf2c   :  { %v1480_v1 = vmul.f32 %v2142_v16, %v1479_v58 }
 0xf2e   :  { %v1483_v39 = vsel %vm1482_vm6, %v1480_v1, 0.0 }
 0xf2f   :  { %v2685_v40 = vadd.f32 %v1483_v39, %v1433_v11 }
 0xf31   :  { %1486 = vst [vmem:[#allocation1 + $0x10] sm:$0xff] %v2685_v40 }
 0xf38   :  { %v2688_v22 = vld [vmem:[#allocation1 + $0x17] ss:$0 sm:$0xff] }
 0xf39   :  { %v1518_v41 = vmul.f32 %v2688_v22, %v2688_v22 }
 0xf3b   :  { %1519 = vadd.xlane.f32.xlu1 %v1518_v41 }
 0xf49   :  { %v1493_v42 = vpop.xlane.xlu1 %1492 }
 0xf4a   :  { %v1494_v26 = vsub.f32 %v2509_v37, %v1493_v42 }
 0xf4c   :  { %v1495_v62 = vmul.f32 %v2142_v16, %v1494_v26 }
 0xf4e   :  { %v1496_v43 = vsel %vm1462_vm3, %v1495_v62, 0.0 }
 0xf4f   :  { %v1497_v44 = vadd.f32 %v1496_v43, %v1446_v23 }
 0xf51   :  { %v1542_v47 = vmul.f32 %v2688_v22, %v1497_v44 }
 0xf53   :  { %1543 = vadd.xlane.f32.xlu0 %v1542_v47 }
 0xf75   :  { %v1455_v48 = vpop.xlane.xlu0 %1454 }
 0xf76   :  { %v1456_v49 = vsub.f32 %v2561_v52, %v1455_v48 }
 0xf78   :  { %v1457_v50 = vmul.f32 %v2140_v9, %v1456_v49 }
 0xf7a   :  { %v1458_v27 = vsel %vm1411_vm15, %v1457_v50, 0.0  ;;  %vm1638_vm15 = vcmask 220368  }
 0xf7b   :  { %v1459_v2 = vadd.f32 %v1458_v27, %v1408_v29  ;;  %vm1658_vm0 = vmand %vm1638_vm15, %vm221_vm5 }
 0xf7d   :  { %v1504_v53 = vmul.f32 %v1464_v14, %v1459_v2 }
 0xf7f   :  { %1505 = vadd.xlane.f32.xlu1 %v1504_v53 }
 0xfc4   :  { %v1520_v57 = vpop.xlane.xlu1 %1519 }
 0xfc5   :  { %v1521_v59 = vsub.f32 %v1517_v54, %v1520_v57  ;;  %v1642_v57 = vld [vmem:[#allocation0 + $0x1a] ss:$0 sm:$0xff] }
 0xfc7   :  { %2143 = vrsqrt.f32 %v1521_v59 }
 0xfd4   :  { %v2698_v35 = vpop.eup %2143 }
 0xfdc   :  { %v1544_v60 = vpop.xlane.xlu0 %1543 }
 0xfdd   :  { %v1545_v63 = vsub.f32 %v2509_v37, %v1544_v60 }
 0xfdf   :  { %v1546_v17 = vmul.f32 %v2698_v35, %v1545_v63 }
 0xfe1   :  { %v1547_v10 = vsel %vm1513_vm7, %v1546_v17, 0.0 }
 0xfe2   :  { %v1548_v3 = vadd.f32 %v1547_v10, %v1497_v44 }
 0xfe4   :  { %1550 = vst [vmem:[#allocation1 + $0x18] sm:$0xff] %v1548_v3 }
 0xfeb   :  { %v1566_v21 = vld [vmem:[#allocation1 + $0x18] ss:$0 sm:$0xff] }
 0xfec   :  { %v1578_v6 = vmul.f32 %v1566_v21, %v1548_v3  ;;  %v1569_v7 = vmul.f32 %v1566_v21, %v1566_v21 }
 0xfee   :  { %1579 = vadd.xlane.f32.xlu1 %v1578_v6  ;;  %1570 = vadd.xlane.f32.xlu0 %v1569_v7 }
0x1008   :  { %v1506_v8 = vpop.xlane.xlu1 %1505 }
0x1009   :  { %v1507_v38 = vsub.f32 %v2561_v52, %v1506_v8 }
0x100b   :  { %v1508_v45 = vmul.f32 %v2142_v16, %v1507_v38 }
0x100d   :  { %v1509_v37 = vsel %vm1462_vm3, %v1508_v45, 0.0  ;;  %vm1676_vm3 = vcmask 228568  }
0x100e   :  { %v1510_v18 = vadd.f32 %v1509_v37, %v1459_v2  ;;  %vm1696_vm6 = vmand %vm1676_vm3, %vm295_vm8 }
0x1010   :  { %v1555_v13 = vmul.f32 %v2688_v22, %v1510_v18 }
0x1012   :  { %1556 = vadd.xlane.f32.xlu0 %v1555_v13 }
0x1077   :  { %v1571_v9 = vpop.xlane.xlu0 %1570  ;;  %v1580_v11 = vpop.xlane.xlu1 %1579 }
0x1078   :  { %v1572_v61 = vsub.f32 %v1568_v12, %v1571_v9  ;;  %v1581_v14 = vsub.f32 %v2705_v0, %v1580_v11  ;;  %v1680_v11 = vld [vmem:[#allocation0 + $0x1b] ss:$0 sm:$0xff] }
0x107a   :  { %2145 = vrsqrt.f32 %v1572_v61 }
0x1087   :  { %v2146_v34 = vpop.eup %2145 }
0x1088   :  { %v1582_v25 = vmul.f32 %v2146_v34, %v1581_v14 }
0x108a   :  { %v1583_v15 = vsel %vm1564_vm9, %v1582_v25, 0.0 }
0x108b   :  { %v1584_v19 = vadd.f32 %v1583_v15, %v1548_v3 }
0x108d   :  { %1586 = vst [vmem:[#allocation1 + $0x18] sm:$0xff] %v1584_v19 }
0x1094   :  { %v1602_v20 = vld [vmem:[#allocation1 + $0x19] ss:$0 sm:$0xff] }
0x1095   :  { %v1605_v55 = vmul.f32 %v1602_v20, %v1602_v20  ;;  %v1614_v23 = vmul.f32 %v1602_v20, %v1584_v19 }
0x1097   :  { %1606 = vadd.xlane.f32.xlu1 %v1605_v55 }
0x109b   :  { %v1557_v24 = vpop.xlane.xlu0 %1556  ;;  %1615 = vadd.xlane.f32.xlu1 %v1614_v23 }
0x109c   :  { %v1558_v5 = vsub.f32 %v2561_v52, %v1557_v24 }
0x109e   :  { %v1559_v56 = vmul.f32 %v2698_v35, %v1558_v5 }
0x10a0   :  { %v1560_v28 = vsel %vm1513_vm7, %v1559_v56, 0.0  ;;  %v2727_v56 = vld [vmem:[#allocation0 + $0x20] sm:$0xff] }
0x10a1   :  { %v1561_v51 = vadd.f32 %v1560_v28, %v1510_v18 }
0x10a3   :  { %v1591_v29 = vmul.f32 %v1566_v21, %v1561_v51 }
0x10a5   :  { %1592 = vadd.xlane.f32.xlu0 %v1591_v29 }
0x1120   :  { %v1607_v32 = vpop.xlane.xlu1 %1606 }
0x1121   :  { %v1608_v30 = vsub.f32 %v1604_v4, %v1607_v32 }
0x1123   :  { %2147 = vrsqrt.f32 %v1608_v30 }
0x1124   :  { %v1616_v33 = vpop.xlane.xlu1 %1615 }
0x1125   :  { %v1617_v58 = vsub.f32 %v2705_v0, %v1616_v33  ;;  %v1718_v33 = vld [vmem:[#allocation0 + $0x1c] ss:$0 sm:$0xff] }
0x112e   :  { %v1593_v36 = vpop.xlane.xlu0 %1592 }
0x112f   :  { %v1594_v16 = vsub.f32 %v2561_v52, %v1593_v36 }
0x1130   :  { %v2148_v1 = vpop.eup %2147 }
0x1131   :  { %v1618_v39 = vmul.f32 %v2148_v1, %v1617_v58  ;;  %v1595_v41 = vmul.f32 %v2146_v34, %v1594_v16 }
0x1133   :  { %v1621_v42 = vsel %vm1620_vm13, %v1618_v39, 0.0  ;;  %v1596_v26 = vsel %vm1564_vm9, %v1595_v41, 0.0  ;;  %vm1714_vm9 = vcmask 236768   ;;  %vm1752_vm13 = vcmask 244968  }
0x1134   :  { %v1622_v62 = vadd.f32 %v1621_v42, %v1584_v19  ;;  %v1597_v43 = vadd.f32 %v1596_v26, %v1561_v51 }
0x1136   :  { %1624 = vst [vmem:[#allocation1 + $0x18] sm:$0xff] %v1622_v62  ;;  %v1629_v44 = vmul.f32 %v1602_v20, %v1597_v43 }
0x1138   :  { %1630 = vadd.xlane.f32.xlu0 %v1629_v44 }
0x113d   :  { %v1640_v47 = vld [vmem:[#allocation1 + $0x1a] ss:$0 sm:$0xff] }
0x113e   :  { %v1643_v48 = vmul.f32 %v1640_v47, %v1640_v47  ;;  %v1652_v49 = vmul.f32 %v1640_v47, %v1622_v62 }
0x1140   :  { %1644 = vadd.xlane.f32.xlu1 %v1643_v48  ;;  %1653 = vadd.xlane.f32.xlu0 %v1652_v49 }
0x11c1   :  { %v1631_v50 = vpop.xlane.xlu0 %1630 }
0x11c2   :  { %v1632_v27 = vsub.f32 %v2561_v52, %v1631_v50 }
0x11c4   :  { %v1633_v2 = vmul.f32 %v2148_v1, %v1632_v27 }
0x11c6   :  { %v1634_v53 = vsel %vm1600_vm10, %v1633_v2, 0.0  ;;  %vm1734_vm10 = vmand %vm1714_vm9, %vm369_vm11 }
0x11c7   :  { %v1635_v54 = vadd.f32 %v1634_v53, %v1597_v43  ;;  %v1756_v53 = vld [vmem:[#allocation0 + $0x1d] ss:$0 sm:$0xff] }
0x11c9   :  { %v1645_v59 = vpop.xlane.xlu1 %1644  ;;  %v1667_v60 = vmul.f32 %v1640_v47, %v1635_v54  ;;  %v1654_v17 = vpop.xlane.xlu0 %1653 }
0x11ca   :  { %v1646_v63 = vsub.f32 %v1642_v57, %v1645_v59  ;;  %v1655_v10 = vsub.f32 %v2705_v0, %v1654_v17 }
0x11cb   :  { %1668 = vadd.xlane.f32.xlu1 %v1667_v60 }
0x11cc   :  { %2149 = vrsqrt.f32 %v1646_v63 }
0x11d9   :  { %v2150_v3 = vpop.eup %2149 }
0x11da   :  { %v1656_v21 = vmul.f32 %v2150_v3, %v1655_v10 }
0x11dc   :  { %v1659_v6 = vsel %vm1658_vm0, %v1656_v21, 0.0  ;;  %vm1790_vm0 = vcmask 253168  }
0x11dd   :  { %v1660_v7 = vadd.f32 %v1659_v6, %v1622_v62 }
0x11df   :  { %1662 = vst [vmem:[#allocation1 + $0x18] sm:$0xff] %v1660_v7 }
0x11e6   :  { %v1678_v8 = vld [vmem:[#allocation1 + $0x1b] ss:$0 sm:$0xff] }
0x11e7   :  { %v1690_v38 = vmul.f32 %v1678_v8, %v1660_v7  ;;  %v1681_v45 = vmul.f32 %v1678_v8, %v1678_v8 }
0x11e9   :  { %1691 = vadd.xlane.f32.xlu1 %v1690_v38  ;;  %1682 = vadd.xlane.f32.xlu0 %v1681_v45 }
0x1254   :  { %v1669_v37 = vpop.xlane.xlu1 %1668 }
0x1255   :  { %v1670_v18 = vsub.f32 %v2561_v52, %v1669_v37 }
0x1257   :  { %v1671_v13 = vmul.f32 %v2150_v3, %v1670_v18 }
0x1259   :  { %v1672_v12 = vsel %vm1638_vm15, %v1671_v13, 0.0  ;;  %vm1772_vm15 = vmand %vm1752_vm13, %vm443_vm14 }
0x125a   :  { %v1673_v9 = vadd.f32 %v1672_v12, %v1635_v54  ;;  %v1794_v12 = vld [vmem:[#allocation0 + $0x1e] ss:$0 sm:$0xff] }
0x125c   :  { %v1705_v61 = vmul.f32 %v1678_v8, %v1673_v9 }
0x125e   :  { %1706 = vadd.xlane.f32.xlu0 %v1705_v61 }
0x1272   :  { %v1683_v14 = vpop.xlane.xlu0 %1682  ;;  %v1692_v25 = vpop.xlane.xlu1 %1691 }
0x1273   :  { %v1684_v34 = vsub.f32 %v1680_v11, %v1683_v14  ;;  %v1693_v15 = vsub.f32 %v2705_v0, %v1692_v25 }
0x1275   :  { %2151 = vrsqrt.f32 %v1684_v34 }
0x1282   :  { %v2152_v19 = vpop.eup %2151 }
0x1283   :  { %v1694_v20 = vmul.f32 %v2152_v19, %v1693_v15 }
0x1285   :  { %v1697_v52 = vsel %vm1696_vm6, %v1694_v20, 0.0  ;;  %vm1828_vm6 = vcmask 261368  }
0x1286   :  { %v1698_v55 = vadd.f32 %v1697_v52, %v1660_v7 }
0x1288   :  { %1700 = vst [vmem:[#allocation1 + $0x18] sm:$0xff] %v1698_v55 }
0x128f   :  { %v1716_v23 = vld [vmem:[#allocation1 + $0x1c] ss:$0 sm:$0xff] }
0x1290   :  { %v1728_v24 = vmul.f32 %v1716_v23, %v1698_v55  ;;  %v1719_v5 = vmul.f32 %v1716_v23, %v1716_v23 }
0x1292   :  { %1729 = vadd.xlane.f32.xlu0 %v1728_v24  ;;  %1720 = vadd.xlane.f32.xlu1 %v1719_v5 }
0x12e7   :  { %v1707_v28 = vpop.xlane.xlu0 %1706 }
0x12e8   :  { %v1708_v51 = vsub.f32 %v2727_v56, %v1707_v28 }
0x12ea   :  { %v1709_v29 = vmul.f32 %v2152_v19, %v1708_v51 }
0x12ec   :  { %v1710_v4 = vsel %vm1676_vm3, %v1709_v29, 0.0  ;;  %vm1810_vm3 = vmand %vm1790_vm0, %vm517_vm1  ;;  %v1832_v29 = vld [vmem:[#allocation0 + $0x1f] ss:$0 sm:$0xff] }
0x12ed   :  { %v1711_v32 = vadd.f32 %v1710_v4, %v1673_v9 }
0x12ef   :  { %v1743_v30 = vmul.f32 %v1716_v23, %v1711_v32 }
0x12f1   :  { %1744 = vadd.xlane.f32.xlu1 %v1743_v30 }
0x131b   :  { %v1721_v36 = vpop.xlane.xlu1 %1720  ;;  %v1730_v16 = vpop.xlane.xlu0 %1729 }
0x131c   :  { %v1722_v58 = vsub.f32 %v1718_v33, %v1721_v36  ;;  %v1731_v1 = vsub.f32 %v2705_v0, %v1730_v16 }
0x131e   :  { %2153 = vrsqrt.f32 %v1722_v58 }
0x132b   :  { %v2154_v39 = vpop.eup %2153 }
0x132c   :  { %v1732_v41 = vmul.f32 %v2154_v39, %v1731_v1 }
0x132e   :  { %v1735_v42 = vsel %vm1734_vm10, %v1732_v41, 0.0  ;;  %vm1889_vm10 = vcmask 277768  }
0x132f   :  { %v1736_v26 = vadd.f32 %v1735_v42, %v1698_v55 }
0x1331   :  { %1738 = vst [vmem:[#allocation1 + $0x18] sm:$0xff] %v1736_v26 }
0x1338   :  { %v1754_v62 = vld [vmem:[#allocation1 + $0x1d] ss:$0 sm:$0xff] }
0x1339   :  { %v1766_v43 = vmul.f32 %v1754_v62, %v1736_v26  ;;  %v1757_v44 = vmul.f32 %v1754_v62, %v1754_v62 }
0x133b   :  { %1767 = vadd.xlane.f32.xlu1 %v1766_v43  ;;  %1758 = vadd.xlane.f32.xlu0 %v1757_v44 }
0x137a   :  { %v1745_v47 = vpop.xlane.xlu1 %1744 }
0x137b   :  { %v1746_v48 = vsub.f32 %v2727_v56, %v1745_v47 }
0x137d   :  { %v1747_v49 = vmul.f32 %v2154_v39, %v1746_v48 }
0x137f   :  { %v1748_v50 = vsel %vm1714_vm9, %v1747_v49, 0.0  ;;  %vm1866_vm9 = vcmask 269568  }
0x1380   :  { %v1749_v27 = vadd.f32 %v1748_v50, %v1711_v32 }
0x1382   :  { %v1781_v2 = vmul.f32 %v1754_v62, %v1749_v27 }
0x1384   :  { %1782 = vadd.xlane.f32.xlu0 %v1781_v2 }
0x13c4   :  { %v1759_v54 = vpop.xlane.xlu0 %1758  ;;  %v1768_v59 = vpop.xlane.xlu1 %1767 }
0x13c5   :  { %v1760_v57 = vsub.f32 %v1756_v53, %v1759_v54  ;;  %v1769_v60 = vsub.f32 %v2705_v0, %v1768_v59 }
0x13c7   :  { %2155 = vrsqrt.f32 %v1760_v57  ;;  %v1893_v57 = vld [vmem:[#allocation0 + $0x21] ss:$0 sm:$0xff] }
0x13d4   :  { %v2156_v63 = vpop.eup %2155 }
0x13d5   :  { %v1770_v17 = vmul.f32 %v2156_v63, %v1769_v60 }
0x13d7   :  { %v1773_v10 = vsel %vm1772_vm15, %v1770_v17, 0.0  ;;  %vm1914_vm15 = vcmask 285968  }
0x13d8   :  { %v1774_v3 = vadd.f32 %v1773_v10, %v1736_v26  ;;  %v1870_v26 = vld [vmem:[#allocation0 + $0x20] ss:$0 sm:$0xff] }
0x13da   :  { %1776 = vst [vmem:[#allocation1 + $0x18] sm:$0xff] %v1774_v3 }
0x13e1   :  { %v1792_v21 = vld [vmem:[#allocation1 + $0x1e] ss:$0 sm:$0xff] }
0x13e2   :  { %v1804_v6 = vmul.f32 %v1792_v21, %v1774_v3  ;;  %v1795_v7 = vmul.f32 %v1792_v21, %v1792_v21 }
0x13e4   :  { %1805 = vadd.xlane.f32.xlu0 %v1804_v6  ;;  %1796 = vadd.xlane.f32.xlu1 %v1795_v7 }
0x140d   :  { %v1783_v8 = vpop.xlane.xlu0 %1782 }
0x140e   :  { %v1784_v38 = vsub.f32 %v2727_v56, %v1783_v8 }
0x1410   :  { %v1785_v45 = vmul.f32 %v2156_v63, %v1784_v38 }
0x1412   :  { %v1786_v37 = vsel %vm1752_vm13, %v1785_v45, 0.0  ;;  %vm1909_vm13 = vmand %vm1889_vm10, %vm147_vm2  ;;  %v1918_v45 = vld [vmem:[#allocation0 + $0x22] ss:$0 sm:$0xff] }
0x1413   :  { %v1787_v18 = vadd.f32 %v1786_v37, %v1749_v27  ;;  %vm1934_vm2 = vmand %vm1914_vm15, %vm221_vm5  ;;  %vm2014_vm15 = vcmask 318768  }
0x1415   :  { %v1819_v13 = vmul.f32 %v1792_v21, %v1787_v18 }
0x1417   :  { %1820 = vadd.xlane.f32.xlu1 %v1819_v13 }
0x146d   :  { %v1797_v9 = vpop.xlane.xlu1 %1796  ;;  %v1806_v11 = vpop.xlane.xlu0 %1805 }
0x146e   :  { %v1798_v61 = vsub.f32 %v1794_v12, %v1797_v9  ;;  %v1807_v14 = vsub.f32 %v2705_v0, %v1806_v11 }
0x1470   :  { %2157 = vrsqrt.f32 %v1798_v61 }
0x147d   :  { %v2158_v34 = vpop.eup %2157 }
0x147e   :  { %v1808_v25 = vmul.f32 %v2158_v34, %v1807_v14 }
0x1480   :  { %v1811_v15 = vsel %vm1810_vm3, %v1808_v25, 0.0  ;;  %vm1964_vm3 = vcmask 302368  }
0x1481   :  { %v2743_v19 = vadd.f32 %v1811_v15, %v1774_v3 }
0x1483   :  { %1814 = vst [vmem:[#allocation1 + $0x18] sm:$0xff] %v2743_v19 }
0x148a   :  { %v2746_v20 = vld [vmem:[#allocation1 + $0x1f] ss:$0 sm:$0xff] }
0x148b   :  { %v1833_v52 = vmul.f32 %v2746_v20, %v2746_v20 }
0x148d   :  { %1834 = vadd.xlane.f32.xlu0 %v1833_v52  ;;  %v1943_v52 = vld [vmem:[#allocation0 + $0x23] ss:$0 sm:$0xff] }
0x14a0   :  { %v1821_v55 = vpop.xlane.xlu1 %1820 }
0x14a1   :  { %v1822_v23 = vsub.f32 %v2727_v56, %v1821_v55 }
0x14a3   :  { %v1823_v24 = vmul.f32 %v2158_v34, %v1822_v23 }
0x14a5   :  { %v1824_v5 = vsel %vm1790_vm0, %v1823_v24, 0.0  ;;  %vm1939_vm0 = vcmask 294168  }
0x14a6   :  { %v1825_v28 = vadd.f32 %v1824_v5, %v1787_v18  ;;  %vm1959_vm5 = vmand %vm1939_vm0, %vm295_vm8 }
0x14a7   :  { %vm1984_vm8 = vmand %vm1964_vm3, %vm369_vm11  ;;  %vm591_vm11 = vcmask 1047559  }
0x14a8   :  { %v1857_v51 = vmul.f32 %v2746_v20, %v1825_v28  ;;  %vm1533_vm10 = vmand %vm1513_vm7, %vm591_vm11 }
0x14a9   :  { %vm1848_vm7 = vmand %vm1828_vm6, %vm591_vm11 }
0x14aa   :  { %1858 = vadd.xlane.f32.xlu1 %v1857_v51 }
0x1516   :  { %v1835_v4 = vpop.xlane.xlu0 %1834 }
0x1517   :  { %v1836_v32 = vsub.f32 %v1832_v29, %v1835_v4 }
0x1519   :  { %2159 = vrsqrt.f32 %v1836_v32 }
0x1526   :  { %v2753_v36 = vpop.eup %2159 }
0x1533   :  { %v1859_v30 = vpop.xlane.xlu1 %1858 }
0x1534   :  { %v1860_v33 = vsub.f32 %v2727_v56, %v1859_v30 }
0x1536   :  { %v1861_v58 = vmul.f32 %v2753_v36, %v1860_v33 }
0x1538   :  { %v1862_v16 = vsel %vm1828_vm6, %v1861_v58, 0.0  ;;  %v1968_v58 = vld [vmem:[#allocation0 + $0x24] ss:$0 sm:$0xff] }
0x1539   :  { %v1863_v1 = vadd.f32 %v1862_v16, %v1825_v28 }
0x153b   :  { %1865 = vst [vmem:[#allocation1 + $0x20] sm:$0xff] %v1863_v1 }
0x1542   :  { %v1868_v39 = vld [vmem:[#allocation1 + $0x20] ss:$0 sm:$0xff] }
0x1543   :  { %v1880_v41 = vmul.f32 %v1868_v39, %v1863_v1  ;;  %v1871_v42 = vmul.f32 %v1868_v39, %v1868_v39 }
0x1545   :  { %1881 = vadd.xlane.f32.xlu1 %v1880_v41  ;;  %1872 = vadd.xlane.f32.xlu0 %v1871_v42 }
0x15ce   :  { %v1873_v62 = vpop.xlane.xlu0 %1872  ;;  %v1882_v44 = vpop.xlane.xlu1 %1881 }
0x15cf   :  { %v1874_v43 = vsub.f32 %v1870_v26, %v1873_v62  ;;  %v1883_v47 = vsub.f32 %v2727_v56, %v1882_v44 }
0x15d1   :  { %2161 = vrsqrt.f32 %v1874_v43 }
0x15de   :  { %v2162_v48 = vpop.eup %2161 }
0x15df   :  { %v1884_v49 = vmul.f32 %v2162_v48, %v1883_v47 }
0x15e1   :  { %v1885_v50 = vsel %vm1866_vm9, %v1884_v49, 0.0  ;;  %v585_v49 = vld [vmem:[#allocation1] sm:$0xff]  ;;  %vm592_vm9 = vmand %vm574_vm4, %vm591_vm11 }
0x15e2   :  { %v1886_v27 = vadd.f32 %v1885_v50, %v1863_v1  ;;  %v2175_v50 = vld [vmem:[#allocation1 + $0x7] ss:$0 sm:$0xff] }
0x15e4   :  { %1888 = vst [vmem:[#allocation1 + $0x20] sm:$0xff] %v1886_v27 }
0x15eb   :  { %v1891_v2 = vld [vmem:[#allocation1 + $0x21] ss:$0 sm:$0xff] }
0x15ec   :  { %v1903_v53 = vmul.f32 %v1891_v2, %v1886_v27  ;;  %v1894_v54 = vmul.f32 %v1891_v2, %v1891_v2  ;;  %v1527_v2 = vmul.f32 %v2688_v22, %v2685_v40 }
0x15ee   :  { %1904 = vadd.xlane.f32.xlu1 %v1903_v53  ;;  %1895 = vadd.xlane.f32.xlu0 %v1894_v54  ;;  %v1993_v53 = vld [vmem:[#allocation0 + $0x25] ss:$0 sm:$0xff] }
0x1677   :  { %v1896_v59 = vpop.xlane.xlu0 %1895  ;;  %v1905_v63 = vpop.xlane.xlu1 %1904 }
0x1678   :  { %v1897_v60 = vsub.f32 %v1893_v57, %v1896_v59  ;;  %v1906_v17 = vsub.f32 %v2727_v56, %v1905_v63 }
0x167a   :  { %2163 = vrsqrt.f32 %v1897_v60  ;;  %v584_v60 = vld [vmem:[#allocation0] sm:$0xff] }
0x1687   :  { %v2164_v10 = vpop.eup %2163 }
0x1688   :  { %v1907_v3 = vmul.f32 %v2164_v10, %v1906_v17  ;;  %v1524_v10 = vld [vmem:[#allocation0 + $0x10] sm:$0xff] }
0x168a   :  { %v1910_v21 = vsel %vm1909_vm13, %v1907_v3, 0.0  ;;  %vm1989_vm13 = vcmask 310568  }
0x168b   :  { %v1911_v6 = vadd.f32 %v1910_v21, %v1886_v27  ;;  %v586_v27 = vmul.f32 %v2175_v50, %v585_v49  ;;  %vm2009_vm4 = vmand %vm1989_vm13, %vm443_vm14 }
0x168c   :  { %vm1114_vm14 = vmand %vm1094_vm12, %vm591_vm11 }
0x168d   :  { %1913 = vst [vmem:[#allocation1 + $0x20] sm:$0xff] %v1911_v6  ;;  %vm2034_vm12 = vmand %vm2014_vm15, %vm517_vm1 }
0x1694   :  { %v1916_v7 = vld [vmem:[#allocation1 + $0x22] ss:$0 sm:$0xff] }
0x1695   :  { %v1928_v8 = vmul.f32 %v1916_v7, %v1911_v6  ;;  %v1919_v38 = vmul.f32 %v1916_v7, %v1916_v7 }
0x1697   :  { %1929 = vadd.xlane.f32.xlu1 %v1928_v8  ;;  %1920 = vadd.xlane.f32.xlu0 %v1919_v38 }
0x1720   :  { %v1921_v37 = vpop.xlane.xlu0 %1920  ;;  %v1930_v13 = vpop.xlane.xlu1 %1929 }
0x1721   :  { %v1922_v18 = vsub.f32 %v1918_v45, %v1921_v37  ;;  %v1931_v12 = vsub.f32 %v2727_v56, %v1930_v13 }
0x1723   :  { %2165 = vrsqrt.f32 %v1922_v18 }
0x1730   :  { %v2166_v9 = vpop.eup %2165 }
0x1731   :  { %v1932_v61 = vmul.f32 %v2166_v9, %v1931_v12 }
0x1733   :  { %v1935_v11 = vsel %vm1934_vm2, %v1932_v61, 0.0 }
0x1734   :  { %v1936_v14 = vadd.f32 %v1935_v11, %v1911_v6  ;;  %v1107_v11 = vld [vmem:[#allocation1 + $0x8] sm:$0xff] }
0x1736   :  { %1938 = vst [vmem:[#allocation1 + $0x20] sm:$0xff] %v1936_v14 }
0x173d   :  { %v1941_v34 = vld [vmem:[#allocation1 + $0x23] ss:$0 sm:$0xff] }
0x173e   :  { %v1953_v25 = vmul.f32 %v1941_v34, %v1936_v14  ;;  %v1944_v15 = vmul.f32 %v1941_v34, %v1941_v34  ;;  %v1842_v34 = vmul.f32 %v2746_v20, %v2743_v19 }
0x1740   :  { %1954 = vadd.xlane.f32.xlu1 %v1953_v25  ;;  %1945 = vadd.xlane.f32.xlu0 %v1944_v15  ;;  %v2018_v25 = vld [vmem:[#allocation0 + $0x26] ss:$0 sm:$0xff] }
0x17c9   :  { %v1946_v55 = vpop.xlane.xlu0 %1945  ;;  %v1955_v24 = vpop.xlane.xlu1 %1954 }
0x17ca   :  { %v1947_v23 = vsub.f32 %v1943_v52, %v1946_v55  ;;  %v1956_v5 = vsub.f32 %v2727_v56, %v1955_v24  ;;  %v1105_v55 = vld [vmem:[#allocation0 + $0x8] sm:$0xff] }
0x17cc   :  { %2167 = vrsqrt.f32 %v1947_v23 }
0x17d9   :  { %v2168_v28 = vpop.eup %2167 }
0x17da   :  { %v1957_v51 = vmul.f32 %v2168_v28, %v1956_v5 }
0x17dc   :  { %v1960_v29 = vsel %vm1959_vm5, %v1957_v51, 0.0 }
0x17dd   :  { %v1961_v4 = vadd.f32 %v1960_v29, %v1936_v14 }
0x17df   :  { %1963 = vst [vmem:[#allocation1 + $0x20] sm:$0xff] %v1961_v4 }
0x17e6   :  { %v1966_v32 = vld [vmem:[#allocation1 + $0x24] ss:$0 sm:$0xff] }
0x17e7   :  { %v1978_v30 = vmul.f32 %v1966_v32, %v1961_v4  ;;  %v1969_v33 = vmul.f32 %v1966_v32, %v1966_v32 }
0x17e9   :  { %1979 = vadd.xlane.f32.xlu1 %v1978_v30  ;;  %1970 = vadd.xlane.f32.xlu0 %v1969_v33 }
0x1872   :  { %v1971_v16 = vpop.xlane.xlu0 %1970  ;;  %v1980_v39 = vpop.xlane.xlu1 %1979 }
0x1873   :  { %v1972_v1 = vsub.f32 %v1968_v58, %v1971_v16  ;;  %v1981_v41 = vsub.f32 %v2727_v56, %v1980_v39 }
0x1875   :  { %2169 = vrsqrt.f32 %v1972_v1 }
0x1882   :  { %v2170_v42 = vpop.eup %2169 }
0x1883   :  { %v1982_v26 = vmul.f32 %v2170_v42, %v1981_v41 }
0x1885   :  { %v1985_v62 = vsel %vm1984_vm8, %v1982_v26, 0.0 }
0x1886   :  { %v1986_v43 = vadd.f32 %v1985_v62, %v1961_v4 }
0x1888   :  { %1988 = vst [vmem:[#allocation1 + $0x20] sm:$0xff] %v1986_v43 }
0x188f   :  { %v1991_v44 = vld [vmem:[#allocation1 + $0x25] ss:$0 sm:$0xff] }
0x1890   :  { %v2003_v47 = vmul.f32 %v1991_v44, %v1986_v43  ;;  %v1994_v48 = vmul.f32 %v1991_v44, %v1991_v44 }
0x1892   :  { %2004 = vadd.xlane.f32.xlu1 %v2003_v47  ;;  %1995 = vadd.xlane.f32.xlu0 %v1994_v48 }
0x1896   :  { %587 = vadd.xlane.f32.xlu1 %v586_v27 }
0x189a   :  { %1528 = vadd.xlane.f32.xlu1 %v1527_v2 }
0x191b   :  { %v2005_v54 = vpop.xlane.xlu1 %2004  ;;  %v1996_v57 = vpop.xlane.xlu0 %1995 }
0x191c   :  { %v1997_v59 = vsub.f32 %v1993_v53, %v1996_v57 }
0x191e   :  { %2171 = vrsqrt.f32 %v1997_v59 }
0x191f   :  { %v588_v63 = vpop.xlane.xlu1 %587 }
0x1920   :  { %v589_v17 = vsub.f32 %v584_v60, %v588_v63 }
0x1922   :  { %v590_v3 = vmul.f32 %v2389_v31, %v589_v17  ;;  %v2006_v31 = vsub.f32 %v2727_v56, %v2005_v54 }
0x1923   :  { %v1529_v21 = vpop.xlane.xlu1 %1528 }
0x1924   :  { %v593_v6 = vsel %vm592_vm9, %v590_v3, 0.0  ;;  %v1530_v7 = vsub.f32 %v1524_v10, %v1529_v21 }
0x1925   :  { %v594_v22 = vadd.f32 %v593_v6, %v585_v49 }
0x1926   :  { %v1531_v8 = vmul.f32 %v2698_v35, %v1530_v7 }
0x1927   :  { %595 = vst [vmem:[#allocation1] sm:$0xff] %v594_v22  ;;  %2076 = vst [vmem:[%s2805_s1] sm:$0xff] %v594_v22 }
0x1928   :  { %v1534_v38 = vsel %vm1533_vm10, %v1531_v8, 0.0 }
0x1929   :  { %v1535_v45 = vadd.f32 %v1534_v38, %v2685_v40  ;;  %v2176_v40 = vld [vmem:[#allocation1 + $0xf] ss:$0 sm:$0xff] }
0x192a   :  { %v1108_v14 = vmul.f32 %v2176_v40, %v1107_v11 }
0x192b   :  { %v2172_v37 = vpop.eup %2171  ;;  %1537 = vst [vmem:[#allocation1 + $0x10] sm:$0xff] %v1535_v45  ;;  %2080 = vst [vmem:[%s2805_s1 + $0x10] sm:$0xff] %v1535_v45 }
0x192c   :  { %v2007_v35 = vmul.f32 %v2172_v37, %v2006_v31 }
0x192e   :  { %v2010_v18 = vsel %vm2009_vm4, %v2007_v35, 0.0 }
0x192f   :  { %v2011_v13 = vadd.f32 %v2010_v18, %v1986_v43 }
0x1931   :  { %2013 = vst [vmem:[#allocation1 + $0x20] sm:$0xff] %v2011_v13 }
0x1938   :  { %v2016_v12 = vld [vmem:[#allocation1 + $0x26] ss:$0 sm:$0xff] }
0x1939   :  { %v2028_v9 = vmul.f32 %v2016_v12, %v2011_v13  ;;  %v2019_v61 = vmul.f32 %v2016_v12, %v2016_v12 }
0x193b   :  { %2029 = vadd.xlane.f32.xlu1 %v2028_v9  ;;  %2020 = vadd.xlane.f32.xlu0 %v2019_v61 }
0x193f   :  { %1109 = vadd.xlane.f32.xlu0 %v1108_v14 }
0x1943   :  { %1843 = vadd.xlane.f32.xlu0 %v1842_v34 }
0x19c4   :  { %v2021_v15 = vpop.xlane.xlu0 %2020  ;;  %v2030_v32 = vpop.xlane.xlu1 %2029 }
0x19c5   :  { %v2022_v52 = vsub.f32 %v2018_v25, %v2021_v15  ;;  %v2031_v33 = vsub.f32 %v2727_v56, %v2030_v32 }
0x19c7   :  { %2173 = vrsqrt.f32 %v2022_v52 }
0x19c8   :  { %v1110_v23 = vpop.xlane.xlu0 %1109 }
0x19c9   :  { %v1111_v24 = vsub.f32 %v1105_v55, %v1110_v23 }
0x19cb   :  { %v1112_v5 = vmul.f32 %v2590_v46, %v1111_v24 }
0x19cc   :  { %v1844_v28 = vpop.xlane.xlu0 %1843 }
0x19cd   :  { %v1115_v51 = vsel %vm1114_vm14, %v1112_v5, 0.0  ;;  %v1845_v29 = vsub.f32 %v2705_v0, %v1844_v28 }
0x19ce   :  { %v1116_v4 = vadd.f32 %v1115_v51, %v1107_v11 }
0x19cf   :  { %v1846_v20 = vmul.f32 %v2753_v36, %v1845_v29 }
0x19d0   :  { %1118 = vst [vmem:[#allocation1 + $0x8] sm:$0xff] %v1116_v4  ;;  %2078 = vst [vmem:[%s2805_s1 + $0x8] sm:$0xff] %v1116_v4 }
0x19d1   :  { %v1849_v30 = vsel %vm1848_vm7, %v1846_v20, 0.0 }
0x19d2   :  { %v1850_v46 = vadd.f32 %v1849_v30, %v2743_v19 }
0x19d4   :  { %v2174_v58 = vpop.eup %2173  ;;  %1852 = vst [vmem:[#allocation1 + $0x18] sm:$0xff] %v1850_v46  ;;  %2082 = vst [vmem:[%s2805_s1 + $0x18] sm:$0xff] %v1850_v46 }
0x19d5   :  { %v2032_v0 = vmul.f32 %v2174_v58, %v2031_v33 }
0x19d7   :  { %v2035_v36 = vsel %vm2034_vm12, %v2032_v0, 0.0 }
0x19d8   :  { %v2036_v16 = vadd.f32 %v2035_v36, %v2011_v13 }
0x19da   :  { %2038 = vst [vmem:[#allocation1 + $0x20] sm:$0xff] %v2036_v16  ;;  %2084 = vst [vmem:[%s2805_s1 + $0x20] sm:$0xff] %v2036_v16 }

// kernel: embedding_spd_forward.2
= control target key start
LH: loop header
LB: loop body
LE: loop exit
PB: predicated region body
PF: predicated region fallthrough
CT: control target
= control target key end

     0   :  { %s938_s9 = smov 0   ;;  %s1084_s0 = inlined_call_operand.vmem [shape: f32[2,64,64], index: 0, kind: input, shape index: {}]   ;;  %s1085_s1 = inlined_call_operand.vmem [shape: f32[2,64,128], index: 1, kind: input, shape index: {}]   ;;  %s1086_s2 = inlined_call_operand.vmem [shape: f32[2,128,128], index: 2, kind: output, shape index: {}]  }
   0x1 LB: > { %s739_s10 = sadd.s32 4294967295, %s920_s9   ;;  %p743_p0 = scmp.ge.s32.totalorder %s920_s9, 1  ;;  %s920_s9 = sphi %s938_s9, %s12_s9  }
   0x2   : > { %p122_p1 = scmp.lt.s32.totalorder %s920_s9, 3 }
   0x4   : > { %p123_p2 = pnand %p743_p0, %p122_p1 }
   0x5   : > { %p149_p3 = scmp.lt.s32.totalorder (!%p123_p2), %s739_s10, 1 }
   0x6   : > { %126 = sbr.rel (%p123_p2) target bundleno = 614 (0x266), region = 28 }
   0xb   : > { %s1088_s10 = smov (!%p149_p3, %s739_s10), 1  ;;  %vm180_vm0 = vcmask 523264  }
   0xc   : > { %s776_s11 = sshll.u32 %s1088_s10, 6  ;;  %s778_s18 = sshll.u32 %s1088_s10, 7 }
   0xd   : > { %s158_s14 = scalar_lea.vmem %s1085_s1, %s776_s11  ;;  %s955_s17 = scalar_lea.vmem %s1084_s0, %s776_s11 }
   0xe   : > { %v179_v0 = vld [vmem:[%s158_s14 + $0x38] sm:$0xff]  ;;  %v178_v1 = vld [vmem:[%s158_s14 + $0x30] sm:$0xff]  ;;  %v177_v2 = vld [vmem:[%s158_s14 + $0x28] sm:$0xff]  ;;  %s1006_s21 = scalar_lea.vmem %s1086_s2, %s778_s18 }
   0xf   : > { %819 = vmatprep.subr.mxu0 %v179_v0  ;;  %v164_v3 = vld [vmem:[%s955_s17] sm:$0xff]  ;;  %v175_v5 = vld [vmem:[%s158_s14 + $0x18] sm:$0xff]  ;;  %v174_v6 = vld [vmem:[%s158_s14 + $0x10] sm:$0xff] }
  0x10   : > { %820 = vmatpush3.msra.mxu0 %v179_v0  ;;  %835 = vmatprep.mubr.msk.f32.mxu0 %vm180_vm0, %v164_v3  ;;  %v176_v4 = vld [vmem:[%s158_s14 + $0x20] sm:$0xff]  ;;  %v173_v7 = vld [vmem:[%s158_s14 + $0x8] sm:$0xff]  ;;  %v166_v10 = vld [vmem:[%s955_s17 + $0x10] sm:$0xff] }
  0x11   : > { %821 = vmatprep.subr.mxu0 %v178_v1  ;;  %v172_v8 = vld [vmem:[%s158_s14] sm:$0xff]  ;;  %v165_v9 = vld [vmem:[%s955_s17 + $0x8] sm:$0xff]  ;;  %v167_v11 = vld [vmem:[%s955_s17 + $0x18] sm:$0xff] }
  0x12   : > { %822 = vmatpush3.msra.mxu0 %v178_v1  ;;  %v168_v12 = vld [vmem:[%s955_s17 + $0x20] sm:$0xff]  ;;  %v169_v13 = vld [vmem:[%s955_s17 + $0x28] sm:$0xff]  ;;  %v170_v14 = vld [vmem:[%s955_s17 + $0x30] sm:$0xff] }
  0x13   : > { %823 = vmatprep.subr.mxu0 %v177_v2  ;;  %v171_v15 = vld [vmem:[%s955_s17 + $0x38] sm:$0xff] }
  0x14   : > { %824 = vmatpush3.msra.mxu0 %v177_v2 }
  0x15   : > { %825 = vmatprep.subr.mxu0 %v176_v4 }
  0x16   : > { %826 = vmatpush3.msra.mxu0 %v176_v4 }
  0x17   : > { %827 = vmatprep.subr.mxu0 %v175_v5 }
  0x18   : > { %828 = vmatpush3.msra.mxu0 %v175_v5  ;;  %v573_v5 = vlaneseq }
  0x19   : > { %829 = vmatprep.subr.mxu0 %v174_v6 }
  0x1a   : > { %830 = vmatpush3.msra.mxu0 %v174_v6  ;;  %v989_v6 = vshrl.u32 %v573_v5, 7 }
  0x1b   : > { %831 = vmatprep.subr.mxu0 %v173_v7 }
  0x1c   : > { %832 = vmatpush3.msra.mxu0 %v173_v7  ;;  %v575_v7 = vadd.s32 8, %v989_v6 }
  0x1d   : > { %833 = vmatprep.subr.mxu0 %v172_v8 }
  0x1e   : > { %834 = vmatpush3.msra.mxu0 %v172_v8  ;;  %v992_v8 = vand.u32 127, %v573_v5  ;;  %v586_v5 = vadd.s32 96, %v989_v6 }
  0x1f   : > { %836 = vmatmul.mubr.msk.f32.vlgmr.msra.gmra.mxu0 %vm180_vm0, %v165_v9 }
  0x20   : > { %838 = vmatprep.mubr.msk.f32.mxu0 %vm180_vm0, %v166_v10  ;;  %vm593_vm1 = vcmp.eq.s32.totalorder %v575_v7, %v992_v8  ;;  %vm592_vm2 = vcmp.eq.s32.totalorder %v989_v6, %v992_v8  ;;  %vm604_vm14 = vcmp.eq.s32.totalorder %v586_v5, %v992_v8 }
  0x23   : > { %839 = vmatmul.mubr.msk.f32.gmra.mxu0 %vm180_vm0, %v167_v11  ;;  %v922_v11 = vmov 0.0  }
  0x24   : > { %841 = vmatprep.mubr.msk.f32.mxu0 %vm180_vm0, %v168_v12  ;;  %v609_v12 = vsel %vm593_vm1, 1e-05, %v922_v11 }
  0x27   : > { %842 = vmatmul.mubr.msk.f32.gmra.mxu0 %vm180_vm0, %v169_v13 }
  0x28   : > { %844 = vmatprep.mubr.msk.f32.mxu0 %vm180_vm0, %v170_v14  ;;  %v577_v14 = vadd.s32 24, %v989_v6 }
  0x2a   : > { %vm595_vm3 = vcmp.eq.s32.totalorder %v577_v14, %v992_v8  ;;  %v589_v14 = vadd.s32 120, %v989_v6 }
  0x2b   : > { %845 = vmatmul.mubr.msk.f32.gmra.mxu0 %vm180_vm0, %v171_v15 }
  0x2c   : > { %vm607_vm15 = vcmp.eq.s32.totalorder %v589_v14, %v992_v8 }
  0xdf   : > { %v837_v16 = vpop.f32.mrf.mxu0 }
  0xe0   : > { %v536_v21 = vmul.f32 %v837_v16, %v837_v16 }
  0xe1   : > { %v271_v17 = vpop.f32.mrf.mxu0 }
  0xe2   : > { %310 = vxpose.xlu0.b32.start [1/8] (short) %v271_v17, 128  ;;  %v535_v18 = vmul.f32 %v271_v17, %v271_v17 }
  0xe3   : > { %v840_v19 = vpop.f32.mrf.mxu0 }
  0xe4   : > { %543 = vadd.xlane.f32.xlu1 %v535_v18  ;;  %v538_v27 = vmul.f32 %v840_v19, %v840_v19 }
  0xe5   : > { %v281_v20 = vpop.f32.mrf.mxu0 }
  0xe6   : > { %311 = vxpose.xlu0.b32.cont [2/8] (short) %v837_v16, 128  ;;  %v537_v24 = vmul.f32 %v281_v20, %v281_v20 }
  0xe7   : > { %v843_v22 = vpop.f32.mrf.mxu0 }
  0xe8   : > { %545 = vadd.xlane.f32.xlu1 %v536_v21  ;;  %v540_v29 = vmul.f32 %v843_v22, %v843_v22 }
  0xe9   : > { %v291_v23 = vpop.f32.mrf.mxu0 }
  0xea   : > { %312 = vxpose.xlu0.b32.cont [3/8] (short) %v281_v20, 128  ;;  %v539_v28 = vmul.f32 %v291_v23, %v291_v23 }
  0xeb   : > { %v846_v25 = vpop.f32.mrf.mxu0 }
  0xec   : > { %547 = vadd.xlane.f32.xlu1 %v537_v24  ;;  %847 = vmatprep.subr.mxu0 %v846_v25  ;;  %v542_v31 = vmul.f32 %v846_v25, %v846_v25  ;;  %v579_v24 = vadd.s32 40, %v989_v6 }
  0xed   : > { %887 = vmatprep.subr.mxu1 %v846_v25  ;;  %v301_v26 = vpop.f32.mrf.mxu0  ;;  %848 = vmatpush3.msra.mxu0 %v846_v25 }
  0xee   : > { %895 = vmatpush3.msra.mxu1 %v846_v25  ;;  %313 = vxpose.xlu0.b32.cont [4/8] (short) %v840_v19, 128  ;;  %v541_v30 = vmul.f32 %v301_v26, %v301_v26  ;;  %vm597_vm5 = vcmp.eq.s32.totalorder %v579_v24, %v992_v8 }
  0xef   : > { %849 = vmatprep.subr.mxu0 %v301_v26  ;;  %888 = vmatprep.subr.mxu1 %v301_v26 }
  0xf0   : > { %850 = vmatpush3.msra.mxu0 %v301_v26  ;;  %896 = vmatpush3.msra.mxu1 %v301_v26 }
  0xf1   : > { %549 = vadd.xlane.f32.xlu1 %v538_v27  ;;  %851 = vmatprep.subr.mxu0 %v843_v22 }
  0xf2   : > { %889 = vmatprep.subr.mxu1 %v843_v22  ;;  %852 = vmatpush3.msra.mxu0 %v843_v22 }
  0xf3   : > { %897 = vmatpush3.msra.mxu1 %v843_v22  ;;  %314 = vxpose.xlu0.b32.cont [5/8] (short) %v291_v23, 128 }
  0xf4   : > { %853 = vmatprep.subr.mxu0 %v291_v23  ;;  %890 = vmatprep.subr.mxu1 %v291_v23 }
  0xf5   : > { %854 = vmatpush3.msra.mxu0 %v291_v23  ;;  %898 = vmatpush3.msra.mxu1 %v291_v23 }
  0xf6   : > { %551 = vadd.xlane.f32.xlu1 %v539_v28  ;;  %855 = vmatprep.subr.mxu0 %v840_v19 }
  0xf7   : > { %891 = vmatprep.subr.mxu1 %v840_v19  ;;  %856 = vmatpush3.msra.mxu0 %v840_v19 }
  0xf8   : > { %899 = vmatpush3.msra.mxu1 %v840_v19  ;;  %315 = vxpose.xlu0.b32.cont [6/8] (short) %v843_v22, 128  ;;  %v576_v19 = vadd.s32 16, %v989_v6  ;;  %v611_v22 = vsel %vm595_vm3, 1e-05, %v922_v11 }
  0xf9   : > { %857 = vmatprep.subr.mxu0 %v281_v20  ;;  %892 = vmatprep.subr.mxu1 %v281_v20 }
  0xfa   : > { %858 = vmatpush3.msra.mxu0 %v281_v20  ;;  %900 = vmatpush3.msra.mxu1 %v281_v20  ;;  %vm594_vm4 = vcmp.eq.s32.totalorder %v576_v19, %v992_v8  ;;  %v588_v19 = vadd.s32 112, %v989_v6 }
  0xfb   : > { %553 = vadd.xlane.f32.xlu1 %v540_v29  ;;  %859 = vmatprep.subr.mxu0 %v837_v16  ;;  %v578_v29 = vadd.s32 32, %v989_v6 }
  0xfc   : > { %893 = vmatprep.subr.mxu1 %v837_v16  ;;  %860 = vmatpush3.msra.mxu0 %v837_v16 }
  0xfd   : > { %901 = vmatpush3.msra.mxu1 %v837_v16  ;;  %316 = vxpose.xlu0.b32.cont [7/8] (short) %v301_v26, 128  ;;  %v608_v16 = vsel %vm592_vm2, 1e-05, %v922_v11  ;;  %v610_v26 = vsel %vm594_vm4, 1e-05, %v922_v11  ;;  %vm596_vm6 = vcmp.eq.s32.totalorder %v578_v29, %v992_v8 }
  0xfe   : > { %861 = vmatprep.subr.mxu0 %v271_v17  ;;  %894 = vmatprep.subr.mxu1 %v271_v17 }
  0xff   : > { %862 = vmatpush3.msra.mxu0 %v271_v17  ;;  %902 = vmatpush3.msra.mxu1 %v271_v17 }
 0x100   : > { %555 = vadd.xlane.f32.xlu1 %v541_v30 }
 0x101   : > { %317 = vxpose.xlu0.b32.end [8/8] (short) %v846_v25, 128 }
 0x104   : > { %557 = vadd.xlane.f32.xlu1 %v542_v31 }
 0x161   : > { %v326_v32 = vpop.trf.xlu0 }
 0x162   : > { %863 = vmatprep.mubr.msk.f32.mxu0 %vm180_vm0, %v326_v32  ;;  %v613_v32 = vsel %vm597_vm5, 1e-05, %v922_v11 }
 0x165   : > { %v327_v33 = vpop.trf.xlu0 }
 0x166   : > { %864 = vmatmul.mubr.msk.f32.vlgmr.msra.gmra.mxu0 %vm180_vm0, %v327_v33 }
 0x169   : > { %v328_v34 = vpop.trf.xlu0 }
 0x16a   : > { %866 = vmatprep.mubr.msk.f32.mxu0 %vm180_vm0, %v328_v34  ;;  %v581_v34 = vadd.s32 56, %v989_v6 }
 0x16c   : > { %vm599_vm7 = vcmp.eq.s32.totalorder %v581_v34, %v992_v8 }
 0x16d   : > { %v329_v35 = vpop.trf.xlu0  ;;  %v544_v48 = vpop.xlane.xlu1 %543 }
 0x16e   : > { %867 = vmatmul.mubr.msk.f32.gmra.mxu0 %vm180_vm0, %v329_v35 }
 0x171   : > { %v330_v36 = vpop.trf.xlu0  ;;  %v546_v49 = vpop.xlane.xlu1 %545 }
 0x172   : > { %869 = vmatprep.mubr.msk.f32.mxu1 %vm180_vm0, %v330_v36  ;;  %v559_v54 = vadd.f32 %v546_v49, %v544_v48  ;;  %v612_v36 = vsel %vm596_vm6, 1e-05, %v922_v11  ;;  %v582_v49 = vadd.s32 64, %v989_v6 }
 0x174   : > { %vm600_vm10 = vcmp.eq.s32.totalorder %v582_v49, %v992_v8 }
 0x175   : > { %v331_v37 = vpop.trf.xlu0  ;;  %v548_v50 = vpop.xlane.xlu1 %547 }
 0x176   : > { %870 = vmatmul.mubr.msk.f32.vlgmr.msra.gmra.mxu1 %vm180_vm0, %v331_v37  ;;  %v560_v55 = vadd.f32 %v559_v54, %v548_v50  ;;  %v585_v54 = vadd.s32 88, %v989_v6 }
 0x178   : > { %vm603_vm11 = vcmp.eq.s32.totalorder %v585_v54, %v992_v8 }
 0x179   : > { %v332_v38 = vpop.trf.xlu0 }
 0x17a   : > { %872 = vmatprep.mubr.msk.f32.mxu1 %vm180_vm0, %v332_v38  ;;  %v550_v51 = vpop.xlane.xlu1 %549 }
 0x17b   : > { %v561_v57 = vadd.f32 %v560_v55, %v550_v51 }
 0x17d   : > { %v333_v39 = vpop.trf.xlu0 }
 0x17e   : > { %873 = vmatmul.mubr.msk.f32.gmra.mxu1 %vm180_vm0, %v333_v39  ;;  %v580_v39 = vadd.s32 48, %v989_v6 }
 0x17f   : > { %v552_v52 = vpop.xlane.xlu1 %551 }
 0x180   : > { %v562_v58 = vadd.f32 %v561_v57, %v552_v52  ;;  %vm598_vm8 = vcmp.eq.s32.totalorder %v580_v39, %v992_v8 }
 0x181   : > { %v334_v40 = vpop.trf.xlu0 }
 0x182   : > { %875 = vmatprep.mubr.msk.f32.mxu1 %vm180_vm0, %v334_v40 }
 0x184   : > { %v554_v53 = vpop.xlane.xlu1 %553 }
 0x185   : > { %v335_v41 = vpop.trf.xlu0  ;;  %v563_v59 = vadd.f32 %v562_v58, %v554_v53 }
 0x186   : > { %876 = vmatmul.mubr.msk.f32.gmra.mxu1 %vm180_vm0, %v335_v41 }
 0x189   : > { %v336_v42 = vpop.trf.xlu0  ;;  %v556_v56 = vpop.xlane.xlu1 %555 }
 0x18a   : > { %878 = vmatprep.mubr.msk.f32.mxu1 %vm180_vm0, %v336_v42  ;;  %v564_v61 = vadd.f32 %v563_v59, %v556_v56  ;;  %v615_v42 = vsel %vm599_vm7, 1e-05, %v922_v11  ;;  %v616_v56 = vsel %vm600_vm10, 1e-05, %v922_v11  ;;  %v584_v59 = vadd.s32 80, %v989_v6 }
 0x18c   : > { %vm602_vm12 = vcmp.eq.s32.totalorder %v584_v59, %v992_v8 }
 0x18d   : > { %v337_v43 = vpop.trf.xlu0  ;;  %v558_v60 = vpop.xlane.xlu1 %557 }
 0x18e   : > { %879 = vmatmul.mubr.msk.f32.gmra.mxu1 %vm180_vm0, %v337_v43  ;;  %v565_v62 = vadd.f32 %v564_v61, %v558_v60 }
 0x190   : > { %v566_v63 = vrot.slane %v565_v62, 4 }
 0x191   : > { %v338_v44 = vpop.trf.xlu0 }
 0x192   : > { %881 = vmatprep.mubr.msk.f32.mxu1 %vm180_vm0, %v338_v44  ;;  %v567_v0 = vadd.f32 %v566_v63, %v565_v62  ;;  %v583_v44 = vadd.s32 72, %v989_v6  ;;  %v619_v62 = vsel %vm603_vm11, 1e-05, %v922_v11 }
 0x194   : > { %v568_v1 = vrot.slane %v567_v0, 2  ;;  %vm601_vm9 = vcmp.eq.s32.totalorder %v583_v44, %v992_v8 }
 0x195   : > { %v339_v45 = vpop.trf.xlu0  ;;  %v617_v52 = vsel %vm601_vm9, 1e-05, %v922_v11 }
 0x196   : > { %882 = vmatmul.mubr.msk.f32.gmra.mxu1 %vm180_vm0, %v339_v45  ;;  %v569_v2 = vadd.f32 %v568_v1, %v567_v0  ;;  %v587_v0 = vadd.s32 104, %v989_v6 }
 0x198   : > { %v570_v3 = vrot.slane %v569_v2, 1  ;;  %vm605_vm13 = vcmp.eq.s32.totalorder %v587_v0, %v992_v8 }
 0x199   : > { %v340_v46 = vpop.trf.xlu0 }
 0x19a   : > { %884 = vmatprep.mubr.msk.f32.mxu1 %vm180_vm0, %v340_v46  ;;  %v571_v4 = vadd.f32 %v570_v3, %v569_v2  ;;  %v614_v46 = vsel %vm598_vm8, 1e-05, %v922_v11  ;;  %v618_v2 = vsel %vm602_vm12, 1e-05, %v922_v11 }
 0x19c   : > { %912 = vrcp.f32 %v571_v4 }
 0x19d   : > { %v341_v47 = vpop.trf.xlu0 }
 0x19e   : > { %885 = vmatmul.mubr.msk.f32.gmra.mxu1 %vm180_vm0, %v341_v47  ;;  %vm606_vm0 = vcmp.eq.s32.totalorder %v588_v19, %v992_v8 }
 0x1a9   : > { %v998_v9 = vpop.eup %912 }
 0x226   : > { %v865_v10 = vpop.f32.mrf.mxu0 }
 0x227   : > { %v625_v13 = vmul.f32 %v998_v9, %v865_v10 }
 0x228   : > { %v456_v15 = vpop.f32.mrf.mxu0 }
 0x229   : > { %v641_v17 = vadd.f32 %v625_v13, %v609_v12  ;;  %v624_v18 = vmul.f32 %v998_v9, %v456_v15  ;;  %v621_v12 = vsel %vm605_vm13, 1e-05, %v922_v11 }
 0x22b   : > { %657 = vst [vmem:[%s1006_s21 + $0x8] sm:$0xff] %v641_v17  ;;  %v640_v20 = vadd.f32 %v624_v18, %v608_v16  ;;  %v620_v16 = vsel %vm604_vm14, 1e-05, %v922_v11 }
 0x22d   : > { %656 = vst [vmem:[%s1006_s21] sm:$0xff] %v640_v20 }
 0x22e   : > { %v868_v21 = vpop.f32.mrf.mxu0 }
 0x22f   : > { %v627_v23 = vmul.f32 %v998_v9, %v868_v21 }
 0x230   : > { %v466_v25 = vpop.f32.mrf.mxu0 }
 0x231   : > { %v643_v27 = vadd.f32 %v627_v23, %v611_v22  ;;  %v626_v28 = vmul.f32 %v998_v9, %v466_v25  ;;  %v623_v22 = vsel %vm607_vm15, 1e-05, %v922_v11  ;;  %v622_v25 = vsel %vm606_vm0, 1e-05, %v922_v11 }
 0x233   : > { %659 = vst [vmem:[%s1006_s21 + $0x18] sm:$0xff] %v643_v27  ;;  %v642_v30 = vadd.f32 %v626_v28, %v610_v26 }
 0x235   : > { %658 = vst [vmem:[%s1006_s21 + $0x10] sm:$0xff] %v642_v30 }
 0x236   : > { %v871_v31 = vpop.f32.mrf.mxu1 }
 0x237   : > { %v629_v33 = vmul.f32 %v998_v9, %v871_v31 }
 0x238   : > { %v476_v35 = vpop.f32.mrf.mxu1 }
 0x239   : > { %v645_v37 = vadd.f32 %v629_v33, %v613_v32  ;;  %v628_v38 = vmul.f32 %v998_v9, %v476_v35 }
 0x23b   : > { %661 = vst [vmem:[%s1006_s21 + $0x28] sm:$0xff] %v645_v37  ;;  %v644_v40 = vadd.f32 %v628_v38, %v612_v36 }
 0x23d   : > { %660 = vst [vmem:[%s1006_s21 + $0x20] sm:$0xff] %v644_v40 }
 0x23e   : > { %v874_v41 = vpop.f32.mrf.mxu1 }
 0x23f   : > { %v631_v43 = vmul.f32 %v998_v9, %v874_v41 }
 0x240   : > { %v486_v45 = vpop.f32.mrf.mxu1 }
 0x241   : > { %v647_v47 = vadd.f32 %v631_v43, %v615_v42  ;;  %v630_v48 = vmul.f32 %v998_v9, %v486_v45 }
 0x243   : > { %663 = vst [vmem:[%s1006_s21 + $0x38] sm:$0xff] %v647_v47  ;;  %v646_v50 = vadd.f32 %v630_v48, %v614_v46 }
 0x245   : > { %662 = vst [vmem:[%s1006_s21 + $0x30] sm:$0xff] %v646_v50 }
 0x246   : > { %v877_v51 = vpop.f32.mrf.mxu1 }
 0x247   : > { %v633_v53 = vmul.f32 %v998_v9, %v877_v51 }
 0x248   : > { %v496_v55 = vpop.f32.mrf.mxu1 }
 0x249   : > { %v649_v57 = vadd.f32 %v633_v53, %v617_v52  ;;  %v632_v58 = vmul.f32 %v998_v9, %v496_v55 }
 0x24b   : > { %665 = vst [vmem:[%s1006_s21 + $0x48] sm:$0xff] %v649_v57  ;;  %v648_v60 = vadd.f32 %v632_v58, %v616_v56 }
 0x24d   : > { %664 = vst [vmem:[%s1006_s21 + $0x40] sm:$0xff] %v648_v60 }
 0x24e   : > { %v880_v61 = vpop.f32.mrf.mxu1 }
 0x24f   : > { %v635_v63 = vmul.f32 %v998_v9, %v880_v61 }
 0x250   : > { %v506_v1 = vpop.f32.mrf.mxu1 }
 0x251   : > { %v651_v3 = vadd.f32 %v635_v63, %v619_v62  ;;  %v634_v4 = vmul.f32 %v998_v9, %v506_v1 }
 0x253   : > { %667 = vst [vmem:[%s1006_s21 + $0x58] sm:$0xff] %v651_v3  ;;  %v650_v7 = vadd.f32 %v634_v4, %v618_v2 }
 0x255   : > { %666 = vst [vmem:[%s1006_s21 + $0x50] sm:$0xff] %v650_v7 }
 0x256   : > { %v883_v10 = vpop.f32.mrf.mxu1 }
 0x257   : > { %v637_v13 = vmul.f32 %v998_v9, %v883_v10 }
 0x258   : > { %v516_v15 = vpop.f32.mrf.mxu1 }
 0x259   : > { %v653_v17 = vadd.f32 %v637_v13, %v621_v12  ;;  %v636_v18 = vmul.f32 %v998_v9, %v516_v15 }
 0x25b   : > { %669 = vst [vmem:[%s1006_s21 + $0x68] sm:$0xff] %v653_v17  ;;  %v652_v20 = vadd.f32 %v636_v18, %v620_v16 }
 0x25d   : > { %668 = vst [vmem:[%s1006_s21 + $0x60] sm:$0xff] %v652_v20 }
 0x25e   : > { %v886_v21 = vpop.f32.mrf.mxu1 }
 0x25f   : > { %v639_v23 = vmul.f32 %v998_v9, %v886_v21 }
 0x260   : > { %v526_v24 = vpop.f32.mrf.mxu1 }
 0x261   : > { %v655_v26 = vadd.f32 %v639_v23, %v623_v22  ;;  %v638_v27 = vmul.f32 %v998_v9, %v526_v24 }
 0x263   : > { %671 = vst [vmem:[%s1006_s21 + $0x78] sm:$0xff] %v655_v26  ;;  %v654_v6 = vadd.f32 %v638_v27, %v622_v25 }
 0x265   : > { %670 = vst [vmem:[%s1006_s21 + $0x70] sm:$0xff] %v654_v6 }
 0x266 PF: > { %s12_s9 = sadd.s32 1, %s920_s9  }
 0x267   : > { %p9_p4 = scmp.ge.s32.totalorder %s12_s9, 4  }
 0x269   :  { %11 = sbr.rel (!%p9_p4) target bundleno = 1 (0x1), region = 61 }

// kernel: embedding_spd_forward.3
= control target key start
LH: loop header
LB: loop body
LE: loop exit
PB: predicated region body
PF: predicated region fallthrough
CT: control target
= control target key end

     0   :  { %s394_s1 = inlined_call_operand.vmem [shape: f32[128,128], index: 1, kind: input, shape index: {}]   ;;  %s395_s0 = inlined_call_operand.vmem [shape: f32[78,128], index: 0, kind: input, shape index: {}]   ;;  %s396_s2 = inlined_call_operand.vmem [shape: f32[78,128], index: 2, kind: output, shape index: {}]  }
   0x1   :  { %v36_v0 = vld [vmem:[%s394_s1 + $0x78] sm:$0xff]  ;;  %v35_v1 = vld [vmem:[%s394_s1 + $0x70] sm:$0xff]  ;;  %v34_v2 = vld [vmem:[%s394_s1 + $0x68] sm:$0xff] }
   0x2   :  { %192 = vmatprep.subr.mxu0 %v36_v0  ;;  %239 = vmatprep.subr.mxu1 %v36_v0  ;;  %v33_v3 = vld [vmem:[%s394_s1 + $0x60] sm:$0xff]  ;;  %v32_v4 = vld [vmem:[%s394_s1 + $0x58] sm:$0xff]  ;;  %v31_v5 = vld [vmem:[%s394_s1 + $0x50] sm:$0xff] }
   0x3   :  { %193 = vmatpush3.msra.mxu0 %v36_v0  ;;  %255 = vmatpush3.msra.mxu1 %v36_v0  ;;  %v30_v6 = vld [vmem:[%s394_s1 + $0x48] sm:$0xff]  ;;  %v29_v7 = vld [vmem:[%s394_s1 + $0x40] sm:$0xff]  ;;  %v28_v8 = vld [vmem:[%s394_s1 + $0x38] sm:$0xff] }
   0x4   :  { %194 = vmatprep.subr.mxu0 %v35_v1  ;;  %240 = vmatprep.subr.mxu1 %v35_v1  ;;  %v27_v9 = vld [vmem:[%s394_s1 + $0x30] sm:$0xff]  ;;  %v26_v10 = vld [vmem:[%s394_s1 + $0x28] sm:$0xff]  ;;  %v25_v11 = vld [vmem:[%s394_s1 + $0x20] sm:$0xff] }
   0x5   :  { %195 = vmatpush3.msra.mxu0 %v35_v1  ;;  %256 = vmatpush3.msra.mxu1 %v35_v1  ;;  %v24_v12 = vld [vmem:[%s394_s1 + $0x18] sm:$0xff]  ;;  %v23_v13 = vld [vmem:[%s394_s1 + $0x10] sm:$0xff]  ;;  %v22_v14 = vld [vmem:[%s394_s1 + $0x8] sm:$0xff] }
   0x6   :  { %196 = vmatprep.subr.mxu0 %v34_v2  ;;  %241 = vmatprep.subr.mxu1 %v34_v2  ;;  %v21_v15 = vld [vmem:[%s394_s1] sm:$0xff]  ;;  %v12_v17 = vld [vmem:[%s395_s0 + $0x8] sm:$0xff]  ;;  %v17_v18 = vld [vmem:[%s395_s0 + $0x30] sm:$0xff] }
   0x7   :  { %197 = vmatpush3.msra.mxu0 %v34_v2  ;;  %257 = vmatpush3.msra.mxu1 %v34_v2  ;;  %v11_v16 = vld [vmem:[%s395_s0] sm:$0xff]  ;;  %v13_v19 = vld [vmem:[%s395_s0 + $0x10] sm:$0xff]  ;;  %v18_v20 = vld [vmem:[%s395_s0 + $0x38] sm:$0xff] }
   0x8   :  { %198 = vmatprep.subr.mxu0 %v33_v3  ;;  %242 = vmatprep.subr.mxu1 %v33_v3  ;;  %v19_v21 = vld [vmem:[%s395_s0 + $0x40] sm:$0xff]  ;;  %v14_v22 = vld [vmem:[%s395_s0 + $0x18] sm:$0xff]  ;;  %v20_v24 = vld [vmem:[%s395_s0 + $0x48] sm:$0x3f] }
   0x9   :  { %199 = vmatpush3.msra.mxu0 %v33_v3  ;;  %258 = vmatpush3.msra.mxu1 %v33_v3  ;;  %v15_v23 = vld [vmem:[%s395_s0 + $0x20] sm:$0xff]  ;;  %v16_v25 = vld [vmem:[%s395_s0 + $0x28] sm:$0xff] }
   0xa   :  { %200 = vmatprep.subr.mxu0 %v32_v4  ;;  %243 = vmatprep.subr.mxu1 %v32_v4 }
   0xb   :  { %201 = vmatpush3.msra.mxu0 %v32_v4  ;;  %259 = vmatpush3.msra.mxu1 %v32_v4 }
   0xc   :  { %202 = vmatprep.subr.mxu0 %v31_v5  ;;  %244 = vmatprep.subr.mxu1 %v31_v5 }
   0xd   :  { %203 = vmatpush3.msra.mxu0 %v31_v5  ;;  %260 = vmatpush3.msra.mxu1 %v31_v5 }
   0xe   :  { %204 = vmatprep.subr.mxu0 %v30_v6  ;;  %245 = vmatprep.subr.mxu1 %v30_v6 }
   0xf   :  { %205 = vmatpush3.msra.mxu0 %v30_v6  ;;  %261 = vmatpush3.msra.mxu1 %v30_v6 }
  0x10   :  { %206 = vmatprep.subr.mxu0 %v29_v7  ;;  %246 = vmatprep.subr.mxu1 %v29_v7 }
  0x11   :  { %207 = vmatpush3.msra.mxu0 %v29_v7  ;;  %262 = vmatpush3.msra.mxu1 %v29_v7 }
  0x12   :  { %208 = vmatprep.subr.mxu0 %v28_v8  ;;  %247 = vmatprep.subr.mxu1 %v28_v8 }
  0x13   :  { %209 = vmatpush3.msra.mxu0 %v28_v8  ;;  %263 = vmatpush3.msra.mxu1 %v28_v8 }
  0x14   :  { %210 = vmatprep.subr.mxu0 %v27_v9  ;;  %248 = vmatprep.subr.mxu1 %v27_v9 }
  0x15   :  { %211 = vmatpush3.msra.mxu0 %v27_v9  ;;  %264 = vmatpush3.msra.mxu1 %v27_v9 }
  0x16   :  { %212 = vmatprep.subr.mxu0 %v26_v10  ;;  %249 = vmatprep.subr.mxu1 %v26_v10 }
  0x17   :  { %213 = vmatpush3.msra.mxu0 %v26_v10  ;;  %265 = vmatpush3.msra.mxu1 %v26_v10 }
  0x18   :  { %214 = vmatprep.subr.mxu0 %v25_v11  ;;  %250 = vmatprep.subr.mxu1 %v25_v11 }
  0x19   :  { %215 = vmatpush3.msra.mxu0 %v25_v11  ;;  %266 = vmatpush3.msra.mxu1 %v25_v11 }
  0x1a   :  { %216 = vmatprep.subr.mxu0 %v24_v12  ;;  %251 = vmatprep.subr.mxu1 %v24_v12 }
  0x1b   :  { %217 = vmatpush3.msra.mxu0 %v24_v12  ;;  %267 = vmatpush3.msra.mxu1 %v24_v12 }
  0x1c   :  { %218 = vmatprep.subr.mxu0 %v23_v13  ;;  %252 = vmatprep.subr.mxu1 %v23_v13 }
  0x1d   :  { %219 = vmatpush3.msra.mxu0 %v23_v13  ;;  %268 = vmatpush3.msra.mxu1 %v23_v13 }
  0x1e   :  { %220 = vmatprep.subr.mxu0 %v22_v14  ;;  %253 = vmatprep.subr.mxu1 %v22_v14 }
  0x1f   :  { %221 = vmatpush3.msra.mxu0 %v22_v14  ;;  %269 = vmatpush3.msra.mxu1 %v22_v14 }
  0x20   :  { %222 = vmatprep.subr.mxu0 %v21_v15  ;;  %224 = vmatprep.mubr.f32.mxu0 %v11_v16 }
  0x21   :  { %223 = vmatpush3.msra.mxu0 %v21_v15  ;;  %254 = vmatprep.subr.mxu1 %v21_v15 }
  0x22   :  { %225 = vmatmul.mubr.f32.vlgmr.msra.gmra.mxu0 %v12_v17  ;;  %270 = vmatpush3.msra.mxu1 %v21_v15 }
  0x23   :  { %233 = vmatprep.mubr.f32.mxu1 %v17_v18  ;;  %227 = vmatprep.mubr.f32.mxu0 %v13_v19 }
  0x24   :  { %234 = vmatmul.mubr.f32.vlgmr.msra.gmra.mxu1 %v18_v20 }
  0x25   :  { %236 = vmatprep.mubr.f32.mxu1 %v19_v21 }
  0x26   :  { %228 = vmatmul.mubr.f32.gmra.mxu0 %v14_v22 }
  0x27   :  { %230 = vmatprep.mubr.f32.mxu0 %v15_v23 }
  0x28   :  { %237 = vmatmul.mubr.f32.gmra.mxu1 %v20_v24 }
  0x2a   :  { %231 = vmatmul.mubr.f32.gmra.mxu0 %v16_v25 }
  0xe2   :  { %v226_v26 = vpop.f32.mrf.mxu0 }
  0xe3   :  { %153 = vst [vmem:[%s396_s2 + $0x8] sm:$0xff] %v226_v26 }
  0xe4   :  { %v103_v27 = vpop.f32.mrf.mxu0  ;;  %v235_v28 = vpop.f32.mrf.mxu1 }
  0xe5   :  { %152 = vst [vmem:[%s396_s2] sm:$0xff] %v103_v27  ;;  %159 = vst [vmem:[%s396_s2 + $0x38] sm:$0xff] %v235_v28 }
  0xe6   :  { %v229_v29 = vpop.f32.mrf.mxu0  ;;  %v133_v30 = vpop.f32.mrf.mxu1 }
  0xe7   :  { %155 = vst [vmem:[%s396_s2 + $0x18] sm:$0xff] %v229_v29  ;;  %158 = vst [vmem:[%s396_s2 + $0x30] sm:$0xff] %v133_v30 }
  0xe8   :  { %v113_v31 = vpop.f32.mrf.mxu0  ;;  %v238_v32 = vpop.f32.mrf.mxu1 }
  0xe9   :  { %154 = vst [vmem:[%s396_s2 + $0x10] sm:$0xff] %v113_v31  ;;  %161 = vst [vmem:[%s396_s2 + $0x48] sm:$0x3f] %v238_v32 }
  0xea   :  { %v232_v33 = vpop.f32.mrf.mxu0  ;;  %v143_v34 = vpop.f32.mrf.mxu1 }
  0xeb   :  { %157 = vst [vmem:[%s396_s2 + $0x28] sm:$0xff] %v232_v33  ;;  %160 = vst [vmem:[%s396_s2 + $0x40] sm:$0xff] %v143_v34 }
  0xec   :  { %v123_v35 = vpop.f32.mrf.mxu0 }
  0xed   :  { %156 = vst [vmem:[%s396_s2 + $0x20] sm:$0xff] %v123_v35 }

</bundles_post_ra>
